<compile_context>
chip_gen: v5e
topology: v5e:2x2
jax: 0.10.0
libtpu: 0.0.40
codegen_flags: <defaults>
</compile_context>

<pallas_src>
import jax
import jax.numpy as jnp
from jax.experimental import pallas as pl
from jax.experimental.pallas import tpu as pltpu


# ---------------------------------------------------------------------------
# One-time parameter re-layout (hoisted out of the forward pass)
# ---------------------------------------------------------------------------
def prepare_params(raw_params, in_hw):
    (w1, b1), (w2, b2), (w3, b3), (w4, b4) = raw_params

    # conv1: GEMM matrix whose row order (ci, dh, dw) matches the feature order
    # produced by lax.conv_general_dilated_patches (channel-major, then kh, kw).
    w1m = jnp.transpose(w1, (1, 2, 3, 0)).reshape(-1, w1.shape[0]).astype(jnp.float32)

    # conv2/conv3: GEMM matrices whose row order (dh, dw, ci) matches the
    # in-kernel patch builder.
    def tap_major(w):
        return jnp.transpose(w, (2, 3, 1, 0)).reshape(-1, w.shape[0]).astype(jnp.float32)

    w2m = tap_major(w2)
    w3m = tap_major(w3)

    # conv4 (Cout == 1): (kh, kw, Cin) for the per-output-pixel window reduce.
    w4t = jnp.transpose(w4[0], (1, 2, 0)).astype(jnp.float32)

    # H/W-swap permutation over the flattened (h*W + w) pixel index; folds
    # v7/v8/v9 (permute, cat, permute) into a single in-kernel matmul.
    h_in, w_in = in_hw
    side = (h_in + 2 - 7) // 3 + 1
    assert side == (w_in + 2 - 7) // 3 + 1, "permute/cat requires square maps"
    m = side * side
    i = jnp.arange(m)
    src = (i % side) * side + (i // side)
    perm = (src[:, None] == jnp.arange(m)[None, :]).astype(jnp.float32)

    return (w1m, b1.reshape(1, -1).astype(jnp.float32),
            w2m, b2.reshape(1, -1).astype(jnp.float32),
            w3m, b3.reshape(1, -1).astype(jnp.float32),
            perm,
            w4t, b4.reshape(1, 1).astype(jnp.float32))


# ---------------------------------------------------------------------------
# Fully-fused forward pass (one pallas_call for the whole network)
# ---------------------------------------------------------------------------
def model_forward(x_nchw, prepared):
    (w1m, b1r, w2m, b2r, w3m, b3r, perm, w4t, b4r) = prepared

    n, c_img, h_img, w_img = x_nchw.shape
    c1 = b1r.shape[-1]                 # 32
    c2 = b2r.shape[-1]                 # 64
    c3 = b3r.shape[-1]                 # 128
    c4 = c3 + c2                       # 192 channels after the permute/cat
    k1 = w1m.shape[0]                  # c_img * 7 * 7

    s = (h_img + 2 - 7) // 3 + 1       # spatial side of v2/v4/v6 (8 for 26x26)
    assert s == (w_img + 2 - 7) // 3 + 1
    m = s * s
    s4 = (s + 2 - 5) // 2 + 1          # conv4 output side (k5, s2, p1) -> 3
    m4 = s4 * s4

    assert w1m.shape == (c_img * 49, c1)
    assert w2m.shape == (9 * c1, c2)
    assert w3m.shape == (9 * c2, c3)
    assert perm.shape == (m, m)
    assert w4t.shape == (5, 5, c4)

    # conv1's input is a kernel input, so its im2col patches are extracted with
    # ONE fused XLA op on the way in (NCHW in -> NHWC patches out); every other
    # layer's im2col happens inside the fused kernel on VMEM-resident data.
    patches = jax.lax.conv_general_dilated_patches(
        x_nchw.astype(jnp.float32),
        filter_shape=(7, 7),
        window_strides=(3, 3),
        padding=((1, 1), (1, 1)),
        dimension_numbers=("NCHW", "OIHW", "NHWC"),
        precision=jax.lax.Precision.HIGHEST)
    p1 = patches.reshape(n, m, k1)

    def kernel(p1_ref, w1_ref, b1_ref, w2_ref, b2_ref, w3_ref, b3_ref,
               perm_ref, w4_ref, b4_ref, o_ref,
               xpad2, pat2, xpad3, pat3, xpad4):
        f32 = jnp.float32
        hi = jax.lax.Precision.HIGHEST

        # ---- v1/v2: conv1 + relu as one im2col GEMM on the MXU ----
        v2 = jnp.maximum(
            jnp.dot(p1_ref[0], w1_ref[...], precision=hi,
                    preferred_element_type=f32) + b1_ref[...], 0.0)        # (m, c1)

        # ---- 3x3 / stride-1 / pad-1 conv + relu with IN-KERNEL im2col:
        #      copy the activation into a zero-padded VMEM buffer, assemble the
        #      (m, 9*cin) patch matrix with static slice copies, one MXU GEMM. ----
        def conv3x3_relu(prev, cin, xpad, pat, w_ref, b_ref):
            xpad[...] = jnp.zeros((s + 2, s + 2, cin), f32)
            for hh in range(s):
                xpad[1 + hh, 1:s + 1, :] = prev[hh * s:(hh + 1) * s, :]
            for oh in range(s):
                for dh in range(3):
                    row = xpad[oh + dh]                                    # (s+2, cin)
                    for dw in range(3):
                        t = dh * 3 + dw
                        pat[oh * s:(oh + 1) * s, t * cin:(t + 1) * cin] = (
                            row[dw:dw + s, :])
            out = jnp.dot(pat[...], w_ref[...], precision=hi,
                          preferred_element_type=f32)
            return jnp.maximum(out + b_ref[...], 0.0)

        v4 = conv3x3_relu(v2, c1, xpad2, pat2, w2_ref, b2_ref)             # (m, c2)
        # TODO(synk): original conv3 (stride=4, padding=0) makes v6 spatially
        # incompatible with v7 for every possible input; stride=1/padding=1 is
        # used so torch.cat([v6, v7], 1) is well defined (same fix as reference).
        v6 = conv3x3_relu(v4, c2, xpad3, pat3, w3_ref, b3_ref)             # (m, c3)

        # ---- v7/v8/v9: cat([swap_hw(v6), v4], channels), assembled directly into
        #      conv4's zero-padded VMEM input.  The H/W swap is one (m, m)
        #      permutation matmul, so no HBM shuffle ops remain. ----
        v6t = jnp.dot(perm_ref[...], v6, precision=hi, preferred_element_type=f32)
        xpad4[...] = jnp.zeros((s + 2, s + 2, c4), f32)
        for hh in range(s):
            xpad4[1 + hh, 1:s + 1, 0:c3] = v6t[hh * s:(hh + 1) * s, :]
            xpad4[1 + hh, 1:s + 1, c3:c4] = v4[hh * s:(hh + 1) * s, :]

        # ---- v10/v11: conv4 + relu (k=5, s=2, p=1, Cout=1).  Per-output-pixel
        #      contiguous (5, 5, c4) windows, VPU multiply + staged reductions;
        #      never materialises an (m4, 25*c4) patch matrix (bounded vregs). ----
        w4v = w4_ref[...]                                                   # (5, 5, c4)
        parts = []
        for oh in range(s4):
            for ow in range(s4):
                win = xpad4[2 * oh:2 * oh + 5, 2 * ow:2 * ow + 5, :]
                prod = win * w4v
                red = jnp.sum(jnp.sum(prod, axis=0), axis=0, keepdims=True)  # (1, c4)
                parts.append(red)
        partial = jnp.concatenate(parts, axis=0)                            # (m4, c4)
        out = jnp.sum(partial, axis=1, keepdims=True) + b4_ref[...]         # (m4, 1)
        o_ref[0] = jnp.maximum(out, 0.0)

    out9 = pl.pallas_call(
        kernel,
        out_shape=jax.ShapeDtypeStruct((n, m4, 1), jnp.float32),
        grid=(n,),
        in_specs=[
            pl.BlockSpec((1, m, k1), lambda i: (i, 0, 0)),      # conv1 patches
            pl.BlockSpec((k1, c1), lambda i: (0, 0)),           # w1 GEMM matrix
            pl.BlockSpec((1, c1), lambda i: (0, 0)),            # b1
            pl.BlockSpec((9 * c1, c2), lambda i: (0, 0)),       # w2 im2col matrix
            pl.BlockSpec((1, c2), lambda i: (0, 0)),            # b2
            pl.BlockSpec((9 * c2, c3), lambda i: (0, 0)),       # w3 im2col matrix
            pl.BlockSpec((1, c3), lambda i: (0, 0)),            # b3
            pl.BlockSpec((m, m), lambda i: (0, 0)),             # H/W-swap perm
            pl.BlockSpec((5, 5, c4), lambda i: (0, 0, 0)),      # w4
            pl.BlockSpec((1, 1), lambda i: (0, 0)),             # b4
        ],
        out_specs=pl.BlockSpec((1, m4, 1), lambda i: (i, 0, 0)),
        scratch_shapes=[
            pltpu.VMEM((s + 2, s + 2, c1), jnp.float32),        # conv2 padded input
            pltpu.VMEM((m, 9 * c1), jnp.float32),               # conv2 patches
            pltpu.VMEM((s + 2, s + 2, c2), jnp.float32),        # conv3 padded input
            pltpu.VMEM((m, 9 * c2), jnp.float32),               # conv3 patches
            pltpu.VMEM((s + 2, s + 2, c4), jnp.float32),        # conv4 padded input (v9)
        ],
        compiler_params=pltpu.CompilerParams(
            dimension_semantics=("parallel",),                  # batch across TCs (v7x)
            vmem_limit_bytes=32 * 1024 * 1024),                 # explicit VMEM budget
    )(p1, w1m, b1r, w2m, b2r, w3m, b3r, perm, w4t, b4r)

    # v11 in NCHW; Cout == 1, so this reshape is metadata-only.
    return out9.reshape(n, 1, s4, s4)


# ---------------------------------------------------------------------------
# Pure-JAX f32 reference of the same (fixed-up) op graph, NCHW like PyTorch.
# ---------------------------------------------------------------------------
def _reference_forward(x1, raw_params):
    (w1, b1), (w2, b2), (w3, b3), (w4, b4) = raw_params
    dn = ("NCHW", "OIHW", "NCHW")

    def conv_relu(x, w, b, stride, padding):
        y = jax.lax.conv_general_dilated(
            x, w, (stride, stride), ((padding, padding), (padding, padding)),
            dimension_numbers=dn, precision=jax.lax.Precision.HIGHEST)
        return jnp.maximum(y + b.reshape(1, -1, 1, 1), 0.0)

    v2 = conv_relu(x1, w1, b1, 3, 1)
    v4 = conv_relu(v2, w2, b2, 1, 1)
    v6 = conv_relu(v4, w3, b3, 1, 1)          # conv3 with the stride/pad fix
    v7 = jnp.transpose(v4, (0, 1, 3, 2))
    v8 = jnp.concatenate([v6, v7], axis=1)
    v9 = jnp.transpose(v8, (0, 1, 3, 2))
    return conv_relu(v9, w4, b4, 2, 1)


if __name__ == "__main__":
    key = jax.random.PRNGKey(0)
    ks = jax.random.split(key, 9)

    # Small input consistent with the module's conv arithmetic:
    # 26 -> conv1(k7,s3,p1) -> 8 -> conv2(k3,s1,p1) -> 8 -> conv3(fixed) -> 8
    # -> permute/cat (192ch) -> conv4(k5,s2,p1) -> 3
    x1 = jax.random.normal(ks[0], (1, 3, 26, 26), dtype=jnp.float32)

    w1 = jax.random.normal(ks[1], (32, 3, 7, 7), dtype=jnp.float32) * 0.05
    b1 = jax.random.normal(ks[2], (32,), dtype=jnp.float32) * 0.05
    w2 = jax.random.normal(ks[3], (64, 32, 3, 3), dtype=jnp.float32) * 0.05
    b2 = jax.random.normal(ks[4], (64,), dtype=jnp.float32) * 0.05
    w3 = jax.random.normal(ks[5], (128, 64, 3, 3), dtype=jnp.float32) * 0.05
    b3 = jax.random.normal(ks[6], (128,), dtype=jnp.float32) * 0.05
    # TODO(synk): original conv4 declares in_channels=256 but the cat yields
    # 128 + 64 = 192 channels; conv4 is instantiated with in_channels=192.
    w4 = jax.random.normal(ks[7], (1, 192, 5, 5), dtype=jnp.float32) * 0.05
    b4 = jax.random.normal(ks[8], (1,), dtype=jnp.float32) * 0.05

    raw_params = ((w1, b1), (w2, b2), (w3, b3), (w4, b4))
    prepared = prepare_params(raw_params, in_hw=(26, 26))   # one-time re-layout

    fwd = jax.jit(model_forward)
    out = jax.block_until_ready(fwd(x1, prepared))

    assert out.shape == (1, 1, 3, 3), out.shape
    assert out.dtype == jnp.float32

    # Tight correctness check (f32 end-to-end inside the kernel, so weight-layout
    # / ordering regressions are caught, per review feedback).
    ref = jax.block_until_ready(_reference_forward(x1, raw_params))
    max_err = float(jnp.max(jnp.abs(out - ref)))
    assert jnp.allclose(out, ref, rtol=1e-3, atol=1e-3), max_err

    print("KERNEL_OK")
</pallas_src>

<mosaic_0001>
module attributes {stable_mosaic.version = 11 : i64} {
  func.func @kernel(%arg0: i32, %arg1: memref<1x64x147xf32, #tpu.memory_space<vmem>>, %arg2: memref<147x32xf32, #tpu.memory_space<vmem>>, %arg3: memref<1x32xf32, #tpu.memory_space<vmem>>, %arg4: memref<288x64xf32, #tpu.memory_space<vmem>>, %arg5: memref<1x64xf32, #tpu.memory_space<vmem>>, %arg6: memref<576x128xf32, #tpu.memory_space<vmem>>, %arg7: memref<1x128xf32, #tpu.memory_space<vmem>>, %arg8: memref<64x64xf32, #tpu.memory_space<vmem>>, %arg9: memref<5x5x192xf32, #tpu.memory_space<vmem>>, %arg10: memref<1x1xf32, #tpu.memory_space<vmem>>, %arg11: memref<1x9x1xf32, #tpu.memory_space<vmem>>, %arg12: memref<10x10x32xf32, #tpu.memory_space<vmem>>, %arg13: memref<64x288xf32, #tpu.memory_space<vmem>>, %arg14: memref<10x10x64xf32, #tpu.memory_space<vmem>>, %arg15: memref<64x576xf32, #tpu.memory_space<vmem>>, %arg16: memref<10x10x192xf32, #tpu.memory_space<vmem>>) attributes {dimension_semantics = [#tpu.dimension_semantics<parallel>], iteration_bounds = array<i64: 1>, scalar_prefetch = 0 : i64, scratch_operands = 5 : i64, tpu.core_type = #tpu.core_type<tc>, window_params = [{transform_indices = @transform_0, window_bounds = array<i64: 1, 64, 147>}, {pipeline_mode = #tpu.pipeline_mode<synchronous>, transform_indices = @transform_1, window_bounds = array<i64: 147, 32>}, {pipeline_mode = #tpu.pipeline_mode<synchronous>, transform_indices = @transform_2, window_bounds = array<i64: 1, 32>}, {pipeline_mode = #tpu.pipeline_mode<synchronous>, transform_indices = @transform_3, window_bounds = array<i64: 288, 64>}, {pipeline_mode = #tpu.pipeline_mode<synchronous>, transform_indices = @transform_4, window_bounds = array<i64: 1, 64>}, {pipeline_mode = #tpu.pipeline_mode<synchronous>, transform_indices = @transform_5, window_bounds = array<i64: 576, 128>}, {pipeline_mode = #tpu.pipeline_mode<synchronous>, transform_indices = @transform_6, window_bounds = array<i64: 1, 128>}, {pipeline_mode = #tpu.pipeline_mode<synchronous>, transform_indices = @transform_7, window_bounds = array<i64: 64, 64>}, {pipeline_mode = #tpu.pipeline_mode<synchronous>, transform_indices = @transform_8, window_bounds = array<i64: 5, 5, 192>}, {pipeline_mode = #tpu.pipeline_mode<synchronous>, transform_indices = @transform_9, window_bounds = array<i64: 1, 1>}, {transform_indices = @transform_10, window_bounds = array<i64: 1, 9, 1>}]} {
    %c0 = arith.constant 0 : index
    %c0_0 = arith.constant 0 : index
    %c0_1 = arith.constant 0 : index
    %0 = vector.load %arg1[%c0, %c0_0, %c0_1] : memref<1x64x147xf32, #tpu.memory_space<vmem>>, vector<1x64x147xf32>
    %1 = vector.shape_cast %0 : vector<1x64x147xf32> to vector<64x147xf32>
    %c0_2 = arith.constant 0 : index
    %c0_3 = arith.constant 0 : index
    %2 = vector.load %arg2[%c0_2, %c0_3] : memref<147x32xf32, #tpu.memory_space<vmem>>, vector<147x32xf32>
    %cst = arith.constant dense<0.000000e+00> : vector<64x32xf32>
    %3 = tpu.matmul %1, %2, %cst {dimension_numbers = #tpu.dot_dimension_numbers<[1], [0], [0], [1], [0, 0, 1, 1], [], []>, precision = #tpu.contract_precision<fp32>} : vector<64x147xf32>, vector<147x32xf32>, vector<64x32xf32> -> vector<64x32xf32>
    %c0_4 = arith.constant 0 : index
    %c0_5 = arith.constant 0 : index
    %4 = vector.load %arg3[%c0_4, %c0_5] : memref<1x32xf32, #tpu.memory_space<vmem>>, vector<1x32xf32>
    %5 = vector.broadcast %4 : vector<1x32xf32> to vector<64x32xf32>
    %6 = arith.addf %3, %5 : vector<64x32xf32>
    %cst_6 = arith.constant 0.000000e+00 : f32
    %7 = vector.broadcast %cst_6 : f32 to vector<64x32xf32>
    %8 = arith.maximumf %6, %7 : vector<64x32xf32>
    %cst_7 = arith.constant 0.000000e+00 : f32
    %9 = vector.broadcast %cst_7 : f32 to vector<10x10x32xf32>
    %c0_8 = arith.constant 0 : index
    %c0_9 = arith.constant 0 : index
    %c0_10 = arith.constant 0 : index
    %10 = vector.load %arg12[%c0_8, %c0_9, %c0_10] : memref<10x10x32xf32, #tpu.memory_space<vmem>>, vector<10x10x32xf32>
    tpu.vector_store %arg12[%c0_8, %c0_9, %c0_10], %9 {strides = array<i32>} : memref<10x10x32xf32, #tpu.memory_space<vmem>>, vector<10x10x32xf32>,
    %11 = vector.extract_strided_slice %8 {offsets = [0, 0], sizes = [8, 32], strides = [1, 1]} : vector<64x32xf32> to vector<8x32xf32>
    %c1 = arith.constant 1 : index
    %c1_11 = arith.constant 1 : index
    %c0_12 = arith.constant 0 : index
    %12 = vector.load %arg12[%c1, %c1_11, %c0_12] : memref<10x10x32xf32, #tpu.memory_space<vmem>>, vector<1x8x32xf32>
    %13 = vector.shape_cast %12 : vector<1x8x32xf32> to vector<8x32xf32>
    %14 = vector.shape_cast %11 : vector<8x32xf32> to vector<1x8x32xf32>
    tpu.vector_store %arg12[%c1, %c1_11, %c0_12], %14 {strides = array<i32>} : memref<10x10x32xf32, #tpu.memory_space<vmem>>, vector<1x8x32xf32>,
    %15 = vector.extract_strided_slice %8 {offsets = [8, 0], sizes = [8, 32], strides = [1, 1]} : vector<64x32xf32> to vector<8x32xf32>
    %c2 = arith.constant 2 : index
    %c1_13 = arith.constant 1 : index
    %c0_14 = arith.constant 0 : index
    %16 = vector.load %arg12[%c2, %c1_13, %c0_14] : memref<10x10x32xf32, #tpu.memory_space<vmem>>, vector<1x8x32xf32>
    %17 = vector.shape_cast %16 : vector<1x8x32xf32> to vector<8x32xf32>
    %18 = vector.shape_cast %15 : vector<8x32xf32> to vector<1x8x32xf32>
    tpu.vector_store %arg12[%c2, %c1_13, %c0_14], %18 {strides = array<i32>} : memref<10x10x32xf32, #tpu.memory_space<vmem>>, vector<1x8x32xf32>,
    %19 = vector.extract_strided_slice %8 {offsets = [16, 0], sizes = [8, 32], strides = [1, 1]} : vector<64x32xf32> to vector<8x32xf32>
    %c3 = arith.constant 3 : index
    %c1_15 = arith.constant 1 : index
    %c0_16 = arith.constant 0 : index
    %20 = vector.load %arg12[%c3, %c1_15, %c0_16] : memref<10x10x32xf32, #tpu.memory_space<vmem>>, vector<1x8x32xf32>
    %21 = vector.shape_cast %20 : vector<1x8x32xf32> to vector<8x32xf32>
    %22 = vector.shape_cast %19 : vector<8x32xf32> to vector<1x8x32xf32>
    tpu.vector_store %arg12[%c3, %c1_15, %c0_16], %22 {strides = array<i32>} : memref<10x10x32xf32, #tpu.memory_space<vmem>>, vector<1x8x32xf32>,
    %23 = vector.extract_strided_slice %8 {offsets = [24, 0], sizes = [8, 32], strides = [1, 1]} : vector<64x32xf32> to vector<8x32xf32>
    %c4 = arith.constant 4 : index
    %c1_17 = arith.constant 1 : index
    %c0_18 = arith.constant 0 : index
    %24 = vector.load %arg12[%c4, %c1_17, %c0_18] : memref<10x10x32xf32, #tpu.memory_space<vmem>>, vector<1x8x32xf32>
    %25 = vector.shape_cast %24 : vector<1x8x32xf32> to vector<8x32xf32>
    %26 = vector.shape_cast %23 : vector<8x32xf32> to vector<1x8x32xf32>
    tpu.vector_store %arg12[%c4, %c1_17, %c0_18], %26 {strides = array<i32>} : memref<10x10x32xf32, #tpu.memory_space<vmem>>, vector<1x8x32xf32>,
    %27 = vector.extract_strided_slice %8 {offsets = [32, 0], sizes = [8, 32], strides = [1, 1]} : vector<64x32xf32> to vector<8x32xf32>
    %c5 = arith.constant 5 : index
    %c1_19 = arith.constant 1 : index
    %c0_20 = arith.constant 0 : index
    %28 = vector.load %arg12[%c5, %c1_19, %c0_20] : memref<10x10x32xf32, #tpu.memory_space<vmem>>, vector<1x8x32xf32>
    %29 = vector.shape_cast %28 : vector<1x8x32xf32> to vector<8x32xf32>
    %30 = vector.shape_cast %27 : vector<8x32xf32> to vector<1x8x32xf32>
    tpu.vector_store %arg12[%c5, %c1_19, %c0_20], %30 {strides = array<i32>} : memref<10x10x32xf32, #tpu.memory_space<vmem>>, vector<1x8x32xf32>,
    %31 = vector.extract_strided_slice %8 {offsets = [40, 0], sizes = [8, 32], strides = [1, 1]} : vector<64x32xf32> to vector<8x32xf32>
    %c6 = arith.constant 6 : index
    %c1_21 = arith.constant 1 : index
    %c0_22 = arith.constant 0 : index
    %32 = vector.load %arg12[%c6, %c1_21, %c0_22] : memref<10x10x32xf32, #tpu.memory_space<vmem>>, vector<1x8x32xf32>
    %33 = vector.shape_cast %32 : vector<1x8x32xf32> to vector<8x32xf32>
    %34 = vector.shape_cast %31 : vector<8x32xf32> to vector<1x8x32xf32>
    tpu.vector_store %arg12[%c6, %c1_21, %c0_22], %34 {strides = array<i32>} : memref<10x10x32xf32, #tpu.memory_space<vmem>>, vector<1x8x32xf32>,
    %35 = vector.extract_strided_slice %8 {offsets = [48, 0], sizes = [8, 32], strides = [1, 1]} : vector<64x32xf32> to vector<8x32xf32>
    %c7 = arith.constant 7 : index
    %c1_23 = arith.constant 1 : index
    %c0_24 = arith.constant 0 : index
    %36 = vector.load %arg12[%c7, %c1_23, %c0_24] : memref<10x10x32xf32, #tpu.memory_space<vmem>>, vector<1x8x32xf32>
    %37 = vector.shape_cast %36 : vector<1x8x32xf32> to vector<8x32xf32>
    %38 = vector.shape_cast %35 : vector<8x32xf32> to vector<1x8x32xf32>
    tpu.vector_store %arg12[%c7, %c1_23, %c0_24], %38 {strides = array<i32>} : memref<10x10x32xf32, #tpu.memory_space<vmem>>, vector<1x8x32xf32>,
    %39 = vector.extract_strided_slice %8 {offsets = [56, 0], sizes = [8, 32], strides = [1, 1]} : vector<64x32xf32> to vector<8x32xf32>
    %c8 = arith.constant 8 : index
    %c1_25 = arith.constant 1 : index
    %c0_26 = arith.constant 0 : index
    %40 = vector.load %arg12[%c8, %c1_25, %c0_26] : memref<10x10x32xf32, #tpu.memory_space<vmem>>, vector<1x8x32xf32>
    %41 = vector.shape_cast %40 : vector<1x8x32xf32> to vector<8x32xf32>
    %42 = vector.shape_cast %39 : vector<8x32xf32> to vector<1x8x32xf32>
    tpu.vector_store %arg12[%c8, %c1_25, %c0_26], %42 {strides = array<i32>} : memref<10x10x32xf32, #tpu.memory_space<vmem>>, vector<1x8x32xf32>,
    %c0_27 = arith.constant 0 : index
    %c0_28 = arith.constant 0 : index
    %c0_29 = arith.constant 0 : index
    %43 = vector.load %arg12[%c0_27, %c0_28, %c0_29] : memref<10x10x32xf32, #tpu.memory_space<vmem>>, vector<1x10x32xf32>
    %44 = vector.shape_cast %43 : vector<1x10x32xf32> to vector<10x32xf32>
    %45 = vector.extract_strided_slice %44 {offsets = [0, 0], sizes = [8, 32], strides = [1, 1]} : vector<10x32xf32> to vector<8x32xf32>
    %c0_30 = arith.constant 0 : index
    %c0_31 = arith.constant 0 : index
    %46 = vector.load %arg13[%c0_30, %c0_31] : memref<64x288xf32, #tpu.memory_space<vmem>>, vector<8x32xf32>
    tpu.vector_store %arg13[%c0_30, %c0_31], %45 {strides = array<i32>} : memref<64x288xf32, #tpu.memory_space<vmem>>, vector<8x32xf32>,
    %47 = vector.extract_strided_slice %44 {offsets = [1, 0], sizes = [8, 32], strides = [1, 1]} : vector<10x32xf32> to vector<8x32xf32>
    %c0_32 = arith.constant 0 : index
    %c32 = arith.constant 32 : index
    %48 = vector.load %arg13[%c0_32, %c32] : memref<64x288xf32, #tpu.memory_space<vmem>>, vector<8x32xf32>
    tpu.vector_store %arg13[%c0_32, %c32], %47 {strides = array<i32>} : memref<64x288xf32, #tpu.memory_space<vmem>>, vector<8x32xf32>,
    %49 = vector.extract_strided_slice %44 {offsets = [2, 0], sizes = [8, 32], strides = [1, 1]} : vector<10x32xf32> to vector<8x32xf32>
    %c0_33 = arith.constant 0 : index
    %c64 = arith.constant 64 : index
    %50 = vector.load %arg13[%c0_33, %c64] : memref<64x288xf32, #tpu.memory_space<vmem>>, vector<8x32xf32>
    tpu.vector_store %arg13[%c0_33, %c64], %49 {strides = array<i32>} : memref<64x288xf32, #tpu.memory_space<vmem>>, vector<8x32xf32>,
    %c1_34 = arith.constant 1 : index
    %c0_35 = arith.constant 0 : index
    %c0_36 = arith.constant 0 : index
    %51 = vector.load %arg12[%c1_34, %c0_35, %c0_36] : memref<10x10x32xf32, #tpu.memory_space<vmem>>, vector<1x10x32xf32>
    %52 = vector.shape_cast %51 : vector<1x10x32xf32> to vector<10x32xf32>
    %53 = vector.extract_strided_slice %52 {offsets = [0, 0], sizes = [8, 32], strides = [1, 1]} : vector<10x32xf32> to vector<8x32xf32>
    %c0_37 = arith.constant 0 : index
    %c96 = arith.constant 96 : index
    %54 = vector.load %arg13[%c0_37, %c96] : memref<64x288xf32, #tpu.memory_space<vmem>>, vector<8x32xf32>
    tpu.vector_store %arg13[%c0_37, %c96], %53 {strides = array<i32>} : memref<64x288xf32, #tpu.memory_space<vmem>>, vector<8x32xf32>,
    %55 = vector.extract_strided_slice %52 {offsets = [1, 0], sizes = [8, 32], strides = [1, 1]} : vector<10x32xf32> to vector<8x32xf32>
    %c0_38 = arith.constant 0 : index
    %c128 = arith.constant 128 : index
    %56 = vector.load %arg13[%c0_38, %c128] : memref<64x288xf32, #tpu.memory_space<vmem>>, vector<8x32xf32>
    tpu.vector_store %arg13[%c0_38, %c128], %55 {strides = array<i32>} : memref<64x288xf32, #tpu.memory_space<vmem>>, vector<8x32xf32>,
    %57 = vector.extract_strided_slice %52 {offsets = [2, 0], sizes = [8, 32], strides = [1, 1]} : vector<10x32xf32> to vector<8x32xf32>
    %c0_39 = arith.constant 0 : index
    %c160 = arith.constant 160 : index
    %58 = vector.load %arg13[%c0_39, %c160] : memref<64x288xf32, #tpu.memory_space<vmem>>, vector<8x32xf32>
    tpu.vector_store %arg13[%c0_39, %c160], %57 {strides = array<i32>} : memref<64x288xf32, #tpu.memory_space<vmem>>, vector<8x32xf32>,
    %c2_40 = arith.constant 2 : index
    %c0_41 = arith.constant 0 : index
    %c0_42 = arith.constant 0 : index
    %59 = vector.load %arg12[%c2_40, %c0_41, %c0_42] : memref<10x10x32xf32, #tpu.memory_space<vmem>>, vector<1x10x32xf32>
    %60 = vector.shape_cast %59 : vector<1x10x32xf32> to vector<10x32xf32>
    %61 = vector.extract_strided_slice %60 {offsets = [0, 0], sizes = [8, 32], strides = [1, 1]} : vector<10x32xf32> to vector<8x32xf32>
    %c0_43 = arith.constant 0 : index
    %c192 = arith.constant 192 : index
    %62 = vector.load %arg13[%c0_43, %c192] : memref<64x288xf32, #tpu.memory_space<vmem>>, vector<8x32xf32>
    tpu.vector_store %arg13[%c0_43, %c192], %61 {strides = array<i32>} : memref<64x288xf32, #tpu.memory_space<vmem>>, vector<8x32xf32>,
    %63 = vector.extract_strided_slice %60 {offsets = [1, 0], sizes = [8, 32], strides = [1, 1]} : vector<10x32xf32> to vector<8x32xf32>
    %c0_44 = arith.constant 0 : index
    %c224 = arith.constant 224 : index
    %64 = vector.load %arg13[%c0_44, %c224] : memref<64x288xf32, #tpu.memory_space<vmem>>, vector<8x32xf32>
    tpu.vector_store %arg13[%c0_44, %c224], %63 {strides = array<i32>} : memref<64x288xf32, #tpu.memory_space<vmem>>, vector<8x32xf32>,
    %65 = vector.extract_strided_slice %60 {offsets = [2, 0], sizes = [8, 32], strides = [1, 1]} : vector<10x32xf32> to vector<8x32xf32>
    %c0_45 = arith.constant 0 : index
    %c256 = arith.constant 256 : index
    %66 = vector.load %arg13[%c0_45, %c256] : memref<64x288xf32, #tpu.memory_space<vmem>>, vector<8x32xf32>
    tpu.vector_store %arg13[%c0_45, %c256], %65 {strides = array<i32>} : memref<64x288xf32, #tpu.memory_space<vmem>>, vector<8x32xf32>,
    %c1_46 = arith.constant 1 : index
    %c0_47 = arith.constant 0 : index
    %c0_48 = arith.constant 0 : index
    %67 = vector.load %arg12[%c1_46, %c0_47, %c0_48] : memref<10x10x32xf32, #tpu.memory_space<vmem>>, vector<1x10x32xf32>
    %68 = vector.shape_cast %67 : vector<1x10x32xf32> to vector<10x32xf32>
    %69 = vector.extract_strided_slice %68 {offsets = [0, 0], sizes = [8, 32], strides = [1, 1]} : vector<10x32xf32> to vector<8x32xf32>
    %c8_49 = arith.constant 8 : index
    %c0_50 = arith.constant 0 : index
    %70 = vector.load %arg13[%c8_49, %c0_50] : memref<64x288xf32, #tpu.memory_space<vmem>>, vector<8x32xf32>
    tpu.vector_store %arg13[%c8_49, %c0_50], %69 {strides = array<i32>} : memref<64x288xf32, #tpu.memory_space<vmem>>, vector<8x32xf32>,
    %71 = vector.extract_strided_slice %68 {offsets = [1, 0], sizes = [8, 32], strides = [1, 1]} : vector<10x32xf32> to vector<8x32xf32>
    %c8_51 = arith.constant 8 : index
    %c32_52 = arith.constant 32 : index
    %72 = vector.load %arg13[%c8_51, %c32_52] : memref<64x288xf32, #tpu.memory_space<vmem>>, vector<8x32xf32>
    tpu.vector_store %arg13[%c8_51, %c32_52], %71 {strides = array<i32>} : memref<64x288xf32, #tpu.memory_space<vmem>>, vector<8x32xf32>,
    %73 = vector.extract_strided_slice %68 {offsets = [2, 0], sizes = [8, 32], strides = [1, 1]} : vector<10x32xf32> to vector<8x32xf32>
    %c8_53 = arith.constant 8 : index
    %c64_54 = arith.constant 64 : index
    %74 = vector.load %arg13[%c8_53, %c64_54] : memref<64x288xf32, #tpu.memory_space<vmem>>, vector<8x32xf32>
    tpu.vector_store %arg13[%c8_53, %c64_54], %73 {strides = array<i32>} : memref<64x288xf32, #tpu.memory_space<vmem>>, vector<8x32xf32>,
    %c2_55 = arith.constant 2 : index
    %c0_56 = arith.constant 0 : index
    %c0_57 = arith.constant 0 : index
    %75 = vector.load %arg12[%c2_55, %c0_56, %c0_57] : memref<10x10x32xf32, #tpu.memory_space<vmem>>, vector<1x10x32xf32>
    %76 = vector.shape_cast %75 : vector<1x10x32xf32> to vector<10x32xf32>
    %77 = vector.extract_strided_slice %76 {offsets = [0, 0], sizes = [8, 32], strides = [1, 1]} : vector<10x32xf32> to vector<8x32xf32>
    %c8_58 = arith.constant 8 : index
    %c96_59 = arith.constant 96 : index
    %78 = vector.load %arg13[%c8_58, %c96_59] : memref<64x288xf32, #tpu.memory_space<vmem>>, vector<8x32xf32>
    tpu.vector_store %arg13[%c8_58, %c96_59], %77 {strides = array<i32>} : memref<64x288xf32, #tpu.memory_space<vmem>>, vector<8x32xf32>,
    %79 = vector.extract_strided_slice %76 {offsets = [1, 0], sizes = [8, 32], strides = [1, 1]} : vector<10x32xf32> to vector<8x32xf32>
    %c8_60 = arith.constant 8 : index
    %c128_61 = arith.constant 128 : index
    %80 = vector.load %arg13[%c8_60, %c128_61] : memref<64x288xf32, #tpu.memory_space<vmem>>, vector<8x32xf32>
    tpu.vector_store %arg13[%c8_60, %c128_61], %79 {strides = array<i32>} : memref<64x288xf32, #tpu.memory_space<vmem>>, vector<8x32xf32>,
    %81 = vector.extract_strided_slice %76 {offsets = [2, 0], sizes = [8, 32], strides = [1, 1]} : vector<10x32xf32> to vector<8x32xf32>
    %c8_62 = arith.constant 8 : index
    %c160_63 = arith.constant 160 : index
    %82 = vector.load %arg13[%c8_62, %c160_63] : memref<64x288xf32, #tpu.memory_space<vmem>>, vector<8x32xf32>
    tpu.vector_store %arg13[%c8_62, %c160_63], %81 {strides = array<i32>} : memref<64x288xf32, #tpu.memory_space<vmem>>, vector<8x32xf32>,
    %c3_64 = arith.constant 3 : index
    %c0_65 = arith.constant 0 : index
    %c0_66 = arith.constant 0 : index
    %83 = vector.load %arg12[%c3_64, %c0_65, %c0_66] : memref<10x10x32xf32, #tpu.memory_space<vmem>>, vector<1x10x32xf32>
    %84 = vector.shape_cast %83 : vector<1x10x32xf32> to vector<10x32xf32>
    %85 = vector.extract_strided_slice %84 {offsets = [0, 0], sizes = [8, 32], strides = [1, 1]} : vector<10x32xf32> to vector<8x32xf32>
    %c8_67 = arith.constant 8 : index
    %c192_68 = arith.constant 192 : index
    %86 = vector.load %arg13[%c8_67, %c192_68] : memref<64x288xf32, #tpu.memory_space<vmem>>, vector<8x32xf32>
    tpu.vector_store %arg13[%c8_67, %c192_68], %85 {strides = array<i32>} : memref<64x288xf32, #tpu.memory_space<vmem>>, vector<8x32xf32>,
    %87 = vector.extract_strided_slice %84 {offsets = [1, 0], sizes = [8, 32], strides = [1, 1]} : vector<10x32xf32> to vector<8x32xf32>
    %c8_69 = arith.constant 8 : index
    %c224_70 = arith.constant 224 : index
    %88 = vector.load %arg13[%c8_69, %c224_70] : memref<64x288xf32, #tpu.memory_space<vmem>>, vector<8x32xf32>
    tpu.vector_store %arg13[%c8_69, %c224_70], %87 {strides = array<i32>} : memref<64x288xf32, #tpu.memory_space<vmem>>, vector<8x32xf32>,
    %89 = vector.extract_strided_slice %84 {offsets = [2, 0], sizes = [8, 32], strides = [1, 1]} : vector<10x32xf32> to vector<8x32xf32>
    %c8_71 = arith.constant 8 : index
    %c256_72 = arith.constant 256 : index
    %90 = vector.load %arg13[%c8_71, %c256_72] : memref<64x288xf32, #tpu.memory_space<vmem>>, vector<8x32xf32>
    tpu.vector_store %arg13[%c8_71, %c256_72], %89 {strides = array<i32>} : memref<64x288xf32, #tpu.memory_space<vmem>>, vector<8x32xf32>,
    %c2_73 = arith.constant 2 : index
    %c0_74 = arith.constant 0 : index
    %c0_75 = arith.constant 0 : index
    %91 = vector.load %arg12[%c2_73, %c0_74, %c0_75] : memref<10x10x32xf32, #tpu.memory_space<vmem>>, vector<1x10x32xf32>
    %92 = vector.shape_cast %91 : vector<1x10x32xf32> to vector<10x32xf32>
    %93 = vector.extract_strided_slice %92 {offsets = [0, 0], sizes = [8, 32], strides = [1, 1]} : vector<10x32xf32> to vector<8x32xf32>
    %c16 = arith.constant 16 : index
    %c0_76 = arith.constant 0 : index
    %94 = vector.load %arg13[%c16, %c0_76] : memref<64x288xf32, #tpu.memory_space<vmem>>, vector<8x32xf32>
    tpu.vector_store %arg13[%c16, %c0_76], %93 {strides = array<i32>} : memref<64x288xf32, #tpu.memory_space<vmem>>, vector<8x32xf32>,
    %95 = vector.extract_strided_slice %92 {offsets = [1, 0], sizes = [8, 32], strides = [1, 1]} : vector<10x32xf32> to vector<8x32xf32>
    %c16_77 = arith.constant 16 : index
    %c32_78 = arith.constant 32 : index
    %96 = vector.load %arg13[%c16_77, %c32_78] : memref<64x288xf32, #tpu.memory_space<vmem>>, vector<8x32xf32>
    tpu.vector_store %arg13[%c16_77, %c32_78], %95 {strides = array<i32>} : memref<64x288xf32, #tpu.memory_space<vmem>>, vector<8x32xf32>,
    %97 = vector.extract_strided_slice %92 {offsets = [2, 0], sizes = [8, 32], strides = [1, 1]} : vector<10x32xf32> to vector<8x32xf32>
    %c16_79 = arith.constant 16 : index
    %c64_80 = arith.constant 64 : index
    %98 = vector.load %arg13[%c16_79, %c64_80] : memref<64x288xf32, #tpu.memory_space<vmem>>, vector<8x32xf32>
    tpu.vector_store %arg13[%c16_79, %c64_80], %97 {strides = array<i32>} : memref<64x288xf32, #tpu.memory_space<vmem>>, vector<8x32xf32>,
    %c3_81 = arith.constant 3 : index
    %c0_82 = arith.constant 0 : index
    %c0_83 = arith.constant 0 : index
    %99 = vector.load %arg12[%c3_81, %c0_82, %c0_83] : memref<10x10x32xf32, #tpu.memory_space<vmem>>, vector<1x10x32xf32>
    %100 = vector.shape_cast %99 : vector<1x10x32xf32> to vector<10x32xf32>
    %101 = vector.extract_strided_slice %100 {offsets = [0, 0], sizes = [8, 32], strides = [1, 1]} : vector<10x32xf32> to vector<8x32xf32>
    %c16_84 = arith.constant 16 : index
    %c96_85 = arith.constant 96 : index
    %102 = vector.load %arg13[%c16_84, %c96_85] : memref<64x288xf32, #tpu.memory_space<vmem>>, vector<8x32xf32>
    tpu.vector_store %arg13[%c16_84, %c96_85], %101 {strides = array<i32>} : memref<64x288xf32, #tpu.memory_space<vmem>>, vector<8x32xf32>,
    %103 = vector.extract_strided_slice %100 {offsets = [1, 0], sizes = [8, 32], strides = [1, 1]} : vector<10x32xf32> to vector<8x32xf32>
    %c16_86 = arith.constant 16 : index
    %c128_87 = arith.constant 128 : index
    %104 = vector.load %arg13[%c16_86, %c128_87] : memref<64x288xf32, #tpu.memory_space<vmem>>, vector<8x32xf32>
    tpu.vector_store %arg13[%c16_86, %c128_87], %103 {strides = array<i32>} : memref<64x288xf32, #tpu.memory_space<vmem>>, vector<8x32xf32>,
    %105 = vector.extract_strided_slice %100 {offsets = [2, 0], sizes = [8, 32], strides = [1, 1]} : vector<10x32xf32> to vector<8x32xf32>
    %c16_88 = arith.constant 16 : index
    %c160_89 = arith.constant 160 : index
    %106 = vector.load %arg13[%c16_88, %c160_89] : memref<64x288xf32, #tpu.memory_space<vmem>>, vector<8x32xf32>
    tpu.vector_store %arg13[%c16_88, %c160_89], %105 {strides = array<i32>} : memref<64x288xf32, #tpu.memory_space<vmem>>, vector<8x32xf32>,
    %c4_90 = arith.constant 4 : index
    %c0_91 = arith.constant 0 : index
    %c0_92 = arith.constant 0 : index
    %107 = vector.load %arg12[%c4_90, %c0_91, %c0_92] : memref<10x10x32xf32, #tpu.memory_space<vmem>>, vector<1x10x32xf32>
    %108 = vector.shape_cast %107 : vector<1x10x32xf32> to vector<10x32xf32>
    %109 = vector.extract_strided_slice %108 {offsets = [0, 0], sizes = [8, 32], strides = [1, 1]} : vector<10x32xf32> to vector<8x32xf32>
    %c16_93 = arith.constant 16 : index
    %c192_94 = arith.constant 192 : index
    %110 = vector.load %arg13[%c16_93, %c192_94] : memref<64x288xf32, #tpu.memory_space<vmem>>, vector<8x32xf32>
    tpu.vector_store %arg13[%c16_93, %c192_94], %109 {strides = array<i32>} : memref<64x288xf32, #tpu.memory_space<vmem>>, vector<8x32xf32>,
    %111 = vector.extract_strided_slice %108 {offsets = [1, 0], sizes = [8, 32], strides = [1, 1]} : vector<10x32xf32> to vector<8x32xf32>
    %c16_95 = arith.constant 16 : index
    %c224_96 = arith.constant 224 : index
    %112 = vector.load %arg13[%c16_95, %c224_96] : memref<64x288xf32, #tpu.memory_space<vmem>>, vector<8x32xf32>
    tpu.vector_store %arg13[%c16_95, %c224_96], %111 {strides = array<i32>} : memref<64x288xf32, #tpu.memory_space<vmem>>, vector<8x32xf32>,
    %113 = vector.extract_strided_slice %108 {offsets = [2, 0], sizes = [8, 32], strides = [1, 1]} : vector<10x32xf32> to vector<8x32xf32>
    %c16_97 = arith.constant 16 : index
    %c256_98 = arith.constant 256 : index
    %114 = vector.load %arg13[%c16_97, %c256_98] : memref<64x288xf32, #tpu.memory_space<vmem>>, vector<8x32xf32>
    tpu.vector_store %arg13[%c16_97, %c256_98], %113 {strides = array<i32>} : memref<64x288xf32, #tpu.memory_space<vmem>>, vector<8x32xf32>,
    %c3_99 = arith.constant 3 : index
    %c0_100 = arith.constant 0 : index
    %c0_101 = arith.constant 0 : index
    %115 = vector.load %arg12[%c3_99, %c0_100, %c0_101] : memref<10x10x32xf32, #tpu.memory_space<vmem>>, vector<1x10x32xf32>
    %116 = vector.shape_cast %115 : vector<1x10x32xf32> to vector<10x32xf32>
    %117 = vector.extract_strided_slice %116 {offsets = [0, 0], sizes = [8, 32], strides = [1, 1]} : vector<10x32xf32> to vector<8x32xf32>
    %c24 = arith.constant 24 : index
    %c0_102 = arith.constant 0 : index
    %118 = vector.load %arg13[%c24, %c0_102] : memref<64x288xf32, #tpu.memory_space<vmem>>, vector<8x32xf32>
    tpu.vector_store %arg13[%c24, %c0_102], %117 {strides = array<i32>} : memref<64x288xf32, #tpu.memory_space<vmem>>, vector<8x32xf32>,
    %119 = vector.extract_strided_slice %116 {offsets = [1, 0], sizes = [8, 32], strides = [1, 1]} : vector<10x32xf32> to vector<8x32xf32>
    %c24_103 = arith.constant 24 : index
    %c32_104 = arith.constant 32 : index
    %120 = vector.load %arg13[%c24_103, %c32_104] : memref<64x288xf32, #tpu.memory_space<vmem>>, vector<8x32xf32>
    tpu.vector_store %arg13[%c24_103, %c32_104], %119 {strides = array<i32>} : memref<64x288xf32, #tpu.memory_space<vmem>>, vector<8x32xf32>,
    %121 = vector.extract_strided_slice %116 {offsets = [2, 0], sizes = [8, 32], strides = [1, 1]} : vector<10x32xf32> to vector<8x32xf32>
    %c24_105 = arith.constant 24 : index
    %c64_106 = arith.constant 64 : index
    %122 = vector.load %arg13[%c24_105, %c64_106] : memref<64x288xf32, #tpu.memory_space<vmem>>, vector<8x32xf32>
    tpu.vector_store %arg13[%c24_105, %c64_106], %121 {strides = array<i32>} : memref<64x288xf32, #tpu.memory_space<vmem>>, vector<8x32xf32>,
    %c4_107 = arith.constant 4 : index
    %c0_108 = arith.constant 0 : index
    %c0_109 = arith.constant 0 : index
    %123 = vector.load %arg12[%c4_107, %c0_108, %c0_109] : memref<10x10x32xf32, #tpu.memory_space<vmem>>, vector<1x10x32xf32>
    %124 = vector.shape_cast %123 : vector<1x10x32xf32> to vector<10x32xf32>
    %125 = vector.extract_strided_slice %124 {offsets = [0, 0], sizes = [8, 32], strides = [1, 1]} : vector<10x32xf32> to vector<8x32xf32>
    %c24_110 = arith.constant 24 : index
    %c96_111 = arith.constant 96 : index
    %126 = vector.load %arg13[%c24_110, %c96_111] : memref<64x288xf32, #tpu.memory_space<vmem>>, vector<8x32xf32>
    tpu.vector_store %arg13[%c24_110, %c96_111], %125 {strides = array<i32>} : memref<64x288xf32, #tpu.memory_space<vmem>>, vector<8x32xf32>,
    %127 = vector.extract_strided_slice %124 {offsets = [1, 0], sizes = [8, 32], strides = [1, 1]} : vector<10x32xf32> to vector<8x32xf32>
    %c24_112 = arith.constant 24 : index
    %c128_113 = arith.constant 128 : index
    %128 = vector.load %arg13[%c24_112, %c128_113] : memref<64x288xf32, #tpu.memory_space<vmem>>, vector<8x32xf32>
    tpu.vector_store %arg13[%c24_112, %c128_113], %127 {strides = array<i32>} : memref<64x288xf32, #tpu.memory_space<vmem>>, vector<8x32xf32>,
    %129 = vector.extract_strided_slice %124 {offsets = [2, 0], sizes = [8, 32], strides = [1, 1]} : vector<10x32xf32> to vector<8x32xf32>
    %c24_114 = arith.constant 24 : index
    %c160_115 = arith.constant 160 : index
    %130 = vector.load %arg13[%c24_114, %c160_115] : memref<64x288xf32, #tpu.memory_space<vmem>>, vector<8x32xf32>
    tpu.vector_store %arg13[%c24_114, %c160_115], %129 {strides = array<i32>} : memref<64x288xf32, #tpu.memory_space<vmem>>, vector<8x32xf32>,
    %c5_116 = arith.constant 5 : index
    %c0_117 = arith.constant 0 : index
    %c0_118 = arith.constant 0 : index
    %131 = vector.load %arg12[%c5_116, %c0_117, %c0_118] : memref<10x10x32xf32, #tpu.memory_space<vmem>>, vector<1x10x32xf32>
    %132 = vector.shape_cast %131 : vector<1x10x32xf32> to vector<10x32xf32>
    %133 = vector.extract_strided_slice %132 {offsets = [0, 0], sizes = [8, 32], strides = [1, 1]} : vector<10x32xf32> to vector<8x32xf32>
    %c24_119 = arith.constant 24 : index
    %c192_120 = arith.constant 192 : index
    %134 = vector.load %arg13[%c24_119, %c192_120] : memref<64x288xf32, #tpu.memory_space<vmem>>, vector<8x32xf32>
    tpu.vector_store %arg13[%c24_119, %c192_120], %133 {strides = array<i32>} : memref<64x288xf32, #tpu.memory_space<vmem>>, vector<8x32xf32>,
    %135 = vector.extract_strided_slice %132 {offsets = [1, 0], sizes = [8, 32], strides = [1, 1]} : vector<10x32xf32> to vector<8x32xf32>
    %c24_121 = arith.constant 24 : index
    %c224_122 = arith.constant 224 : index
    %136 = vector.load %arg13[%c24_121, %c224_122] : memref<64x288xf32, #tpu.memory_space<vmem>>, vector<8x32xf32>
    tpu.vector_store %arg13[%c24_121, %c224_122], %135 {strides = array<i32>} : memref<64x288xf32, #tpu.memory_space<vmem>>, vector<8x32xf32>,
    %137 = vector.extract_strided_slice %132 {offsets = [2, 0], sizes = [8, 32], strides = [1, 1]} : vector<10x32xf32> to vector<8x32xf32>
    %c24_123 = arith.constant 24 : index
    %c256_124 = arith.constant 256 : index
    %138 = vector.load %arg13[%c24_123, %c256_124] : memref<64x288xf32, #tpu.memory_space<vmem>>, vector<8x32xf32>
    tpu.vector_store %arg13[%c24_123, %c256_124], %137 {strides = array<i32>} : memref<64x288xf32, #tpu.memory_space<vmem>>, vector<8x32xf32>,
    %c4_125 = arith.constant 4 : index
    %c0_126 = arith.constant 0 : index
    %c0_127 = arith.constant 0 : index
    %139 = vector.load %arg12[%c4_125, %c0_126, %c0_127] : memref<10x10x32xf32, #tpu.memory_space<vmem>>, vector<1x10x32xf32>
    %140 = vector.shape_cast %139 : vector<1x10x32xf32> to vector<10x32xf32>
    %141 = vector.extract_strided_slice %140 {offsets = [0, 0], sizes = [8, 32], strides = [1, 1]} : vector<10x32xf32> to vector<8x32xf32>
    %c32_128 = arith.constant 32 : index
    %c0_129 = arith.constant 0 : index
    %142 = vector.load %arg13[%c32_128, %c0_129] : memref<64x288xf32, #tpu.memory_space<vmem>>, vector<8x32xf32>
    tpu.vector_store %arg13[%c32_128, %c0_129], %141 {strides = array<i32>} : memref<64x288xf32, #tpu.memory_space<vmem>>, vector<8x32xf32>,
    %143 = vector.extract_strided_slice %140 {offsets = [1, 0], sizes = [8, 32], strides = [1, 1]} : vector<10x32xf32> to vector<8x32xf32>
    %c32_130 = arith.constant 32 : index
    %c32_131 = arith.constant 32 : index
    %144 = vector.load %arg13[%c32_130, %c32_131] : memref<64x288xf32, #tpu.memory_space<vmem>>, vector<8x32xf32>
    tpu.vector_store %arg13[%c32_130, %c32_131], %143 {strides = array<i32>} : memref<64x288xf32, #tpu.memory_space<vmem>>, vector<8x32xf32>,
    %145 = vector.extract_strided_slice %140 {offsets = [2, 0], sizes = [8, 32], strides = [1, 1]} : vector<10x32xf32> to vector<8x32xf32>
    %c32_132 = arith.constant 32 : index
    %c64_133 = arith.constant 64 : index
    %146 = vector.load %arg13[%c32_132, %c64_133] : memref<64x288xf32, #tpu.memory_space<vmem>>, vector<8x32xf32>
    tpu.vector_store %arg13[%c32_132, %c64_133], %145 {strides = array<i32>} : memref<64x288xf32, #tpu.memory_space<vmem>>, vector<8x32xf32>,
    %c5_134 = arith.constant 5 : index
    %c0_135 = arith.constant 0 : index
    %c0_136 = arith.constant 0 : index
    %147 = vector.load %arg12[%c5_134, %c0_135, %c0_136] : memref<10x10x32xf32, #tpu.memory_space<vmem>>, vector<1x10x32xf32>
    %148 = vector.shape_cast %147 : vector<1x10x32xf32> to vector<10x32xf32>
    %149 = vector.extract_strided_slice %148 {offsets = [0, 0], sizes = [8, 32], strides = [1, 1]} : vector<10x32xf32> to vector<8x32xf32>
    %c32_137 = arith.constant 32 : index
    %c96_138 = arith.constant 96 : index
    %150 = vector.load %arg13[%c32_137, %c96_138] : memref<64x288xf32, #tpu.memory_space<vmem>>, vector<8x32xf32>
    tpu.vector_store %arg13[%c32_137, %c96_138], %149 {strides = array<i32>} : memref<64x288xf32, #tpu.memory_space<vmem>>, vector<8x32xf32>,
    %151 = vector.extract_strided_slice %148 {offsets = [1, 0], sizes = [8, 32], strides = [1, 1]} : vector<10x32xf32> to vector<8x32xf32>
    %c32_139 = arith.constant 32 : index
    %c128_140 = arith.constant 128 : index
    %152 = vector.load %arg13[%c32_139, %c128_140] : memref<64x288xf32, #tpu.memory_space<vmem>>, vector<8x32xf32>
    tpu.vector_store %arg13[%c32_139, %c128_140], %151 {strides = array<i32>} : memref<64x288xf32, #tpu.memory_space<vmem>>, vector<8x32xf32>,
    %153 = vector.extract_strided_slice %148 {offsets = [2, 0], sizes = [8, 32], strides = [1, 1]} : vector<10x32xf32> to vector<8x32xf32>
    %c32_141 = arith.constant 32 : index
    %c160_142 = arith.constant 160 : index
    %154 = vector.load %arg13[%c32_141, %c160_142] : memref<64x288xf32, #tpu.memory_space<vmem>>, vector<8x32xf32>
    tpu.vector_store %arg13[%c32_141, %c160_142], %153 {strides = array<i32>} : memref<64x288xf32, #tpu.memory_space<vmem>>, vector<8x32xf32>,
    %c6_143 = arith.constant 6 : index
    %c0_144 = arith.constant 0 : index
    %c0_145 = arith.constant 0 : index
    %155 = vector.load %arg12[%c6_143, %c0_144, %c0_145] : memref<10x10x32xf32, #tpu.memory_space<vmem>>, vector<1x10x32xf32>
    %156 = vector.shape_cast %155 : vector<1x10x32xf32> to vector<10x32xf32>
    %157 = vector.extract_strided_slice %156 {offsets = [0, 0], sizes = [8, 32], strides = [1, 1]} : vector<10x32xf32> to vector<8x32xf32>
    %c32_146 = arith.constant 32 : index
    %c192_147 = arith.constant 192 : index
    %158 = vector.load %arg13[%c32_146, %c192_147] : memref<64x288xf32, #tpu.memory_space<vmem>>, vector<8x32xf32>
    tpu.vector_store %arg13[%c32_146, %c192_147], %157 {strides = array<i32>} : memref<64x288xf32, #tpu.memory_space<vmem>>, vector<8x32xf32>,
    %159 = vector.extract_strided_slice %156 {offsets = [1, 0], sizes = [8, 32], strides = [1, 1]} : vector<10x32xf32> to vector<8x32xf32>
    %c32_148 = arith.constant 32 : index
    %c224_149 = arith.constant 224 : index
    %160 = vector.load %arg13[%c32_148, %c224_149] : memref<64x288xf32, #tpu.memory_space<vmem>>, vector<8x32xf32>
    tpu.vector_store %arg13[%c32_148, %c224_149], %159 {strides = array<i32>} : memref<64x288xf32, #tpu.memory_space<vmem>>, vector<8x32xf32>,
    %161 = vector.extract_strided_slice %156 {offsets = [2, 0], sizes = [8, 32], strides = [1, 1]} : vector<10x32xf32> to vector<8x32xf32>
    %c32_150 = arith.constant 32 : index
    %c256_151 = arith.constant 256 : index
    %162 = vector.load %arg13[%c32_150, %c256_151] : memref<64x288xf32, #tpu.memory_space<vmem>>, vector<8x32xf32>
    tpu.vector_store %arg13[%c32_150, %c256_151], %161 {strides = array<i32>} : memref<64x288xf32, #tpu.memory_space<vmem>>, vector<8x32xf32>,
    %c5_152 = arith.constant 5 : index
    %c0_153 = arith.constant 0 : index
    %c0_154 = arith.constant 0 : index
    %163 = vector.load %arg12[%c5_152, %c0_153, %c0_154] : memref<10x10x32xf32, #tpu.memory_space<vmem>>, vector<1x10x32xf32>
    %164 = vector.shape_cast %163 : vector<1x10x32xf32> to vector<10x32xf32>
    %165 = vector.extract_strided_slice %164 {offsets = [0, 0], sizes = [8, 32], strides = [1, 1]} : vector<10x32xf32> to vector<8x32xf32>
    %c40 = arith.constant 40 : index
    %c0_155 = arith.constant 0 : index
    %166 = vector.load %arg13[%c40, %c0_155] : memref<64x288xf32, #tpu.memory_space<vmem>>, vector<8x32xf32>
    tpu.vector_store %arg13[%c40, %c0_155], %165 {strides = array<i32>} : memref<64x288xf32, #tpu.memory_space<vmem>>, vector<8x32xf32>,
    %167 = vector.extract_strided_slice %164 {offsets = [1, 0], sizes = [8, 32], strides = [1, 1]} : vector<10x32xf32> to vector<8x32xf32>
    %c40_156 = arith.constant 40 : index
    %c32_157 = arith.constant 32 : index
    %168 = vector.load %arg13[%c40_156, %c32_157] : memref<64x288xf32, #tpu.memory_space<vmem>>, vector<8x32xf32>
    tpu.vector_store %arg13[%c40_156, %c32_157], %167 {strides = array<i32>} : memref<64x288xf32, #tpu.memory_space<vmem>>, vector<8x32xf32>,
    %169 = vector.extract_strided_slice %164 {offsets = [2, 0], sizes = [8, 32], strides = [1, 1]} : vector<10x32xf32> to vector<8x32xf32>
    %c40_158 = arith.constant 40 : index
    %c64_159 = arith.constant 64 : index
    %170 = vector.load %arg13[%c40_158, %c64_159] : memref<64x288xf32, #tpu.memory_space<vmem>>, vector<8x32xf32>
    tpu.vector_store %arg13[%c40_158, %c64_159], %169 {strides = array<i32>} : memref<64x288xf32, #tpu.memory_space<vmem>>, vector<8x32xf32>,
    %c6_160 = arith.constant 6 : index
    %c0_161 = arith.constant 0 : index
    %c0_162 = arith.constant 0 : index
    %171 = vector.load %arg12[%c6_160, %c0_161, %c0_162] : memref<10x10x32xf32, #tpu.memory_space<vmem>>, vector<1x10x32xf32>
    %172 = vector.shape_cast %171 : vector<1x10x32xf32> to vector<10x32xf32>
    %173 = vector.extract_strided_slice %172 {offsets = [0, 0], sizes = [8, 32], strides = [1, 1]} : vector<10x32xf32> to vector<8x32xf32>
    %c40_163 = arith.constant 40 : index
    %c96_164 = arith.constant 96 : index
    %174 = vector.load %arg13[%c40_163, %c96_164] : memref<64x288xf32, #tpu.memory_space<vmem>>, vector<8x32xf32>
    tpu.vector_store %arg13[%c40_163, %c96_164], %173 {strides = array<i32>} : memref<64x288xf32, #tpu.memory_space<vmem>>, vector<8x32xf32>,
    %175 = vector.extract_strided_slice %172 {offsets = [1, 0], sizes = [8, 32], strides = [1, 1]} : vector<10x32xf32> to vector<8x32xf32>
    %c40_165 = arith.constant 40 : index
    %c128_166 = arith.constant 128 : index
    %176 = vector.load %arg13[%c40_165, %c128_166] : memref<64x288xf32, #tpu.memory_space<vmem>>, vector<8x32xf32>
    tpu.vector_store %arg13[%c40_165, %c128_166], %175 {strides = array<i32>} : memref<64x288xf32, #tpu.memory_space<vmem>>, vector<8x32xf32>,
    %177 = vector.extract_strided_slice %172 {offsets = [2, 0], sizes = [8, 32], strides = [1, 1]} : vector<10x32xf32> to vector<8x32xf32>
    %c40_167 = arith.constant 40 : index
    %c160_168 = arith.constant 160 : index
    %178 = vector.load %arg13[%c40_167, %c160_168] : memref<64x288xf32, #tpu.memory_space<vmem>>, vector<8x32xf32>
    tpu.vector_store %arg13[%c40_167, %c160_168], %177 {strides = array<i32>} : memref<64x288xf32, #tpu.memory_space<vmem>>, vector<8x32xf32>,
    %c7_169 = arith.constant 7 : index
    %c0_170 = arith.constant 0 : index
    %c0_171 = arith.constant 0 : index
    %179 = vector.load %arg12[%c7_169, %c0_170, %c0_171] : memref<10x10x32xf32, #tpu.memory_space<vmem>>, vector<1x10x32xf32>
    %180 = vector.shape_cast %179 : vector<1x10x32xf32> to vector<10x32xf32>
    %181 = vector.extract_strided_slice %180 {offsets = [0, 0], sizes = [8, 32], strides = [1, 1]} : vector<10x32xf32> to vector<8x32xf32>
    %c40_172 = arith.constant 40 : index
    %c192_173 = arith.constant 192 : index
    %182 = vector.load %arg13[%c40_172, %c192_173] : memref<64x288xf32, #tpu.memory_space<vmem>>, vector<8x32xf32>
    tpu.vector_store %arg13[%c40_172, %c192_173], %181 {strides = array<i32>} : memref<64x288xf32, #tpu.memory_space<vmem>>, vector<8x32xf32>,
    %183 = vector.extract_strided_slice %180 {offsets = [1, 0], sizes = [8, 32], strides = [1, 1]} : vector<10x32xf32> to vector<8x32xf32>
    %c40_174 = arith.constant 40 : index
    %c224_175 = arith.constant 224 : index
    %184 = vector.load %arg13[%c40_174, %c224_175] : memref<64x288xf32, #tpu.memory_space<vmem>>, vector<8x32xf32>
    tpu.vector_store %arg13[%c40_174, %c224_175], %183 {strides = array<i32>} : memref<64x288xf32, #tpu.memory_space<vmem>>, vector<8x32xf32>,
    %185 = vector.extract_strided_slice %180 {offsets = [2, 0], sizes = [8, 32], strides = [1, 1]} : vector<10x32xf32> to vector<8x32xf32>
    %c40_176 = arith.constant 40 : index
    %c256_177 = arith.constant 256 : index
    %186 = vector.load %arg13[%c40_176, %c256_177] : memref<64x288xf32, #tpu.memory_space<vmem>>, vector<8x32xf32>
    tpu.vector_store %arg13[%c40_176, %c256_177], %185 {strides = array<i32>} : memref<64x288xf32, #tpu.memory_space<vmem>>, vector<8x32xf32>,
    %c6_178 = arith.constant 6 : index
    %c0_179 = arith.constant 0 : index
    %c0_180 = arith.constant 0 : index
    %187 = vector.load %arg12[%c6_178, %c0_179, %c0_180] : memref<10x10x32xf32, #tpu.memory_space<vmem>>, vector<1x10x32xf32>
    %188 = vector.shape_cast %187 : vector<1x10x32xf32> to vector<10x32xf32>
    %189 = vector.extract_strided_slice %188 {offsets = [0, 0], sizes = [8, 32], strides = [1, 1]} : vector<10x32xf32> to vector<8x32xf32>
    %c48 = arith.constant 48 : index
    %c0_181 = arith.constant 0 : index
    %190 = vector.load %arg13[%c48, %c0_181] : memref<64x288xf32, #tpu.memory_space<vmem>>, vector<8x32xf32>
    tpu.vector_store %arg13[%c48, %c0_181], %189 {strides = array<i32>} : memref<64x288xf32, #tpu.memory_space<vmem>>, vector<8x32xf32>,
    %191 = vector.extract_strided_slice %188 {offsets = [1, 0], sizes = [8, 32], strides = [1, 1]} : vector<10x32xf32> to vector<8x32xf32>
    %c48_182 = arith.constant 48 : index
    %c32_183 = arith.constant 32 : index
    %192 = vector.load %arg13[%c48_182, %c32_183] : memref<64x288xf32, #tpu.memory_space<vmem>>, vector<8x32xf32>
    tpu.vector_store %arg13[%c48_182, %c32_183], %191 {strides = array<i32>} : memref<64x288xf32, #tpu.memory_space<vmem>>, vector<8x32xf32>,
    %193 = vector.extract_strided_slice %188 {offsets = [2, 0], sizes = [8, 32], strides = [1, 1]} : vector<10x32xf32> to vector<8x32xf32>
    %c48_184 = arith.constant 48 : index
    %c64_185 = arith.constant 64 : index
    %194 = vector.load %arg13[%c48_184, %c64_185] : memref<64x288xf32, #tpu.memory_space<vmem>>, vector<8x32xf32>
    tpu.vector_store %arg13[%c48_184, %c64_185], %193 {strides = array<i32>} : memref<64x288xf32, #tpu.memory_space<vmem>>, vector<8x32xf32>,
    %c7_186 = arith.constant 7 : index
    %c0_187 = arith.constant 0 : index
    %c0_188 = arith.constant 0 : index
    %195 = vector.load %arg12[%c7_186, %c0_187, %c0_188] : memref<10x10x32xf32, #tpu.memory_space<vmem>>, vector<1x10x32xf32>
    %196 = vector.shape_cast %195 : vector<1x10x32xf32> to vector<10x32xf32>
    %197 = vector.extract_strided_slice %196 {offsets = [0, 0], sizes = [8, 32], strides = [1, 1]} : vector<10x32xf32> to vector<8x32xf32>
    %c48_189 = arith.constant 48 : index
    %c96_190 = arith.constant 96 : index
    %198 = vector.load %arg13[%c48_189, %c96_190] : memref<64x288xf32, #tpu.memory_space<vmem>>, vector<8x32xf32>
    tpu.vector_store %arg13[%c48_189, %c96_190], %197 {strides = array<i32>} : memref<64x288xf32, #tpu.memory_space<vmem>>, vector<8x32xf32>,
    %199 = vector.extract_strided_slice %196 {offsets = [1, 0], sizes = [8, 32], strides = [1, 1]} : vector<10x32xf32> to vector<8x32xf32>
    %c48_191 = arith.constant 48 : index
    %c128_192 = arith.constant 128 : index
    %200 = vector.load %arg13[%c48_191, %c128_192] : memref<64x288xf32, #tpu.memory_space<vmem>>, vector<8x32xf32>
    tpu.vector_store %arg13[%c48_191, %c128_192], %199 {strides = array<i32>} : memref<64x288xf32, #tpu.memory_space<vmem>>, vector<8x32xf32>,
    %201 = vector.extract_strided_slice %196 {offsets = [2, 0], sizes = [8, 32], strides = [1, 1]} : vector<10x32xf32> to vector<8x32xf32>
    %c48_193 = arith.constant 48 : index
    %c160_194 = arith.constant 160 : index
    %202 = vector.load %arg13[%c48_193, %c160_194] : memref<64x288xf32, #tpu.memory_space<vmem>>, vector<8x32xf32>
    tpu.vector_store %arg13[%c48_193, %c160_194], %201 {strides = array<i32>} : memref<64x288xf32, #tpu.memory_space<vmem>>, vector<8x32xf32>,
    %c8_195 = arith.constant 8 : index
    %c0_196 = arith.constant 0 : index
    %c0_197 = arith.constant 0 : index
    %203 = vector.load %arg12[%c8_195, %c0_196, %c0_197] : memref<10x10x32xf32, #tpu.memory_space<vmem>>, vector<1x10x32xf32>
    %204 = vector.shape_cast %203 : vector<1x10x32xf32> to vector<10x32xf32>
    %205 = vector.extract_strided_slice %204 {offsets = [0, 0], sizes = [8, 32], strides = [1, 1]} : vector<10x32xf32> to vector<8x32xf32>
    %c48_198 = arith.constant 48 : index
    %c192_199 = arith.constant 192 : index
    %206 = vector.load %arg13[%c48_198, %c192_199] : memref<64x288xf32, #tpu.memory_space<vmem>>, vector<8x32xf32>
    tpu.vector_store %arg13[%c48_198, %c192_199], %205 {strides = array<i32>} : memref<64x288xf32, #tpu.memory_space<vmem>>, vector<8x32xf32>,
    %207 = vector.extract_strided_slice %204 {offsets = [1, 0], sizes = [8, 32], strides = [1, 1]} : vector<10x32xf32> to vector<8x32xf32>
    %c48_200 = arith.constant 48 : index
    %c224_201 = arith.constant 224 : index
    %208 = vector.load %arg13[%c48_200, %c224_201] : memref<64x288xf32, #tpu.memory_space<vmem>>, vector<8x32xf32>
    tpu.vector_store %arg13[%c48_200, %c224_201], %207 {strides = array<i32>} : memref<64x288xf32, #tpu.memory_space<vmem>>, vector<8x32xf32>,
    %209 = vector.extract_strided_slice %204 {offsets = [2, 0], sizes = [8, 32], strides = [1, 1]} : vector<10x32xf32> to vector<8x32xf32>
    %c48_202 = arith.constant 48 : index
    %c256_203 = arith.constant 256 : index
    %210 = vector.load %arg13[%c48_202, %c256_203] : memref<64x288xf32, #tpu.memory_space<vmem>>, vector<8x32xf32>
    tpu.vector_store %arg13[%c48_202, %c256_203], %209 {strides = array<i32>} : memref<64x288xf32, #tpu.memory_space<vmem>>, vector<8x32xf32>,
    %c7_204 = arith.constant 7 : index
    %c0_205 = arith.constant 0 : index
    %c0_206 = arith.constant 0 : index
    %211 = vector.load %arg12[%c7_204, %c0_205, %c0_206] : memref<10x10x32xf32, #tpu.memory_space<vmem>>, vector<1x10x32xf32>
    %212 = vector.shape_cast %211 : vector<1x10x32xf32> to vector<10x32xf32>
    %213 = vector.extract_strided_slice %212 {offsets = [0, 0], sizes = [8, 32], strides = [1, 1]} : vector<10x32xf32> to vector<8x32xf32>
    %c56 = arith.constant 56 : index
    %c0_207 = arith.constant 0 : index
    %214 = vector.load %arg13[%c56, %c0_207] : memref<64x288xf32, #tpu.memory_space<vmem>>, vector<8x32xf32>
    tpu.vector_store %arg13[%c56, %c0_207], %213 {strides = array<i32>} : memref<64x288xf32, #tpu.memory_space<vmem>>, vector<8x32xf32>,
    %215 = vector.extract_strided_slice %212 {offsets = [1, 0], sizes = [8, 32], strides = [1, 1]} : vector<10x32xf32> to vector<8x32xf32>
    %c56_208 = arith.constant 56 : index
    %c32_209 = arith.constant 32 : index
    %216 = vector.load %arg13[%c56_208, %c32_209] : memref<64x288xf32, #tpu.memory_space<vmem>>, vector<8x32xf32>
    tpu.vector_store %arg13[%c56_208, %c32_209], %215 {strides = array<i32>} : memref<64x288xf32, #tpu.memory_space<vmem>>, vector<8x32xf32>,
    %217 = vector.extract_strided_slice %212 {offsets = [2, 0], sizes = [8, 32], strides = [1, 1]} : vector<10x32xf32> to vector<8x32xf32>
    %c56_210 = arith.constant 56 : index
    %c64_211 = arith.constant 64 : index
    %218 = vector.load %arg13[%c56_210, %c64_211] : memref<64x288xf32, #tpu.memory_space<vmem>>, vector<8x32xf32>
    tpu.vector_store %arg13[%c56_210, %c64_211], %217 {strides = array<i32>} : memref<64x288xf32, #tpu.memory_space<vmem>>, vector<8x32xf32>,
    %c8_212 = arith.constant 8 : index
    %c0_213 = arith.constant 0 : index
    %c0_214 = arith.constant 0 : index
    %219 = vector.load %arg12[%c8_212, %c0_213, %c0_214] : memref<10x10x32xf32, #tpu.memory_space<vmem>>, vector<1x10x32xf32>
    %220 = vector.shape_cast %219 : vector<1x10x32xf32> to vector<10x32xf32>
    %221 = vector.extract_strided_slice %220 {offsets = [0, 0], sizes = [8, 32], strides = [1, 1]} : vector<10x32xf32> to vector<8x32xf32>
    %c56_215 = arith.constant 56 : index
    %c96_216 = arith.constant 96 : index
    %222 = vector.load %arg13[%c56_215, %c96_216] : memref<64x288xf32, #tpu.memory_space<vmem>>, vector<8x32xf32>
    tpu.vector_store %arg13[%c56_215, %c96_216], %221 {strides = array<i32>} : memref<64x288xf32, #tpu.memory_space<vmem>>, vector<8x32xf32>,
    %223 = vector.extract_strided_slice %220 {offsets = [1, 0], sizes = [8, 32], strides = [1, 1]} : vector<10x32xf32> to vector<8x32xf32>
    %c56_217 = arith.constant 56 : index
    %c128_218 = arith.constant 128 : index
    %224 = vector.load %arg13[%c56_217, %c128_218] : memref<64x288xf32, #tpu.memory_space<vmem>>, vector<8x32xf32>
    tpu.vector_store %arg13[%c56_217, %c128_218], %223 {strides = array<i32>} : memref<64x288xf32, #tpu.memory_space<vmem>>, vector<8x32xf32>,
    %225 = vector.extract_strided_slice %220 {offsets = [2, 0], sizes = [8, 32], strides = [1, 1]} : vector<10x32xf32> to vector<8x32xf32>
    %c56_219 = arith.constant 56 : index
    %c160_220 = arith.constant 160 : index
    %226 = vector.load %arg13[%c56_219, %c160_220] : memref<64x288xf32, #tpu.memory_space<vmem>>, vector<8x32xf32>
    tpu.vector_store %arg13[%c56_219, %c160_220], %225 {strides = array<i32>} : memref<64x288xf32, #tpu.memory_space<vmem>>, vector<8x32xf32>,
    %c9 = arith.constant 9 : index
    %c0_221 = arith.constant 0 : index
    %c0_222 = arith.constant 0 : index
    %227 = vector.load %arg12[%c9, %c0_221, %c0_222] : memref<10x10x32xf32, #tpu.memory_space<vmem>>, vector<1x10x32xf32>
    %228 = vector.shape_cast %227 : vector<1x10x32xf32> to vector<10x32xf32>
    %229 = vector.extract_strided_slice %228 {offsets = [0, 0], sizes = [8, 32], strides = [1, 1]} : vector<10x32xf32> to vector<8x32xf32>
    %c56_223 = arith.constant 56 : index
    %c192_224 = arith.constant 192 : index
    %230 = vector.load %arg13[%c56_223, %c192_224] : memref<64x288xf32, #tpu.memory_space<vmem>>, vector<8x32xf32>
    tpu.vector_store %arg13[%c56_223, %c192_224], %229 {strides = array<i32>} : memref<64x288xf32, #tpu.memory_space<vmem>>, vector<8x32xf32>,
    %231 = vector.extract_strided_slice %228 {offsets = [1, 0], sizes = [8, 32], strides = [1, 1]} : vector<10x32xf32> to vector<8x32xf32>
    %c56_225 = arith.constant 56 : index
    %c224_226 = arith.constant 224 : index
    %232 = vector.load %arg13[%c56_225, %c224_226] : memref<64x288xf32, #tpu.memory_space<vmem>>, vector<8x32xf32>
    tpu.vector_store %arg13[%c56_225, %c224_226], %231 {strides = array<i32>} : memref<64x288xf32, #tpu.memory_space<vmem>>, vector<8x32xf32>,
    %233 = vector.extract_strided_slice %228 {offsets = [2, 0], sizes = [8, 32], strides = [1, 1]} : vector<10x32xf32> to vector<8x32xf32>
    %c56_227 = arith.constant 56 : index
    %c256_228 = arith.constant 256 : index
    %234 = vector.load %arg13[%c56_227, %c256_228] : memref<64x288xf32, #tpu.memory_space<vmem>>, vector<8x32xf32>
    tpu.vector_store %arg13[%c56_227, %c256_228], %233 {strides = array<i32>} : memref<64x288xf32, #tpu.memory_space<vmem>>, vector<8x32xf32>,
    %c0_229 = arith.constant 0 : index
    %c0_230 = arith.constant 0 : index
    %235 = vector.load %arg13[%c0_229, %c0_230] : memref<64x288xf32, #tpu.memory_space<vmem>>, vector<64x288xf32>
    %c0_231 = arith.constant 0 : index
    %c0_232 = arith.constant 0 : index
    %236 = vector.load %arg4[%c0_231, %c0_232] : memref<288x64xf32, #tpu.memory_space<vmem>>, vector<288x64xf32>
    %cst_233 = arith.constant dense<0.000000e+00> : vector<64x64xf32>
    %237 = tpu.matmul %235, %236, %cst_233 {dimension_numbers = #tpu.dot_dimension_numbers<[1], [0], [0], [1], [0, 0, 1, 1], [], []>, precision = #tpu.contract_precision<fp32>} : vector<64x288xf32>, vector<288x64xf32>, vector<64x64xf32> -> vector<64x64xf32>
    %c0_234 = arith.constant 0 : index
    %c0_235 = arith.constant 0 : index
    %238 = vector.load %arg5[%c0_234, %c0_235] : memref<1x64xf32, #tpu.memory_space<vmem>>, vector<1x64xf32>
    %239 = vector.broadcast %238 : vector<1x64xf32> to vector<64x64xf32>
    %240 = arith.addf %237, %239 : vector<64x64xf32>
    %cst_236 = arith.constant 0.000000e+00 : f32
    %241 = vector.broadcast %cst_236 : f32 to vector<64x64xf32>
    %242 = arith.maximumf %240, %241 : vector<64x64xf32>
    %cst_237 = arith.constant 0.000000e+00 : f32
    %243 = vector.broadcast %cst_237 : f32 to vector<10x10x64xf32>
    %c0_238 = arith.constant 0 : index
    %c0_239 = arith.constant 0 : index
    %c0_240 = arith.constant 0 : index
    %244 = vector.load %arg14[%c0_238, %c0_239, %c0_240] : memref<10x10x64xf32, #tpu.memory_space<vmem>>, vector<10x10x64xf32>
    tpu.vector_store %arg14[%c0_238, %c0_239, %c0_240], %243 {strides = array<i32>} : memref<10x10x64xf32, #tpu.memory_space<vmem>>, vector<10x10x64xf32>,
    %245 = vector.extract_strided_slice %242 {offsets = [0, 0], sizes = [8, 64], strides = [1, 1]} : vector<64x64xf32> to vector<8x64xf32>
    %c1_241 = arith.constant 1 : index
    %c1_242 = arith.constant 1 : index
    %c0_243 = arith.constant 0 : index
    %246 = vector.load %arg14[%c1_241, %c1_242, %c0_243] : memref<10x10x64xf32, #tpu.memory_space<vmem>>, vector<1x8x64xf32>
    %247 = vector.shape_cast %246 : vector<1x8x64xf32> to vector<8x64xf32>
    %248 = vector.shape_cast %245 : vector<8x64xf32> to vector<1x8x64xf32>
    tpu.vector_store %arg14[%c1_241, %c1_242, %c0_243], %248 {strides = array<i32>} : memref<10x10x64xf32, #tpu.memory_space<vmem>>, vector<1x8x64xf32>,
    %249 = vector.extract_strided_slice %242 {offsets = [8, 0], sizes = [8, 64], strides = [1, 1]} : vector<64x64xf32> to vector<8x64xf32>
    %c2_244 = arith.constant 2 : index
    %c1_245 = arith.constant 1 : index
    %c0_246 = arith.constant 0 : index
    %250 = vector.load %arg14[%c2_244, %c1_245, %c0_246] : memref<10x10x64xf32, #tpu.memory_space<vmem>>, vector<1x8x64xf32>
    %251 = vector.shape_cast %250 : vector<1x8x64xf32> to vector<8x64xf32>
    %252 = vector.shape_cast %249 : vector<8x64xf32> to vector<1x8x64xf32>
    tpu.vector_store %arg14[%c2_244, %c1_245, %c0_246], %252 {strides = array<i32>} : memref<10x10x64xf32, #tpu.memory_space<vmem>>, vector<1x8x64xf32>,
    %253 = vector.extract_strided_slice %242 {offsets = [16, 0], sizes = [8, 64], strides = [1, 1]} : vector<64x64xf32> to vector<8x64xf32>
    %c3_247 = arith.constant 3 : index
    %c1_248 = arith.constant 1 : index
    %c0_249 = arith.constant 0 : index
    %254 = vector.load %arg14[%c3_247, %c1_248, %c0_249] : memref<10x10x64xf32, #tpu.memory_space<vmem>>, vector<1x8x64xf32>
    %255 = vector.shape_cast %254 : vector<1x8x64xf32> to vector<8x64xf32>
    %256 = vector.shape_cast %253 : vector<8x64xf32> to vector<1x8x64xf32>
    tpu.vector_store %arg14[%c3_247, %c1_248, %c0_249], %256 {strides = array<i32>} : memref<10x10x64xf32, #tpu.memory_space<vmem>>, vector<1x8x64xf32>,
    %257 = vector.extract_strided_slice %242 {offsets = [24, 0], sizes = [8, 64], strides = [1, 1]} : vector<64x64xf32> to vector<8x64xf32>
    %c4_250 = arith.constant 4 : index
    %c1_251 = arith.constant 1 : index
    %c0_252 = arith.constant 0 : index
    %258 = vector.load %arg14[%c4_250, %c1_251, %c0_252] : memref<10x10x64xf32, #tpu.memory_space<vmem>>, vector<1x8x64xf32>
    %259 = vector.shape_cast %258 : vector<1x8x64xf32> to vector<8x64xf32>
    %260 = vector.shape_cast %257 : vector<8x64xf32> to vector<1x8x64xf32>
    tpu.vector_store %arg14[%c4_250, %c1_251, %c0_252], %260 {strides = array<i32>} : memref<10x10x64xf32, #tpu.memory_space<vmem>>, vector<1x8x64xf32>,
    %261 = vector.extract_strided_slice %242 {offsets = [32, 0], sizes = [8, 64], strides = [1, 1]} : vector<64x64xf32> to vector<8x64xf32>
    %c5_253 = arith.constant 5 : index
    %c1_254 = arith.constant 1 : index
    %c0_255 = arith.constant 0 : index
    %262 = vector.load %arg14[%c5_253, %c1_254, %c0_255] : memref<10x10x64xf32, #tpu.memory_space<vmem>>, vector<1x8x64xf32>
    %263 = vector.shape_cast %262 : vector<1x8x64xf32> to vector<8x64xf32>
    %264 = vector.shape_cast %261 : vector<8x64xf32> to vector<1x8x64xf32>
    tpu.vector_store %arg14[%c5_253, %c1_254, %c0_255], %264 {strides = array<i32>} : memref<10x10x64xf32, #tpu.memory_space<vmem>>, vector<1x8x64xf32>,
    %265 = vector.extract_strided_slice %242 {offsets = [40, 0], sizes = [8, 64], strides = [1, 1]} : vector<64x64xf32> to vector<8x64xf32>
    %c6_256 = arith.constant 6 : index
    %c1_257 = arith.constant 1 : index
    %c0_258 = arith.constant 0 : index
    %266 = vector.load %arg14[%c6_256, %c1_257, %c0_258] : memref<10x10x64xf32, #tpu.memory_space<vmem>>, vector<1x8x64xf32>
    %267 = vector.shape_cast %266 : vector<1x8x64xf32> to vector<8x64xf32>
    %268 = vector.shape_cast %265 : vector<8x64xf32> to vector<1x8x64xf32>
    tpu.vector_store %arg14[%c6_256, %c1_257, %c0_258], %268 {strides = array<i32>} : memref<10x10x64xf32, #tpu.memory_space<vmem>>, vector<1x8x64xf32>,
    %269 = vector.extract_strided_slice %242 {offsets = [48, 0], sizes = [8, 64], strides = [1, 1]} : vector<64x64xf32> to vector<8x64xf32>
    %c7_259 = arith.constant 7 : index
    %c1_260 = arith.constant 1 : index
    %c0_261 = arith.constant 0 : index
    %270 = vector.load %arg14[%c7_259, %c1_260, %c0_261] : memref<10x10x64xf32, #tpu.memory_space<vmem>>, vector<1x8x64xf32>
    %271 = vector.shape_cast %270 : vector<1x8x64xf32> to vector<8x64xf32>
    %272 = vector.shape_cast %269 : vector<8x64xf32> to vector<1x8x64xf32>
    tpu.vector_store %arg14[%c7_259, %c1_260, %c0_261], %272 {strides = array<i32>} : memref<10x10x64xf32, #tpu.memory_space<vmem>>, vector<1x8x64xf32>,
    %273 = vector.extract_strided_slice %242 {offsets = [56, 0], sizes = [8, 64], strides = [1, 1]} : vector<64x64xf32> to vector<8x64xf32>
    %c8_262 = arith.constant 8 : index
    %c1_263 = arith.constant 1 : index
    %c0_264 = arith.constant 0 : index
    %274 = vector.load %arg14[%c8_262, %c1_263, %c0_264] : memref<10x10x64xf32, #tpu.memory_space<vmem>>, vector<1x8x64xf32>
    %275 = vector.shape_cast %274 : vector<1x8x64xf32> to vector<8x64xf32>
    %276 = vector.shape_cast %273 : vector<8x64xf32> to vector<1x8x64xf32>
    tpu.vector_store %arg14[%c8_262, %c1_263, %c0_264], %276 {strides = array<i32>} : memref<10x10x64xf32, #tpu.memory_space<vmem>>, vector<1x8x64xf32>,
    %c0_265 = arith.constant 0 : index
    %c0_266 = arith.constant 0 : index
    %c0_267 = arith.constant 0 : index
    %277 = vector.load %arg14[%c0_265, %c0_266, %c0_267] : memref<10x10x64xf32, #tpu.memory_space<vmem>>, vector<1x10x64xf32>
    %278 = vector.shape_cast %277 : vector<1x10x64xf32> to vector<10x64xf32>
    %279 = vector.extract_strided_slice %278 {offsets = [0, 0], sizes = [8, 64], strides = [1, 1]} : vector<10x64xf32> to vector<8x64xf32>
    %c0_268 = arith.constant 0 : index
    %c0_269 = arith.constant 0 : index
    %280 = vector.load %arg15[%c0_268, %c0_269] : memref<64x576xf32, #tpu.memory_space<vmem>>, vector<8x64xf32>
    tpu.vector_store %arg15[%c0_268, %c0_269], %279 {strides = array<i32>} : memref<64x576xf32, #tpu.memory_space<vmem>>, vector<8x64xf32>,
    %281 = vector.extract_strided_slice %278 {offsets = [1, 0], sizes = [8, 64], strides = [1, 1]} : vector<10x64xf32> to vector<8x64xf32>
    %c0_270 = arith.constant 0 : index
    %c64_271 = arith.constant 64 : index
    %282 = vector.load %arg15[%c0_270, %c64_271] : memref<64x576xf32, #tpu.memory_space<vmem>>, vector<8x64xf32>
    tpu.vector_store %arg15[%c0_270, %c64_271], %281 {strides = array<i32>} : memref<64x576xf32, #tpu.memory_space<vmem>>, vector<8x64xf32>,
    %283 = vector.extract_strided_slice %278 {offsets = [2, 0], sizes = [8, 64], strides = [1, 1]} : vector<10x64xf32> to vector<8x64xf32>
    %c0_272 = arith.constant 0 : index
    %c128_273 = arith.constant 128 : index
    %284 = vector.load %arg15[%c0_272, %c128_273] : memref<64x576xf32, #tpu.memory_space<vmem>>, vector<8x64xf32>
    tpu.vector_store %arg15[%c0_272, %c128_273], %283 {strides = array<i32>} : memref<64x576xf32, #tpu.memory_space<vmem>>, vector<8x64xf32>,
    %c1_274 = arith.constant 1 : index
    %c0_275 = arith.constant 0 : index
    %c0_276 = arith.constant 0 : index
    %285 = vector.load %arg14[%c1_274, %c0_275, %c0_276] : memref<10x10x64xf32, #tpu.memory_space<vmem>>, vector<1x10x64xf32>
    %286 = vector.shape_cast %285 : vector<1x10x64xf32> to vector<10x64xf32>
    %287 = vector.extract_strided_slice %286 {offsets = [0, 0], sizes = [8, 64], strides = [1, 1]} : vector<10x64xf32> to vector<8x64xf32>
    %c0_277 = arith.constant 0 : index
    %c192_278 = arith.constant 192 : index
    %288 = vector.load %arg15[%c0_277, %c192_278] : memref<64x576xf32, #tpu.memory_space<vmem>>, vector<8x64xf32>
    tpu.vector_store %arg15[%c0_277, %c192_278], %287 {strides = array<i32>} : memref<64x576xf32, #tpu.memory_space<vmem>>, vector<8x64xf32>,
    %289 = vector.extract_strided_slice %286 {offsets = [1, 0], sizes = [8, 64], strides = [1, 1]} : vector<10x64xf32> to vector<8x64xf32>
    %c0_279 = arith.constant 0 : index
    %c256_280 = arith.constant 256 : index
    %290 = vector.load %arg15[%c0_279, %c256_280] : memref<64x576xf32, #tpu.memory_space<vmem>>, vector<8x64xf32>
    tpu.vector_store %arg15[%c0_279, %c256_280], %289 {strides = array<i32>} : memref<64x576xf32, #tpu.memory_space<vmem>>, vector<8x64xf32>,
    %291 = vector.extract_strided_slice %286 {offsets = [2, 0], sizes = [8, 64], strides = [1, 1]} : vector<10x64xf32> to vector<8x64xf32>
    %c0_281 = arith.constant 0 : index
    %c320 = arith.constant 320 : index
    %292 = vector.load %arg15[%c0_281, %c320] : memref<64x576xf32, #tpu.memory_space<vmem>>, vector<8x64xf32>
    tpu.vector_store %arg15[%c0_281, %c320], %291 {strides = array<i32>} : memref<64x576xf32, #tpu.memory_space<vmem>>, vector<8x64xf32>,
    %c2_282 = arith.constant 2 : index
    %c0_283 = arith.constant 0 : index
    %c0_284 = arith.constant 0 : index
    %293 = vector.load %arg14[%c2_282, %c0_283, %c0_284] : memref<10x10x64xf32, #tpu.memory_space<vmem>>, vector<1x10x64xf32>
    %294 = vector.shape_cast %293 : vector<1x10x64xf32> to vector<10x64xf32>
    %295 = vector.extract_strided_slice %294 {offsets = [0, 0], sizes = [8, 64], strides = [1, 1]} : vector<10x64xf32> to vector<8x64xf32>
    %c0_285 = arith.constant 0 : index
    %c384 = arith.constant 384 : index
    %296 = vector.load %arg15[%c0_285, %c384] : memref<64x576xf32, #tpu.memory_space<vmem>>, vector<8x64xf32>
    tpu.vector_store %arg15[%c0_285, %c384], %295 {strides = array<i32>} : memref<64x576xf32, #tpu.memory_space<vmem>>, vector<8x64xf32>,
    %297 = vector.extract_strided_slice %294 {offsets = [1, 0], sizes = [8, 64], strides = [1, 1]} : vector<10x64xf32> to vector<8x64xf32>
    %c0_286 = arith.constant 0 : index
    %c448 = arith.constant 448 : index
    %298 = vector.load %arg15[%c0_286, %c448] : memref<64x576xf32, #tpu.memory_space<vmem>>, vector<8x64xf32>
    tpu.vector_store %arg15[%c0_286, %c448], %297 {strides = array<i32>} : memref<64x576xf32, #tpu.memory_space<vmem>>, vector<8x64xf32>,
    %299 = vector.extract_strided_slice %294 {offsets = [2, 0], sizes = [8, 64], strides = [1, 1]} : vector<10x64xf32> to vector<8x64xf32>
    %c0_287 = arith.constant 0 : index
    %c512 = arith.constant 512 : index
    %300 = vector.load %arg15[%c0_287, %c512] : memref<64x576xf32, #tpu.memory_space<vmem>>, vector<8x64xf32>
    tpu.vector_store %arg15[%c0_287, %c512], %299 {strides = array<i32>} : memref<64x576xf32, #tpu.memory_space<vmem>>, vector<8x64xf32>,
    %c1_288 = arith.constant 1 : index
    %c0_289 = arith.constant 0 : index
    %c0_290 = arith.constant 0 : index
    %301 = vector.load %arg14[%c1_288, %c0_289, %c0_290] : memref<10x10x64xf32, #tpu.memory_space<vmem>>, vector<1x10x64xf32>
    %302 = vector.shape_cast %301 : vector<1x10x64xf32> to vector<10x64xf32>
    %303 = vector.extract_strided_slice %302 {offsets = [0, 0], sizes = [8, 64], strides = [1, 1]} : vector<10x64xf32> to vector<8x64xf32>
    %c8_291 = arith.constant 8 : index
    %c0_292 = arith.constant 0 : index
    %304 = vector.load %arg15[%c8_291, %c0_292] : memref<64x576xf32, #tpu.memory_space<vmem>>, vector<8x64xf32>
    tpu.vector_store %arg15[%c8_291, %c0_292], %303 {strides = array<i32>} : memref<64x576xf32, #tpu.memory_space<vmem>>, vector<8x64xf32>,
    %305 = vector.extract_strided_slice %302 {offsets = [1, 0], sizes = [8, 64], strides = [1, 1]} : vector<10x64xf32> to vector<8x64xf32>
    %c8_293 = arith.constant 8 : index
    %c64_294 = arith.constant 64 : index
    %306 = vector.load %arg15[%c8_293, %c64_294] : memref<64x576xf32, #tpu.memory_space<vmem>>, vector<8x64xf32>
    tpu.vector_store %arg15[%c8_293, %c64_294], %305 {strides = array<i32>} : memref<64x576xf32, #tpu.memory_space<vmem>>, vector<8x64xf32>,
    %307 = vector.extract_strided_slice %302 {offsets = [2, 0], sizes = [8, 64], strides = [1, 1]} : vector<10x64xf32> to vector<8x64xf32>
    %c8_295 = arith.constant 8 : index
    %c128_296 = arith.constant 128 : index
    %308 = vector.load %arg15[%c8_295, %c128_296] : memref<64x576xf32, #tpu.memory_space<vmem>>, vector<8x64xf32>
    tpu.vector_store %arg15[%c8_295, %c128_296], %307 {strides = array<i32>} : memref<64x576xf32, #tpu.memory_space<vmem>>, vector<8x64xf32>,
    %c2_297 = arith.constant 2 : index
    %c0_298 = arith.constant 0 : index
    %c0_299 = arith.constant 0 : index
    %309 = vector.load %arg14[%c2_297, %c0_298, %c0_299] : memref<10x10x64xf32, #tpu.memory_space<vmem>>, vector<1x10x64xf32>
    %310 = vector.shape_cast %309 : vector<1x10x64xf32> to vector<10x64xf32>
    %311 = vector.extract_strided_slice %310 {offsets = [0, 0], sizes = [8, 64], strides = [1, 1]} : vector<10x64xf32> to vector<8x64xf32>
    %c8_300 = arith.constant 8 : index
    %c192_301 = arith.constant 192 : index
    %312 = vector.load %arg15[%c8_300, %c192_301] : memref<64x576xf32, #tpu.memory_space<vmem>>, vector<8x64xf32>
    tpu.vector_store %arg15[%c8_300, %c192_301], %311 {strides = array<i32>} : memref<64x576xf32, #tpu.memory_space<vmem>>, vector<8x64xf32>,
    %313 = vector.extract_strided_slice %310 {offsets = [1, 0], sizes = [8, 64], strides = [1, 1]} : vector<10x64xf32> to vector<8x64xf32>
    %c8_302 = arith.constant 8 : index
    %c256_303 = arith.constant 256 : index
    %314 = vector.load %arg15[%c8_302, %c256_303] : memref<64x576xf32, #tpu.memory_space<vmem>>, vector<8x64xf32>
    tpu.vector_store %arg15[%c8_302, %c256_303], %313 {strides = array<i32>} : memref<64x576xf32, #tpu.memory_space<vmem>>, vector<8x64xf32>,
    %315 = vector.extract_strided_slice %310 {offsets = [2, 0], sizes = [8, 64], strides = [1, 1]} : vector<10x64xf32> to vector<8x64xf32>
    %c8_304 = arith.constant 8 : index
    %c320_305 = arith.constant 320 : index
    %316 = vector.load %arg15[%c8_304, %c320_305] : memref<64x576xf32, #tpu.memory_space<vmem>>, vector<8x64xf32>
    tpu.vector_store %arg15[%c8_304, %c320_305], %315 {strides = array<i32>} : memref<64x576xf32, #tpu.memory_space<vmem>>, vector<8x64xf32>,
    %c3_306 = arith.constant 3 : index
    %c0_307 = arith.constant 0 : index
    %c0_308 = arith.constant 0 : index
    %317 = vector.load %arg14[%c3_306, %c0_307, %c0_308] : memref<10x10x64xf32, #tpu.memory_space<vmem>>, vector<1x10x64xf32>
    %318 = vector.shape_cast %317 : vector<1x10x64xf32> to vector<10x64xf32>
    %319 = vector.extract_strided_slice %318 {offsets = [0, 0], sizes = [8, 64], strides = [1, 1]} : vector<10x64xf32> to vector<8x64xf32>
    %c8_309 = arith.constant 8 : index
    %c384_310 = arith.constant 384 : index
    %320 = vector.load %arg15[%c8_309, %c384_310] : memref<64x576xf32, #tpu.memory_space<vmem>>, vector<8x64xf32>
    tpu.vector_store %arg15[%c8_309, %c384_310], %319 {strides = array<i32>} : memref<64x576xf32, #tpu.memory_space<vmem>>, vector<8x64xf32>,
    %321 = vector.extract_strided_slice %318 {offsets = [1, 0], sizes = [8, 64], strides = [1, 1]} : vector<10x64xf32> to vector<8x64xf32>
    %c8_311 = arith.constant 8 : index
    %c448_312 = arith.constant 448 : index
    %322 = vector.load %arg15[%c8_311, %c448_312] : memref<64x576xf32, #tpu.memory_space<vmem>>, vector<8x64xf32>
    tpu.vector_store %arg15[%c8_311, %c448_312], %321 {strides = array<i32>} : memref<64x576xf32, #tpu.memory_space<vmem>>, vector<8x64xf32>,
    %323 = vector.extract_strided_slice %318 {offsets = [2, 0], sizes = [8, 64], strides = [1, 1]} : vector<10x64xf32> to vector<8x64xf32>
    %c8_313 = arith.constant 8 : index
    %c512_314 = arith.constant 512 : index
    %324 = vector.load %arg15[%c8_313, %c512_314] : memref<64x576xf32, #tpu.memory_space<vmem>>, vector<8x64xf32>
    tpu.vector_store %arg15[%c8_313, %c512_314], %323 {strides = array<i32>} : memref<64x576xf32, #tpu.memory_space<vmem>>, vector<8x64xf32>,
    %c2_315 = arith.constant 2 : index
    %c0_316 = arith.constant 0 : index
    %c0_317 = arith.constant 0 : index
    %325 = vector.load %arg14[%c2_315, %c0_316, %c0_317] : memref<10x10x64xf32, #tpu.memory_space<vmem>>, vector<1x10x64xf32>
    %326 = vector.shape_cast %325 : vector<1x10x64xf32> to vector<10x64xf32>
    %327 = vector.extract_strided_slice %326 {offsets = [0, 0], sizes = [8, 64], strides = [1, 1]} : vector<10x64xf32> to vector<8x64xf32>
    %c16_318 = arith.constant 16 : index
    %c0_319 = arith.constant 0 : index
    %328 = vector.load %arg15[%c16_318, %c0_319] : memref<64x576xf32, #tpu.memory_space<vmem>>, vector<8x64xf32>
    tpu.vector_store %arg15[%c16_318, %c0_319], %327 {strides = array<i32>} : memref<64x576xf32, #tpu.memory_space<vmem>>, vector<8x64xf32>,
    %329 = vector.extract_strided_slice %326 {offsets = [1, 0], sizes = [8, 64], strides = [1, 1]} : vector<10x64xf32> to vector<8x64xf32>
    %c16_320 = arith.constant 16 : index
    %c64_321 = arith.constant 64 : index
    %330 = vector.load %arg15[%c16_320, %c64_321] : memref<64x576xf32, #tpu.memory_space<vmem>>, vector<8x64xf32>
    tpu.vector_store %arg15[%c16_320, %c64_321], %329 {strides = array<i32>} : memref<64x576xf32, #tpu.memory_space<vmem>>, vector<8x64xf32>,
    %331 = vector.extract_strided_slice %326 {offsets = [2, 0], sizes = [8, 64], strides = [1, 1]} : vector<10x64xf32> to vector<8x64xf32>
    %c16_322 = arith.constant 16 : index
    %c128_323 = arith.constant 128 : index
    %332 = vector.load %arg15[%c16_322, %c128_323] : memref<64x576xf32, #tpu.memory_space<vmem>>, vector<8x64xf32>
    tpu.vector_store %arg15[%c16_322, %c128_323], %331 {strides = array<i32>} : memref<64x576xf32, #tpu.memory_space<vmem>>, vector<8x64xf32>,
    %c3_324 = arith.constant 3 : index
    %c0_325 = arith.constant 0 : index
    %c0_326 = arith.constant 0 : index
    %333 = vector.load %arg14[%c3_324, %c0_325, %c0_326] : memref<10x10x64xf32, #tpu.memory_space<vmem>>, vector<1x10x64xf32>
    %334 = vector.shape_cast %333 : vector<1x10x64xf32> to vector<10x64xf32>
    %335 = vector.extract_strided_slice %334 {offsets = [0, 0], sizes = [8, 64], strides = [1, 1]} : vector<10x64xf32> to vector<8x64xf32>
    %c16_327 = arith.constant 16 : index
    %c192_328 = arith.constant 192 : index
    %336 = vector.load %arg15[%c16_327, %c192_328] : memref<64x576xf32, #tpu.memory_space<vmem>>, vector<8x64xf32>
    tpu.vector_store %arg15[%c16_327, %c192_328], %335 {strides = array<i32>} : memref<64x576xf32, #tpu.memory_space<vmem>>, vector<8x64xf32>,
    %337 = vector.extract_strided_slice %334 {offsets = [1, 0], sizes = [8, 64], strides = [1, 1]} : vector<10x64xf32> to vector<8x64xf32>
    %c16_329 = arith.constant 16 : index
    %c256_330 = arith.constant 256 : index
    %338 = vector.load %arg15[%c16_329, %c256_330] : memref<64x576xf32, #tpu.memory_space<vmem>>, vector<8x64xf32>
    tpu.vector_store %arg15[%c16_329, %c256_330], %337 {strides = array<i32>} : memref<64x576xf32, #tpu.memory_space<vmem>>, vector<8x64xf32>,
    %339 = vector.extract_strided_slice %334 {offsets = [2, 0], sizes = [8, 64], strides = [1, 1]} : vector<10x64xf32> to vector<8x64xf32>
    %c16_331 = arith.constant 16 : index
    %c320_332 = arith.constant 320 : index
    %340 = vector.load %arg15[%c16_331, %c320_332] : memref<64x576xf32, #tpu.memory_space<vmem>>, vector<8x64xf32>
    tpu.vector_store %arg15[%c16_331, %c320_332], %339 {strides = array<i32>} : memref<64x576xf32, #tpu.memory_space<vmem>>, vector<8x64xf32>,
    %c4_333 = arith.constant 4 : index
    %c0_334 = arith.constant 0 : index
    %c0_335 = arith.constant 0 : index
    %341 = vector.load %arg14[%c4_333, %c0_334, %c0_335] : memref<10x10x64xf32, #tpu.memory_space<vmem>>, vector<1x10x64xf32>
    %342 = vector.shape_cast %341 : vector<1x10x64xf32> to vector<10x64xf32>
    %343 = vector.extract_strided_slice %342 {offsets = [0, 0], sizes = [8, 64], strides = [1, 1]} : vector<10x64xf32> to vector<8x64xf32>
    %c16_336 = arith.constant 16 : index
    %c384_337 = arith.constant 384 : index
    %344 = vector.load %arg15[%c16_336, %c384_337] : memref<64x576xf32, #tpu.memory_space<vmem>>, vector<8x64xf32>
    tpu.vector_store %arg15[%c16_336, %c384_337], %343 {strides = array<i32>} : memref<64x576xf32, #tpu.memory_space<vmem>>, vector<8x64xf32>,
    %345 = vector.extract_strided_slice %342 {offsets = [1, 0], sizes = [8, 64], strides = [1, 1]} : vector<10x64xf32> to vector<8x64xf32>
    %c16_338 = arith.constant 16 : index
    %c448_339 = arith.constant 448 : index
    %346 = vector.load %arg15[%c16_338, %c448_339] : memref<64x576xf32, #tpu.memory_space<vmem>>, vector<8x64xf32>
    tpu.vector_store %arg15[%c16_338, %c448_339], %345 {strides = array<i32>} : memref<64x576xf32, #tpu.memory_space<vmem>>, vector<8x64xf32>,
    %347 = vector.extract_strided_slice %342 {offsets = [2, 0], sizes = [8, 64], strides = [1, 1]} : vector<10x64xf32> to vector<8x64xf32>
    %c16_340 = arith.constant 16 : index
    %c512_341 = arith.constant 512 : index
    %348 = vector.load %arg15[%c16_340, %c512_341] : memref<64x576xf32, #tpu.memory_space<vmem>>, vector<8x64xf32>
    tpu.vector_store %arg15[%c16_340, %c512_341], %347 {strides = array<i32>} : memref<64x576xf32, #tpu.memory_space<vmem>>, vector<8x64xf32>,
    %c3_342 = arith.constant 3 : index
    %c0_343 = arith.constant 0 : index
    %c0_344 = arith.constant 0 : index
    %349 = vector.load %arg14[%c3_342, %c0_343, %c0_344] : memref<10x10x64xf32, #tpu.memory_space<vmem>>, vector<1x10x64xf32>
    %350 = vector.shape_cast %349 : vector<1x10x64xf32> to vector<10x64xf32>
    %351 = vector.extract_strided_slice %350 {offsets = [0, 0], sizes = [8, 64], strides = [1, 1]} : vector<10x64xf32> to vector<8x64xf32>
    %c24_345 = arith.constant 24 : index
    %c0_346 = arith.constant 0 : index
    %352 = vector.load %arg15[%c24_345, %c0_346] : memref<64x576xf32, #tpu.memory_space<vmem>>, vector<8x64xf32>
    tpu.vector_store %arg15[%c24_345, %c0_346], %351 {strides = array<i32>} : memref<64x576xf32, #tpu.memory_space<vmem>>, vector<8x64xf32>,
    %353 = vector.extract_strided_slice %350 {offsets = [1, 0], sizes = [8, 64], strides = [1, 1]} : vector<10x64xf32> to vector<8x64xf32>
    %c24_347 = arith.constant 24 : index
    %c64_348 = arith.constant 64 : index
    %354 = vector.load %arg15[%c24_347, %c64_348] : memref<64x576xf32, #tpu.memory_space<vmem>>, vector<8x64xf32>
    tpu.vector_store %arg15[%c24_347, %c64_348], %353 {strides = array<i32>} : memref<64x576xf32, #tpu.memory_space<vmem>>, vector<8x64xf32>,
    %355 = vector.extract_strided_slice %350 {offsets = [2, 0], sizes = [8, 64], strides = [1, 1]} : vector<10x64xf32> to vector<8x64xf32>
    %c24_349 = arith.constant 24 : index
    %c128_350 = arith.constant 128 : index
    %356 = vector.load %arg15[%c24_349, %c128_350] : memref<64x576xf32, #tpu.memory_space<vmem>>, vector<8x64xf32>
    tpu.vector_store %arg15[%c24_349, %c128_350], %355 {strides = array<i32>} : memref<64x576xf32, #tpu.memory_space<vmem>>, vector<8x64xf32>,
    %c4_351 = arith.constant 4 : index
    %c0_352 = arith.constant 0 : index
    %c0_353 = arith.constant 0 : index
    %357 = vector.load %arg14[%c4_351, %c0_352, %c0_353] : memref<10x10x64xf32, #tpu.memory_space<vmem>>, vector<1x10x64xf32>
    %358 = vector.shape_cast %357 : vector<1x10x64xf32> to vector<10x64xf32>
    %359 = vector.extract_strided_slice %358 {offsets = [0, 0], sizes = [8, 64], strides = [1, 1]} : vector<10x64xf32> to vector<8x64xf32>
    %c24_354 = arith.constant 24 : index
    %c192_355 = arith.constant 192 : index
    %360 = vector.load %arg15[%c24_354, %c192_355] : memref<64x576xf32, #tpu.memory_space<vmem>>, vector<8x64xf32>
    tpu.vector_store %arg15[%c24_354, %c192_355], %359 {strides = array<i32>} : memref<64x576xf32, #tpu.memory_space<vmem>>, vector<8x64xf32>,
    %361 = vector.extract_strided_slice %358 {offsets = [1, 0], sizes = [8, 64], strides = [1, 1]} : vector<10x64xf32> to vector<8x64xf32>
    %c24_356 = arith.constant 24 : index
    %c256_357 = arith.constant 256 : index
    %362 = vector.load %arg15[%c24_356, %c256_357] : memref<64x576xf32, #tpu.memory_space<vmem>>, vector<8x64xf32>
    tpu.vector_store %arg15[%c24_356, %c256_357], %361 {strides = array<i32>} : memref<64x576xf32, #tpu.memory_space<vmem>>, vector<8x64xf32>,
    %363 = vector.extract_strided_slice %358 {offsets = [2, 0], sizes = [8, 64], strides = [1, 1]} : vector<10x64xf32> to vector<8x64xf32>
    %c24_358 = arith.constant 24 : index
    %c320_359 = arith.constant 320 : index
    %364 = vector.load %arg15[%c24_358, %c320_359] : memref<64x576xf32, #tpu.memory_space<vmem>>, vector<8x64xf32>
    tpu.vector_store %arg15[%c24_358, %c320_359], %363 {strides = array<i32>} : memref<64x576xf32, #tpu.memory_space<vmem>>, vector<8x64xf32>,
    %c5_360 = arith.constant 5 : index
    %c0_361 = arith.constant 0 : index
    %c0_362 = arith.constant 0 : index
    %365 = vector.load %arg14[%c5_360, %c0_361, %c0_362] : memref<10x10x64xf32, #tpu.memory_space<vmem>>, vector<1x10x64xf32>
    %366 = vector.shape_cast %365 : vector<1x10x64xf32> to vector<10x64xf32>
    %367 = vector.extract_strided_slice %366 {offsets = [0, 0], sizes = [8, 64], strides = [1, 1]} : vector<10x64xf32> to vector<8x64xf32>
    %c24_363 = arith.constant 24 : index
    %c384_364 = arith.constant 384 : index
    %368 = vector.load %arg15[%c24_363, %c384_364] : memref<64x576xf32, #tpu.memory_space<vmem>>, vector<8x64xf32>
    tpu.vector_store %arg15[%c24_363, %c384_364], %367 {strides = array<i32>} : memref<64x576xf32, #tpu.memory_space<vmem>>, vector<8x64xf32>,
    %369 = vector.extract_strided_slice %366 {offsets = [1, 0], sizes = [8, 64], strides = [1, 1]} : vector<10x64xf32> to vector<8x64xf32>
    %c24_365 = arith.constant 24 : index
    %c448_366 = arith.constant 448 : index
    %370 = vector.load %arg15[%c24_365, %c448_366] : memref<64x576xf32, #tpu.memory_space<vmem>>, vector<8x64xf32>
    tpu.vector_store %arg15[%c24_365, %c448_366], %369 {strides = array<i32>} : memref<64x576xf32, #tpu.memory_space<vmem>>, vector<8x64xf32>,
    %371 = vector.extract_strided_slice %366 {offsets = [2, 0], sizes = [8, 64], strides = [1, 1]} : vector<10x64xf32> to vector<8x64xf32>
    %c24_367 = arith.constant 24 : index
    %c512_368 = arith.constant 512 : index
    %372 = vector.load %arg15[%c24_367, %c512_368] : memref<64x576xf32, #tpu.memory_space<vmem>>, vector<8x64xf32>
    tpu.vector_store %arg15[%c24_367, %c512_368], %371 {strides = array<i32>} : memref<64x576xf32, #tpu.memory_space<vmem>>, vector<8x64xf32>,
    %c4_369 = arith.constant 4 : index
    %c0_370 = arith.constant 0 : index
    %c0_371 = arith.constant 0 : index
    %373 = vector.load %arg14[%c4_369, %c0_370, %c0_371] : memref<10x10x64xf32, #tpu.memory_space<vmem>>, vector<1x10x64xf32>
    %374 = vector.shape_cast %373 : vector<1x10x64xf32> to vector<10x64xf32>
    %375 = vector.extract_strided_slice %374 {offsets = [0, 0], sizes = [8, 64], strides = [1, 1]} : vector<10x64xf32> to vector<8x64xf32>
    %c32_372 = arith.constant 32 : index
    %c0_373 = arith.constant 0 : index
    %376 = vector.load %arg15[%c32_372, %c0_373] : memref<64x576xf32, #tpu.memory_space<vmem>>, vector<8x64xf32>
    tpu.vector_store %arg15[%c32_372, %c0_373], %375 {strides = array<i32>} : memref<64x576xf32, #tpu.memory_space<vmem>>, vector<8x64xf32>,
    %377 = vector.extract_strided_slice %374 {offsets = [1, 0], sizes = [8, 64], strides = [1, 1]} : vector<10x64xf32> to vector<8x64xf32>
    %c32_374 = arith.constant 32 : index
    %c64_375 = arith.constant 64 : index
    %378 = vector.load %arg15[%c32_374, %c64_375] : memref<64x576xf32, #tpu.memory_space<vmem>>, vector<8x64xf32>
    tpu.vector_store %arg15[%c32_374, %c64_375], %377 {strides = array<i32>} : memref<64x576xf32, #tpu.memory_space<vmem>>, vector<8x64xf32>,
    %379 = vector.extract_strided_slice %374 {offsets = [2, 0], sizes = [8, 64], strides = [1, 1]} : vector<10x64xf32> to vector<8x64xf32>
    %c32_376 = arith.constant 32 : index
    %c128_377 = arith.constant 128 : index
    %380 = vector.load %arg15[%c32_376, %c128_377] : memref<64x576xf32, #tpu.memory_space<vmem>>, vector<8x64xf32>
    tpu.vector_store %arg15[%c32_376, %c128_377], %379 {strides = array<i32>} : memref<64x576xf32, #tpu.memory_space<vmem>>, vector<8x64xf32>,
    %c5_378 = arith.constant 5 : index
    %c0_379 = arith.constant 0 : index
    %c0_380 = arith.constant 0 : index
    %381 = vector.load %arg14[%c5_378, %c0_379, %c0_380] : memref<10x10x64xf32, #tpu.memory_space<vmem>>, vector<1x10x64xf32>
    %382 = vector.shape_cast %381 : vector<1x10x64xf32> to vector<10x64xf32>
    %383 = vector.extract_strided_slice %382 {offsets = [0, 0], sizes = [8, 64], strides = [1, 1]} : vector<10x64xf32> to vector<8x64xf32>
    %c32_381 = arith.constant 32 : index
    %c192_382 = arith.constant 192 : index
    %384 = vector.load %arg15[%c32_381, %c192_382] : memref<64x576xf32, #tpu.memory_space<vmem>>, vector<8x64xf32>
    tpu.vector_store %arg15[%c32_381, %c192_382], %383 {strides = array<i32>} : memref<64x576xf32, #tpu.memory_space<vmem>>, vector<8x64xf32>,
    %385 = vector.extract_strided_slice %382 {offsets = [1, 0], sizes = [8, 64], strides = [1, 1]} : vector<10x64xf32> to vector<8x64xf32>
    %c32_383 = arith.constant 32 : index
    %c256_384 = arith.constant 256 : index
    %386 = vector.load %arg15[%c32_383, %c256_384] : memref<64x576xf32, #tpu.memory_space<vmem>>, vector<8x64xf32>
    tpu.vector_store %arg15[%c32_383, %c256_384], %385 {strides = array<i32>} : memref<64x576xf32, #tpu.memory_space<vmem>>, vector<8x64xf32>,
    %387 = vector.extract_strided_slice %382 {offsets = [2, 0], sizes = [8, 64], strides = [1, 1]} : vector<10x64xf32> to vector<8x64xf32>
    %c32_385 = arith.constant 32 : index
    %c320_386 = arith.constant 320 : index
    %388 = vector.load %arg15[%c32_385, %c320_386] : memref<64x576xf32, #tpu.memory_space<vmem>>, vector<8x64xf32>
    tpu.vector_store %arg15[%c32_385, %c320_386], %387 {strides = array<i32>} : memref<64x576xf32, #tpu.memory_space<vmem>>, vector<8x64xf32>,
    %c6_387 = arith.constant 6 : index
    %c0_388 = arith.constant 0 : index
    %c0_389 = arith.constant 0 : index
    %389 = vector.load %arg14[%c6_387, %c0_388, %c0_389] : memref<10x10x64xf32, #tpu.memory_space<vmem>>, vector<1x10x64xf32>
    %390 = vector.shape_cast %389 : vector<1x10x64xf32> to vector<10x64xf32>
    %391 = vector.extract_strided_slice %390 {offsets = [0, 0], sizes = [8, 64], strides = [1, 1]} : vector<10x64xf32> to vector<8x64xf32>
    %c32_390 = arith.constant 32 : index
    %c384_391 = arith.constant 384 : index
    %392 = vector.load %arg15[%c32_390, %c384_391] : memref<64x576xf32, #tpu.memory_space<vmem>>, vector<8x64xf32>
    tpu.vector_store %arg15[%c32_390, %c384_391], %391 {strides = array<i32>} : memref<64x576xf32, #tpu.memory_space<vmem>>, vector<8x64xf32>,
    %393 = vector.extract_strided_slice %390 {offsets = [1, 0], sizes = [8, 64], strides = [1, 1]} : vector<10x64xf32> to vector<8x64xf32>
    %c32_392 = arith.constant 32 : index
    %c448_393 = arith.constant 448 : index
    %394 = vector.load %arg15[%c32_392, %c448_393] : memref<64x576xf32, #tpu.memory_space<vmem>>, vector<8x64xf32>
    tpu.vector_store %arg15[%c32_392, %c448_393], %393 {strides = array<i32>} : memref<64x576xf32, #tpu.memory_space<vmem>>, vector<8x64xf32>,
    %395 = vector.extract_strided_slice %390 {offsets = [2, 0], sizes = [8, 64], strides = [1, 1]} : vector<10x64xf32> to vector<8x64xf32>
    %c32_394 = arith.constant 32 : index
    %c512_395 = arith.constant 512 : index
    %396 = vector.load %arg15[%c32_394, %c512_395] : memref<64x576xf32, #tpu.memory_space<vmem>>, vector<8x64xf32>
    tpu.vector_store %arg15[%c32_394, %c512_395], %395 {strides = array<i32>} : memref<64x576xf32, #tpu.memory_space<vmem>>, vector<8x64xf32>,
    %c5_396 = arith.constant 5 : index
    %c0_397 = arith.constant 0 : index
    %c0_398 = arith.constant 0 : index
    %397 = vector.load %arg14[%c5_396, %c0_397, %c0_398] : memref<10x10x64xf32, #tpu.memory_space<vmem>>, vector<1x10x64xf32>
    %398 = vector.shape_cast %397 : vector<1x10x64xf32> to vector<10x64xf32>
    %399 = vector.extract_strided_slice %398 {offsets = [0, 0], sizes = [8, 64], strides = [1, 1]} : vector<10x64xf32> to vector<8x64xf32>
    %c40_399 = arith.constant 40 : index
    %c0_400 = arith.constant 0 : index
    %400 = vector.load %arg15[%c40_399, %c0_400] : memref<64x576xf32, #tpu.memory_space<vmem>>, vector<8x64xf32>
    tpu.vector_store %arg15[%c40_399, %c0_400], %399 {strides = array<i32>} : memref<64x576xf32, #tpu.memory_space<vmem>>, vector<8x64xf32>,
    %401 = vector.extract_strided_slice %398 {offsets = [1, 0], sizes = [8, 64], strides = [1, 1]} : vector<10x64xf32> to vector<8x64xf32>
    %c40_401 = arith.constant 40 : index
    %c64_402 = arith.constant 64 : index
    %402 = vector.load %arg15[%c40_401, %c64_402] : memref<64x576xf32, #tpu.memory_space<vmem>>, vector<8x64xf32>
    tpu.vector_store %arg15[%c40_401, %c64_402], %401 {strides = array<i32>} : memref<64x576xf32, #tpu.memory_space<vmem>>, vector<8x64xf32>,
    %403 = vector.extract_strided_slice %398 {offsets = [2, 0], sizes = [8, 64], strides = [1, 1]} : vector<10x64xf32> to vector<8x64xf32>
    %c40_403 = arith.constant 40 : index
    %c128_404 = arith.constant 128 : index
    %404 = vector.load %arg15[%c40_403, %c128_404] : memref<64x576xf32, #tpu.memory_space<vmem>>, vector<8x64xf32>
    tpu.vector_store %arg15[%c40_403, %c128_404], %403 {strides = array<i32>} : memref<64x576xf32, #tpu.memory_space<vmem>>, vector<8x64xf32>,
    %c6_405 = arith.constant 6 : index
    %c0_406 = arith.constant 0 : index
    %c0_407 = arith.constant 0 : index
    %405 = vector.load %arg14[%c6_405, %c0_406, %c0_407] : memref<10x10x64xf32, #tpu.memory_space<vmem>>, vector<1x10x64xf32>
    %406 = vector.shape_cast %405 : vector<1x10x64xf32> to vector<10x64xf32>
    %407 = vector.extract_strided_slice %406 {offsets = [0, 0], sizes = [8, 64], strides = [1, 1]} : vector<10x64xf32> to vector<8x64xf32>
    %c40_408 = arith.constant 40 : index
    %c192_409 = arith.constant 192 : index
    %408 = vector.load %arg15[%c40_408, %c192_409] : memref<64x576xf32, #tpu.memory_space<vmem>>, vector<8x64xf32>
    tpu.vector_store %arg15[%c40_408, %c192_409], %407 {strides = array<i32>} : memref<64x576xf32, #tpu.memory_space<vmem>>, vector<8x64xf32>,
    %409 = vector.extract_strided_slice %406 {offsets = [1, 0], sizes = [8, 64], strides = [1, 1]} : vector<10x64xf32> to vector<8x64xf32>
    %c40_410 = arith.constant 40 : index
    %c256_411 = arith.constant 256 : index
    %410 = vector.load %arg15[%c40_410, %c256_411] : memref<64x576xf32, #tpu.memory_space<vmem>>, vector<8x64xf32>
    tpu.vector_store %arg15[%c40_410, %c256_411], %409 {strides = array<i32>} : memref<64x576xf32, #tpu.memory_space<vmem>>, vector<8x64xf32>,
    %411 = vector.extract_strided_slice %406 {offsets = [2, 0], sizes = [8, 64], strides = [1, 1]} : vector<10x64xf32> to vector<8x64xf32>
    %c40_412 = arith.constant 40 : index
    %c320_413 = arith.constant 320 : index
    %412 = vector.load %arg15[%c40_412, %c320_413] : memref<64x576xf32, #tpu.memory_space<vmem>>, vector<8x64xf32>
    tpu.vector_store %arg15[%c40_412, %c320_413], %411 {strides = array<i32>} : memref<64x576xf32, #tpu.memory_space<vmem>>, vector<8x64xf32>,
    %c7_414 = arith.constant 7 : index
    %c0_415 = arith.constant 0 : index
    %c0_416 = arith.constant 0 : index
    %413 = vector.load %arg14[%c7_414, %c0_415, %c0_416] : memref<10x10x64xf32, #tpu.memory_space<vmem>>, vector<1x10x64xf32>
    %414 = vector.shape_cast %413 : vector<1x10x64xf32> to vector<10x64xf32>
    %415 = vector.extract_strided_slice %414 {offsets = [0, 0], sizes = [8, 64], strides = [1, 1]} : vector<10x64xf32> to vector<8x64xf32>
    %c40_417 = arith.constant 40 : index
    %c384_418 = arith.constant 384 : index
    %416 = vector.load %arg15[%c40_417, %c384_418] : memref<64x576xf32, #tpu.memory_space<vmem>>, vector<8x64xf32>
    tpu.vector_store %arg15[%c40_417, %c384_418], %415 {strides = array<i32>} : memref<64x576xf32, #tpu.memory_space<vmem>>, vector<8x64xf32>,
    %417 = vector.extract_strided_slice %414 {offsets = [1, 0], sizes = [8, 64], strides = [1, 1]} : vector<10x64xf32> to vector<8x64xf32>
    %c40_419 = arith.constant 40 : index
    %c448_420 = arith.constant 448 : index
    %418 = vector.load %arg15[%c40_419, %c448_420] : memref<64x576xf32, #tpu.memory_space<vmem>>, vector<8x64xf32>
    tpu.vector_store %arg15[%c40_419, %c448_420], %417 {strides = array<i32>} : memref<64x576xf32, #tpu.memory_space<vmem>>, vector<8x64xf32>,
    %419 = vector.extract_strided_slice %414 {offsets = [2, 0], sizes = [8, 64], strides = [1, 1]} : vector<10x64xf32> to vector<8x64xf32>
    %c40_421 = arith.constant 40 : index
    %c512_422 = arith.constant 512 : index
    %420 = vector.load %arg15[%c40_421, %c512_422] : memref<64x576xf32, #tpu.memory_space<vmem>>, vector<8x64xf32>
    tpu.vector_store %arg15[%c40_421, %c512_422], %419 {strides = array<i32>} : memref<64x576xf32, #tpu.memory_space<vmem>>, vector<8x64xf32>,
    %c6_423 = arith.constant 6 : index
    %c0_424 = arith.constant 0 : index
    %c0_425 = arith.constant 0 : index
    %421 = vector.load %arg14[%c6_423, %c0_424, %c0_425] : memref<10x10x64xf32, #tpu.memory_space<vmem>>, vector<1x10x64xf32>
    %422 = vector.shape_cast %421 : vector<1x10x64xf32> to vector<10x64xf32>
    %423 = vector.extract_strided_slice %422 {offsets = [0, 0], sizes = [8, 64], strides = [1, 1]} : vector<10x64xf32> to vector<8x64xf32>
    %c48_426 = arith.constant 48 : index
    %c0_427 = arith.constant 0 : index
    %424 = vector.load %arg15[%c48_426, %c0_427] : memref<64x576xf32, #tpu.memory_space<vmem>>, vector<8x64xf32>
    tpu.vector_store %arg15[%c48_426, %c0_427], %423 {strides = array<i32>} : memref<64x576xf32, #tpu.memory_space<vmem>>, vector<8x64xf32>,
    %425 = vector.extract_strided_slice %422 {offsets = [1, 0], sizes = [8, 64], strides = [1, 1]} : vector<10x64xf32> to vector<8x64xf32>
    %c48_428 = arith.constant 48 : index
    %c64_429 = arith.constant 64 : index
    %426 = vector.load %arg15[%c48_428, %c64_429] : memref<64x576xf32, #tpu.memory_space<vmem>>, vector<8x64xf32>
    tpu.vector_store %arg15[%c48_428, %c64_429], %425 {strides = array<i32>} : memref<64x576xf32, #tpu.memory_space<vmem>>, vector<8x64xf32>,
    %427 = vector.extract_strided_slice %422 {offsets = [2, 0], sizes = [8, 64], strides = [1, 1]} : vector<10x64xf32> to vector<8x64xf32>
    %c48_430 = arith.constant 48 : index
    %c128_431 = arith.constant 128 : index
    %428 = vector.load %arg15[%c48_430, %c128_431] : memref<64x576xf32, #tpu.memory_space<vmem>>, vector<8x64xf32>
    tpu.vector_store %arg15[%c48_430, %c128_431], %427 {strides = array<i32>} : memref<64x576xf32, #tpu.memory_space<vmem>>, vector<8x64xf32>,
    %c7_432 = arith.constant 7 : index
    %c0_433 = arith.constant 0 : index
    %c0_434 = arith.constant 0 : index
    %429 = vector.load %arg14[%c7_432, %c0_433, %c0_434] : memref<10x10x64xf32, #tpu.memory_space<vmem>>, vector<1x10x64xf32>
    %430 = vector.shape_cast %429 : vector<1x10x64xf32> to vector<10x64xf32>
    %431 = vector.extract_strided_slice %430 {offsets = [0, 0], sizes = [8, 64], strides = [1, 1]} : vector<10x64xf32> to vector<8x64xf32>
    %c48_435 = arith.constant 48 : index
    %c192_436 = arith.constant 192 : index
    %432 = vector.load %arg15[%c48_435, %c192_436] : memref<64x576xf32, #tpu.memory_space<vmem>>, vector<8x64xf32>
    tpu.vector_store %arg15[%c48_435, %c192_436], %431 {strides = array<i32>} : memref<64x576xf32, #tpu.memory_space<vmem>>, vector<8x64xf32>,
    %433 = vector.extract_strided_slice %430 {offsets = [1, 0], sizes = [8, 64], strides = [1, 1]} : vector<10x64xf32> to vector<8x64xf32>
    %c48_437 = arith.constant 48 : index
    %c256_438 = arith.constant 256 : index
    %434 = vector.load %arg15[%c48_437, %c256_438] : memref<64x576xf32, #tpu.memory_space<vmem>>, vector<8x64xf32>
    tpu.vector_store %arg15[%c48_437, %c256_438], %433 {strides = array<i32>} : memref<64x576xf32, #tpu.memory_space<vmem>>, vector<8x64xf32>,
    %435 = vector.extract_strided_slice %430 {offsets = [2, 0], sizes = [8, 64], strides = [1, 1]} : vector<10x64xf32> to vector<8x64xf32>
    %c48_439 = arith.constant 48 : index
    %c320_440 = arith.constant 320 : index
    %436 = vector.load %arg15[%c48_439, %c320_440] : memref<64x576xf32, #tpu.memory_space<vmem>>, vector<8x64xf32>
    tpu.vector_store %arg15[%c48_439, %c320_440], %435 {strides = array<i32>} : memref<64x576xf32, #tpu.memory_space<vmem>>, vector<8x64xf32>,
    %c8_441 = arith.constant 8 : index
    %c0_442 = arith.constant 0 : index
    %c0_443 = arith.constant 0 : index
    %437 = vector.load %arg14[%c8_441, %c0_442, %c0_443] : memref<10x10x64xf32, #tpu.memory_space<vmem>>, vector<1x10x64xf32>
    %438 = vector.shape_cast %437 : vector<1x10x64xf32> to vector<10x64xf32>
    %439 = vector.extract_strided_slice %438 {offsets = [0, 0], sizes = [8, 64], strides = [1, 1]} : vector<10x64xf32> to vector<8x64xf32>
    %c48_444 = arith.constant 48 : index
    %c384_445 = arith.constant 384 : index
    %440 = vector.load %arg15[%c48_444, %c384_445] : memref<64x576xf32, #tpu.memory_space<vmem>>, vector<8x64xf32>
    tpu.vector_store %arg15[%c48_444, %c384_445], %439 {strides = array<i32>} : memref<64x576xf32, #tpu.memory_space<vmem>>, vector<8x64xf32>,
    %441 = vector.extract_strided_slice %438 {offsets = [1, 0], sizes = [8, 64], strides = [1, 1]} : vector<10x64xf32> to vector<8x64xf32>
    %c48_446 = arith.constant 48 : index
    %c448_447 = arith.constant 448 : index
    %442 = vector.load %arg15[%c48_446, %c448_447] : memref<64x576xf32, #tpu.memory_space<vmem>>, vector<8x64xf32>
    tpu.vector_store %arg15[%c48_446, %c448_447], %441 {strides = array<i32>} : memref<64x576xf32, #tpu.memory_space<vmem>>, vector<8x64xf32>,
    %443 = vector.extract_strided_slice %438 {offsets = [2, 0], sizes = [8, 64], strides = [1, 1]} : vector<10x64xf32> to vector<8x64xf32>
    %c48_448 = arith.constant 48 : index
    %c512_449 = arith.constant 512 : index
    %444 = vector.load %arg15[%c48_448, %c512_449] : memref<64x576xf32, #tpu.memory_space<vmem>>, vector<8x64xf32>
    tpu.vector_store %arg15[%c48_448, %c512_449], %443 {strides = array<i32>} : memref<64x576xf32, #tpu.memory_space<vmem>>, vector<8x64xf32>,
    %c7_450 = arith.constant 7 : index
    %c0_451 = arith.constant 0 : index
    %c0_452 = arith.constant 0 : index
    %445 = vector.load %arg14[%c7_450, %c0_451, %c0_452] : memref<10x10x64xf32, #tpu.memory_space<vmem>>, vector<1x10x64xf32>
    %446 = vector.shape_cast %445 : vector<1x10x64xf32> to vector<10x64xf32>
    %447 = vector.extract_strided_slice %446 {offsets = [0, 0], sizes = [8, 64], strides = [1, 1]} : vector<10x64xf32> to vector<8x64xf32>
    %c56_453 = arith.constant 56 : index
    %c0_454 = arith.constant 0 : index
    %448 = vector.load %arg15[%c56_453, %c0_454] : memref<64x576xf32, #tpu.memory_space<vmem>>, vector<8x64xf32>
    tpu.vector_store %arg15[%c56_453, %c0_454], %447 {strides = array<i32>} : memref<64x576xf32, #tpu.memory_space<vmem>>, vector<8x64xf32>,
    %449 = vector.extract_strided_slice %446 {offsets = [1, 0], sizes = [8, 64], strides = [1, 1]} : vector<10x64xf32> to vector<8x64xf32>
    %c56_455 = arith.constant 56 : index
    %c64_456 = arith.constant 64 : index
    %450 = vector.load %arg15[%c56_455, %c64_456] : memref<64x576xf32, #tpu.memory_space<vmem>>, vector<8x64xf32>
    tpu.vector_store %arg15[%c56_455, %c64_456], %449 {strides = array<i32>} : memref<64x576xf32, #tpu.memory_space<vmem>>, vector<8x64xf32>,
    %451 = vector.extract_strided_slice %446 {offsets = [2, 0], sizes = [8, 64], strides = [1, 1]} : vector<10x64xf32> to vector<8x64xf32>
    %c56_457 = arith.constant 56 : index
    %c128_458 = arith.constant 128 : index
    %452 = vector.load %arg15[%c56_457, %c128_458] : memref<64x576xf32, #tpu.memory_space<vmem>>, vector<8x64xf32>
    tpu.vector_store %arg15[%c56_457, %c128_458], %451 {strides = array<i32>} : memref<64x576xf32, #tpu.memory_space<vmem>>, vector<8x64xf32>,
    %c8_459 = arith.constant 8 : index
    %c0_460 = arith.constant 0 : index
    %c0_461 = arith.constant 0 : index
    %453 = vector.load %arg14[%c8_459, %c0_460, %c0_461] : memref<10x10x64xf32, #tpu.memory_space<vmem>>, vector<1x10x64xf32>
    %454 = vector.shape_cast %453 : vector<1x10x64xf32> to vector<10x64xf32>
    %455 = vector.extract_strided_slice %454 {offsets = [0, 0], sizes = [8, 64], strides = [1, 1]} : vector<10x64xf32> to vector<8x64xf32>
    %c56_462 = arith.constant 56 : index
    %c192_463 = arith.constant 192 : index
    %456 = vector.load %arg15[%c56_462, %c192_463] : memref<64x576xf32, #tpu.memory_space<vmem>>, vector<8x64xf32>
    tpu.vector_store %arg15[%c56_462, %c192_463], %455 {strides = array<i32>} : memref<64x576xf32, #tpu.memory_space<vmem>>, vector<8x64xf32>,
    %457 = vector.extract_strided_slice %454 {offsets = [1, 0], sizes = [8, 64], strides = [1, 1]} : vector<10x64xf32> to vector<8x64xf32>
    %c56_464 = arith.constant 56 : index
    %c256_465 = arith.constant 256 : index
    %458 = vector.load %arg15[%c56_464, %c256_465] : memref<64x576xf32, #tpu.memory_space<vmem>>, vector<8x64xf32>
    tpu.vector_store %arg15[%c56_464, %c256_465], %457 {strides = array<i32>} : memref<64x576xf32, #tpu.memory_space<vmem>>, vector<8x64xf32>,
    %459 = vector.extract_strided_slice %454 {offsets = [2, 0], sizes = [8, 64], strides = [1, 1]} : vector<10x64xf32> to vector<8x64xf32>
    %c56_466 = arith.constant 56 : index
    %c320_467 = arith.constant 320 : index
    %460 = vector.load %arg15[%c56_466, %c320_467] : memref<64x576xf32, #tpu.memory_space<vmem>>, vector<8x64xf32>
    tpu.vector_store %arg15[%c56_466, %c320_467], %459 {strides = array<i32>} : memref<64x576xf32, #tpu.memory_space<vmem>>, vector<8x64xf32>,
    %c9_468 = arith.constant 9 : index
    %c0_469 = arith.constant 0 : index
    %c0_470 = arith.constant 0 : index
    %461 = vector.load %arg14[%c9_468, %c0_469, %c0_470] : memref<10x10x64xf32, #tpu.memory_space<vmem>>, vector<1x10x64xf32>
    %462 = vector.shape_cast %461 : vector<1x10x64xf32> to vector<10x64xf32>
    %463 = vector.extract_strided_slice %462 {offsets = [0, 0], sizes = [8, 64], strides = [1, 1]} : vector<10x64xf32> to vector<8x64xf32>
    %c56_471 = arith.constant 56 : index
    %c384_472 = arith.constant 384 : index
    %464 = vector.load %arg15[%c56_471, %c384_472] : memref<64x576xf32, #tpu.memory_space<vmem>>, vector<8x64xf32>
    tpu.vector_store %arg15[%c56_471, %c384_472], %463 {strides = array<i32>} : memref<64x576xf32, #tpu.memory_space<vmem>>, vector<8x64xf32>,
    %465 = vector.extract_strided_slice %462 {offsets = [1, 0], sizes = [8, 64], strides = [1, 1]} : vector<10x64xf32> to vector<8x64xf32>
    %c56_473 = arith.constant 56 : index
    %c448_474 = arith.constant 448 : index
    %466 = vector.load %arg15[%c56_473, %c448_474] : memref<64x576xf32, #tpu.memory_space<vmem>>, vector<8x64xf32>
    tpu.vector_store %arg15[%c56_473, %c448_474], %465 {strides = array<i32>} : memref<64x576xf32, #tpu.memory_space<vmem>>, vector<8x64xf32>,
    %467 = vector.extract_strided_slice %462 {offsets = [2, 0], sizes = [8, 64], strides = [1, 1]} : vector<10x64xf32> to vector<8x64xf32>
    %c56_475 = arith.constant 56 : index
    %c512_476 = arith.constant 512 : index
    %468 = vector.load %arg15[%c56_475, %c512_476] : memref<64x576xf32, #tpu.memory_space<vmem>>, vector<8x64xf32>
    tpu.vector_store %arg15[%c56_475, %c512_476], %467 {strides = array<i32>} : memref<64x576xf32, #tpu.memory_space<vmem>>, vector<8x64xf32>,
    %c0_477 = arith.constant 0 : index
    %c0_478 = arith.constant 0 : index
    %469 = vector.load %arg15[%c0_477, %c0_478] : memref<64x576xf32, #tpu.memory_space<vmem>>, vector<64x576xf32>
    %c0_479 = arith.constant 0 : index
    %c0_480 = arith.constant 0 : index
    %470 = vector.load %arg6[%c0_479, %c0_480] : memref<576x128xf32, #tpu.memory_space<vmem>>, vector<576x128xf32>
    %cst_481 = arith.constant dense<0.000000e+00> : vector<64x128xf32>
    %471 = tpu.matmul %469, %470, %cst_481 {dimension_numbers = #tpu.dot_dimension_numbers<[1], [0], [0], [1], [0, 0, 1, 1], [], []>, precision = #tpu.contract_precision<fp32>} : vector<64x576xf32>, vector<576x128xf32>, vector<64x128xf32> -> vector<64x128xf32>
    %c0_482 = arith.constant 0 : index
    %c0_483 = arith.constant 0 : index
    %472 = vector.load %arg7[%c0_482, %c0_483] : memref<1x128xf32, #tpu.memory_space<vmem>>, vector<1x128xf32>
    %473 = vector.broadcast %472 : vector<1x128xf32> to vector<64x128xf32>
    %474 = arith.addf %471, %473 : vector<64x128xf32>
    %cst_484 = arith.constant 0.000000e+00 : f32
    %475 = vector.broadcast %cst_484 : f32 to vector<64x128xf32>
    %476 = arith.maximumf %474, %475 : vector<64x128xf32>
    %c0_485 = arith.constant 0 : index
    %c0_486 = arith.constant 0 : index
    %477 = vector.load %arg8[%c0_485, %c0_486] : memref<64x64xf32, #tpu.memory_space<vmem>>, vector<64x64xf32>
    %cst_487 = arith.constant dense<0.000000e+00> : vector<64x128xf32>
    %478 = tpu.matmul %477, %476, %cst_487 {dimension_numbers = #tpu.dot_dimension_numbers<[1], [0], [0], [1], [0, 0, 1, 1], [], []>, precision = #tpu.contract_precision<fp32>} : vector<64x64xf32>, vector<64x128xf32>, vector<64x128xf32> -> vector<64x128xf32>
    %cst_488 = arith.constant 0.000000e+00 : f32
    %479 = vector.broadcast %cst_488 : f32 to vector<10x10x192xf32>
    %c0_489 = arith.constant 0 : index
    %c0_490 = arith.constant 0 : index
    %c0_491 = arith.constant 0 : index
    %480 = vector.load %arg16[%c0_489, %c0_490, %c0_491] : memref<10x10x192xf32, #tpu.memory_space<vmem>>, vector<10x10x192xf32>
    tpu.vector_store %arg16[%c0_489, %c0_490, %c0_491], %479 {strides = array<i32>} : memref<10x10x192xf32, #tpu.memory_space<vmem>>, vector<10x10x192xf32>,
    %481 = vector.extract_strided_slice %478 {offsets = [0, 0], sizes = [8, 128], strides = [1, 1]} : vector<64x128xf32> to vector<8x128xf32>
    %c1_492 = arith.constant 1 : index
    %c1_493 = arith.constant 1 : index
    %c0_494 = arith.constant 0 : index
    %482 = vector.load %arg16[%c1_492, %c1_493, %c0_494] : memref<10x10x192xf32, #tpu.memory_space<vmem>>, vector<1x8x128xf32>
    %483 = vector.shape_cast %482 : vector<1x8x128xf32> to vector<8x128xf32>
    %484 = vector.shape_cast %481 : vector<8x128xf32> to vector<1x8x128xf32>
    tpu.vector_store %arg16[%c1_492, %c1_493, %c0_494], %484 {strides = array<i32>} : memref<10x10x192xf32, #tpu.memory_space<vmem>>, vector<1x8x128xf32>,
    %485 = vector.extract_strided_slice %242 {offsets = [0, 0], sizes = [8, 64], strides = [1, 1]} : vector<64x64xf32> to vector<8x64xf32>
    %c1_495 = arith.constant 1 : index
    %c1_496 = arith.constant 1 : index
    %c128_497 = arith.constant 128 : index
    %486 = vector.load %arg16[%c1_495, %c1_496, %c128_497] : memref<10x10x192xf32, #tpu.memory_space<vmem>>, vector<1x8x64xf32>
    %487 = vector.shape_cast %486 : vector<1x8x64xf32> to vector<8x64xf32>
    %488 = vector.shape_cast %485 : vector<8x64xf32> to vector<1x8x64xf32>
    tpu.vector_store %arg16[%c1_495, %c1_496, %c128_497], %488 {strides = array<i32>} : memref<10x10x192xf32, #tpu.memory_space<vmem>>, vector<1x8x64xf32>,
    %489 = vector.extract_strided_slice %478 {offsets = [8, 0], sizes = [8, 128], strides = [1, 1]} : vector<64x128xf32> to vector<8x128xf32>
    %c2_498 = arith.constant 2 : index
    %c1_499 = arith.constant 1 : index
    %c0_500 = arith.constant 0 : index
    %490 = vector.load %arg16[%c2_498, %c1_499, %c0_500] : memref<10x10x192xf32, #tpu.memory_space<vmem>>, vector<1x8x128xf32>
    %491 = vector.shape_cast %490 : vector<1x8x128xf32> to vector<8x128xf32>
    %492 = vector.shape_cast %489 : vector<8x128xf32> to vector<1x8x128xf32>
    tpu.vector_store %arg16[%c2_498, %c1_499, %c0_500], %492 {strides = array<i32>} : memref<10x10x192xf32, #tpu.memory_space<vmem>>, vector<1x8x128xf32>,
    %493 = vector.extract_strided_slice %242 {offsets = [8, 0], sizes = [8, 64], strides = [1, 1]} : vector<64x64xf32> to vector<8x64xf32>
    %c2_501 = arith.constant 2 : index
    %c1_502 = arith.constant 1 : index
    %c128_503 = arith.constant 128 : index
    %494 = vector.load %arg16[%c2_501, %c1_502, %c128_503] : memref<10x10x192xf32, #tpu.memory_space<vmem>>, vector<1x8x64xf32>
    %495 = vector.shape_cast %494 : vector<1x8x64xf32> to vector<8x64xf32>
    %496 = vector.shape_cast %493 : vector<8x64xf32> to vector<1x8x64xf32>
    tpu.vector_store %arg16[%c2_501, %c1_502, %c128_503], %496 {strides = array<i32>} : memref<10x10x192xf32, #tpu.memory_space<vmem>>, vector<1x8x64xf32>,
    %497 = vector.extract_strided_slice %478 {offsets = [16, 0], sizes = [8, 128], strides = [1, 1]} : vector<64x128xf32> to vector<8x128xf32>
    %c3_504 = arith.constant 3 : index
    %c1_505 = arith.constant 1 : index
    %c0_506 = arith.constant 0 : index
    %498 = vector.load %arg16[%c3_504, %c1_505, %c0_506] : memref<10x10x192xf32, #tpu.memory_space<vmem>>, vector<1x8x128xf32>
    %499 = vector.shape_cast %498 : vector<1x8x128xf32> to vector<8x128xf32>
    %500 = vector.shape_cast %497 : vector<8x128xf32> to vector<1x8x128xf32>
    tpu.vector_store %arg16[%c3_504, %c1_505, %c0_506], %500 {strides = array<i32>} : memref<10x10x192xf32, #tpu.memory_space<vmem>>, vector<1x8x128xf32>,
    %501 = vector.extract_strided_slice %242 {offsets = [16, 0], sizes = [8, 64], strides = [1, 1]} : vector<64x64xf32> to vector<8x64xf32>
    %c3_507 = arith.constant 3 : index
    %c1_508 = arith.constant 1 : index
    %c128_509 = arith.constant 128 : index
    %502 = vector.load %arg16[%c3_507, %c1_508, %c128_509] : memref<10x10x192xf32, #tpu.memory_space<vmem>>, vector<1x8x64xf32>
    %503 = vector.shape_cast %502 : vector<1x8x64xf32> to vector<8x64xf32>
    %504 = vector.shape_cast %501 : vector<8x64xf32> to vector<1x8x64xf32>
    tpu.vector_store %arg16[%c3_507, %c1_508, %c128_509], %504 {strides = array<i32>} : memref<10x10x192xf32, #tpu.memory_space<vmem>>, vector<1x8x64xf32>,
    %505 = vector.extract_strided_slice %478 {offsets = [24, 0], sizes = [8, 128], strides = [1, 1]} : vector<64x128xf32> to vector<8x128xf32>
    %c4_510 = arith.constant 4 : index
    %c1_511 = arith.constant 1 : index
    %c0_512 = arith.constant 0 : index
    %506 = vector.load %arg16[%c4_510, %c1_511, %c0_512] : memref<10x10x192xf32, #tpu.memory_space<vmem>>, vector<1x8x128xf32>
    %507 = vector.shape_cast %506 : vector<1x8x128xf32> to vector<8x128xf32>
    %508 = vector.shape_cast %505 : vector<8x128xf32> to vector<1x8x128xf32>
    tpu.vector_store %arg16[%c4_510, %c1_511, %c0_512], %508 {strides = array<i32>} : memref<10x10x192xf32, #tpu.memory_space<vmem>>, vector<1x8x128xf32>,
    %509 = vector.extract_strided_slice %242 {offsets = [24, 0], sizes = [8, 64], strides = [1, 1]} : vector<64x64xf32> to vector<8x64xf32>
    %c4_513 = arith.constant 4 : index
    %c1_514 = arith.constant 1 : index
    %c128_515 = arith.constant 128 : index
    %510 = vector.load %arg16[%c4_513, %c1_514, %c128_515] : memref<10x10x192xf32, #tpu.memory_space<vmem>>, vector<1x8x64xf32>
    %511 = vector.shape_cast %510 : vector<1x8x64xf32> to vector<8x64xf32>
    %512 = vector.shape_cast %509 : vector<8x64xf32> to vector<1x8x64xf32>
    tpu.vector_store %arg16[%c4_513, %c1_514, %c128_515], %512 {strides = array<i32>} : memref<10x10x192xf32, #tpu.memory_space<vmem>>, vector<1x8x64xf32>,
    %513 = vector.extract_strided_slice %478 {offsets = [32, 0], sizes = [8, 128], strides = [1, 1]} : vector<64x128xf32> to vector<8x128xf32>
    %c5_516 = arith.constant 5 : index
    %c1_517 = arith.constant 1 : index
    %c0_518 = arith.constant 0 : index
    %514 = vector.load %arg16[%c5_516, %c1_517, %c0_518] : memref<10x10x192xf32, #tpu.memory_space<vmem>>, vector<1x8x128xf32>
    %515 = vector.shape_cast %514 : vector<1x8x128xf32> to vector<8x128xf32>
    %516 = vector.shape_cast %513 : vector<8x128xf32> to vector<1x8x128xf32>
    tpu.vector_store %arg16[%c5_516, %c1_517, %c0_518], %516 {strides = array<i32>} : memref<10x10x192xf32, #tpu.memory_space<vmem>>, vector<1x8x128xf32>,
    %517 = vector.extract_strided_slice %242 {offsets = [32, 0], sizes = [8, 64], strides = [1, 1]} : vector<64x64xf32> to vector<8x64xf32>
    %c5_519 = arith.constant 5 : index
    %c1_520 = arith.constant 1 : index
    %c128_521 = arith.constant 128 : index
    %518 = vector.load %arg16[%c5_519, %c1_520, %c128_521] : memref<10x10x192xf32, #tpu.memory_space<vmem>>, vector<1x8x64xf32>
    %519 = vector.shape_cast %518 : vector<1x8x64xf32> to vector<8x64xf32>
    %520 = vector.shape_cast %517 : vector<8x64xf32> to vector<1x8x64xf32>
    tpu.vector_store %arg16[%c5_519, %c1_520, %c128_521], %520 {strides = array<i32>} : memref<10x10x192xf32, #tpu.memory_space<vmem>>, vector<1x8x64xf32>,
    %521 = vector.extract_strided_slice %478 {offsets = [40, 0], sizes = [8, 128], strides = [1, 1]} : vector<64x128xf32> to vector<8x128xf32>
    %c6_522 = arith.constant 6 : index
    %c1_523 = arith.constant 1 : index
    %c0_524 = arith.constant 0 : index
    %522 = vector.load %arg16[%c6_522, %c1_523, %c0_524] : memref<10x10x192xf32, #tpu.memory_space<vmem>>, vector<1x8x128xf32>
    %523 = vector.shape_cast %522 : vector<1x8x128xf32> to vector<8x128xf32>
    %524 = vector.shape_cast %521 : vector<8x128xf32> to vector<1x8x128xf32>
    tpu.vector_store %arg16[%c6_522, %c1_523, %c0_524], %524 {strides = array<i32>} : memref<10x10x192xf32, #tpu.memory_space<vmem>>, vector<1x8x128xf32>,
    %525 = vector.extract_strided_slice %242 {offsets = [40, 0], sizes = [8, 64], strides = [1, 1]} : vector<64x64xf32> to vector<8x64xf32>
    %c6_525 = arith.constant 6 : index
    %c1_526 = arith.constant 1 : index
    %c128_527 = arith.constant 128 : index
    %526 = vector.load %arg16[%c6_525, %c1_526, %c128_527] : memref<10x10x192xf32, #tpu.memory_space<vmem>>, vector<1x8x64xf32>
    %527 = vector.shape_cast %526 : vector<1x8x64xf32> to vector<8x64xf32>
    %528 = vector.shape_cast %525 : vector<8x64xf32> to vector<1x8x64xf32>
    tpu.vector_store %arg16[%c6_525, %c1_526, %c128_527], %528 {strides = array<i32>} : memref<10x10x192xf32, #tpu.memory_space<vmem>>, vector<1x8x64xf32>,
    %529 = vector.extract_strided_slice %478 {offsets = [48, 0], sizes = [8, 128], strides = [1, 1]} : vector<64x128xf32> to vector<8x128xf32>
    %c7_528 = arith.constant 7 : index
    %c1_529 = arith.constant 1 : index
    %c0_530 = arith.constant 0 : index
    %530 = vector.load %arg16[%c7_528, %c1_529, %c0_530] : memref<10x10x192xf32, #tpu.memory_space<vmem>>, vector<1x8x128xf32>
    %531 = vector.shape_cast %530 : vector<1x8x128xf32> to vector<8x128xf32>
    %532 = vector.shape_cast %529 : vector<8x128xf32> to vector<1x8x128xf32>
    tpu.vector_store %arg16[%c7_528, %c1_529, %c0_530], %532 {strides = array<i32>} : memref<10x10x192xf32, #tpu.memory_space<vmem>>, vector<1x8x128xf32>,
    %533 = vector.extract_strided_slice %242 {offsets = [48, 0], sizes = [8, 64], strides = [1, 1]} : vector<64x64xf32> to vector<8x64xf32>
    %c7_531 = arith.constant 7 : index
    %c1_532 = arith.constant 1 : index
    %c128_533 = arith.constant 128 : index
    %534 = vector.load %arg16[%c7_531, %c1_532, %c128_533] : memref<10x10x192xf32, #tpu.memory_space<vmem>>, vector<1x8x64xf32>
    %535 = vector.shape_cast %534 : vector<1x8x64xf32> to vector<8x64xf32>
    %536 = vector.shape_cast %533 : vector<8x64xf32> to vector<1x8x64xf32>
    tpu.vector_store %arg16[%c7_531, %c1_532, %c128_533], %536 {strides = array<i32>} : memref<10x10x192xf32, #tpu.memory_space<vmem>>, vector<1x8x64xf32>,
    %537 = vector.extract_strided_slice %478 {offsets = [56, 0], sizes = [8, 128], strides = [1, 1]} : vector<64x128xf32> to vector<8x128xf32>
    %c8_534 = arith.constant 8 : index
    %c1_535 = arith.constant 1 : index
    %c0_536 = arith.constant 0 : index
    %538 = vector.load %arg16[%c8_534, %c1_535, %c0_536] : memref<10x10x192xf32, #tpu.memory_space<vmem>>, vector<1x8x128xf32>
    %539 = vector.shape_cast %538 : vector<1x8x128xf32> to vector<8x128xf32>
    %540 = vector.shape_cast %537 : vector<8x128xf32> to vector<1x8x128xf32>
    tpu.vector_store %arg16[%c8_534, %c1_535, %c0_536], %540 {strides = array<i32>} : memref<10x10x192xf32, #tpu.memory_space<vmem>>, vector<1x8x128xf32>,
    %541 = vector.extract_strided_slice %242 {offsets = [56, 0], sizes = [8, 64], strides = [1, 1]} : vector<64x64xf32> to vector<8x64xf32>
    %c8_537 = arith.constant 8 : index
    %c1_538 = arith.constant 1 : index
    %c128_539 = arith.constant 128 : index
    %542 = vector.load %arg16[%c8_537, %c1_538, %c128_539] : memref<10x10x192xf32, #tpu.memory_space<vmem>>, vector<1x8x64xf32>
    %543 = vector.shape_cast %542 : vector<1x8x64xf32> to vector<8x64xf32>
    %544 = vector.shape_cast %541 : vector<8x64xf32> to vector<1x8x64xf32>
    tpu.vector_store %arg16[%c8_537, %c1_538, %c128_539], %544 {strides = array<i32>} : memref<10x10x192xf32, #tpu.memory_space<vmem>>, vector<1x8x64xf32>,
    %c0_540 = arith.constant 0 : index
    %c0_541 = arith.constant 0 : index
    %c0_542 = arith.constant 0 : index
    %545 = vector.load %arg9[%c0_540, %c0_541, %c0_542] : memref<5x5x192xf32, #tpu.memory_space<vmem>>, vector<5x5x192xf32>
    %c0_543 = arith.constant 0 : index
    %c0_544 = arith.constant 0 : index
    %c0_545 = arith.constant 0 : index
    %546 = vector.load %arg16[%c0_543, %c0_544, %c0_545] : memref<10x10x192xf32, #tpu.memory_space<vmem>>, vector<5x5x192xf32>
    %547 = arith.mulf %546, %545 : vector<5x5x192xf32>
    %cst_546 = arith.constant dense<0.000000e+00> : vector<5x192xf32>
    %548 = vector.multi_reduction <add>, %547, %cst_546 [0] : vector<5x5x192xf32> to vector<5x192xf32>
    %cst_547 = arith.constant dense<0.000000e+00> : vector<192xf32>
    %549 = vector.multi_reduction <add>, %548, %cst_547 [0] : vector<5x192xf32> to vector<192xf32>
    %550 = vector.shape_cast %549 : vector<192xf32> to vector<1x192xf32>
    %c0_548 = arith.constant 0 : index
    %c2_549 = arith.constant 2 : index
    %c0_550 = arith.constant 0 : index
    %551 = vector.load %arg16[%c0_548, %c2_549, %c0_550] : memref<10x10x192xf32, #tpu.memory_space<vmem>>, vector<5x5x192xf32>
    %552 = arith.mulf %551, %545 : vector<5x5x192xf32>
    %cst_551 = arith.constant dense<0.000000e+00> : vector<5x192xf32>
    %553 = vector.multi_reduction <add>, %552, %cst_551 [0] : vector<5x5x192xf32> to vector<5x192xf32>
    %cst_552 = arith.constant dense<0.000000e+00> : vector<192xf32>
    %554 = vector.multi_reduction <add>, %553, %cst_552 [0] : vector<5x192xf32> to vector<192xf32>
    %555 = vector.shape_cast %554 : vector<192xf32> to vector<1x192xf32>
    %c0_553 = arith.constant 0 : index
    %c4_554 = arith.constant 4 : index
    %c0_555 = arith.constant 0 : index
    %556 = vector.load %arg16[%c0_553, %c4_554, %c0_555] : memref<10x10x192xf32, #tpu.memory_space<vmem>>, vector<5x5x192xf32>
    %557 = arith.mulf %556, %545 : vector<5x5x192xf32>
    %cst_556 = arith.constant dense<0.000000e+00> : vector<5x192xf32>
    %558 = vector.multi_reduction <add>, %557, %cst_556 [0] : vector<5x5x192xf32> to vector<5x192xf32>
    %cst_557 = arith.constant dense<0.000000e+00> : vector<192xf32>
    %559 = vector.multi_reduction <add>, %558, %cst_557 [0] : vector<5x192xf32> to vector<192xf32>
    %560 = vector.shape_cast %559 : vector<192xf32> to vector<1x192xf32>
    %c2_558 = arith.constant 2 : index
    %c0_559 = arith.constant 0 : index
    %c0_560 = arith.constant 0 : index
    %561 = vector.load %arg16[%c2_558, %c0_559, %c0_560] : memref<10x10x192xf32, #tpu.memory_space<vmem>>, vector<5x5x192xf32>
    %562 = arith.mulf %561, %545 : vector<5x5x192xf32>
    %cst_561 = arith.constant dense<0.000000e+00> : vector<5x192xf32>
    %563 = vector.multi_reduction <add>, %562, %cst_561 [0] : vector<5x5x192xf32> to vector<5x192xf32>
    %cst_562 = arith.constant dense<0.000000e+00> : vector<192xf32>
    %564 = vector.multi_reduction <add>, %563, %cst_562 [0] : vector<5x192xf32> to vector<192xf32>
    %565 = vector.shape_cast %564 : vector<192xf32> to vector<1x192xf32>
    %c2_563 = arith.constant 2 : index
    %c2_564 = arith.constant 2 : index
    %c0_565 = arith.constant 0 : index
    %566 = vector.load %arg16[%c2_563, %c2_564, %c0_565] : memref<10x10x192xf32, #tpu.memory_space<vmem>>, vector<5x5x192xf32>
    %567 = arith.mulf %566, %545 : vector<5x5x192xf32>
    %cst_566 = arith.constant dense<0.000000e+00> : vector<5x192xf32>
    %568 = vector.multi_reduction <add>, %567, %cst_566 [0] : vector<5x5x192xf32> to vector<5x192xf32>
    %cst_567 = arith.constant dense<0.000000e+00> : vector<192xf32>
    %569 = vector.multi_reduction <add>, %568, %cst_567 [0] : vector<5x192xf32> to vector<192xf32>
    %570 = vector.shape_cast %569 : vector<192xf32> to vector<1x192xf32>
    %c2_568 = arith.constant 2 : index
    %c4_569 = arith.constant 4 : index
    %c0_570 = arith.constant 0 : index
    %571 = vector.load %arg16[%c2_568, %c4_569, %c0_570] : memref<10x10x192xf32, #tpu.memory_space<vmem>>, vector<5x5x192xf32>
    %572 = arith.mulf %571, %545 : vector<5x5x192xf32>
    %cst_571 = arith.constant dense<0.000000e+00> : vector<5x192xf32>
    %573 = vector.multi_reduction <add>, %572, %cst_571 [0] : vector<5x5x192xf32> to vector<5x192xf32>
    %cst_572 = arith.constant dense<0.000000e+00> : vector<192xf32>
    %574 = vector.multi_reduction <add>, %573, %cst_572 [0] : vector<5x192xf32> to vector<192xf32>
    %575 = vector.shape_cast %574 : vector<192xf32> to vector<1x192xf32>
    %c4_573 = arith.constant 4 : index
    %c0_574 = arith.constant 0 : index
    %c0_575 = arith.constant 0 : index
    %576 = vector.load %arg16[%c4_573, %c0_574, %c0_575] : memref<10x10x192xf32, #tpu.memory_space<vmem>>, vector<5x5x192xf32>
    %577 = arith.mulf %576, %545 : vector<5x5x192xf32>
    %cst_576 = arith.constant dense<0.000000e+00> : vector<5x192xf32>
    %578 = vector.multi_reduction <add>, %577, %cst_576 [0] : vector<5x5x192xf32> to vector<5x192xf32>
    %cst_577 = arith.constant dense<0.000000e+00> : vector<192xf32>
    %579 = vector.multi_reduction <add>, %578, %cst_577 [0] : vector<5x192xf32> to vector<192xf32>
    %580 = vector.shape_cast %579 : vector<192xf32> to vector<1x192xf32>
    %c4_578 = arith.constant 4 : index
    %c2_579 = arith.constant 2 : index
    %c0_580 = arith.constant 0 : index
    %581 = vector.load %arg16[%c4_578, %c2_579, %c0_580] : memref<10x10x192xf32, #tpu.memory_space<vmem>>, vector<5x5x192xf32>
    %582 = arith.mulf %581, %545 : vector<5x5x192xf32>
    %cst_581 = arith.constant dense<0.000000e+00> : vector<5x192xf32>
    %583 = vector.multi_reduction <add>, %582, %cst_581 [0] : vector<5x5x192xf32> to vector<5x192xf32>
    %cst_582 = arith.constant dense<0.000000e+00> : vector<192xf32>
    %584 = vector.multi_reduction <add>, %583, %cst_582 [0] : vector<5x192xf32> to vector<192xf32>
    %585 = vector.shape_cast %584 : vector<192xf32> to vector<1x192xf32>
    %c4_583 = arith.constant 4 : index
    %c4_584 = arith.constant 4 : index
    %c0_585 = arith.constant 0 : index
    %586 = vector.load %arg16[%c4_583, %c4_584, %c0_585] : memref<10x10x192xf32, #tpu.memory_space<vmem>>, vector<5x5x192xf32>
    %587 = arith.mulf %586, %545 : vector<5x5x192xf32>
    %cst_586 = arith.constant dense<0.000000e+00> : vector<5x192xf32>
    %588 = vector.multi_reduction <add>, %587, %cst_586 [0] : vector<5x5x192xf32> to vector<5x192xf32>
    %cst_587 = arith.constant dense<0.000000e+00> : vector<192xf32>
    %589 = vector.multi_reduction <add>, %588, %cst_587 [0] : vector<5x192xf32> to vector<192xf32>
    %590 = vector.shape_cast %589 : vector<192xf32> to vector<1x192xf32>
    %591 = tpu.concatenate %550, %555, %560, %565, %570, %575, %580, %585, %590 in 0 : vector<1x192xf32>, vector<1x192xf32>, vector<1x192xf32>, vector<1x192xf32>, vector<1x192xf32>, vector<1x192xf32>, vector<1x192xf32>, vector<1x192xf32>, vector<1x192xf32> -> vector<9x192xf32>
    %cst_588 = arith.constant dense<0.000000e+00> : vector<9xf32>
    %592 = vector.multi_reduction <add>, %591, %cst_588 [1] : vector<9x192xf32> to vector<9xf32>
    %593 = vector.shape_cast %592 : vector<9xf32> to vector<9x1xf32>
    %c0_589 = arith.constant 0 : index
    %c0_590 = arith.constant 0 : index
    %594 = vector.load %arg10[%c0_589, %c0_590] : memref<1x1xf32, #tpu.memory_space<vmem>>, vector<1x1xf32>
    %595 = vector.broadcast %594 : vector<1x1xf32> to vector<9x1xf32>
    %596 = arith.addf %593, %595 : vector<9x1xf32>
    %cst_591 = arith.constant 0.000000e+00 : f32
    %597 = vector.broadcast %cst_591 : f32 to vector<9x1xf32>
    %598 = arith.maximumf %596, %597 : vector<9x1xf32>
    %c0_592 = arith.constant 0 : index
    %c0_593 = arith.constant 0 : index
    %c0_594 = arith.constant 0 : index
    %599 = vector.load %arg11[%c0_592, %c0_593, %c0_594] : memref<1x9x1xf32, #tpu.memory_space<vmem>>, vector<1x9x1xf32>
    %600 = vector.shape_cast %599 : vector<1x9x1xf32> to vector<9x1xf32>
    %601 = vector.shape_cast %598 : vector<9x1xf32> to vector<1x9x1xf32>
    tpu.vector_store %arg11[%c0_592, %c0_593, %c0_594], %601 {strides = array<i32>} : memref<1x9x1xf32, #tpu.memory_space<vmem>>, vector<1x9x1xf32>,
    return
  }
  func.func @transform_0(%arg0: i32) -> (i32, i32, i32) {
    %c0_i32 = arith.constant 0 : i32
    %c0_i32_0 = arith.constant 0 : i32
    %c0_i32_1 = arith.constant 0 : i32
    return %arg0, %c0_i32, %c0_i32_0 : i32, i32, i32
  }
  func.func @transform_1(%arg0: i32) -> (i32, i32) {
    %c0_i32 = arith.constant 0 : i32
    %c0_i32_0 = arith.constant 0 : i32
    %c0_i32_1 = arith.constant 0 : i32
    return %c0_i32, %c0_i32_0 : i32, i32
  }
  func.func @transform_2(%arg0: i32) -> (i32, i32) {
    %c0_i32 = arith.constant 0 : i32
    %c0_i32_0 = arith.constant 0 : i32
    %c0_i32_1 = arith.constant 0 : i32
    return %c0_i32, %c0_i32_0 : i32, i32
  }
  func.func @transform_3(%arg0: i32) -> (i32, i32) {
    %c0_i32 = arith.constant 0 : i32
    %c0_i32_0 = arith.constant 0 : i32
    %c0_i32_1 = arith.constant 0 : i32
    return %c0_i32, %c0_i32_0 : i32, i32
  }
  func.func @transform_4(%arg0: i32) -> (i32, i32) {
    %c0_i32 = arith.constant 0 : i32
    %c0_i32_0 = arith.constant 0 : i32
    %c0_i32_1 = arith.constant 0 : i32
    return %c0_i32, %c0_i32_0 : i32, i32
  }
  func.func @transform_5(%arg0: i32) -> (i32, i32) {
    %c0_i32 = arith.constant 0 : i32
    %c0_i32_0 = arith.constant 0 : i32
    %c0_i32_1 = arith.constant 0 : i32
    return %c0_i32, %c0_i32_0 : i32, i32
  }
  func.func @transform_6(%arg0: i32) -> (i32, i32) {
    %c0_i32 = arith.constant 0 : i32
    %c0_i32_0 = arith.constant 0 : i32
    %c0_i32_1 = arith.constant 0 : i32
    return %c0_i32, %c0_i32_0 : i32, i32
  }
  func.func @transform_7(%arg0: i32) -> (i32, i32) {
    %c0_i32 = arith.constant 0 : i32
    %c0_i32_0 = arith.constant 0 : i32
    %c0_i32_1 = arith.constant 0 : i32
    return %c0_i32, %c0_i32_0 : i32, i32
  }
  func.func @transform_8(%arg0: i32) -> (i32, i32, i32) {
    %c0_i32 = arith.constant 0 : i32
    %c0_i32_0 = arith.constant 0 : i32
    %c0_i32_1 = arith.constant 0 : i32
    %c0_i32_2 = arith.constant 0 : i32
    return %c0_i32, %c0_i32_0, %c0_i32_1 : i32, i32, i32
  }
  func.func @transform_9(%arg0: i32) -> (i32, i32) {
    %c0_i32 = arith.constant 0 : i32
    %c0_i32_0 = arith.constant 0 : i32
    %c0_i32_1 = arith.constant 0 : i32
    return %c0_i32, %c0_i32_0 : i32, i32
  }
  func.func @transform_10(%arg0: i32) -> (i32, i32, i32) {
    %c0_i32 = arith.constant 0 : i32
    %c0_i32_0 = arith.constant 0 : i32
    %c0_i32_1 = arith.constant 0 : i32
    return %arg0, %c0_i32, %c0_i32_0 : i32, i32, i32
  }
}

</mosaic_0001>

<bundles_post_ra>
// kernel: model_forward.1
= control target key start
LH: loop header
LB: loop body
LE: loop exit
PB: predicated region body
PF: predicated region fallthrough
CT: control target
= control target key end

     0   :  { %vm101_vm0 = vcmask 1042432   ;;  %vm76_vm1 = vcmask 154624   ;;  %vm1060_vm2 = vcmask 261120   ;;  %vm1062_vm3 = vcmask 254976   ;;  %s7901_s24 = smov 96   ;;  %s13454_s1 = inlined_call_operand.vmem [shape: f32[147,32], index: 1, kind: input, shape index: {}]   ;;  %s13455_s0 = inlined_call_operand.vmem [shape: f32[1,64,147], index: 0, kind: input, shape index: {}]   ;;  %s13456_s2 = inlined_call_operand.vmem [shape: f32[1,32], index: 2, kind: input, shape index: {}]   ;;  %s13457_s3 = inlined_call_operand.vmem [shape: f32[288,64], index: 3, kind: input, shape index: {}]   ;;  %s13458_s4 = inlined_call_operand.vmem [shape: f32[1,64], index: 4, kind: input, shape index: {}]   ;;  %s13459_s5 = inlined_call_operand.vmem [shape: f32[576,128], index: 5, kind: input, shape index: {}]   ;;  %s13460_s6 = inlined_call_operand.vmem [shape: f32[1,128], index: 6, kind: input, shape index: {}]   ;;  %s13461_s7 = inlined_call_operand.vmem [shape: f32[64,64], index: 7, kind: input, shape index: {}]   ;;  %s13462_s8 = inlined_call_operand.vmem [shape: f32[5,5,192], index: 8, kind: input, shape index: {}]   ;;  %s13463_s9 = inlined_call_operand.<no memory space> [shape: f32[1,1], index: 9, kind: input, shape index: {}]   ;;  %s13464_s10 = inlined_call_operand.vmem [shape: f32[1,9,1], index: 10, kind: output, shape index: {}]  }
   0x1   :  { %v68_v0 = vld [vmem:[%s13454_s1 + $0x78] sm:$0xff]  ;;  %v67_v1 = vld [vmem:[%s13454_s1 + $0x70] sm:$0xff]  ;;  %v66_v2 = vld [vmem:[%s13454_s1 + $0x68] sm:$0xff]  ;;  %vm1103_vm4 = vcmask 1046528   ;;  %vm1112_vm5 = vcmask 1045504   ;;  %vm1110_vm6 = vcmask 523520  }
   0x2   :  { %v7966_v3 = vand.u32 4294901760, %v68_v0  ;;  %v7968_v4 = vand.u32 4294901760, %v67_v1  ;;  %v7970_v5 = vand.u32 4294901760, %v66_v2  ;;  %v65_v6 = vld [vmem:[%s13454_s1 + $0x60] sm:$0xff]  ;;  %v64_v7 = vld [vmem:[%s13454_s1 + $0x58] sm:$0xff]  ;;  %v63_v8 = vld [vmem:[%s13454_s1 + $0x50] sm:$0xff] }
   0x3   :  { %v7981_v9 = vand.u32 4294901760, %v65_v6  ;;  %v7983_v10 = vand.u32 4294901760, %v64_v7  ;;  %v7985_v11 = vand.u32 4294901760, %v63_v8  ;;  %v62_v12 = vld [vmem:[%s13454_s1 + $0x48] sm:$0xff]  ;;  %v61_v13 = vld [vmem:[%s13454_s1 + $0x40] sm:$0xff]  ;;  %v60_v17 = vld [vmem:[%s13454_s1 + $0x38] sm:$0xff] }
   0x4   :  { %7856 = vmatpush.msra.mxu2 %v7966_v3  ;;  %v7995_v14 = vsub.f32 %v68_v0, %v7966_v3  ;;  %v7998_v15 = vsub.f32 %v67_v1, %v7968_v4  ;;  %v8001_v16 = vsub.f32 %v66_v2, %v7970_v5  ;;  %106 = vmatpush.msra.mxu0 %v7966_v3  ;;  %v8007_v18 = vand.u32 4294901760, %v62_v12  ;;  %v59_v25 = vld [vmem:[%s13454_s1 + $0x30] sm:$0xff]  ;;  %v58_v33 = vld [vmem:[%s13454_s1 + $0x28] sm:$0xff]  ;;  %v57_v42 = vld [vmem:[%s13454_s1 + $0x20] sm:$0xff] }
   0x5   :  { %v8010_v19 = vsub.f32 %v65_v6, %v7981_v9  ;;  %v8013_v20 = vsub.f32 %v64_v7, %v7983_v10  ;;  %v8019_v24 = vand.u32 4294901760, %v61_v13  ;;  %v8026_v27 = vand.u32 4294901760, %v60_v17  ;;  %v45_v47 = vld [vmem:[%s13455_s0 + $0x40] sm:$0xff]  ;;  %v56_v49 = vld [vmem:[%s13454_s1 + $0x18] sm:$0xff]  ;;  %v55_v55 = vld [vmem:[%s13454_s1 + $0x10] sm:$0xff] }
   0x6   :  { %7857 = vmatpush.msra.mxu2 %v7968_v4  ;;  %v204_v21 = vand.u32 4294901760, %v7995_v14  ;;  %v210_v22 = vand.u32 4294901760, %v7998_v15  ;;  %v216_v23 = vand.u32 4294901760, %v8001_v16  ;;  %108 = vmatpush.msra.mxu0 %v7968_v4  ;;  %v8029_v28 = vsub.f32 %v63_v8, %v7985_v11  ;;  %v54_v62 = vld [vmem:[%s13454_s1 + $0x8] sm:$0xff]  ;;  %v53_v2 = vld [vmem:[%s13454_s1] sm:$0xff] }
   0x7   :  { %v222_v26 = vand.u32 4294901760, %v8010_v19  ;;  %v228_v32 = vand.u32 4294901760, %v8013_v20  ;;  %v8049_v35 = vand.u32 4294901760, %v59_v25  ;;  %v8052_v36 = vsub.f32 %v62_v12, %v8007_v18  ;;  %v37_v12 = vld [vmem:[%s13455_s0] sm:$0xff] }
   0x8   :  { %7858 = vmatpush.msra.mxu2 %v7970_v5  ;;  %v205_v29 = vsub.f32 %v7995_v14, %v204_v21  ;;  %v211_v30 = vsub.f32 %v7998_v15, %v210_v22  ;;  %v217_v31 = vsub.f32 %v8001_v16, %v216_v23  ;;  %110 = vmatpush.msra.mxu0 %v7970_v5  ;;  %v234_v39 = vand.u32 4294901760, %v8029_v28 }
   0x9   :  { %v223_v34 = vsub.f32 %v8010_v19, %v222_v26  ;;  %v8058_v40 = vsub.f32 %v61_v13, %v8019_v24  ;;  %v8060_v41 = vand.u32 4294901760, %v58_v33  ;;  %v229_v44 = vsub.f32 %v8013_v20, %v228_v32 }
   0xa   :  { %7859 = vmatpush.msra.mxu2 %v7981_v9  ;;  %v206_v37 = vand.u32 4294901760, %v205_v29  ;;  %v212_v38 = vand.u32 4294901760, %v211_v30  ;;  %112 = vmatpush.msra.mxu0 %v7981_v9  ;;  %v218_v43 = vand.u32 4294901760, %v217_v31  ;;  %v240_v45 = vand.u32 4294901760, %v8052_v36  ;;  %v47_v30 = vld [vmem:[%s13455_s0 + $0x50] sm:$0xff] }
   0xb   :  { %v8071_v46 = vsub.f32 %v60_v17, %v8026_v27  ;;  %v246_v48 = vand.u32 4294901760, %v8058_v40  ;;  %v224_v50 = vand.u32 4294901760, %v223_v34  ;;  %v235_v51 = vsub.f32 %v8029_v28, %v234_v39 }
   0xc   :  { %7860 = vmatpush.msra.mxu2 %v7983_v10  ;;  %7872 = vmatpush.msra.mxu3 %v206_v37  ;;  %v8085_v52 = vand.u32 4294901760, %v57_v42  ;;  %v8088_v53 = vsub.f32 %v59_v25, %v8049_v35  ;;  %v8095_v56 = vand.u32 4294901760, %v45_v47  ;;  %v230_v57 = vand.u32 4294901760, %v229_v44 }
   0xd   :  { %207 = vmatpush.msra.mxu1 %v206_v37  ;;  %114 = vmatpush.msra.mxu0 %v7983_v10  ;;  %v13473_v54 = vand.u32 4294901760, %v8071_v46  ;;  %v241_v58 = vsub.f32 %v8052_v36, %v240_v45  ;;  %v8101_v59 = vand.u32 4294901760, %v56_v49  ;;  %v8104_v60 = vsub.f32 %v58_v33, %v8060_v41 }
   0xe   :  { %7861 = vmatpush.msra.mxu2 %v7985_v11  ;;  %7873 = vmatpush.msra.mxu3 %v212_v38  ;;  %v247_v61 = vsub.f32 %v8058_v40, %v246_v48  ;;  %v236_v63 = vand.u32 4294901760, %v235_v51  ;;  %v8114_v0 = vand.u32 4294901760, %v55_v55  ;;  %v13470_v1 = vand.u32 4294901760, %v8088_v53 }
   0xf   :  { %213 = vmatpush.msra.mxu1 %v212_v38  ;;  %116 = vmatpush.msra.mxu0 %v7985_v11  ;;  %v8121_v6 = vsub.f32 %v57_v42, %v8085_v52  ;;  %v253_v7 = vsub.f32 %v8071_v46, %v13473_v54  ;;  %v8128_v8 = vsub.f32 %v45_v47, %v8095_v56  ;;  %v242_v13 = vand.u32 4294901760, %v241_v58 }
  0x10   :  { %7862 = vmatpush.msra.mxu2 %v8007_v18  ;;  %7874 = vmatpush.msra.mxu3 %v218_v43  ;;  %v8134_v17 = vand.u32 4294901760, %v54_v62  ;;  %v13468_v25 = vand.u32 4294901760, %v8104_v60  ;;  %v8138_v29 = vsub.f32 %v56_v49, %v8101_v59  ;;  %v248_v31 = vand.u32 4294901760, %v247_v61 }
  0x11   :  { %219 = vmatpush.msra.mxu1 %v218_v43  ;;  %118 = vmatpush.msra.mxu0 %v8007_v18  ;;  %v8143_v33 = vand.u32 4294901760, %v53_v2  ;;  %v259_v34 = vsub.f32 %v8088_v53, %v13470_v1  ;;  %v13467_v37 = vand.u32 4294901760, %v8121_v6  ;;  %v8152_v38 = vsub.f32 %v55_v55, %v8114_v0 }
  0x12   :  { %7863 = vmatpush.msra.mxu2 %v8019_v24  ;;  %7875 = vmatpush.msra.mxu3 %v224_v50  ;;  %v8154_v42 = vand.u32 4294901760, %v37_v12  ;;  %v254_v43 = vand.u32 4294901760, %v253_v7  ;;  %v13465_v44 = vand.u32 4294901760, %v8128_v8  ;;  %v8158_v47 = vand.u32 4294901760, %v47_v30 }
  0x13   :  { %225 = vmatpush.msra.mxu1 %v224_v50  ;;  %120 = vmatpush.msra.mxu0 %v8019_v24  ;;  %v265_v49 = vsub.f32 %v8104_v60, %v13468_v25  ;;  %v13466_v50 = vand.u32 4294901760, %v8138_v29  ;;  %v8166_v51 = vsub.f32 %v54_v62, %v8134_v17  ;;  %v271_v58 = vsub.f32 %v8121_v6, %v13467_v37 }
  0x14   :  { %7864 = vmatpush.msra.mxu2 %v8026_v27  ;;  %7876 = vmatpush.msra.mxu3 %v230_v57  ;;  %v8169_v55 = vsub.f32 %v37_v12, %v8154_v42  ;;  %v13469_v61 = vand.u32 4294901760, %v8152_v38  ;;  %v172_v62 = vsub.f32 %v8128_v8, %v13465_v44  ;;  %v8185_v7 = vsub.f32 %v47_v30, %v8158_v47 }
  0x15   :  { %231 = vmatpush.msra.mxu1 %v230_v57  ;;  %122 = vmatpush.msra.mxu0 %v8026_v27  ;;  %v260_v57 = vand.u32 4294901760, %v259_v34  ;;  %v13472_v34 = vand.u32 4294901760, %v8166_v51  ;;  %v272_v30 = vand.u32 4294901760, %v271_v58  ;;  %vm1119_vm7 = vcmask 785920  }
  0x16   :  { %7865 = vmatpush.msra.mxu2 %v8049_v35  ;;  %7877 = vmatpush.msra.mxu3 %v236_v63  ;;  %v13471_v12 = vand.u32 4294901760, %v8169_v55  ;;  %v173_v37 = vand.u32 4294901760, %v172_v62  ;;  %vm1127_vm8 = vcmask 1048320   ;;  %vm3190_vm9 = vcmask 523264  }
  0x17   :  { %237 = vmatpush.msra.mxu1 %v236_v63  ;;  %124 = vmatpush.msra.mxu0 %v8049_v35  ;;  %v8178_v63 = vsub.f32 %v53_v2, %v8143_v33  ;;  %v277_v2 = vsub.f32 %v8138_v29, %v13466_v50  ;;  %v39_v50 = vld [vmem:[%s13455_s0 + $0x10] sm:$0xff]  ;;  %v289_v1 = vsub.f32 %v8166_v51, %v13472_v34  ;;  %vm3192_vm10 = vcmask 517120  }
  0x18   :  { %7866 = vmatpush.msra.mxu2 %v8060_v41  ;;  %7878 = vmatpush.msra.mxu3 %v242_v13  ;;  %v140_v58 = vsub.f32 %v8169_v55, %v13471_v12  ;;  %vm7031_vm11 = vcmask 523265   ;;  %vm7033_vm12 = vcmask 516096   ;;  %vm3239_vm13 = vcmask 1048064  }
  0x19   :  { %243 = vmatpush.msra.mxu1 %v242_v13  ;;  %126 = vmatpush.msra.mxu0 %v8060_v41  ;;  %v266_v13 = vand.u32 4294901760, %v265_v49  ;;  %v283_v49 = vsub.f32 %v8152_v38, %v13469_v61  ;;  %v294_v44 = vand.u32 4294901760, %v8178_v63  ;;  %v278_v61 = vand.u32 4294901760, %v277_v2 }
  0x1a   :  { %7867 = vmatpush.msra.mxu2 %v8085_v52  ;;  %7879 = vmatpush.msra.mxu3 %v248_v31  ;;  %v141_v34 = vand.u32 4294901760, %v140_v58  ;;  %v290_v54 = vand.u32 4294901760, %v289_v1  ;;  %vm7152_vm14 = vcmask 520192   ;;  %vm7236_vm15 = vcmask 522242  }
  0x1b   :  { %249 = vmatpush.msra.mxu1 %v248_v31  ;;  %128 = vmatpush.msra.mxu0 %v8085_v52  ;;  %v49_v31 = vld [vmem:[%s13455_s0 + $0x60] sm:$0xff]  ;;  %v284_v62 = vand.u32 4294901760, %v283_v49  ;;  %v295_v12 = vsub.f32 %v8178_v63, %v294_v44  ;;  %v51_v49 = vld [vmem:[%s13455_s0 + $0x70] sm:$0xff] }
  0x1c   :  { %7868 = vmatpush.msra.mxu2 %v8101_v59  ;;  %7880 = vmatpush.msra.mxu3 %v254_v43  ;;  %v8210_v25 = vand.u32 4294901760, %v49_v31  ;;  %v8239_v1 = vand.u32 4294901760, %v51_v49 }
  0x1d   :  { %255 = vmatpush.msra.mxu1 %v254_v43  ;;  %130 = vmatpush.msra.mxu0 %v8101_v59  ;;  %v179_v43 = vand.u32 4294901760, %v8185_v7 }
  0x1e   :  { %7869 = vmatpush.msra.mxu2 %v8114_v0  ;;  %7881 = vmatpush.msra.mxu3 %v260_v57 }
  0x1f   :  { %261 = vmatpush.msra.mxu1 %v260_v57  ;;  %132 = vmatpush.msra.mxu0 %v8114_v0  ;;  %v8217_v57 = vand.u32 4294901760, %v39_v50  ;;  %v180_v2 = vsub.f32 %v8185_v7, %v179_v43 }
  0x20   :  { %7870 = vmatpush.msra.mxu2 %v8134_v17  ;;  %7882 = vmatpush.msra.mxu3 %v266_v13 }
  0x21   :  { %267 = vmatpush.msra.mxu1 %v266_v13  ;;  %134 = vmatpush.msra.mxu0 %v8134_v17  ;;  %v8227_v13 = vsub.f32 %v49_v31, %v8210_v25  ;;  %v181_v31 = vand.u32 4294901760, %v180_v2 }
  0x22   :  { %7871 = vmatpush.msra.mxu2 %v8143_v33  ;;  %7883 = vmatpush.msra.mxu3 %v272_v30 }
  0x23   :  { %174 = vmatmul.f32.vlgmr.msra.gmra.mxu2 %v173_v37  ;;  %273 = vmatpush.msra.mxu1 %v272_v30  ;;  %v8235_v37 = vsub.f32 %v39_v50, %v8217_v57  ;;  %v296_v30 = vand.u32 4294901760, %v295_v12  ;;  %v187_v58 = vand.u32 4294901760, %v8227_v13 }
  0x24   :  { %7884 = vmatpush.msra.mxu3 %v278_v61  ;;  %333 = vmatpush.msrb.mxu2 %v7995_v14 }
  0x25   :  { %279 = vmatpush.msra.mxu1 %v278_v61  ;;  %136 = vmatpush.msra.mxu0 %v8143_v33  ;;  %v147_v50 = vand.u32 4294901760, %v8235_v37  ;;  %v41_v61 = vld [vmem:[%s13455_s0 + $0x20] sm:$0xff]  ;;  %v188_v12 = vsub.f32 %v8227_v13, %v187_v58 }
  0x26   :  { %7885 = vmatpush.msra.mxu3 %v284_v62  ;;  %336 = vmatpush.msrb.mxu2 %v7998_v15 }
  0x27   :  { %285 = vmatpush.msra.mxu1 %v284_v62  ;;  %142 = vmatmul.f32.vlgmr.msra.gmra.mxu0 %v141_v34  ;;  %v148_v14 = vsub.f32 %v8235_v37, %v147_v50  ;;  %v189_v34 = vand.u32 4294901760, %v188_v12 }
  0x28   :  { %7886 = vmatpush.msra.mxu3 %v290_v54  ;;  %339 = vmatpush.msrb.mxu2 %v8001_v16 }
  0x29   :  { %291 = vmatpush.msra.mxu1 %v290_v54  ;;  %504 = vmatpush.msrb.mxu0 %v204_v21  ;;  %v8254_v54 = vsub.f32 %v51_v49, %v8239_v1  ;;  %v8263_v21 = vand.u32 4294901760, %v41_v61  ;;  %v149_v15 = vand.u32 4294901760, %v148_v14 }
  0x2a   :  { %7887 = vmatpush.msra.mxu3 %v296_v30  ;;  %342 = vmatpush.msrb.mxu2 %v8010_v19 }
  0x2b   :  { %182 = vmatmul.f32.gmra.mxu2 %v181_v31  ;;  %315 = vmatmul.f32.vlgmr.msra.gmra.mxu3 %v8095_v56  ;;  %v195_v62 = vand.u32 4294901760, %v8254_v54 }
  0x2c   :  { %345 = vmatpush.msrb.mxu2 %v8013_v20  ;;  %421 = vmatpush.msrb.mxu3 %v7966_v3 }
  0x2d   :  { %297 = vmatpush.msra.mxu1 %v296_v30  ;;  %508 = vmatpush.msrb.mxu0 %v210_v22  ;;  %v8277_v22 = vsub.f32 %v41_v61, %v8263_v21  ;;  %v196_v16 = vsub.f32 %v8254_v54, %v195_v62  ;;  %v42_v61 = vld [vmem:[%s13455_s0 + $0x28] sm:$0xff] }
  0x2e   :  { %348 = vmatpush.msrb.mxu2 %v8029_v28  ;;  %423 = vmatpush.msrb.mxu3 %v7968_v4  ;;  %v84_v12 = vsel %vm76_vm1, %v42_v61, 0 }
  0x2f   :  { %299 = vmatmul.f32.vlgmr.msra.gmra.mxu1 %v8154_v42  ;;  %512 = vmatpush.msrb.mxu0 %v216_v23  ;;  %v155_v19 = vand.u32 4294901760, %v8277_v22 }
  0x30   :  { %351 = vmatpush.msrb.mxu2 %v8052_v36  ;;  %425 = vmatpush.msrb.mxu3 %v7970_v5  ;;  %v13550_v36 = vand.u32 4294901760, %v8169_v55 }
  0x31   :  { %599 = vmatpush.msrb.mxu1 %v7966_v3  ;;  %516 = vmatpush.msrb.mxu0 %v222_v26  ;;  %v43_v3 = vld [vmem:[%s13455_s0 + $0x30] sm:$0xff]  ;;  %v197_v26 = vand.u32 4294901760, %v196_v16 }
  0x32   :  { %354 = vmatpush.msrb.mxu2 %v8058_v40  ;;  %427 = vmatpush.msrb.mxu3 %v7981_v9  ;;  %v8294_v23 = vand.u32 4294901760, %v43_v3  ;;  %v71_v40 = vld [vmem:[%s13454_s1 + $0x90] sm:$0x7] }
  0x33   :  { %190 = vmatmul.f32.gmra.mxu2 %v189_v34  ;;  %319 = vmatmul.f32.gmra.mxu3 %v8158_v47  ;;  %v44_v34 = vld [vmem:[%s13455_s0 + $0x38] sm:$0xff] }
  0x34   :  { %357 = vmatpush.msrb.mxu2 %v8071_v46  ;;  %429 = vmatpush.msrb.mxu3 %v7983_v10 }
  0x35   :  { %601 = vmatpush.msrb.mxu1 %v7968_v4  ;;  %150 = vmatmul.f32.gmra.mxu0 %v149_v15  ;;  %v156_v4 = vsub.f32 %v8277_v22, %v155_v19  ;;  %v87_v15 = vsel %vm76_vm1, %v44_v34, 0 }
  0x36   :  { %360 = vmatpush.msrb.mxu2 %v8088_v53  ;;  %431 = vmatpush.msrb.mxu3 %v7985_v11  ;;  %v8438_v16 = vand.u32 4294901760, %v87_v15 }
  0x37   :  { %603 = vmatpush.msrb.mxu1 %v7970_v5  ;;  %520 = vmatpush.msrb.mxu0 %v228_v32  ;;  %v8310_v5 = vsub.f32 %v43_v3, %v8294_v23  ;;  %v13547_v32 = vand.u32 4294901760, %v8088_v53  ;;  %v69_v53 = vld [vmem:[%s13454_s1 + $0x80] sm:$0xff]  ;;  %v46_v3 = vld [vmem:[%s13455_s0 + $0x48] sm:$0xff] }
  0x38   :  { %363 = vmatpush.msrb.mxu2 %v8104_v60  ;;  %433 = vmatpush.msrb.mxu3 %v8007_v18 }
  0x39   :  { %605 = vmatpush.msrb.mxu1 %v7981_v9  ;;  %524 = vmatpush.msrb.mxu0 %v234_v39  ;;  %v157_v9 = vand.u32 4294901760, %v156_v4  ;;  %v163_v20 = vand.u32 4294901760, %v8310_v5  ;;  %v13553_v39 = vand.u32 4294901760, %v8166_v51  ;;  %v48_v4 = vld [vmem:[%s13455_s0 + $0x58] sm:$0xff] }
  0x3a   :  { %366 = vmatpush.msrb.mxu2 %v8121_v6  ;;  %435 = vmatpush.msrb.mxu3 %v8019_v24 }
  0x3b   :  { %198 = vmatmul.f32.gmra.mxu2 %v197_v26  ;;  %323 = vmatmul.f32.gmra.mxu3 %v8210_v25  ;;  %v164_v28 = vsub.f32 %v8310_v5, %v163_v20 }
  0x3c   :  { %369 = vmatpush.msrb.mxu2 %v8138_v29  ;;  %437 = vmatpush.msrb.mxu3 %v8026_v27 }
  0x3d   :  { %303 = vmatmul.f32.gmra.mxu1 %v8217_v57  ;;  %528 = vmatpush.msrb.mxu0 %v240_v45 }
  0x3e   :  { %372 = vmatpush.msrb.mxu2 %v8152_v38  ;;  %439 = vmatpush.msrb.mxu3 %v8049_v35 }
  0x3f   :  { %607 = vmatpush.msrb.mxu1 %v7983_v10  ;;  %532 = vmatpush.msrb.mxu0 %v246_v48  ;;  %v13546_v10 = vand.u32 4294901760, %v8071_v46 }
  0x40   :  { %375 = vmatpush.msrb.mxu2 %v8166_v51  ;;  %441 = vmatpush.msrb.mxu3 %v8060_v41 }
  0x41   :  { %609 = vmatpush.msrb.mxu1 %v7985_v11  ;;  %158 = vmatmul.f32.gmra.mxu0 %v157_v9  ;;  %v165_v11 = vand.u32 4294901760, %v164_v28 }
  0x42   :  { %378 = vmatpush.msrb.mxu2 %v8178_v63  ;;  %443 = vmatpush.msrb.mxu3 %v8085_v52 }
  0x43   :  { %611 = vmatpush.msrb.mxu1 %v8007_v18  ;;  %327 = vmatmul.f32.gmra.mxu3 %v8239_v1  ;;  %v13548_v18 = vand.u32 4294901760, %v8104_v60 }
  0x44   :  { %381 = vmatmul.f32.vlgmr.msrb.gmra.mxu2 %v8169_v55  ;;  %445 = vmatpush.msrb.mxu3 %v8101_v59  ;;  %v38_v55 = vld [vmem:[%s13455_s0 + $0x8] sm:$0xff] }
  0x45   :  { %536 = vmatpush.msrb.mxu0 %v13546_v10  ;;  %613 = vmatpush.msrb.mxu1 %v8019_v24  ;;  %v13549_v24 = vand.u32 4294901760, %v8121_v6  ;;  %v78_v2 = vsel %vm76_vm1, %v38_v55, 0 }
  0x46   :  { %307 = vmatmul.f32.gmra.mxu1 %v8263_v21  ;;  %447 = vmatpush.msrb.mxu3 %v8114_v0  ;;  %v8403_v49 = vand.u32 4294901760, %v78_v2 }
  0x47   :  { %540 = vmatpush.msrb.mxu0 %v13547_v32  ;;  %615 = vmatpush.msrb.mxu1 %v8026_v27  ;;  %v13551_v27 = vand.u32 4294901760, %v8138_v29 }
  0x48   :  { %449 = vmatpush.msrb.mxu3 %v8134_v17 }
  0x49   :  { %544 = vmatpush.msrb.mxu0 %v13548_v18  ;;  %617 = vmatpush.msrb.mxu1 %v8049_v35  ;;  %v13552_v35 = vand.u32 4294901760, %v8152_v38 }
  0x4a   :  { %451 = vmatpush.msrb.mxu3 %v8143_v33  ;;  %166 = vmatmul.f32.gmra.mxu0 %v165_v11  ;;  %v50_v11 = vld [vmem:[%s13455_s0 + $0x68] sm:$0xff] }
  0x4b   :  { %548 = vmatpush.msrb.mxu0 %v13549_v24  ;;  %619 = vmatpush.msrb.mxu1 %v8060_v41  ;;  %v103_v41 = vsel %vm101_vm0, %v71_v40, 0  ;;  %v96_v24 = vsel %vm76_vm1, %v50_v11, 0 }
  0x4c   :  { %386 = vmatmul.f32.gmra.mxu2 %v8235_v37  ;;  %455 = vmatmul.f32.vlgmr.msrb.gmra.mxu3 %v13550_v36  ;;  %v676_v45 = vand.u32 4294901760, %v103_v41  ;;  %v40_v37 = vld [vmem:[%s13455_s0 + $0x18] sm:$0xff] }
  0x4d   :  { %552 = vmatpush.msrb.mxu0 %v13551_v27  ;;  %621 = vmatpush.msrb.mxu1 %v8085_v52  ;;  %v70_v52 = vld [vmem:[%s13454_s1 + $0x88] sm:$0xff]  ;;  %v81_v30 = vsel %vm76_vm1, %v40_v37, 0 }
  0x4e   :  { %311 = vmatmul.f32.gmra.mxu1 %v8294_v23  ;;  %677 = vmatpush.msra.mxu2 %v676_v45  ;;  %v761_v46 = vsub.f32 %v103_v41, %v676_v45  ;;  %v678_v60 = vand.u32 4294901760, %v70_v52 }
  0x4f   :  { %556 = vmatpush.msrb.mxu0 %v13552_v35  ;;  %623 = vmatpush.msrb.mxu1 %v8101_v59  ;;  %v8464_v35 = vand.u32 4294901760, %v96_v24 }
  0x50   :  { %v762_v48 = vand.u32 4294901760, %v761_v46  ;;  %679 = vmatpush.msra.mxu2 %v678_v60 }
  0x51   :  { %560 = vmatpush.msrb.mxu0 %v13553_v39  ;;  %625 = vmatpush.msrb.mxu1 %v8114_v0  ;;  %v680_v0 = vand.u32 4294901760, %v69_v53  ;;  %v52_v39 = vld [vmem:[%s13455_s0 + $0x78] sm:$0xff]  ;;  %v731_v41 = vsub.f32 %v96_v24, %v8464_v35  ;;  %s7899_s0 = smov 32  }
  0x52   :  { %v763_v59 = vsub.f32 %v761_v46, %v762_v48 }
  0x53   :  { %564 = vmatpush.msrb.mxu0 %v294_v44  ;;  %627 = vmatpush.msrb.mxu1 %v8134_v17  ;;  %v767_v17 = vsub.f32 %v70_v52, %v678_v60 }
  0x54   :  { %391 = vmatmul.f32.gmra.mxu2 %v8277_v22  ;;  %461 = vmatmul.f32.gmra.mxu3 %v147_v50  ;;  %v764_v6 = vand.u32 4294901760, %v763_v59  ;;  %v8415_v50 = vand.u32 4294901760, %v81_v30 }
  0x55   :  { %566 = vmatmul.f32.vlgmr.msrb.gmra.mxu0 %v8154_v42  ;;  %629 = vmatpush.msrb.mxu1 %v8143_v33  ;;  %v768_v29 = vand.u32 4294901760, %v767_v17  ;;  %v773_v33 = vsub.f32 %v69_v53, %v680_v0  ;;  %v732_v53 = vand.u32 4294901760, %v731_v41 }
  0x56   :  { %631 = vmatmul.f32.vlgmr.msrb.gmra.mxu1 %v8154_v42  ;;  %826 = vmatpush.msra.mxu0 %v761_v46 }
  0x57   :  { %888 = vmatpush.msra.mxu1 %v676_v45  ;;  %765 = vmatpush.msra.mxu3 %v764_v6  ;;  %v769_v38 = vsub.f32 %v767_v17, %v768_v29  ;;  %v774_v42 = vand.u32 4294901760, %v773_v33 }
  0x58   :  { %681 = vmatpush.msra.mxu2 %v680_v0  ;;  %829 = vmatpush.msra.mxu0 %v767_v17 }
  0x59   :  { %890 = vmatpush.msra.mxu1 %v678_v60  ;;  %v770_v44 = vand.u32 4294901760, %v769_v38  ;;  %v775_v51 = vsub.f32 %v773_v33, %v774_v42 }
  0x5a   :  { %958 = vmatpush.msrb.mxu2 %v762_v48  ;;  %832 = vmatpush.msra.mxu0 %v773_v33  ;;  %v8475_v48 = vld [vmem:[%s13456_s2] ss:$0 sm:$0xff]  ;;  %s7900_s2 = smov 64  }
  0x5b   :  { %892 = vmatpush.msra.mxu1 %v680_v0  ;;  %771 = vmatpush.msra.mxu3 %v770_v44  ;;  %v776_v63 = vand.u32 4294901760, %v775_v51 }
  0x5c   :  { %396 = vmatmul.f32.gmra.mxu2 %v8310_v5  ;;  %467 = vmatmul.f32.gmra.mxu3 %v155_v19  ;;  %v90_v19 = vsel %vm76_vm1, %v46_v3, 0 }
  0x5d   :  { %570 = vmatmul.f32.gmra.mxu0 %v8217_v57  ;;  %962 = vmatpush.msrb.mxu2 %v768_v29  ;;  %v8448_v26 = vand.u32 4294901760, %v90_v19 }
  0x5e   :  { %635 = vmatmul.f32.gmra.mxu1 %v8217_v57  ;;  %v13554_v57 = vand.u32 4294901760, %v8128_v8  ;;  %777 = vmatpush.msra.mxu3 %v776_v63 }
  0x5f   :  { %966 = vmatpush.msrb.mxu2 %v774_v42  ;;  %v715_v9 = vsub.f32 %v90_v19, %v8448_v26 }
  0x60   :  { %1014 = vmatpush.msrb.mxu3 %v676_v45  ;;  %v99_v45 = vsel %vm76_vm1, %v52_v39, 0 }
  0x61   :  { %v8477_v59 = vand.u32 4294901760, %v99_v45 }
  0x62   :  { %1016 = vmatpush.msrb.mxu3 %v678_v60 }
  0x63   :  { %v739_v6 = vsub.f32 %v99_v45, %v8477_v59 }
  0x64   :  { %401 = vmatmul.f32.gmra.mxu2 %v8128_v8  ;;  %473 = vmatmul.f32.gmra.mxu3 %v163_v20  ;;  %v683_v8 = vsub.f32 %v78_v2, %v8403_v49  ;;  %v93_v20 = vsel %vm76_vm1, %v48_v4, 0  ;;  %vm7336_vm1 = vcmask 523268  }
  0x65   :  { %574 = vmatmul.f32.gmra.mxu0 %v8263_v21  ;;  %1018 = vmatpush.msrb.mxu3 %v680_v0  ;;  %v8456_v10 = vand.u32 4294901760, %v93_v20  ;;  %v733_v0 = vsub.f32 %v731_v41, %v732_v53  ;;  %v740_v42 = vand.u32 4294901760, %v739_v6 }
  0x66   :  { %639 = vmatmul.f32.gmra.mxu1 %v8263_v21  ;;  %v684_v31 = vand.u32 4294901760, %v683_v8  ;;  %v8427_v21 = vand.u32 4294901760, %v84_v12 }
  0x67   :  { %v723_v18 = vsub.f32 %v93_v20, %v8456_v10  ;;  %v734_v38 = vand.u32 4294901760, %v733_v0  ;;  %v741_v51 = vsub.f32 %v739_v6, %v740_v42 }
  0x69   :  { %v724_v27 = vand.u32 4294901760, %v723_v18  ;;  %v742_v2 = vand.u32 4294901760, %v741_v51 }
  0x6b   :  { %v725_v40 = vsub.f32 %v723_v18, %v724_v27 }
  0x6c   :  { %406 = vmatmul.f32.gmra.mxu2 %v8185_v7  ;;  %479 = vmatmul.f32.gmra.mxu3 %v13554_v57  ;;  %v685_v7 = vsub.f32 %v683_v8, %v684_v31 }
  0x6d   :  { %578 = vmatmul.f32.gmra.mxu0 %v8294_v23  ;;  %v726_v52 = vand.u32 4294901760, %v725_v40 }
  0x6e   :  { %643 = vmatmul.f32.gmra.mxu1 %v8294_v23 }
  0x74   :  { %411 = vmatmul.f32.gmra.mxu2 %v8227_v13  ;;  %485 = vmatmul.f32.gmra.mxu3 %v179_v43  ;;  %v691_v43 = vsub.f32 %v81_v30, %v8415_v50 }
  0x75   :  { %582 = vmatmul.f32.gmra.mxu0 %v8095_v56 }
  0x76   :  { %647 = vmatmul.f32.gmra.mxu1 %v8095_v56  ;;  %v686_v56 = vand.u32 4294901760, %v685_v7  ;;  %v692_v14 = vand.u32 4294901760, %v691_v43 }
  0x78   :  { %v693_v13 = vsub.f32 %v691_v43, %v692_v14 }
  0x7c   :  { %416 = vmatmul.f32.gmra.mxu2 %v8254_v54  ;;  %491 = vmatmul.f32.gmra.mxu3 %v187_v58  ;;  %v699_v58 = vsub.f32 %v84_v12, %v8427_v21 }
  0x7d   :  { %586 = vmatmul.f32.gmra.mxu0 %v8158_v47 }
  0x7e   :  { %651 = vmatmul.f32.gmra.mxu1 %v8158_v47  ;;  %v694_v47 = vand.u32 4294901760, %v693_v13  ;;  %v700_v22 = vand.u32 4294901760, %v699_v58 }
  0x80   :  { %v701_v54 = vsub.f32 %v699_v58, %v700_v22 }
  0x84   :  { %497 = vmatmul.f32.gmra.mxu3 %v195_v62  ;;  %687 = vmatmul.f32.vlgmr.msra.gmra.mxu2 %v686_v56  ;;  %v707_v62 = vsub.f32 %v87_v15, %v8438_v16 }
  0x85   :  { %590 = vmatmul.f32.gmra.mxu0 %v8210_v25 }
  0x86   :  { %655 = vmatmul.f32.gmra.mxu1 %v8210_v25  ;;  %v702_v25 = vand.u32 4294901760, %v701_v54  ;;  %v708_v23 = vand.u32 4294901760, %v707_v62 }
  0x88   :  { %v709_v5 = vsub.f32 %v707_v62, %v708_v23 }
  0x8a   :  { %v710_v28 = vand.u32 4294901760, %v709_v5 }
  0x8c   :  { %695 = vmatmul.f32.gmra.mxu2 %v694_v47  ;;  %779 = vmatmul.f32.vlgmr.msra.gmra.mxu3 %v8403_v49 }
  0x8d   :  { %594 = vmatmul.f32.gmra.mxu0 %v8239_v1 }
  0x8e   :  { %659 = vmatmul.f32.gmra.mxu1 %v8239_v1  ;;  %v716_v1 = vand.u32 4294901760, %v715_v9 }
  0x90   :  { %v717_v32 = vsub.f32 %v715_v9, %v716_v1 }
  0x92   :  { %v718_v36 = vand.u32 4294901760, %v717_v32 }
  0x94   :  { %703 = vmatmul.f32.gmra.mxu2 %v702_v25  ;;  %783 = vmatmul.f32.gmra.mxu3 %v8415_v50 }
  0x95   :  { %835 = vmatmul.f32.vlgmr.msra.gmra.mxu0 %v683_v8 }
  0x96   :  { %896 = vmatmul.f32.vlgmr.msra.gmra.mxu1 %v684_v31 }
  0x9c   :  { %711 = vmatmul.f32.gmra.mxu2 %v710_v28  ;;  %787 = vmatmul.f32.gmra.mxu3 %v8427_v21 }
  0x9d   :  { %840 = vmatmul.f32.gmra.mxu0 %v691_v43 }
  0x9e   :  { %902 = vmatmul.f32.gmra.mxu1 %v692_v14 }
  0xa4   :  { %719 = vmatmul.f32.gmra.mxu2 %v718_v36  ;;  %791 = vmatmul.f32.gmra.mxu3 %v8438_v16  ;;  %v8490_v8 = vpop.f32.mrf.mxu0 }
  0xa5   :  { %845 = vmatmul.f32.gmra.mxu0 %v699_v58 }
  0xa6   :  { %908 = vmatmul.f32.gmra.mxu1 %v700_v22  ;;  %v175_v46 = vpop.f32.mrf.mxu2 }
  0xa7   :  { %v176_v60 = vadd.f32 %v8475_v48, %v175_v46 }
  0xac   :  { %727 = vmatmul.f32.gmra.mxu2 %v726_v52  ;;  %795 = vmatmul.f32.gmra.mxu3 %v8448_v26  ;;  %v8494_v7 = vpop.f32.mrf.mxu1 }
  0xad   :  { %850 = vmatmul.f32.gmra.mxu0 %v707_v62 }
  0xae   :  { %914 = vmatmul.f32.gmra.mxu1 %v708_v23  ;;  %v183_v17 = vpop.f32.mrf.mxu2  ;;  %v316_v29 = vpop.f32.mrf.mxu3 }
  0xaf   :  { %v8482_v33 = vadd.f32 %v316_v29, %v176_v60  ;;  %v184_v44 = vadd.f32 %v8475_v48, %v183_v17 }
  0xb2   :  { %v8503_v34 = vpop.f32.mrf.mxu0 }
  0xb4   :  { %735 = vmatmul.f32.gmra.mxu2 %v734_v38  ;;  %799 = vmatmul.f32.gmra.mxu3 %v8456_v10  ;;  %v7898_v38 = vmov 0.0  }
  0xb5   :  { %855 = vmatmul.f32.gmra.mxu0 %v715_v9  ;;  %1064 = vst.msk [vmem:[#allocation2 + $0x10] sm:$0xff] %vm1060_vm2, %v7898_v38 }
  0xb6   :  { %920 = vmatmul.f32.gmra.mxu1 %v716_v1  ;;  %v191_v55 = vpop.f32.mrf.mxu2  ;;  %v320_v63 = vpop.f32.mrf.mxu3  ;;  %1065 = vst.msk [vmem:[#allocation2 + $0x18] sm:$0x3] %vm1062_vm3, %v7898_v38 }
  0xb7   :  { %v8486_v57 = vadd.f32 %v320_v63, %v184_v44  ;;  %v192_v37 = vadd.f32 %v8475_v48, %v191_v55  ;;  %1061 = vst.msk [vmem:[#allocation2] sm:$0xff] %vm1060_vm2, %v7898_v38 }
  0xb8   :  { %1063 = vst.msk [vmem:[#allocation2 + $0x8] sm:$0x3] %vm1062_vm3, %v7898_v38 }
  0xb9   :  { %1066 = vst.msk [vmem:[#allocation2 + $0x20] sm:$0xff] %vm1060_vm2, %v7898_v38 }
  0xba   :  { %v8505_v13 = vpop.f32.mrf.mxu1  ;;  %1067 = vst.msk [vmem:[#allocation2 + $0x28] sm:$0x3] %vm1062_vm3, %v7898_v38 }
  0xbb   :  { %1068 = vst.msk [vmem:[#allocation2 + $0x30] sm:$0xff] %vm1060_vm2, %v7898_v38 }
  0xbc   :  { %743 = vmatmul.f32.gmra.mxu2 %v742_v2  ;;  %803 = vmatmul.f32.gmra.mxu3 %v8464_v35  ;;  %1069 = vst.msk [vmem:[#allocation2 + $0x38] sm:$0x3] %vm1062_vm3, %v7898_v38 }
  0xbd   :  { %860 = vmatmul.f32.gmra.mxu0 %v723_v18  ;;  %1070 = vst.msk [vmem:[#allocation2 + $0x40] sm:$0xff] %vm1060_vm2, %v7898_v38 }
  0xbe   :  { %926 = vmatmul.f32.gmra.mxu1 %v724_v27  ;;  %v199_v30 = vpop.f32.mrf.mxu2  ;;  %v324_v31 = vpop.f32.mrf.mxu3  ;;  %1071 = vst.msk [vmem:[#allocation2 + $0x48] sm:$0x3] %vm1062_vm3, %v7898_v38 }
  0xbf   :  { %v8492_v61 = vadd.f32 %v324_v31, %v192_v37  ;;  %v200_v43 = vadd.f32 %v8475_v48, %v199_v30  ;;  %v8513_v47 = vpop.f32.mrf.mxu0  ;;  %v8637_v37 = vld [vmem:[#allocation2] sm:$0xff]  ;;  %1072 = vst.msk [vmem:[#allocation2 + $0x50] sm:$0xff] %vm1060_vm2, %v7898_v38  ;;  %v152_v31 = vadd.f32 %v8475_v48, %v8503_v34 }
  0xc0   :  { %v1104_v30 = vrot.slane %v8637_v37, 1  ;;  %1073 = vst.msk [vmem:[#allocation2 + $0x58] sm:$0x3] %vm1062_vm3, %v7898_v38 }
  0xc1   :  { %1074 = vst.msk [vmem:[#allocation2 + $0x60] sm:$0xff] %vm1060_vm2, %v7898_v38 }
  0xc2   :  { %1075 = vst.msk [vmem:[#allocation2 + $0x68] sm:$0x3] %vm1062_vm3, %v7898_v38 }
  0xc3   :  { %v8517_v22 = vpop.f32.mrf.mxu1  ;;  %1076 = vst.msk [vmem:[#allocation2 + $0x70] sm:$0xff] %vm1060_vm2, %v7898_v38 }
  0xc4   :  { %807 = vmatmul.f32.gmra.mxu3 %v8477_v59  ;;  %968 = vmatmul.f32.vlgmr.msrb.gmra.mxu2 %v8403_v49  ;;  %1077 = vst.msk [vmem:[#allocation2 + $0x78] sm:$0x3] %vm1062_vm3, %v7898_v38 }
  0xc5   :  { %865 = vmatmul.f32.gmra.mxu0 %v731_v41  ;;  %1078 = vst.msk [vmem:[#allocation2 + $0x80] sm:$0xff] %vm1060_vm2, %v7898_v38 }
  0xc6   :  { %932 = vmatmul.f32.gmra.mxu1 %v732_v53  ;;  %v328_v12 = vpop.f32.mrf.mxu3  ;;  %1079 = vst.msk [vmem:[#allocation2 + $0x88] sm:$0x3] %vm1062_vm3, %v7898_v38 }
  0xc7   :  { %v8499_v56 = vadd.f32 %v328_v12, %v200_v43  ;;  %v8501_v14 = vpop.f32.mrf.mxu2  ;;  %v8523_v62 = vpop.f32.mrf.mxu0  ;;  %1080 = vst.msk [vmem:[#allocation2 + $0x90] sm:$0xff] %vm1060_vm2, %v7898_v38 }
  0xc8   :  { %1081 = vst.msk [vmem:[#allocation2 + $0x98] sm:$0x3] %vm1062_vm3, %v7898_v38  ;;  %vm7346_vm3 = vcmask 1040384  }
  0xc9   :  { %6982 = vst [vmem:[#allocation6] sm:$0xff] %v7898_v38 }
  0xca   :  { %6984 = vst [vmem:[#allocation6 + $0x10] sm:$0x3] %v7898_v38 }
  0xcb   :  { %v8531_v25 = vpop.f32.mrf.mxu1  ;;  %6986 = vst [vmem:[#allocation6 + $0x20] sm:$0xff] %v7898_v38 }
  0xcc   :  { %972 = vmatmul.f32.gmra.mxu2 %v8415_v50  ;;  %1020 = vmatmul.f32.vlgmr.msrb.gmra.mxu3 %v8403_v49  ;;  %6988 = vst [vmem:[#allocation6 + $0x30] sm:$0x3] %v7898_v38 }
  0xcd   :  { %870 = vmatmul.f32.gmra.mxu0 %v739_v6  ;;  %6990 = vst [vmem:[#allocation6 + $0x40] sm:$0xff] %v7898_v38 }
  0xce   :  { %938 = vmatmul.f32.gmra.mxu1 %v740_v42  ;;  %v144_v42 = vadd.f32 %v8475_v48, %v8490_v8  ;;  %v1099_v8 = vld [vmem:[#allocation2 + $0x8] sm:$0x3]  ;;  %6992 = vst [vmem:[#allocation6 + $0x50] sm:$0x3] %v7898_v38 }
  0xcf   :  { %v8509_v58 = vpop.f32.mrf.mxu2  ;;  %v8511_v15 = vpop.f32.mrf.mxu3  ;;  %v1105_v43 = vrot.slane %v1099_v8, 1  ;;  %6994 = vst [vmem:[#allocation6 + $0x60] sm:$0xff] %v7898_v38 }
  0xd0   :  { %v301_v63 = vadd.f32 %v8494_v7, %v144_v42  ;;  %6996 = vst [vmem:[#allocation6 + $0x70] sm:$0x3] %v7898_v38 }
  0xd1   :  { %v1106_v42 = vsel %vm1103_vm4, %v1104_v30, %v1105_v43  ;;  %v1114_v30 = vrot.slane %v1099_v8, 2  ;;  %6998 = vst [vmem:[#allocation6 + $0x80] sm:$0xff] %v7898_v38 }
  0xd2   :  { %v383_v7 = vadd.f32 %v8501_v14, %v301_v63  ;;  %1107 = vrot.lane.b32.xlu0 %v1106_v42, %s7899_s0  ;;  %v305_v14 = vadd.f32 %v8505_v13, %v152_v31  ;;  %v1113_v63 = vrot.slane %v8637_v37, 2  ;;  %v160_v42 = vadd.f32 %v8475_v48, %v8513_v47  ;;  %7000 = vst [vmem:[#allocation6 + $0x90] sm:$0x3] %v7898_v38 }
  0xd3   :  { %v8541_v5 = vpop.f32.mrf.mxu1  ;;  %7002 = vst [vmem:[#allocation6 + $0xa0] sm:$0xff] %v7898_v38 }
  0xd4   :  { %976 = vmatmul.f32.gmra.mxu2 %v8427_v21  ;;  %1024 = vmatmul.f32.gmra.mxu3 %v8415_v50  ;;  %v8535_v50 = vpop.f32.mrf.mxu0  ;;  %v457_v34 = vadd.f32 %v8511_v15, %v383_v7  ;;  %v388_v13 = vadd.f32 %v8509_v58, %v305_v14  ;;  %v1115_v8 = vsel %vm1112_vm5, %v1113_v63, %v1114_v30 }
  0xd5   :  { %v309_v31 = vadd.f32 %v8517_v22, %v160_v42  ;;  %v168_v63 = vadd.f32 %v8475_v48, %v8523_v62  ;;  %7004 = vst [vmem:[#allocation6 + $0xb0] sm:$0x3] %v7898_v38 }
  0xd6   :  { %v568_v15 = vadd.f32 %v8535_v50, %v457_v34  ;;  %7006 = vst [vmem:[#allocation6 + $0xc0] sm:$0xff] %v7898_v38 }
  0xd7   :  { %v8519_v3 = vpop.f32.mrf.mxu2  ;;  %v8521_v54 = vpop.f32.mrf.mxu3  ;;  %v313_v48 = vadd.f32 %v8531_v25, %v168_v63  ;;  %7008 = vst [vmem:[#allocation6 + $0xd0] sm:$0x3] %v7898_v38 }
  0xd8   :  { %v633_v58 = vadd.f32 %v8541_v5, %v568_v15  ;;  %v463_v50 = vadd.f32 %v8521_v54, %v388_v13  ;;  %v393_v34 = vadd.f32 %v8519_v3, %v309_v31  ;;  %7010 = vst [vmem:[#allocation6 + $0xe0] sm:$0xff] %v7898_v38 }
  0xd9   :  { %7012 = vst [vmem:[#allocation6 + $0xf0] sm:$0x3] %v7898_v38 }
  0xda   :  { %1116 = vrot.lane.b32.xlu0 %v1115_v8, %s7900_s2  ;;  %7014 = vst [vmem:[#allocation6 + $0x100] sm:$0xff] %v7898_v38 }
  0xdb   :  { %v8551_v28 = vpop.f32.mrf.mxu1  ;;  %7016 = vst [vmem:[#allocation6 + $0x110] sm:$0x3] %v7898_v38 }
  0xdc   :  { %980 = vmatmul.f32.gmra.mxu2 %v8438_v16  ;;  %1028 = vmatmul.f32.gmra.mxu3 %v8427_v21  ;;  %v8549_v20 = vpop.f32.mrf.mxu0  ;;  %1100 = vst.msk [vmem:[#allocation3] sm:$0xff] %vm1060_vm2, %v8637_v37 }
  0xdd   :  { %v572_v5 = vadd.f32 %v8549_v20, %v463_v50 }
  0xdf   :  { %v8527_v49 = vpop.f32.mrf.mxu2  ;;  %v8529_v19 = vpop.f32.mrf.mxu3  ;;  %v637_v62 = vadd.f32 %v8551_v28, %v572_v5 }
  0xe0   :  { %v398_v15 = vadd.f32 %v8527_v49, %v313_v48 }
  0xe4   :  { %984 = vmatmul.f32.gmra.mxu2 %v8448_v26  ;;  %1032 = vmatmul.f32.gmra.mxu3 %v8438_v16  ;;  %v8559_v11 = vpop.f32.mrf.mxu0 }
  0xe7   :  { %v8537_v23 = vpop.f32.mrf.mxu2  ;;  %v8539_v4 = vpop.f32.mrf.mxu3 }
  0xec   :  { %988 = vmatmul.f32.gmra.mxu2 %v8456_v10  ;;  %1036 = vmatmul.f32.gmra.mxu3 %v8448_v26  ;;  %v8563_v26 = vpop.f32.mrf.mxu1  ;;  %v8569_v24 = vpop.f32.mrf.mxu0 }
  0xef   :  { %v8545_v21 = vpop.f32.mrf.mxu2  ;;  %v8547_v9 = vpop.f32.mrf.mxu3 }
  0xf4   :  { %992 = vmatmul.f32.gmra.mxu2 %v8464_v35  ;;  %1040 = vmatmul.f32.gmra.mxu3 %v8456_v10  ;;  %v8576_v27 = vpop.f32.mrf.mxu1  ;;  %v8578_v39 = vpop.f32.mrf.mxu0 }
  0xf7   :  { %v8555_v16 = vpop.f32.mrf.mxu2  ;;  %v8557_v1 = vpop.f32.mrf.mxu3 }
  0xfc   :  { %996 = vmatmul.f32.gmra.mxu2 %v8477_v59  ;;  %1044 = vmatmul.f32.gmra.mxu3 %v8464_v35  ;;  %v8584_v41 = vpop.f32.mrf.mxu1  ;;  %v8590_v52 = vpop.f32.mrf.mxu0 }
  0xff   :  { %v8565_v32 = vpop.f32.mrf.mxu2  ;;  %v8567_v18 = vpop.f32.mrf.mxu3 }
 0x104   :  { %1048 = vmatmul.f32.gmra.mxu3 %v8477_v59  ;;  %v8592_v53 = vpop.f32.mrf.mxu1  ;;  %v8598_v0 = vpop.f32.mrf.mxu0 }
 0x107   :  { %v8572_v10 = vpop.f32.mrf.mxu3  ;;  %v8574_v36 = vpop.f32.mrf.mxu2 }
 0x108   :  { %v689_v22 = vadd.f32 %v8574_v36, %v633_v58  ;;  %v469_v36 = vadd.f32 %v8529_v19, %v393_v34 }
 0x10a   :  { %v576_v19 = vadd.f32 %v8559_v11, %v469_v36  ;;  %v475_v11 = vadd.f32 %v8539_v4, %v398_v15 }
 0x10c   :  { %v8600_v6 = vpop.f32.mrf.mxu1  ;;  %v8614_v44 = vpop.f32.mrf.mxu0  ;;  %v580_v34 = vadd.f32 %v8569_v24, %v475_v11 }
 0x10d   :  { %13555 = vst [vmem:[#allocation8_spill] sm:$0xff] %v8614_v44 }
 0x10e   :  { %v645_v37 = vadd.f32 %v8576_v27, %v580_v34 }
 0x10f   :  { %v8580_v40 = vpop.f32.mrf.mxu2  ;;  %v8582_v35 = vpop.f32.mrf.mxu3 }
 0x110   :  { %v781_v54 = vadd.f32 %v8582_v35, %v689_v22  ;;  %v697_v35 = vadd.f32 %v8580_v40, %v637_v62  ;;  %v641_v40 = vadd.f32 %v8563_v26, %v576_v19  ;;  %v403_v26 = vadd.f32 %v8537_v23, %v8482_v33 }
 0x114   :  { %v8629_v2 = vpop.f32.mrf.mxu1  ;;  %v836_v12 = vpop.f32.mrf.mxu0 }
 0x115   :  { %13556 = vst [vmem:[#allocation9_spill] sm:$0xff] %v8629_v2  ;;  %v837_v20 = vadd.f32 %v836_v12, %v781_v54 }
 0x117   :  { %v8586_v45 = vpop.f32.mrf.mxu2  ;;  %v8588_v46 = vpop.f32.mrf.mxu3 }
 0x118   :  { %v785_v25 = vadd.f32 %v8588_v46, %v697_v35  ;;  %v705_v49 = vadd.f32 %v8586_v45, %v641_v40 }
 0x11c   :  { %v897_v43 = vpop.f32.mrf.mxu1  ;;  %v841_v14 = vpop.f32.mrf.mxu0 }
 0x11d   :  { %v898_v8 = vadd.f32 %v897_v43, %v837_v20  ;;  %v842_v50 = vadd.f32 %v841_v14, %v785_v25  ;;  %v481_v14 = vadd.f32 %v8547_v9, %v403_v26 }
 0x11f   :  { %v8594_v59 = vpop.f32.mrf.mxu2  ;;  %v8596_v60 = vpop.f32.mrf.mxu3 }
 0x120   :  { %v789_v43 = vadd.f32 %v8596_v60, %v705_v49  ;;  %v713_v60 = vadd.f32 %v8594_v59, %v645_v37 }
 0x124   :  { %v903_v30 = vpop.f32.mrf.mxu1  ;;  %v846_v13 = vpop.f32.mrf.mxu0 }
 0x125   :  { %v904_v63 = vadd.f32 %v903_v30, %v842_v50  ;;  %v847_v5 = vadd.f32 %v846_v13, %v789_v43  ;;  %v584_v30 = vadd.f32 %v8578_v39, %v481_v14  ;;  %v408_v39 = vadd.f32 %v8545_v21, %v8486_v57 }
 0x127   :  { %v8602_v17 = vpop.f32.mrf.mxu2  ;;  %v8604_v29 = vpop.f32.mrf.mxu3  ;;  %v649_v15 = vadd.f32 %v8584_v41, %v584_v30 }
 0x128   :  { %v793_v23 = vadd.f32 %v8604_v29, %v713_v60 }
 0x12c   :  { %v909_v28 = vpop.f32.mrf.mxu1  ;;  %v851_v38 = vpop.f32.mrf.mxu0 }
 0x12d   :  { %v910_v48 = vadd.f32 %v909_v28, %v847_v5 }
 0x12f   :  { %v8622_v51 = vpop.f32.mrf.mxu2  ;;  %v8624_v55 = vpop.f32.mrf.mxu3 }
 0x134   :  { %v856_v29 = vpop.f32.mrf.mxu0 }
 0x137   :  { %v8652_v2 = vpop.f32.mrf.mxu2  ;;  %v8654_v44 = vpop.f32.mrf.mxu3 }
 0x13c   :  { %v861_v60 = vpop.f32.mrf.mxu0 }
 0x13f   :  { %v8680_v7 = vpop.f32.mrf.mxu2  ;;  %v8682_v47 = vpop.f32.mrf.mxu3 }
 0x147   :  { %v8702_v42 = vpop.f32.mrf.mxu3  ;;  %v969_v3 = vpop.f32.mrf.mxu2 }
 0x148   :  { %v970_v12 = vadd.f32 %v969_v3, %v898_v8  ;;  %v915_v3 = vpop.f32.mrf.mxu1  ;;  %v487_v8 = vadd.f32 %v8557_v1, %v408_v39 }
 0x14a   :  { %v588_v11 = vadd.f32 %v8590_v52, %v487_v8 }
 0x14f   :  { %v973_v31 = vpop.f32.mrf.mxu2  ;;  %v1021_v58 = vpop.f32.mrf.mxu3 }
 0x150   :  { %v1022_v22 = vadd.f32 %v1021_v58, %v970_v12  ;;  %v974_v4 = vadd.f32 %v973_v31, %v904_v63  ;;  %v852_v12 = vadd.f32 %v851_v38, %v793_v23  ;;  %v721_v31 = vadd.f32 %v8602_v17, %v649_v15  ;;  %v921_v50 = vpop.f32.mrf.mxu1 }
 0x152   :  { %v1052_v46 = vmax.f32 %v1022_v22, 0.0  ;;  %v797_v41 = vadd.f32 %v8624_v55, %v721_v31  ;;  %v916_v43 = vadd.f32 %v915_v3, %v852_v12  ;;  %v413_v55 = vadd.f32 %v8555_v16, %v8492_v61 }
 0x154   :  { %1083 = vst.msk [vmem:[#allocation2 + $0x11] sm:$0xff] %vm1060_vm2, %v1052_v46  ;;  %v493_v5 = vadd.f32 %v8567_v18, %v413_v55 }
 0x157   :  { %v977_v45 = vpop.f32.mrf.mxu2  ;;  %v1025_v54 = vpop.f32.mrf.mxu3 }
 0x158   :  { %v1026_v36 = vadd.f32 %v1025_v54, %v974_v4  ;;  %v978_v13 = vadd.f32 %v977_v45, %v910_v48  ;;  %v857_v45 = vadd.f32 %v856_v29, %v797_v41  ;;  %v592_v48 = vadd.f32 %v8598_v0, %v493_v5 }
 0x159   :  { %v418_v29 = vadd.f32 %v8565_v32, %v8499_v56 }
 0x15a   :  { %v1053_v24 = vmax.f32 %v1026_v36, 0.0  ;;  %v653_v36 = vadd.f32 %v8592_v53, %v588_v11  ;;  %v13557_v11 = vld [vmem:[#allocation8_spill] sm:$0xff] }
 0x15b   :  { %v8732_v62 = vld [vmem:[#allocation2 + $0x10] sm:$0xff]  ;;  %v1163_v20 = vld [vmem:[#allocation2 + $0x18] sm:$0x3] }
 0x15c   :  { %v8734_v33 = vld [vmem:[#allocation2 + $0x18] sm:$0x3]  ;;  %1085 = vst.msk [vmem:[#allocation2 + $0x21] sm:$0xff] %vm1060_vm2, %v1053_v24  ;;  %1124 = vrot.lane.b32.xlu1 %v8732_v62, %s7901_s24  ;;  %v1130_v9 = vrot.slane %v8732_v62, 1  ;;  %v1135_v27 = vrot.slane %v8732_v62, 2  ;;  %v1175_v59 = vrot.slane %v1163_v20, 2  ;;  %v729_v24 = vadd.f32 %v8622_v51, %v653_v36 }
 0x15d   :  { %1164 = vst.msk [vmem:[#allocation3 + $0x18] sm:$0xff] %vm1060_vm2, %v8732_v62  ;;  %v1131_v35 = vrot.slane %v8734_v33, 1  ;;  %v1168_v57 = vrot.slane %v1163_v20, 1  ;;  %v922_v20 = vadd.f32 %v921_v50, %v857_v45  ;;  %v1612_v62 = vld [vmem:[%s13457_s3 + $0x60] sm:$0xff] }
 0x15e   :  { %v1176_v19 = vsel %vm1112_vm5, %v1135_v27, %v1175_v59  ;;  %v801_v39 = vadd.f32 %v8654_v44, %v729_v24 }
 0x15f   :  { %v981_v25 = vpop.f32.mrf.mxu2  ;;  %v1029_v28 = vpop.f32.mrf.mxu3  ;;  %1177 = vrot.lane.b32.xlu2 %v1176_v19, %s7900_s2  ;;  %v1132_v21 = vsel %vm1103_vm4, %v1130_v9, %v1131_v35  ;;  %v1169_v1 = vsel %vm1103_vm4, %v1130_v9, %v1168_v57  ;;  %v499_v57 = vadd.f32 %v8572_v10, %v418_v29 }
 0x160   :  { %v1030_v40 = vadd.f32 %v1029_v28, %v978_v13  ;;  %1134 = vst.msk [vmem:[#allocation3 + $0x8] sm:$0xff] %vm1060_vm2, %v1132_v21  ;;  %v982_v26 = vadd.f32 %v981_v25, %v916_v43  ;;  %v927_v13 = vpop.f32.mrf.mxu1  ;;  %v657_v28 = vadd.f32 %v8600_v6, %v592_v48 }
 0x161   :  { %v596_v41 = vadd.f32 %v13557_v11, %v499_v57 }
 0x162   :  { %v1054_v58 = vmax.f32 %v1030_v40, 0.0  ;;  %v862_v40 = vadd.f32 %v861_v60, %v801_v39  ;;  %v737_v10 = vadd.f32 %v8652_v2, %v657_v28 }
 0x163   :  { %v8759_v22 = vld [vmem:[#allocation2 + $0x20] sm:$0xff]  ;;  %v1222_v49 = vld [vmem:[#allocation2 + $0x28] sm:$0x3] }
 0x164   :  { %v8761_v46 = vld [vmem:[#allocation2 + $0x28] sm:$0x3]  ;;  %1087 = vst.msk [vmem:[#allocation2 + $0x31] sm:$0xff] %vm1060_vm2, %v1054_v58  ;;  %1170 = vrot.lane.b32.xlu1 %v1169_v1, %s7899_s0  ;;  %v8766_v17 = vrot.slane %v8759_v22, 1  ;;  %v1227_v34 = vrot.slane %v1222_v49, 1  ;;  %v8769_v52 = vrot.slane %v8759_v22, 2  ;;  %v805_v50 = vadd.f32 %v8682_v47, %v737_v10  ;;  %v866_v1 = vpop.f32.mrf.mxu0 }
 0x165   :  { %1223 = vst.msk [vmem:[#allocation3 + $0x30] sm:$0xff] %vm1060_vm2, %v8759_v22  ;;  %v1158_v63 = vrot.slane %v8761_v46, 2  ;;  %v8776_v38 = vld [vmem:[#allocation2 + $0x28] sm:$0x3]  ;;  %v1234_v61 = vrot.slane %v1222_v49, 2 }
 0x166   :  { %v1228_v4 = vsel %vm1103_vm4, %v8766_v17, %v1227_v34  ;;  %v1190_v14 = vrot.slane %v8776_v38, 1 }
 0x167   :  { %v985_v54 = vpop.f32.mrf.mxu2  ;;  %v1033_v37 = vpop.f32.mrf.mxu3  ;;  %1229 = vrot.lane.b32.xlu0 %v1228_v4, %s7899_s0  ;;  %1184 = vrot.lane.b32.xlu2 %v8759_v22, %s7901_s24  ;;  %v1159_v16 = vsel %vm1112_vm5, %v8769_v52, %v1158_v63  ;;  %v1235_v23 = vsel %vm1112_vm5, %v8769_v52, %v1234_v61  ;;  %v928_v63 = vadd.f32 %v927_v13, %v862_v40 }
 0x168   :  { %v1034_v3 = vadd.f32 %v1033_v37, %v982_v26  ;;  %1161 = vst.msk [vmem:[#allocation3 + $0x10] sm:$0xff] %vm1060_vm2, %v1159_v16  ;;  %v1191_v18 = vsel %vm1103_vm4, %v8766_v17, %v1190_v14  ;;  %v986_v15 = vadd.f32 %v985_v54, %v922_v20  ;;  %v867_v37 = vadd.f32 %v866_v1, %v805_v50  ;;  %v933_v61 = vpop.f32.mrf.mxu1 }
 0x169   :  { %1193 = vst.msk [vmem:[#allocation3 + $0x20] sm:$0xff] %vm1060_vm2, %v1191_v18  ;;  %v13558_v18 = vld [vmem:[#allocation9_spill] sm:$0xff] }
 0x16a   :  { %v1055_v30 = vmax.f32 %v1034_v3, 0.0  ;;  %v661_v60 = vadd.f32 %v13558_v18, %v596_v41 }
 0x16b   :  { %v8796_v9 = vld [vmem:[#allocation2 + $0x30] sm:$0xff]  ;;  %v1281_v53 = vld [vmem:[#allocation2 + $0x38] sm:$0x3] }
 0x16c   :  { %v8798_v59 = vld [vmem:[#allocation2 + $0x38] sm:$0x3]  ;;  %1089 = vst.msk [vmem:[#allocation2 + $0x41] sm:$0xff] %vm1060_vm2, %v1055_v30  ;;  %1236 = vrot.lane.b32.xlu1 %v1235_v23, %s7900_s2  ;;  %v8804_v51 = vrot.slane %v8796_v9, 1  ;;  %v1286_v35 = vrot.slane %v1281_v53, 1  ;;  %v8807_v0 = vrot.slane %v8796_v9, 2  ;;  %v745_v20 = vadd.f32 %v8680_v7, %v661_v60 }
 0x16d   :  { %1282 = vst.msk [vmem:[#allocation3 + $0x48] sm:$0xff] %vm1060_vm2, %v8796_v9  ;;  %v1217_v44 = vrot.slane %v8798_v59, 2  ;;  %v8814_v19 = vld [vmem:[#allocation2 + $0x38] sm:$0x3]  ;;  %v1293_v32 = vrot.slane %v1281_v53, 2  ;;  %v934_v53 = vadd.f32 %v933_v61, %v867_v37 }
 0x16e   :  { %v1287_v8 = vsel %vm1103_vm4, %v8804_v51, %v1286_v35  ;;  %v1249_v25 = vrot.slane %v8814_v19, 1 }
 0x16f   :  { %v989_v21 = vpop.f32.mrf.mxu2  ;;  %v1037_v56 = vpop.f32.mrf.mxu3  ;;  %1288 = vrot.lane.b32.xlu0 %v1287_v8, %s7899_s0  ;;  %1243 = vrot.lane.b32.xlu2 %v8796_v9, %s7901_s24  ;;  %v1218_v12 = vsel %vm1112_vm5, %v8807_v0, %v1217_v44  ;;  %v1294_v49 = vsel %vm1112_vm5, %v8807_v0, %v1293_v32  ;;  %v809_v44 = vadd.f32 %v8702_v42, %v745_v20 }
 0x170   :  { %v1038_v31 = vadd.f32 %v1037_v56, %v986_v15  ;;  %1220 = vst.msk [vmem:[#allocation3 + $0x28] sm:$0xff] %vm1060_vm2, %v1218_v12  ;;  %v1250_v6 = vsel %vm1103_vm4, %v8804_v51, %v1249_v25  ;;  %v990_v5 = vadd.f32 %v989_v21, %v928_v63  ;;  %v871_v25 = vpop.f32.mrf.mxu0 }
 0x171   :  { %1252 = vst.msk [vmem:[#allocation3 + $0x38] sm:$0xff] %vm1060_vm2, %v1250_v6 }
 0x172   :  { %v1056_v58 = vmax.f32 %v1038_v31, 0.0  ;;  %v872_v31 = vadd.f32 %v871_v25, %v809_v44 }
 0x173   :  { %v8835_v43 = vld [vmem:[#allocation2 + $0x40] sm:$0xff]  ;;  %v1340_v34 = vld [vmem:[#allocation2 + $0x48] sm:$0x3] }
 0x174   :  { %v8837_v55 = vld [vmem:[#allocation2 + $0x48] sm:$0x3]  ;;  %1091 = vst.msk [vmem:[#allocation2 + $0x51] sm:$0xff] %vm1060_vm2, %v1056_v58  ;;  %1295 = vrot.lane.b32.xlu1 %v1294_v49, %s7900_s2  ;;  %v8842_v2 = vrot.slane %v8835_v43, 1  ;;  %v1345_v26 = vrot.slane %v1340_v34, 1  ;;  %v8845_v47 = vrot.slane %v8835_v43, 2  ;;  %v939_v58 = vpop.f32.mrf.mxu1 }
 0x175   :  { %1341 = vst.msk [vmem:[#allocation3 + $0x60] sm:$0xff] %vm1060_vm2, %v8835_v43  ;;  %v1276_v4 = vrot.slane %v8837_v55, 2  ;;  %v8850_v14 = vld [vmem:[#allocation2 + $0x48] sm:$0x3]  ;;  %v1352_v36 = vrot.slane %v1340_v34, 2  ;;  %v940_v63 = vadd.f32 %v939_v58, %v872_v31  ;;  %v1614_v58 = vld [vmem:[%s13457_s3 + $0x70] sm:$0xff] }
 0x176   :  { %v1346_v45 = vsel %vm1103_vm4, %v8842_v2, %v1345_v26  ;;  %v1308_v54 = vrot.slane %v8850_v14, 1 }
 0x177   :  { %v1041_v16 = vpop.f32.mrf.mxu3  ;;  %1347 = vrot.lane.b32.xlu0 %v1346_v45, %s7899_s0  ;;  %1302 = vrot.lane.b32.xlu2 %v8835_v43, %s7901_s24  ;;  %v1277_v3 = vsel %vm1112_vm5, %v8845_v47, %v1276_v4  ;;  %v993_v48 = vpop.f32.mrf.mxu2  ;;  %v1353_v39 = vsel %vm1112_vm5, %v8845_v47, %v1352_v36 }
 0x178   :  { %v1042_v24 = vadd.f32 %v1041_v16, %v990_v5  ;;  %1279 = vst.msk [vmem:[#allocation3 + $0x40] sm:$0xff] %vm1060_vm2, %v1277_v3  ;;  %v1309_v30 = vsel %vm1103_vm4, %v8842_v2, %v1308_v54  ;;  %v994_v42 = vadd.f32 %v993_v48, %v934_v53 }
 0x179   :  { %1311 = vst.msk [vmem:[#allocation3 + $0x50] sm:$0xff] %vm1060_vm2, %v1309_v30 }
 0x17a   :  { %v1057_v23 = vmax.f32 %v1042_v24, 0.0 }
 0x17b   :  { %v8868_v35 = vld [vmem:[#allocation2 + $0x50] sm:$0xff]  ;;  %v1399_v29 = vld [vmem:[#allocation2 + $0x58] sm:$0x3] }
 0x17c   :  { %v8870_v13 = vld [vmem:[#allocation2 + $0x58] sm:$0x3]  ;;  %1093 = vst.msk [vmem:[#allocation2 + $0x61] sm:$0xff] %vm1060_vm2, %v1057_v23  ;;  %1354 = vrot.lane.b32.xlu1 %v1353_v39, %s7900_s2  ;;  %v8876_v15 = vrot.slane %v8868_v35, 1  ;;  %v1404_v7 = vrot.slane %v1399_v29, 1  ;;  %v8879_v8 = vrot.slane %v8868_v35, 2 }
 0x17d   :  { %1400 = vst.msk [vmem:[#allocation3 + $0x78] sm:$0xff] %vm1060_vm2, %v8868_v35  ;;  %v1335_v28 = vrot.slane %v8870_v13, 2  ;;  %v8884_v57 = vld [vmem:[#allocation2 + $0x58] sm:$0x3]  ;;  %v1411_v12 = vrot.slane %v1399_v29, 2 }
 0x17e   :  { %v1405_v21 = vsel %vm1103_vm4, %v8876_v15, %v1404_v7  ;;  %v1367_v56 = vrot.slane %v8884_v57, 1 }
 0x17f   :  { %v1045_v32 = vpop.f32.mrf.mxu3  ;;  %1406 = vrot.lane.b32.xlu0 %v1405_v21, %s7899_s0  ;;  %1361 = vrot.lane.b32.xlu2 %v8868_v35, %s7901_s24  ;;  %v1336_v40 = vsel %vm1112_vm5, %v8879_v8, %v1335_v28  ;;  %v997_v41 = vpop.f32.mrf.mxu2  ;;  %v1412_v50 = vsel %vm1112_vm5, %v8879_v8, %v1411_v12  ;;  %v1615_v12 = vld [vmem:[%s13457_s3 + $0x78] sm:$0xff] }
 0x180   :  { %v1046_v6 = vadd.f32 %v1045_v32, %v994_v42  ;;  %1338 = vst.msk [vmem:[#allocation3 + $0x58] sm:$0xff] %vm1060_vm2, %v1336_v40  ;;  %v1368_v10 = vsel %vm1103_vm4, %v8876_v15, %v1367_v56  ;;  %v998_v37 = vadd.f32 %v997_v41, %v940_v63  ;;  %v1136_v40 = vrot.slane %v8734_v33, 2 }
 0x181   :  { %1370 = vst.msk [vmem:[#allocation3 + $0x68] sm:$0xff] %vm1060_vm2, %v1368_v10  ;;  %v8964_v31 = vand.u32 4294901760, %v1615_v12  ;;  %v8980_v33 = vand.u32 4294901760, %v1614_v58 }
 0x182   :  { %v1058_v11 = vmax.f32 %v1046_v6, 0.0 }
 0x183   :  { %v8900_v1 = vld [vmem:[#allocation2 + $0x60] sm:$0xff]  ;;  %v1458_v49 = vld [vmem:[#allocation2 + $0x68] sm:$0x3]  ;;  %1980 = vmatpush.msra.mxu3 %v8964_v31  ;;  %1665 = vmatpush.msrb.mxu0 %v8964_v31 }
 0x184   :  { %v8902_v34 = vld [vmem:[#allocation2 + $0x68] sm:$0x3]  ;;  %1095 = vst.msk [vmem:[#allocation2 + $0x71] sm:$0xff] %vm1060_vm2, %v1058_v11  ;;  %1413 = vrot.lane.b32.xlu1 %v1412_v50, %s7900_s2  ;;  %v8907_v26 = vrot.slane %v8900_v1, 1  ;;  %v1463_v4 = vrot.slane %v1458_v49, 1  ;;  %v8910_v5 = vrot.slane %v8900_v1, 2  ;;  %v8978_v50 = vsub.f32 %v1615_v12, %v8964_v31 }
 0x185   :  { %1459 = vst.msk [vmem:[#allocation3 + $0x90] sm:$0xff] %vm1060_vm2, %v8900_v1  ;;  %v1394_v45 = vrot.slane %v8902_v34, 2  ;;  %v8915_v54 = vld [vmem:[#allocation2 + $0x68] sm:$0x3]  ;;  %v1470_v3 = vrot.slane %v1458_v49, 2  ;;  %1982 = vmatpush.msra.mxu3 %v8980_v33  ;;  %1667 = vmatpush.msrb.mxu0 %v8980_v33 }
 0x186   :  { %v1464_v61 = vsel %vm1103_vm4, %v8907_v26, %v1463_v4  ;;  %v1426_v16 = vrot.slane %v8915_v54, 1  ;;  %v1613_v4 = vld [vmem:[%s13457_s3 + $0x68] sm:$0xff]  ;;  %1892 = vmatpush.msra.mxu2 %v8978_v50 }
 0x187   :  { %v1049_v36 = vpop.f32.mrf.mxu3  ;;  %1465 = vrot.lane.b32.xlu0 %v1464_v61, %s7899_s0  ;;  %1420 = vrot.lane.b32.xlu2 %v8900_v1, %s7901_s24  ;;  %v1395_v18 = vsel %vm1112_vm5, %v8910_v5, %v1394_v45  ;;  %v1471_v48 = vsel %vm1112_vm5, %v8910_v5, %v1470_v3  ;;  %v1137_v61 = vsel %vm1112_vm5, %v1135_v27, %v1136_v40  ;;  %v9000_v3 = vand.u32 4294901760, %v1613_v4 }
 0x188   :  { %v1050_v60 = vadd.f32 %v1049_v36, %v998_v37  ;;  %1397 = vst.msk [vmem:[#allocation3 + $0x70] sm:$0xff] %vm1060_vm2, %v1395_v18  ;;  %v1427_v24 = vsel %vm1103_vm4, %v8907_v26, %v1426_v16  ;;  %v1763_v16 = vand.u32 4294901760, %v8978_v50  ;;  %v8997_v36 = vsub.f32 %v1614_v58, %v8980_v33 }
 0x189   :  { %1429 = vst.msk [vmem:[#allocation3 + $0x80] sm:$0xff] %vm1060_vm2, %v1427_v24  ;;  %v9017_v24 = vsub.f32 %v1613_v4, %v9000_v3  ;;  %1984 = vmatpush.msra.mxu3 %v9000_v3  ;;  %1669 = vmatpush.msrb.mxu0 %v9000_v3 }
 0x18a   :  { %v1059_v30 = vmax.f32 %v1050_v60, 0.0  ;;  %v1764_v18 = vsub.f32 %v8978_v50, %v1763_v16  ;;  %v1769_v60 = vand.u32 4294901760, %v8997_v36  ;;  %1895 = vmatpush.msra.mxu2 %v8997_v36 }
 0x18b   :  { %v8931_v20 = vld [vmem:[#allocation2 + $0x70] sm:$0xff]  ;;  %v1517_v23 = vld [vmem:[#allocation2 + $0x78] sm:$0x3] }
 0x18c   :  { %v8933_v53 = vld [vmem:[#allocation2 + $0x78] sm:$0x3]  ;;  %1097 = vst.msk [vmem:[#allocation2 + $0x81] sm:$0xff] %vm1060_vm2, %v1059_v30  ;;  %1472 = vrot.lane.b32.xlu1 %v1471_v48, %s7900_s2  ;;  %v8938_v39 = vrot.slane %v8931_v20, 1  ;;  %v1522_v29 = vrot.slane %v1517_v23, 1  ;;  %v8941_v44 = vrot.slane %v8931_v20, 2  ;;  %1898 = vmatpush.msra.mxu2 %v9017_v24 }
 0x18d   :  { %1518 = vst.msk [vmem:[#allocation3 + $0xa8] sm:$0xff] %vm1060_vm2, %v8931_v20  ;;  %v1453_v7 = vrot.slane %v8933_v53, 2  ;;  %v8946_v25 = vld [vmem:[#allocation2 + $0x78] sm:$0x3]  ;;  %v1529_v21 = vrot.slane %v1517_v23, 2  ;;  %v9020_v30 = vand.u32 4294901760, %v1612_v62 }
 0x18e   :  { %v1523_v28 = vsel %vm1103_vm4, %v8938_v39, %v1522_v29  ;;  %v1485_v42 = vrot.slane %v8946_v25, 1  ;;  %v1151_v48 = vrot.slane %v8761_v46, 1  ;;  %v1195_v23 = vrot.slane %v8776_v38, 2  ;;  %v1611_v29 = vld [vmem:[%s13457_s3 + $0x58] sm:$0xff] }
 0x18f   :  { %1524 = vrot.lane.b32.xlu0 %v1523_v28, %s7899_s0  ;;  %1479 = vrot.lane.b32.xlu2 %v8931_v20, %s7901_s24  ;;  %v1454_v56 = vsel %vm1112_vm5, %v8941_v44, %v1453_v7  ;;  %v1530_v6 = vsel %vm1112_vm5, %v8941_v44, %v1529_v21  ;;  %v1765_v28 = vand.u32 4294901760, %v1764_v18  ;;  %v1775_v21 = vand.u32 4294901760, %v9017_v24 }
 0x190   :  { %1456 = vst.msk [vmem:[#allocation3 + $0x88] sm:$0xff] %vm1060_vm2, %v1454_v56  ;;  %v1486_v32 = vsel %vm1103_vm4, %v8938_v39, %v1485_v42  ;;  %v1770_v42 = vsub.f32 %v8997_v36, %v1769_v60  ;;  %v9038_v46 = vsub.f32 %v1612_v62, %v9020_v30  ;;  %1986 = vmatpush.msra.mxu3 %v9020_v30  ;;  %v9043_v38 = vand.u32 4294901760, %v1611_v29  ;;  %v1610_v56 = vld [vmem:[%s13457_s3 + $0x50] sm:$0xff] }
 0x191   :  { %1488 = vst.msk [vmem:[#allocation3 + $0x98] sm:$0xff] %vm1060_vm2, %v1486_v32  ;;  %1766 = vmatpush.msrb.mxu1 %v1765_v28  ;;  %v1776_v12 = vsub.f32 %v9017_v24, %v1775_v21  ;;  %v1152_v58 = vsel %vm1103_vm4, %v8766_v17, %v1151_v48  ;;  %v1196_v4 = vsel %vm1112_vm5, %v8769_v52, %v1195_v23  ;;  %v1254_v28 = vrot.slane %v8814_v19, 2 }
 0x192   :  { %v1771_v32 = vand.u32 4294901760, %v1770_v42  ;;  %v13485_v40 = vand.u32 4294901760, %v9038_v46  ;;  %1901 = vmatpush.msra.mxu2 %v9038_v46  ;;  %1988 = vmatpush.msra.mxu3 %v9043_v38 }
 0x193   :  { %v8968_v10 = vld [vmem:[#allocation2 + $0x80] sm:$0xff]  ;;  %v8973_v11 = vld [vmem:[#allocation2 + $0x88] sm:$0x3]  ;;  %1671 = vmatpush.msrb.mxu0 %v9020_v30 }
 0x194   :  { %1531 = vrot.lane.b32.xlu1 %v1530_v6, %s7900_s2  ;;  %v13474_v41 = vrot.slane %v8968_v10, 2  ;;  %v8983_v49 = vld [vmem:[#allocation2 + $0x88] sm:$0x3]  ;;  %v13476_v63 = vrot.slane %v8968_v10, 1  ;;  %v1512_v45 = vrot.slane %v8973_v11, 2  ;;  %v9055_v6 = vand.u32 4294901760, %v1610_v56  ;;  %1772 = vmatpush.msrb.mxu1 %v1771_v32 }
 0x195   :  { %v1544_v37 = vrot.slane %v8983_v49, 1  ;;  %v1782_v17 = vsub.f32 %v9038_v46, %v13485_v40  ;;  %1673 = vmatpush.msrb.mxu0 %v9043_v38 }
 0x196   :  { %v1513_v27 = vsel %vm1112_vm5, %v13474_v41, %v1512_v45  ;;  %v9062_v45 = vsub.f32 %v1611_v29, %v9043_v38  ;;  %1990 = vmatpush.msra.mxu3 %v9055_v6 }
 0x197   :  { %1538 = vrot.lane.b32.xlu2 %v8968_v10, %s7901_s24  ;;  %1138 = vrot.lane.b32.xlu0 %v1137_v61, %s7899_s0  ;;  %1515 = vst.msk [vmem:[#allocation3 + $0xa0] sm:$0xff] %vm1060_vm2, %v1513_v27  ;;  %v1545_v7 = vsel %vm1103_vm4, %v13476_v63, %v1544_v37  ;;  %v1777_v37 = vand.u32 4294901760, %v1776_v12  ;;  %v9073_v61 = vsub.f32 %v1610_v56, %v9055_v6  ;;  %v1608_v27 = vld [vmem:[%s13457_s3 + $0x40] sm:$0xff]  ;;  %v1783_v18 = vand.u32 4294901760, %v1782_v17  ;;  %v1607_v56 = vld [vmem:[%s13457_s3 + $0x38] sm:$0xff] }
 0x198   :  { %1547 = vst.msk [vmem:[#allocation3 + $0xb0] sm:$0xff] %vm1060_vm2, %v1545_v7  ;;  %v13481_v62 = vand.u32 4294901760, %v9062_v45  ;;  %1904 = vmatpush.msra.mxu2 %v9062_v45  ;;  %v9089_v29 = vand.u32 4294901760, %v1608_v27  ;;  %v1210_v7 = vrot.slane %v8798_v59, 1  ;;  %v9109_v12 = vand.u32 4294901760, %v1607_v56  ;;  %1675 = vmatpush.msrb.mxu0 %v9055_v6 }
 0x199   :  { %1778 = vmatpush.msrb.mxu1 %v1777_v37  ;;  %v13479_v48 = vand.u32 4294901760, %v9073_v61 }
 0x19a   :  { %v1788_v42 = vsub.f32 %v9062_v45, %v13481_v62  ;;  %1907 = vmatpush.msra.mxu2 %v9073_v61  ;;  %v9107_v19 = vsub.f32 %v1608_v27, %v9089_v29  ;;  %v1211_v27 = vsel %vm1103_vm4, %v8804_v51, %v1210_v7 }
 0x19b   :  { %1784 = vmatpush.msrb.mxu1 %v1783_v18  ;;  %v1794_v32 = vsub.f32 %v9073_v61, %v13479_v48  ;;  %v9126_v18 = vsub.f32 %v1607_v56, %v9109_v12 }
 0x19c   :  { %1145 = vrot.lane.b32.xlu1 %v8759_v22, %s7900_s2  ;;  %v1609_v22 = vld [vmem:[%s13457_s3 + $0x48] sm:$0xff]  ;;  %v13475_v17 = vand.u32 4294901760, %v9107_v19 }
 0x19d   :  { %v9075_v52 = vand.u32 4294901760, %v1609_v22  ;;  %v13477_v56 = vand.u32 4294901760, %v9126_v18 }
 0x19e   :  { %v1806_v51 = vsub.f32 %v9107_v19, %v13475_v17  ;;  %v1108_v17 = vpop.permute.xlu0 %1107 }
 0x19f   :  { %1153 = vrot.lane.b32.xlu2 %v1152_v58, %s7901_s24  ;;  %1197 = vrot.lane.b32.xlu0 %v1196_v4, %s7899_s0  ;;  %v9087_v23 = vsub.f32 %v1609_v22, %v9075_v52  ;;  %v1789_v58 = vand.u32 4294901760, %v1788_v42  ;;  %v1606_v4 = vld [vmem:[%s13457_s3 + $0x30] sm:$0xff]  ;;  %v1795_v22 = vand.u32 4294901760, %v1794_v32  ;;  %v1255_v32 = vsel %vm1112_vm5, %v8807_v0, %v1254_v28  ;;  %v1604_v28 = vld [vmem:[%s13457_s3 + $0x20] sm:$0xff]  ;;  %1111 = vst.msk [vmem:[#allocation3] sm:$0xff] %vm1110_vm6, %v1108_v17 }
 0x1a0   :  { %1992 = vmatpush.msra.mxu3 %v9075_v52  ;;  %v9128_v42 = vand.u32 4294901760, %v1606_v4  ;;  %1677 = vmatpush.msrb.mxu0 %v9075_v52 }
 0x1a1   :  { %v13478_v59 = vand.u32 4294901760, %v9087_v23  ;;  %1910 = vmatpush.msra.mxu2 %v9087_v23  ;;  %1790 = vmatpush.msrb.mxu1 %v1789_v58  ;;  %v1807_v58 = vand.u32 4294901760, %v1806_v51  ;;  %v13562_v24 = vand.u32 4294901760, %v9087_v23 }
 0x1a2   :  { %1994 = vmatpush.msra.mxu3 %v9089_v29  ;;  %v9147_v0 = vsub.f32 %v1606_v4, %v9128_v42  ;;  %v1812_v4 = vsub.f32 %v9126_v18, %v13477_v56  ;;  %1679 = vmatpush.msrb.mxu0 %v9089_v29 }
 0x1a3   :  { %v1800_v37 = vsub.f32 %v9087_v23, %v13478_v59  ;;  %1913 = vmatpush.msra.mxu2 %v9107_v19  ;;  %1796 = vmatpush.msrb.mxu1 %v1795_v22  ;;  %v1603_v22 = vld [vmem:[%s13457_s3 + $0x18] sm:$0xff] }
 0x1a4   :  { %1204 = vrot.lane.b32.xlu1 %v8796_v9, %s7900_s2  ;;  %v1605_v9 = vld [vmem:[%s13457_s3 + $0x28] sm:$0xff]  ;;  %v13480_v63 = vand.u32 4294901760, %v9147_v0  ;;  %1996 = vmatpush.msra.mxu3 %v9109_v12  ;;  %v9175_v56 = vand.u32 4294901760, %v1603_v22  ;;  %v1813_v59 = vand.u32 4294901760, %v1812_v4 }
 0x1a5   :  { %v1801_v41 = vand.u32 4294901760, %v1800_v37  ;;  %v9141_v7 = vand.u32 4294901760, %v1605_v9  ;;  %1916 = vmatpush.msra.mxu2 %v9126_v18  ;;  %1681 = vmatpush.msrb.mxu0 %v9109_v12 }
 0x1a6   :  { %v1818_v48 = vsub.f32 %v9147_v0, %v13480_v63  ;;  %1998 = vmatpush.msra.mxu3 %v9128_v42  ;;  %v9195_v63 = vsub.f32 %v1603_v22, %v9175_v56 }
 0x1a7   :  { %1212 = vrot.lane.b32.xlu2 %v1211_v27, %s7901_s24  ;;  %1256 = vrot.lane.b32.xlu0 %v1255_v32, %s7899_s0  ;;  %v9154_v37 = vsub.f32 %v1605_v9, %v9141_v7  ;;  %v9156_v27 = vand.u32 4294901760, %v1604_v28  ;;  %v1269_v32 = vrot.slane %v8837_v55, 1  ;;  %v1313_v9 = vrot.slane %v8850_v14, 2  ;;  %v1602_v14 = vld [vmem:[%s13457_s3 + $0x10] sm:$0xff] }
 0x1a8   :  { %1802 = vmatpush.msrb.mxu1 %v1801_v41  ;;  %1919 = vmatpush.msra.mxu2 %v9147_v0  ;;  %v1819_v4 = vand.u32 4294901760, %v1818_v48  ;;  %v9198_v62 = vand.u32 4294901760, %v1602_v14 }
 0x1a9   :  { %v13482_v55 = vand.u32 4294901760, %v9154_v37  ;;  %v9173_v51 = vsub.f32 %v1604_v28, %v9156_v27  ;;  %v1270_v28 = vsel %vm1103_vm4, %v8842_v2, %v1269_v32  ;;  %2000 = vmatpush.msra.mxu3 %v9141_v7  ;;  %1683 = vmatpush.msrb.mxu0 %v9128_v42  ;;  %v13484_v32 = vand.u32 4294901760, %v9195_v63 }
 0x1aa   :  { %1808 = vmatpush.msrb.mxu1 %v1807_v58  ;;  %1922 = vmatpush.msra.mxu2 %v9154_v37  ;;  %v1314_v58 = vsel %vm1112_vm5, %v8845_v47, %v1313_v9  ;;  %v9215_v22 = vsub.f32 %v1602_v14, %v9198_v62  ;;  %v1600_v47 = vld [vmem:[%s13457_s3] sm:$0xff] }
 0x1ab   :  { %v1824_v41 = vsub.f32 %v9154_v37, %v13482_v55  ;;  %v13483_v17 = vand.u32 4294901760, %v9173_v51  ;;  %2002 = vmatpush.msra.mxu3 %v9156_v27  ;;  %1685 = vmatpush.msrb.mxu0 %v9141_v7 }
 0x1ac   :  { %1263 = vrot.lane.b32.xlu1 %v8835_v43, %s7900_s2  ;;  %v1601_v43 = vld [vmem:[%s13457_s3 + $0x8] sm:$0xff]  ;;  %1814 = vmatpush.msrb.mxu1 %v1813_v59  ;;  %v1841_v14 = vand.u32 4294901760, %v9215_v22 }
 0x1ad   :  { %v1825_v55 = vand.u32 4294901760, %v1824_v41  ;;  %v1830_v2 = vsub.f32 %v9173_v51, %v13483_v17  ;;  %v9209_v48 = vand.u32 4294901760, %v1601_v43  ;;  %1925 = vmatpush.msra.mxu2 %v9173_v51  ;;  %v9224_v41 = vand.u32 4294901760, %v1600_v47  ;;  %2004 = vmatpush.msra.mxu3 %v9175_v56 }
 0x1ae   :  { %1820 = vmatpush.msrb.mxu1 %v1819_v4  ;;  %v1328_v4 = vrot.slane %v8870_v13, 1  ;;  %v1842_v40 = vsub.f32 %v9215_v22, %v1841_v14  ;;  %1687 = vmatpush.msrb.mxu0 %v9156_v27 }
 0x1af   :  { %1271 = vrot.lane.b32.xlu2 %v1270_v28, %s7901_s24  ;;  %1315 = vrot.lane.b32.xlu0 %v1314_v58, %s7899_s0  ;;  %v1831_v59 = vand.u32 4294901760, %v1830_v2  ;;  %v9222_v9 = vsub.f32 %v1601_v43, %v9209_v48  ;;  %v1117_v28 = vpop.permute.xlu0 %1116  ;;  %v1836_v58 = vsub.f32 %v9195_v63, %v13484_v32  ;;  %v1372_v2 = vrot.slane %v8884_v57, 2 }
 0x1b0   :  { %1120 = vst.msk [vmem:[#allocation3] sm:$0xff] %vm1119_vm7, %v1117_v28  ;;  %1826 = vmatpush.msrb.mxu1 %v1825_v55  ;;  %1928 = vmatpush.msra.mxu2 %v9195_v63  ;;  %v9238_v17 = vsub.f32 %v1600_v47, %v9224_v41  ;;  %v1843_v55 = vand.u32 4294901760, %v1842_v40  ;;  %v1329_v47 = vsel %vm1103_vm4, %v8876_v15, %v1328_v4  ;;  %v13569_v4 = vand.u32 4294901760, %v9173_v51 }
 0x1b1   :  { %v1847_v43 = vand.u32 4294901760, %v9222_v9  ;;  %v1837_v32 = vand.u32 4294901760, %v1836_v58  ;;  %2006 = vmatpush.msra.mxu3 %v9198_v62  ;;  %v1373_v28 = vsel %vm1112_vm5, %v8879_v8, %v1372_v2  ;;  %1689 = vmatpush.msrb.mxu0 %v9175_v56  ;;  %v1387_v8 = vrot.slane %v8902_v34, 1 }
 0x1b2   :  { %1832 = vmatpush.msrb.mxu1 %v1831_v59  ;;  %v1853_v57 = vand.u32 4294901760, %v9238_v17  ;;  %1931 = vmatpush.msra.mxu2 %v9215_v22  ;;  %v13570_v51 = vand.u32 4294901760, %v9195_v63 }
 0x1b3   :  { %v1848_v13 = vsub.f32 %v9222_v9, %v1847_v43  ;;  %2008 = vmatpush.msra.mxu3 %v9209_v48  ;;  %1691 = vmatpush.msrb.mxu0 %v9198_v62  ;;  %v1388_v34 = vsel %vm1103_vm4, %v8907_v26, %v1387_v8  ;;  %v1490_v26 = vrot.slane %v8946_v25, 2 }
 0x1b4   :  { %1322 = vrot.lane.b32.xlu1 %v8868_v35, %s7900_s2  ;;  %1838 = vmatpush.msrb.mxu1 %v1837_v32  ;;  %v1854_v59 = vsub.f32 %v9238_v17, %v1853_v57  ;;  %v1431_v32 = vrot.slane %v8915_v54, 2 }
 0x1b5   :  { %v1849_v35 = vand.u32 4294901760, %v1848_v13  ;;  %1934 = vmatpush.msra.mxu2 %v9222_v9  ;;  %2010 = vmatpush.msra.mxu3 %v9224_v41 }
 0x1b6   :  { %1844 = vmatpush.msrb.mxu1 %v1843_v55  ;;  %v1855_v40 = vand.u32 4294901760, %v1854_v59  ;;  %1693 = vmatpush.msrb.mxu0 %v9209_v48  ;;  %v1432_v54 = vsel %vm1112_vm5, %v8910_v5, %v1431_v32  ;;  %v13559_v5 = vand.u32 4294901760, %v9038_v46  ;;  %v1629_v55 = vld [vmem:[%s13457_s3 + $0xe8] sm:$0xff]  ;;  %v1628_v59 = vld [vmem:[%s13457_s3 + $0xe0] sm:$0xff] }
 0x1b7   :  { %1330 = vrot.lane.b32.xlu2 %v1329_v47, %s7901_s24  ;;  %1374 = vrot.lane.b32.xlu0 %v1373_v28, %s7899_s0 }
 0x1b8   :  { %1850 = vmatpush.msrb.mxu1 %v1849_v35  ;;  %1937 = vmatpush.msra.mxu2 %v9238_v17  ;;  %v9387_v35 = vand.u32 4294901760, %v1629_v55 }
 0x1b9   :  { %v9264_v15 = vpop.permute.xlu2 %1177  ;;  %1695 = vmatpush.msrb.mxu0 %v9224_v41 }
 0x1ba   :  { %1856 = vmatpush.msrb.mxu1 %v1855_v40  ;;  %v9401_v8 = vsub.f32 %v1629_v55, %v9387_v35 }
 0x1bb   :  { %2063 = vmatpush.msra.mxu0 %v1763_v16  ;;  %v1505_v16 = vrot.slane %v8973_v11, 1 }
 0x1bc   :  { %1381 = vrot.lane.b32.xlu1 %v8900_v1, %s7900_s2  ;;  %2158 = vmatpush.msra.mxu1 %v8964_v31  ;;  %v1446_v31 = vrot.slane %v8933_v53, 1  ;;  %v1491_v53 = vsel %vm1112_vm5, %v8941_v44, %v1490_v26  ;;  %v13561_v44 = vand.u32 4294901760, %v9073_v61 }
 0x1bd   :  { %2067 = vmatpush.msra.mxu0 %v1769_v60 }
 0x1be   :  { %2160 = vmatpush.msra.mxu1 %v8980_v33  ;;  %v1447_v50 = vsel %vm1103_vm4, %v8938_v39, %v1446_v31  ;;  %v1556_v33 = vld [vmem:[#allocation2 + $0x90] sm:$0xff]  ;;  %v1549_v39 = vrot.slane %v8983_v49, 2  ;;  %v13563_v49 = vrot.slane %v8968_v10, 1 }
 0x1bf   :  { %1389 = vrot.lane.b32.xlu2 %v1388_v34, %s7901_s24  ;;  %1433 = vrot.lane.b32.xlu0 %v1432_v54, %s7899_s0  ;;  %v1571_v36 = vrot.slane %v1556_v33, 2 }
 0x1c0   :  { %2162 = vmatpush.msra.mxu1 %v9000_v3  ;;  %2071 = vmatpush.msra.mxu0 %v1775_v21  ;;  %v1557_v3 = vld [vmem:[#allocation2 + $0x98] sm:$0x3]  ;;  %v13564_v21 = vrot.slane %v8968_v10, 2 }
 0x1c1   :  { %v1185_v1 = vpop.permute.xlu2 %1184  ;;  %v1572_v60 = vrot.slane %v1557_v3, 2 }
 0x1c2   :  { %2164 = vmatpush.msra.mxu1 %v9020_v30  ;;  %2075 = vmatpush.msra.mxu0 %v13559_v5  ;;  %v1506_v30 = vsel %vm1103_vm4, %v13563_v49, %v1505_v16  ;;  %v1550_v46 = vsel %vm1112_vm5, %v13564_v21, %v1549_v39  ;;  %v1626_v5 = vld [vmem:[%s13457_s3 + $0xd0] sm:$0xff] }
 0x1c4   :  { %1440 = vrot.lane.b32.xlu1 %v8931_v20, %s7900_s2  ;;  %2166 = vmatpush.msra.mxu1 %v9043_v38  ;;  %v13560_v20 = vand.u32 4294901760, %v9062_v45  ;;  %v1573_v38 = vsel %vm1112_vm5, %v1571_v36, %v1572_v60  ;;  %v1565_v45 = vrot.slane %v1557_v3, 1  ;;  %v1625_v36 = vld [vmem:[%s13457_s3 + $0xc8] sm:$0xff] }
 0x1c5   :  { %1575 = vst.msk [vmem:[#allocation3 + $0xb8] sm:$0xff] %vm1060_vm2, %v1573_v38  ;;  %v9457_v3 = vand.u32 4294901760, %v1625_v36 }
 0x1c6   :  { %2168 = vmatpush.msra.mxu1 %v9055_v6  ;;  %2079 = vmatpush.msra.mxu0 %v13560_v20  ;;  %v1564_v6 = vrot.slane %v1556_v33, 1 }
 0x1c7   :  { %1448 = vrot.lane.b32.xlu2 %v1447_v50, %s7901_s24  ;;  %1492 = vrot.lane.b32.xlu0 %v1491_v53, %s7899_s0 }
 0x1c8   :  { %2170 = vmatpush.msra.mxu1 %v9075_v52  ;;  %2083 = vmatpush.msra.mxu0 %v13561_v44  ;;  %v13566_v52 = vand.u32 4294901760, %v9126_v18  ;;  %v1566_v23 = vsel %vm1103_vm4, %v1564_v6, %v1565_v45  ;;  %v1631_v18 = vld [vmem:[%s13457_s3 + $0xf8] sm:$0xff] }
 0x1c9   :  { %v9308_v25 = vpop.permute.xlu2 %1243 }
 0x1ca   :  { %2172 = vmatpush.msra.mxu1 %v9089_v29  ;;  %2087 = vmatpush.msra.mxu0 %v13562_v24  ;;  %v13567_v29 = vand.u32 4294901760, %v9147_v0  ;;  %v9357_v0 = vand.u32 4294901760, %v1631_v18 }
 0x1cc   :  { %1499 = vrot.lane.b32.xlu1 %v8968_v10, %s7900_s2  ;;  %2174 = vmatpush.msra.mxu1 %v9109_v12  ;;  %v13565_v10 = vand.u32 4294901760, %v9107_v19 }
 0x1cd   :  { %2223 = vmatpush.msrb.mxu2 %v9357_v0 }
 0x1ce   :  { %v1125_v11 = vpop.permute.xlu1 %1124  ;;  %2176 = vmatpush.msra.mxu1 %v9128_v42  ;;  %2091 = vmatpush.msra.mxu0 %v13565_v10 }
 0x1cf   :  { %1128 = vst.msk [vmem:[#allocation3] sm:$0xff] %vm1127_vm8, %v1125_v11  ;;  %1507 = vrot.lane.b32.xlu2 %v1506_v30, %s7901_s24  ;;  %1551 = vrot.lane.b32.xlu0 %v1550_v46, %s7899_s0  ;;  %v1624_v11 = vld [vmem:[%s13457_s3 + $0xc0] sm:$0xff]  ;;  %v9467_v46 = vsub.f32 %v1625_v36, %v9457_v3 }
 0x1d0   :  { %2178 = vmatpush.msra.mxu1 %v9141_v7  ;;  %2095 = vmatpush.msra.mxu0 %v13566_v52  ;;  %v13568_v7 = vand.u32 4294901760, %v9154_v37  ;;  %v1630_v37 = vld [vmem:[%s13457_s3 + $0xf0] sm:$0xff]  ;;  %v9470_v38 = vand.u32 4294901760, %v1624_v11  ;;  %v1623_v52 = vld [vmem:[%s13457_s3 + $0xb8] sm:$0xff] }
 0x1d1   :  { %v9335_v61 = vpop.permute.xlu2 %1302  ;;  %v9374_v2 = vand.u32 4294901760, %v1630_v37 }
 0x1d2   :  { %2180 = vmatpush.msra.mxu1 %v9156_v27  ;;  %2099 = vmatpush.msra.mxu0 %v13567_v29 }
 0x1d3   :  { %v9385_v28 = vsub.f32 %v1630_v37, %v9374_v2  ;;  %2225 = vmatpush.msrb.mxu2 %v9374_v2 }
 0x1d4   :  { %1559 = vrot.lane.b32.xlu1 %v1556_v33, %s7900_s2  ;;  %2182 = vmatpush.msra.mxu1 %v9175_v56 }
 0x1d5   :  { %2103 = vmatpush.msra.mxu0 %v13568_v7  ;;  %2227 = vmatpush.msrb.mxu2 %v9387_v35 }
 0x1d6   :  { %v1171_v12 = vpop.permute.xlu1 %1170  ;;  %v1576_v42 = vld [vmem:[#allocation3] sm:$0xff]  ;;  %2184 = vmatpush.msra.mxu1 %v9198_v62  ;;  %v9372_v62 = vsub.f32 %v1631_v18, %v9357_v0 }
 0x1d7   :  { %1173 = vst.msk [vmem:[#allocation3 + $0x18] sm:$0xff] %vm1110_vm6, %v1171_v12  ;;  %v9347_v19 = vand.u32 4294901760, %v1576_v42  ;;  %1567 = vrot.lane.b32.xlu2 %v1566_v23, %s7901_s24  ;;  %2107 = vmatpush.msra.mxu0 %v13569_v4  ;;  %v2357_v12 = vand.u32 4294901760, %v9467_v46 }
 0x1d8   :  { %1180 = vst.msk [vmem:[#allocation3 + $0x18] sm:$0xff] %vm1119_vm7, %v9264_v15  ;;  %2186 = vmatpush.msra.mxu1 %v9209_v48  ;;  %v2321_v47 = vand.u32 4294901760, %v9372_v62  ;;  %v2327_v15 = vand.u32 4294901760, %v9385_v28 }
 0x1d9   :  { %1187 = vst.msk [vmem:[#allocation3 + $0x18] sm:$0xff] %vm1127_vm8, %v1185_v1  ;;  %v1230_v56 = vpop.permute.xlu0 %1229  ;;  %v9361_v27 = vpop.permute.xlu2 %1361  ;;  %v1697_v58 = vsub.f32 %v1576_v42, %v9347_v19  ;;  %1858 = vmatmul.f32.vlgmr.msrb.gmra.mxu1 %v9347_v19  ;;  %2111 = vmatpush.msra.mxu0 %v13570_v51  ;;  %v2333_v1 = vand.u32 4294901760, %v9401_v8  ;;  %v9489_v42 = vsub.f32 %v1624_v11, %v9470_v38  ;;  %v1619_v11 = vld [vmem:[%s13457_s3 + $0x98] sm:$0xff] }
 0x1da   :  { %1232 = vst.msk [vmem:[#allocation3 + $0x30] sm:$0xff] %vm1110_vm6, %v1230_v56  ;;  %2188 = vmatpush.msra.mxu1 %v9224_v41  ;;  %v2322_v40 = vsub.f32 %v9372_v62, %v2321_v47  ;;  %v9403_v41 = vand.u32 4294901760, %v1628_v59  ;;  %v2328_v54 = vsub.f32 %v9385_v28, %v2327_v15 }
 0x1db   :  { %1940 = vmatmul.f32.vlgmr.msra.gmra.mxu2 %v1697_v58  ;;  %v1698_v13 = vand.u32 4294901760, %v1697_v58  ;;  %2115 = vmatpush.msra.mxu0 %v1841_v14  ;;  %v1627_v14 = vld [vmem:[%s13457_s3 + $0xd8] sm:$0xff]  ;;  %v2334_v53 = vsub.f32 %v9401_v8, %v2333_v1  ;;  %v2363_v55 = vand.u32 4294901760, %v9489_v42 }
 0x1dc   :  { %2538 = vmatpush.msrb.mxu1 %v9357_v0  ;;  %v2323_v34 = vand.u32 4294901760, %v2322_v40  ;;  %v9420_v31 = vsub.f32 %v1628_v59, %v9403_v41  ;;  %2229 = vmatpush.msrb.mxu2 %v9403_v41  ;;  %v9426_v26 = vand.u32 4294901760, %v1627_v14  ;;  %v2329_v50 = vand.u32 4294901760, %v2328_v54  ;;  %v1621_v59 = vld [vmem:[%s13457_s3 + $0xa8] sm:$0xff] }
 0x1dd   :  { %2014 = vmatmul.f32.vlgmr.msra.gmra.mxu3 %v1698_v13  ;;  %v1699_v48 = vsub.f32 %v1697_v58, %v1698_v13  ;;  %2119 = vmatpush.msra.mxu0 %v1847_v43  ;;  %v2335_v44 = vand.u32 4294901760, %v2334_v53  ;;  %v9492_v58 = vand.u32 4294901760, %v1623_v52  ;;  %v2358_v13 = vsub.f32 %v9467_v46, %v2357_v12 }
 0x1de   :  { %v1237_v63 = vpop.permute.xlu1 %1236  ;;  %2540 = vmatpush.msrb.mxu1 %v9374_v2  ;;  %2324 = vmatpush.msrb.mxu3 %v2323_v34  ;;  %v2339_v20 = vand.u32 4294901760, %v9420_v31  ;;  %v9445_v39 = vsub.f32 %v1627_v14, %v9426_v26  ;;  %v9519_v14 = vand.u32 4294901760, %v1621_v59 }
 0x1df   :  { %1239 = vst.msk [vmem:[#allocation3 + $0x30] sm:$0xff] %vm1119_vm7, %v1237_v63  ;;  %v1700_v22 = vand.u32 4294901760, %v1699_v48  ;;  %2123 = vmatpush.msra.mxu0 %v1853_v57  ;;  %2231 = vmatpush.msrb.mxu2 %v9426_v26  ;;  %v9508_v51 = vsub.f32 %v1623_v52, %v9492_v58  ;;  %v2359_v40 = vand.u32 4294901760, %v2358_v13 }
 0x1e0   :  { %1246 = vst.msk [vmem:[#allocation3 + $0x30] sm:$0xff] %vm1127_vm8, %v9308_v25  ;;  %v1579_v32 = vld [vmem:[#allocation3 + $0x18] sm:$0xff]  ;;  %v9436_v25 = vand.u32 4294901760, %v1626_v5  ;;  %2330 = vmatpush.msrb.mxu3 %v2329_v50  ;;  %v2340_v17 = vsub.f32 %v9420_v31, %v2339_v20  ;;  %2542 = vmatpush.msrb.mxu1 %v9387_v35  ;;  %v2345_v24 = vand.u32 4294901760, %v9445_v39 }
 0x1e1   :  { %v1289_v9 = vpop.permute.xlu0 %1288  ;;  %1701 = vmatmul.f32.vlgmr.msrb.gmra.mxu0 %v1700_v22  ;;  %v9424_v43 = vand.u32 4294901760, %v1579_v32  ;;  %v9440_v33 = vpop.permute.xlu2 %1420  ;;  %v2364_v22 = vsub.f32 %v9489_v42, %v2363_v55  ;;  %v2369_v34 = vand.u32 4294901760, %v9508_v51 }
 0x1e2   :  { %1291 = vst.msk [vmem:[#allocation3 + $0x48] sm:$0xff] %vm1110_vm6, %v1289_v9  ;;  %v9455_v57 = vsub.f32 %v1626_v5, %v9436_v25  ;;  %2450 = vmatpush.msrb.mxu0 %v9372_v62  ;;  %2336 = vmatpush.msrb.mxu3 %v2335_v44  ;;  %v2341_v30 = vand.u32 4294901760, %v2340_v17  ;;  %v2346_v10 = vsub.f32 %v9445_v39, %v2345_v24  ;;  %v1620_v9 = vld [vmem:[%s13457_s3 + $0xa0] sm:$0xff] }
 0x1e3   :  { %1862 = vmatmul.f32.gmra.mxu1 %v9424_v43  ;;  %v1705_v16 = vsub.f32 %v1579_v32, %v9424_v43  ;;  %2233 = vmatpush.msrb.mxu2 %v9436_v25  ;;  %v2365_v53 = vand.u32 4294901760, %v2364_v22  ;;  %v9535_v36 = vand.u32 4294901760, %v1620_v9  ;;  %v2370_v17 = vsub.f32 %v9508_v51, %v2369_v34 }
 0x1e4   :  { %v2351_v21 = vand.u32 4294901760, %v9455_v57  ;;  %2544 = vmatpush.msrb.mxu1 %v9403_v41  ;;  %2342 = vmatpush.msrb.mxu3 %v2341_v30  ;;  %v2347_v56 = vand.u32 4294901760, %v2346_v10 }
 0x1e5   :  { %1945 = vmatmul.f32.gmra.mxu2 %v1705_v16  ;;  %v1706_v60 = vand.u32 4294901760, %v1705_v16  ;;  %2453 = vmatpush.msrb.mxu0 %v9385_v28  ;;  %v2371_v52 = vand.u32 4294901760, %v2370_v17 }
 0x1e6   :  { %v1296_v49 = vpop.permute.xlu1 %1295  ;;  %v2352_v29 = vsub.f32 %v9455_v57, %v2351_v21  ;;  %2235 = vmatpush.msrb.mxu2 %v9457_v3  ;;  %2546 = vmatpush.msrb.mxu1 %v9426_v26 }
 0x1e7   :  { %1298 = vst.msk [vmem:[#allocation3 + $0x48] sm:$0xff] %vm1119_vm7, %v1296_v49  ;;  %2020 = vmatmul.f32.gmra.mxu3 %v1706_v60  ;;  %v1707_v6 = vsub.f32 %v1705_v16, %v1706_v60  ;;  %v1582_v45 = vld [vmem:[#allocation3 + $0x30] sm:$0xff]  ;;  %v9532_v16 = vsub.f32 %v1621_v59, %v9519_v14  ;;  %2456 = vmatpush.msrb.mxu0 %v9401_v8  ;;  %v1617_v59 = vld [vmem:[%s13457_s3 + $0x88] sm:$0xff] }
 0x1e8   :  { %1305 = vst.msk [vmem:[#allocation3 + $0x48] sm:$0xff] %vm1127_vm8, %v9335_v61  ;;  %v9482_v23 = vand.u32 4294901760, %v1582_v45  ;;  %v1622_v61 = vld [vmem:[%s13457_s3 + $0xb0] sm:$0xff]  ;;  %v2353_v4 = vand.u32 4294901760, %v2352_v29  ;;  %2237 = vmatpush.msrb.mxu2 %v9470_v38  ;;  %2348 = vmatpush.msrb.mxu3 %v2347_v56 }
 0x1e9   :  { %v1348_v18 = vpop.permute.xlu0 %1347  ;;  %v1708_v7 = vand.u32 4294901760, %v1707_v6  ;;  %v9510_v48 = vand.u32 4294901760, %v1622_v61  ;;  %v9521_v32 = vpop.permute.xlu2 %1479  ;;  %2548 = vmatpush.msrb.mxu1 %v9436_v25  ;;  %v2381_v6 = vand.u32 4294901760, %v9532_v16  ;;  %2459 = vmatpush.msrb.mxu0 %v9420_v31 }
 0x1ea   :  { %1350 = vst.msk [vmem:[#allocation3 + $0x60] sm:$0xff] %vm1110_vm6, %v1348_v18  ;;  %v1713_v37 = vsub.f32 %v1582_v45, %v9482_v23  ;;  %2239 = vmatpush.msrb.mxu2 %v9492_v58  ;;  %2354 = vmatpush.msrb.mxu3 %v2353_v4  ;;  %v9552_v45 = vsub.f32 %v1620_v9, %v9535_v36  ;;  %v9558_v18 = vand.u32 4294901760, %v1619_v11 }
 0x1eb   :  { %1709 = vmatmul.f32.gmra.mxu0 %v1708_v7  ;;  %1866 = vmatmul.f32.gmra.mxu1 %v9482_v23  ;;  %v9525_v54 = vsub.f32 %v1622_v61, %v9510_v48  ;;  %v2382_v56 = vsub.f32 %v9532_v16, %v2381_v6 }
 0x1ec   :  { %v1714_v63 = vand.u32 4294901760, %v1713_v37  ;;  %2241 = vmatpush.msrb.mxu2 %v9510_v48  ;;  %2360 = vmatpush.msrb.mxu3 %v2359_v40  ;;  %v2387_v61 = vand.u32 4294901760, %v9552_v45  ;;  %v9576_v13 = vsub.f32 %v1619_v11, %v9558_v18 }
 0x1ed   :  { %1950 = vmatmul.f32.gmra.mxu2 %v1713_v37  ;;  %v2375_v60 = vand.u32 4294901760, %v9525_v54  ;;  %2550 = vmatpush.msrb.mxu1 %v9457_v3  ;;  %v2383_v40 = vand.u32 4294901760, %v2382_v56 }
 0x1ee   :  { %v1355_v5 = vpop.permute.xlu1 %1354  ;;  %v1715_v50 = vsub.f32 %v1713_v37, %v1714_v63  ;;  %2243 = vmatpush.msrb.mxu2 %v9519_v14  ;;  %2366 = vmatpush.msrb.mxu3 %v2365_v53  ;;  %v2388_v22 = vsub.f32 %v9552_v45, %v2387_v61  ;;  %v1616_v53 = vld [vmem:[%s13457_s3 + $0x80] sm:$0xff] }
 0x1ef   :  { %1357 = vst.msk [vmem:[#allocation3 + $0x60] sm:$0xff] %vm1119_vm7, %v1355_v5  ;;  %2026 = vmatmul.f32.gmra.mxu3 %v1714_v63  ;;  %v1585_v44 = vld [vmem:[#allocation3 + $0x48] sm:$0xff]  ;;  %v2376_v29 = vsub.f32 %v9525_v54, %v2375_v60  ;;  %v13486_v5 = vand.u32 4294901760, %v9576_v13  ;;  %2552 = vmatpush.msrb.mxu1 %v9470_v38 }
 0x1f0   :  { %1364 = vst.msk [vmem:[#allocation3 + $0x60] sm:$0xff] %vm1127_vm8, %v9361_v27  ;;  %v1716_v49 = vand.u32 4294901760, %v1715_v50  ;;  %v9548_v30 = vand.u32 4294901760, %v1585_v44  ;;  %v1618_v27 = vld [vmem:[%s13457_s3 + $0x90] sm:$0xff]  ;;  %2245 = vmatpush.msrb.mxu2 %v9535_v36  ;;  %2372 = vmatpush.msrb.mxu3 %v2371_v52  ;;  %v9589_v50 = vand.u32 4294901760, %v1617_v59  ;;  %v2389_v11 = vand.u32 4294901760, %v2388_v22 }
 0x1f1   :  { %v1407_v10 = vpop.permute.xlu0 %1406  ;;  %v9572_v37 = vand.u32 4294901760, %v1618_v27  ;;  %v2377_v4 = vand.u32 4294901760, %v2376_v29  ;;  %v9599_v52 = vpop.permute.xlu2 %1538  ;;  %2462 = vmatpush.msrb.mxu0 %v9445_v39  ;;  %2554 = vmatpush.msrb.mxu1 %v9492_v58 }
 0x1f2   :  { %1409 = vst.msk [vmem:[#allocation3 + $0x78] sm:$0xff] %vm1110_vm6, %v1407_v10  ;;  %v1721_v7 = vsub.f32 %v1585_v44, %v9548_v30  ;;  %2247 = vmatpush.msrb.mxu2 %v9558_v18  ;;  %v9597_v10 = vand.u32 4294901760, %v1616_v53 }
 0x1f3   :  { %1717 = vmatmul.f32.gmra.mxu0 %v1716_v49  ;;  %1870 = vmatmul.f32.gmra.mxu1 %v9548_v30  ;;  %v9585_v9 = vsub.f32 %v1618_v27, %v9572_v37  ;;  %v2394_v27 = vsub.f32 %v9576_v13, %v13486_v5 }
 0x1f4   :  { %v1722_v63 = vand.u32 4294901760, %v1721_v7  ;;  %2378 = vmatpush.msrb.mxu3 %v2377_v4  ;;  %2249 = vmatpush.msrb.mxu2 %v9572_v37  ;;  %v9617_v22 = vsub.f32 %v1616_v53, %v9597_v10 }
 0x1f5   :  { %1955 = vmatmul.f32.gmra.mxu2 %v1721_v7  ;;  %v2399_v49 = vand.u32 4294901760, %v9585_v9  ;;  %2465 = vmatpush.msrb.mxu0 %v9455_v57 }
 0x1f6   :  { %v1414_v44 = vpop.permute.xlu1 %1413  ;;  %v1723_v17 = vsub.f32 %v1721_v7, %v1722_v63  ;;  %v9606_v7 = vsub.f32 %v1617_v59, %v9589_v50  ;;  %2384 = vmatpush.msrb.mxu3 %v2383_v40  ;;  %2251 = vmatpush.msrb.mxu2 %v9589_v50 }
 0x1f7   :  { %1416 = vst.msk [vmem:[#allocation3 + $0x78] sm:$0xff] %vm1119_vm7, %v1414_v44  ;;  %2032 = vmatmul.f32.gmra.mxu3 %v1722_v63  ;;  %v1588_v29 = vld [vmem:[#allocation3 + $0x60] sm:$0xff]  ;;  %v2400_v63 = vsub.f32 %v9585_v9, %v2399_v49  ;;  %v2395_v44 = vand.u32 4294901760, %v2394_v27  ;;  %2556 = vmatpush.msrb.mxu1 %v9510_v48 }
 0x1f8   :  { %1423 = vst.msk [vmem:[#allocation3 + $0x78] sm:$0xff] %vm1127_vm8, %v9440_v33  ;;  %v1724_v56 = vand.u32 4294901760, %v1723_v17  ;;  %v9611_v4 = vand.u32 4294901760, %v1588_v29  ;;  %v2405_v5 = vand.u32 4294901760, %v9606_v7  ;;  %2390 = vmatpush.msrb.mxu3 %v2389_v11  ;;  %v2411_v17 = vand.u32 4294901760, %v9617_v22  ;;  %2253 = vmatpush.msrb.mxu2 %v9597_v10 }
 0x1f9   :  { %v1466_v59 = vpop.permute.xlu0 %1465  ;;  %v2401_v40 = vand.u32 4294901760, %v2400_v63  ;;  %2468 = vmatpush.msrb.mxu0 %v9467_v46  ;;  %2558 = vmatpush.msrb.mxu1 %v9519_v14 }
 0x1fa   :  { %1468 = vst.msk [vmem:[#allocation3 + $0x90] sm:$0xff] %vm1110_vm6, %v1466_v59  ;;  %v1729_v33 = vsub.f32 %v1588_v29, %v9611_v4  ;;  %v2406_v53 = vsub.f32 %v9606_v7, %v2405_v5  ;;  %2396 = vmatpush.msrb.mxu3 %v2395_v44  ;;  %v2412_v59 = vsub.f32 %v9617_v22, %v2411_v17 }
 0x1fb   :  { %1725 = vmatmul.f32.gmra.mxu0 %v1724_v56  ;;  %1874 = vmatmul.f32.gmra.mxu1 %v9611_v4 }
 0x1fc   :  { %v1730_v27 = vand.u32 4294901760, %v1729_v33  ;;  %2621 = vmatpush.msra.mxu2 %v2321_v47  ;;  %v2407_v11 = vand.u32 4294901760, %v2406_v53  ;;  %2402 = vmatpush.msrb.mxu3 %v2401_v40  ;;  %v2413_v63 = vand.u32 4294901760, %v2412_v59 }
 0x1fd   :  { %1960 = vmatmul.f32.gmra.mxu2 %v1729_v33  ;;  %2471 = vmatpush.msrb.mxu0 %v9489_v42 }
 0x1fe   :  { %v1473_v29 = vpop.permute.xlu1 %1472  ;;  %v1731_v56 = vsub.f32 %v1729_v33, %v1730_v27  ;;  %2625 = vmatpush.msra.mxu2 %v2327_v15  ;;  %2408 = vmatpush.msrb.mxu3 %v2407_v11  ;;  %v1154_v33 = vpop.permute.xlu2 %1153 }
 0x1ff   :  { %1475 = vst.msk [vmem:[#allocation3 + $0x90] sm:$0xff] %vm1119_vm7, %v1473_v29  ;;  %2038 = vmatmul.f32.gmra.mxu3 %v1730_v27  ;;  %v1591_v44 = vld [vmem:[#allocation3 + $0x78] sm:$0xff]  ;;  %2560 = vmatpush.msrb.mxu1 %v9535_v36 }
 0x200   :  { %1482 = vst.msk [vmem:[#allocation3 + $0x90] sm:$0xff] %vm1127_vm8, %v9521_v32  ;;  %v1732_v62 = vand.u32 4294901760, %v1731_v56  ;;  %v9643_v47 = vand.u32 4294901760, %v1591_v44  ;;  %2629 = vmatpush.msra.mxu2 %v2333_v1  ;;  %2414 = vmatpush.msrb.mxu3 %v2413_v63 }
 0x201   :  { %v1525_v40 = vpop.permute.xlu0 %1524  ;;  %2474 = vmatpush.msrb.mxu0 %v9508_v51  ;;  %2562 = vmatpush.msrb.mxu1 %v9558_v18 }
 0x202   :  { %1527 = vst.msk [vmem:[#allocation3 + $0xa8] sm:$0xff] %vm1110_vm6, %v1525_v40  ;;  %v1737_v28 = vsub.f32 %v1591_v44, %v9643_v47  ;;  %2633 = vmatpush.msra.mxu2 %v2339_v20  ;;  %2716 = vmatpush.msra.mxu3 %v9357_v0 }
 0x203   :  { %1733 = vmatmul.f32.gmra.mxu0 %v1732_v62  ;;  %1878 = vmatmul.f32.gmra.mxu1 %v9643_v47 }
 0x204   :  { %v1738_v15 = vand.u32 4294901760, %v1737_v28  ;;  %2637 = vmatpush.msra.mxu2 %v2345_v24  ;;  %2718 = vmatpush.msra.mxu3 %v9374_v2 }
 0x205   :  { %1965 = vmatmul.f32.gmra.mxu2 %v1737_v28  ;;  %2477 = vmatpush.msrb.mxu0 %v9525_v54 }
 0x206   :  { %v1532_v8 = vpop.permute.xlu1 %1531  ;;  %v1739_v1 = vsub.f32 %v1737_v28, %v1738_v15  ;;  %2641 = vmatpush.msra.mxu2 %v2351_v21  ;;  %2720 = vmatpush.msra.mxu3 %v9387_v35  ;;  %v1213_v57 = vpop.permute.xlu2 %1212 }
 0x207   :  { %1534 = vst.msk [vmem:[#allocation3 + $0xa8] sm:$0xff] %vm1119_vm7, %v1532_v8  ;;  %2044 = vmatmul.f32.gmra.mxu3 %v1738_v15  ;;  %v1594_v31 = vld [vmem:[#allocation3 + $0x90] sm:$0xff]  ;;  %2564 = vmatpush.msrb.mxu1 %v9572_v37 }
 0x208   :  { %1541 = vst.msk [vmem:[#allocation3 + $0xa8] sm:$0xff] %vm1127_vm8, %v9599_v52  ;;  %v1740_v0 = vand.u32 4294901760, %v1739_v1  ;;  %v9665_v20 = vand.u32 4294901760, %v1594_v31  ;;  %2645 = vmatpush.msra.mxu2 %v2357_v12  ;;  %2722 = vmatpush.msra.mxu3 %v9403_v41 }
 0x209   :  { %v1139_v2 = vpop.permute.xlu0 %1138  ;;  %2480 = vmatpush.msrb.mxu0 %v9532_v16  ;;  %2566 = vmatpush.msrb.mxu1 %v9589_v50 }
 0x20a   :  { %1141 = vst.msk [vmem:[#allocation3 + $0x8] sm:$0xff] %vm1110_vm6, %v1139_v2  ;;  %v1745_v39 = vsub.f32 %v1594_v31, %v9665_v20  ;;  %2649 = vmatpush.msra.mxu2 %v2363_v55  ;;  %2724 = vmatpush.msra.mxu3 %v9426_v26 }
 0x20b   :  { %1741 = vmatmul.f32.gmra.mxu0 %v1740_v0  ;;  %1882 = vmatmul.f32.gmra.mxu1 %v9665_v20 }
 0x20c   :  { %v1746_v35 = vand.u32 4294901760, %v1745_v39  ;;  %2653 = vmatpush.msra.mxu2 %v2369_v34  ;;  %2726 = vmatpush.msra.mxu3 %v9436_v25 }
 0x20d   :  { %1970 = vmatmul.f32.gmra.mxu2 %v1745_v39  ;;  %2483 = vmatpush.msrb.mxu0 %v9552_v45 }
 0x20e   :  { %v1146_v24 = vpop.permute.xlu1 %1145  ;;  %v1747_v21 = vsub.f32 %v1745_v39, %v1746_v35  ;;  %2657 = vmatpush.msra.mxu2 %v2375_v60  ;;  %2728 = vmatpush.msra.mxu3 %v9457_v3  ;;  %v1272_v42 = vpop.permute.xlu2 %1271 }
 0x20f   :  { %1148 = vst.msk [vmem:[#allocation3 + $0x8] sm:$0xff] %vm1119_vm7, %v1146_v24  ;;  %2050 = vmatmul.f32.gmra.mxu3 %v1746_v35  ;;  %v1597_v41 = vld [vmem:[#allocation3 + $0xa8] sm:$0xff]  ;;  %2568 = vmatpush.msrb.mxu1 %v9597_v10 }
 0x210   :  { %1156 = vst.msk [vmem:[#allocation3 + $0x8] sm:$0xff] %vm1127_vm8, %v1154_v33  ;;  %v1748_v26 = vand.u32 4294901760, %v1747_v21  ;;  %v9688_v46 = vand.u32 4294901760, %v1597_v41  ;;  %2661 = vmatpush.msra.mxu2 %v2381_v6  ;;  %2730 = vmatpush.msra.mxu3 %v9470_v38  ;;  %v13571_v38 = vand.u32 4294901760, %v9576_v13 }
 0x211   :  { %v1198_v25 = vpop.permute.xlu0 %1197  ;;  %2486 = vmatpush.msrb.mxu0 %v9576_v13 }
 0x212   :  { %1200 = vst.msk [vmem:[#allocation3 + $0x20] sm:$0xff] %vm1110_vm6, %v1198_v25  ;;  %v1753_v12 = vsub.f32 %v1597_v41, %v9688_v46  ;;  %2665 = vmatpush.msra.mxu2 %v2387_v61  ;;  %2732 = vmatpush.msra.mxu3 %v9492_v58 }
 0x213   :  { %1749 = vmatmul.f32.gmra.mxu0 %v1748_v26  ;;  %1886 = vmatmul.f32.gmra.mxu1 %v9688_v46 }
 0x214   :  { %v1754_v3 = vand.u32 4294901760, %v1753_v12  ;;  %2734 = vmatpush.msra.mxu3 %v9510_v48  ;;  %2669 = vmatpush.msra.mxu2 %v13571_v38 }
 0x215   :  { %1975 = vmatmul.f32.gmra.mxu2 %v1753_v12  ;;  %2489 = vmatpush.msrb.mxu0 %v9585_v9 }
 0x216   :  { %v1205_v55 = vpop.permute.xlu1 %1204  ;;  %v1755_v51 = vsub.f32 %v1753_v12, %v1754_v3  ;;  %2736 = vmatpush.msra.mxu3 %v9519_v14  ;;  %2673 = vmatpush.msra.mxu2 %v2399_v49  ;;  %v1331_v60 = vpop.permute.xlu2 %1330 }
 0x217   :  { %1207 = vst.msk [vmem:[#allocation3 + $0x20] sm:$0xff] %vm1119_vm7, %v1205_v55  ;;  %2056 = vmatmul.f32.gmra.mxu3 %v1754_v3  ;;  %v1577_v32 = vld [vmem:[#allocation3 + $0x8] sm:$0xff]  ;;  %2492 = vmatpush.msrb.mxu0 %v9606_v7 }
 0x218   :  { %1215 = vst.msk [vmem:[#allocation3 + $0x20] sm:$0xff] %vm1127_vm8, %v1213_v57  ;;  %v1756_v58 = vand.u32 4294901760, %v1755_v51  ;;  %v9710_v34 = vand.u32 4294901760, %v1577_v32  ;;  %2738 = vmatpush.msra.mxu3 %v9535_v36  ;;  %2677 = vmatpush.msra.mxu2 %v2405_v5 }
 0x219   :  { %v1257_v48 = vpop.permute.xlu0 %1256  ;;  %2495 = vmatpush.msrb.mxu0 %v9617_v22 }
 0x21a   :  { %1259 = vst.msk [vmem:[#allocation3 + $0x38] sm:$0xff] %vm1110_vm6, %v1257_v48  ;;  %v9718_v54 = vsub.f32 %v1577_v32, %v9710_v34  ;;  %2740 = vmatpush.msra.mxu3 %v9558_v18  ;;  %2681 = vmatpush.msra.mxu2 %v2411_v17 }
 0x21b   :  { %1757 = vmatmul.f32.gmra.mxu0 %v1756_v58  ;;  %2190 = vmatmul.f32.vlgmr.msra.gmra.mxu1 %v9347_v19 }
 0x21c   :  { %v2256_v14 = vand.u32 4294901760, %v9718_v54  ;;  %2742 = vmatpush.msra.mxu3 %v9572_v37 }
 0x21e   :  { %v1264_v16 = vpop.permute.xlu1 %1263  ;;  %v2257_v36 = vsub.f32 %v9718_v54, %v2256_v14  ;;  %2744 = vmatpush.msra.mxu3 %v9589_v50 }
 0x21f   :  { %1266 = vst.msk [vmem:[#allocation3 + $0x38] sm:$0xff] %vm1119_vm7, %v1264_v16  ;;  %2416 = vmatmul.f32.vlgmr.msrb.gmra.mxu3 %v9710_v34  ;;  %v1580_v6 = vld [vmem:[#allocation3 + $0x20] sm:$0xff] }
 0x220   :  { %1274 = vst.msk [vmem:[#allocation3 + $0x38] sm:$0xff] %vm1127_vm8, %v1272_v42  ;;  %v2258_v45 = vand.u32 4294901760, %v2257_v36  ;;  %v9736_v18 = vand.u32 4294901760, %v1580_v6  ;;  %2746 = vmatpush.msra.mxu3 %v9597_v10 }
 0x221   :  { %v1316_v61 = vpop.permute.xlu0 %1315 }
 0x222   :  { %1318 = vst.msk [vmem:[#allocation3 + $0x50] sm:$0xff] %vm1110_vm6, %v1316_v61  ;;  %2259 = vmatmul.f32.vlgmr.msrb.gmra.mxu2 %v2258_v45  ;;  %v9741_v13 = vsub.f32 %v1580_v6, %v9736_v18 }
 0x223   :  { %2125 = vmatmul.f32.vlgmr.msra.gmra.mxu0 %v9347_v19  ;;  %2194 = vmatmul.f32.gmra.mxu1 %v9424_v43  ;;  %v1390_v19 = vpop.permute.xlu2 %1389 }
 0x224   :  { %v2264_v37 = vand.u32 4294901760, %v9741_v13 }
 0x226   :  { %v1323_v9 = vpop.permute.xlu1 %1322  ;;  %v2265_v5 = vsub.f32 %v9741_v13, %v2264_v37 }
 0x227   :  { %1325 = vst.msk [vmem:[#allocation3 + $0x50] sm:$0xff] %vm1119_vm7, %v1323_v9  ;;  %2420 = vmatmul.f32.gmra.mxu3 %v9736_v18  ;;  %v1583_v50 = vld [vmem:[#allocation3 + $0x38] sm:$0xff] }
 0x228   :  { %1333 = vst.msk [vmem:[#allocation3 + $0x50] sm:$0xff] %vm1127_vm8, %v1331_v60  ;;  %v2266_v49 = vand.u32 4294901760, %v2265_v5  ;;  %v9753_v10 = vand.u32 4294901760, %v1583_v50 }
 0x229   :  { %v1375_v52 = vpop.permute.xlu0 %1374 }
 0x22a   :  { %1377 = vst.msk [vmem:[#allocation3 + $0x68] sm:$0xff] %vm1110_vm6, %v1375_v52  ;;  %2267 = vmatmul.f32.gmra.mxu2 %v2266_v49  ;;  %v9757_v7 = vsub.f32 %v1583_v50, %v9753_v10 }
 0x22b   :  { %2129 = vmatmul.f32.gmra.mxu0 %v9424_v43  ;;  %2198 = vmatmul.f32.gmra.mxu1 %v9482_v23  ;;  %v1449_v56 = vpop.permute.xlu2 %1448 }
 0x22c   :  { %v2272_v22 = vand.u32 4294901760, %v9757_v7 }
 0x22e   :  { %v1382_v17 = vpop.permute.xlu1 %1381  ;;  %v2273_v53 = vsub.f32 %v9757_v7, %v2272_v22 }
 0x22f   :  { %1384 = vst.msk [vmem:[#allocation3 + $0x68] sm:$0xff] %vm1119_vm7, %v1382_v17  ;;  %2424 = vmatmul.f32.gmra.mxu3 %v9753_v10  ;;  %v1586_v27 = vld [vmem:[#allocation3 + $0x50] sm:$0xff] }
 0x230   :  { %1392 = vst.msk [vmem:[#allocation3 + $0x68] sm:$0xff] %vm1127_vm8, %v1390_v19  ;;  %v2274_v59 = vand.u32 4294901760, %v2273_v53  ;;  %v9768_v11 = vand.u32 4294901760, %v1586_v27 }
 0x231   :  { %v1434_v43 = vpop.permute.xlu0 %1433 }
 0x232   :  { %1436 = vst.msk [vmem:[#allocation3 + $0x80] sm:$0xff] %vm1110_vm6, %v1434_v43  ;;  %2275 = vmatmul.f32.gmra.mxu2 %v2274_v59  ;;  %v9772_v29 = vsub.f32 %v1586_v27, %v9768_v11  ;;  %v1634_v27 = vld [vmem:[%s13457_s3 + $0x110] sm:$0xff] }
 0x233   :  { %2133 = vmatmul.f32.gmra.mxu0 %v9482_v23  ;;  %2202 = vmatmul.f32.gmra.mxu1 %v9548_v30  ;;  %v1508_v1 = vpop.permute.xlu2 %1507 }
 0x234   :  { %v2280_v63 = vand.u32 4294901760, %v9772_v29 }
 0x236   :  { %v1441_v44 = vpop.permute.xlu1 %1440  ;;  %v2281_v62 = vsub.f32 %v9772_v29, %v2280_v63 }
 0x237   :  { %1443 = vst.msk [vmem:[#allocation3 + $0x80] sm:$0xff] %vm1119_vm7, %v1441_v44  ;;  %2428 = vmatmul.f32.gmra.mxu3 %v9768_v11  ;;  %v1589_v33 = vld [vmem:[#allocation3 + $0x68] sm:$0xff] }
 0x238   :  { %1451 = vst.msk [vmem:[#allocation3 + $0x80] sm:$0xff] %vm1127_vm8, %v1449_v56  ;;  %v2282_v40 = vand.u32 4294901760, %v2281_v62  ;;  %v9783_v28 = vand.u32 4294901760, %v1589_v33  ;;  %v1633_v56 = vld [vmem:[%s13457_s3 + $0x108] sm:$0xff] }
 0x239   :  { %v1493_v23 = vpop.permute.xlu0 %1492 }
 0x23a   :  { %1495 = vst.msk [vmem:[#allocation3 + $0x98] sm:$0xff] %vm1110_vm6, %v1493_v23  ;;  %2283 = vmatmul.f32.gmra.mxu2 %v2282_v40  ;;  %v9787_v15 = vsub.f32 %v1589_v33, %v9783_v28  ;;  %v9880_v23 = vand.u32 4294901760, %v1633_v56 }
 0x23b   :  { %2137 = vmatmul.f32.gmra.mxu0 %v9548_v30  ;;  %2206 = vmatmul.f32.gmra.mxu1 %v9611_v4  ;;  %v1568_v21 = vpop.permute.xlu2 %1567 }
 0x23c   :  { %v2288_v8 = vand.u32 4294901760, %v9787_v15 }
 0x23e   :  { %v1500_v31 = vpop.permute.xlu1 %1499  ;;  %v2289_v0 = vsub.f32 %v9787_v15, %v2288_v8 }
 0x23f   :  { %1502 = vst.msk [vmem:[#allocation3 + $0x98] sm:$0xff] %vm1119_vm7, %v1500_v31  ;;  %2432 = vmatmul.f32.gmra.mxu3 %v9783_v28  ;;  %v1592_v2 = vld [vmem:[#allocation3 + $0x80] sm:$0xff] }
 0x240   :  { %1510 = vst.msk [vmem:[#allocation3 + $0x98] sm:$0xff] %vm1127_vm8, %v1508_v1  ;;  %v2290_v39 = vand.u32 4294901760, %v2289_v0  ;;  %v9798_v57 = vand.u32 4294901760, %v1592_v2  ;;  %v1632_v31 = vld [vmem:[%s13457_s3 + $0x100] sm:$0xff] }
 0x241   :  { %v1552_v30 = vpop.permute.xlu0 %1551 }
 0x242   :  { %1554 = vst.msk [vmem:[#allocation3 + $0xb0] sm:$0xff] %vm1110_vm6, %v1552_v30  ;;  %2291 = vmatmul.f32.gmra.mxu2 %v2290_v39  ;;  %v9802_v35 = vsub.f32 %v1592_v2, %v9798_v57  ;;  %v2890_v30 = vsub.f32 %v1633_v56, %v9880_v23  ;;  %vm7818_vm6 = vcmask 1041408  }
 0x243   :  { %2141 = vmatmul.f32.gmra.mxu0 %v9611_v4  ;;  %2210 = vmatmul.f32.gmra.mxu1 %v9643_v47 }
 0x244   :  { %v2296_v24 = vand.u32 4294901760, %v9802_v35 }
 0x246   :  { %v1560_v41 = vpop.permute.xlu1 %1559  ;;  %v2297_v26 = vsub.f32 %v9802_v35, %v2296_v24 }
 0x247   :  { %1562 = vst.msk [vmem:[#allocation3 + $0xb0] sm:$0xff] %vm1119_vm7, %v1560_v41  ;;  %2436 = vmatmul.f32.gmra.mxu3 %v9798_v57  ;;  %v1595_v25 = vld [vmem:[#allocation3 + $0x98] sm:$0xff]  ;;  %vm7142_vm7 = vcmask 1044480  }
 0x248   :  { %1570 = vst.msk [vmem:[#allocation3 + $0xb0] sm:$0xff] %vm1127_vm8, %v1568_v21  ;;  %v2298_v12 = vand.u32 4294901760, %v2297_v26  ;;  %v9813_v3 = vand.u32 4294901760, %v1595_v25  ;;  %v2798_v21 = vand.u32 4294901760, %v1632_v31  ;;  %vm7226_vm8 = vcmask 1046530  }
 0x24a   :  { %2299 = vmatmul.f32.gmra.mxu2 %v2298_v12  ;;  %v9816_v4 = vsub.f32 %v1595_v25, %v9813_v3  ;;  %v2891_v25 = vand.u32 4294901760, %v2890_v30  ;;  %v2896_v12 = vsub.f32 %v1632_v31, %v2798_v21 }
 0x24b   :  { %2145 = vmatmul.f32.gmra.mxu0 %v9643_v47  ;;  %2214 = vmatmul.f32.gmra.mxu1 %v9665_v20 }
 0x24c   :  { %v2304_v42 = vand.u32 4294901760, %v9816_v4 }
 0x24e   :  { %v2305_v55 = vsub.f32 %v9816_v4, %v2304_v42 }
 0x24f   :  { %2440 = vmatmul.f32.gmra.mxu3 %v9813_v3  ;;  %v1598_v51 = vld [vmem:[#allocation3 + $0xb0] sm:$0xff] }
 0x250   :  { %v2306_v38 = vand.u32 4294901760, %v2305_v55  ;;  %v9825_v32 = vand.u32 4294901760, %v1598_v51  ;;  %v2892_v55 = vsub.f32 %v2890_v30, %v2891_v25 }
 0x252   :  { %2307 = vmatmul.f32.gmra.mxu2 %v2306_v38  ;;  %v9828_v58 = vsub.f32 %v1598_v51, %v9825_v32 }
 0x253   :  { %2149 = vmatmul.f32.gmra.mxu0 %v9665_v20  ;;  %2218 = vmatmul.f32.gmra.mxu1 %v9688_v46  ;;  %v9843_v20 = vld [vmem:[%s13458_s4] ss:$0 sm:$0xff] }
 0x254   :  { %v2312_v47 = vand.u32 4294901760, %v9828_v58 }
 0x256   :  { %v2313_v48 = vsub.f32 %v9828_v58, %v2312_v47  ;;  %v1859_v16 = vpop.f32.mrf.mxu1 }
 0x257   :  { %2444 = vmatmul.f32.gmra.mxu3 %v9825_v32 }
 0x258   :  { %v2314_v36 = vand.u32 4294901760, %v2313_v48  ;;  %v2897_v48 = vand.u32 4294901760, %v2896_v12 }
 0x25a   :  { %2315 = vmatmul.f32.gmra.mxu2 %v2314_v36 }
 0x25b   :  { %2153 = vmatmul.f32.gmra.mxu0 %v9688_v46  ;;  %2572 = vmatmul.f32.vlgmr.msrb.gmra.mxu1 %v2256_v14 }
 0x25e   :  { %v1702_v60 = vpop.f32.mrf.mxu0  ;;  %v1941_v9 = vpop.f32.mrf.mxu2 }
 0x25f   :  { %v1703_v6 = vadd.f32 %v9843_v20, %v1702_v60  ;;  %2748 = vmatmul.f32.vlgmr.msra.gmra.mxu3 %v9710_v34  ;;  %v2893_v60 = vand.u32 4294901760, %v2892_v55 }
 0x260   :  { %v1863_v45 = vpop.f32.mrf.mxu1  ;;  %v2015_v5 = vpop.f32.mrf.mxu3 }
 0x261   :  { %v1860_v61 = vadd.f32 %v1859_v16, %v1703_v6 }
 0x262   :  { %2683 = vmatmul.f32.vlgmr.msra.gmra.mxu2 %v9710_v34  ;;  %v1635_v34 = vld [vmem:[%s13457_s3 + $0x118] sm:$0xff] }
 0x263   :  { %v1942_v46 = vadd.f32 %v1941_v9, %v1860_v61  ;;  %2498 = vmatmul.f32.vlgmr.msrb.gmra.mxu0 %v9718_v54  ;;  %2578 = vmatmul.f32.gmra.mxu1 %v2264_v37  ;;  %v9862_v37 = vand.u32 4294901760, %v1635_v34 }
 0x265   :  { %v9851_v14 = vadd.f32 %v2015_v5, %v1942_v46  ;;  %2793 = vmatpush.msra.mxu0 %v9862_v37  ;;  %3012 = vmatpush.msrb.mxu3 %v9862_v37 }
 0x267   :  { %2752 = vmatmul.f32.gmra.mxu3 %v9736_v18 }
 0x268   :  { %v1710_v50 = vpop.f32.mrf.mxu0  ;;  %v1867_v49 = vpop.f32.mrf.mxu1 }
 0x269   :  { %v1711_v19 = vadd.f32 %v9843_v20, %v1710_v50  ;;  %v1946_v52 = vpop.f32.mrf.mxu2 }
 0x26a   :  { %v2021_v17 = vpop.f32.mrf.mxu3  ;;  %2687 = vmatmul.f32.gmra.mxu2 %v9736_v18  ;;  %v2878_v18 = vsub.f32 %v1635_v34, %v9862_v37 }
 0x26b   :  { %v1864_v53 = vadd.f32 %v1863_v45, %v1711_v19  ;;  %2503 = vmatmul.f32.gmra.mxu0 %v9741_v13  ;;  %2584 = vmatmul.f32.gmra.mxu1 %v2272_v22  ;;  %v9872_v13 = vand.u32 4294901760, %v1634_v27  ;;  %v2898_v45 = vsub.f32 %v2896_v12, %v2897_v48 }
 0x26c   :  { %v2879_v33 = vand.u32 4294901760, %v2878_v18  ;;  %2948 = vmatpush.msrb.mxu2 %v2878_v18 }
 0x26d   :  { %v1947_v54 = vadd.f32 %v1946_v52, %v1864_v53  ;;  %v2884_v40 = vsub.f32 %v1634_v27, %v9872_v13  ;;  %2795 = vmatpush.msra.mxu0 %v9872_v13  ;;  %3014 = vmatpush.msrb.mxu3 %v9872_v13  ;;  %v2899_v9 = vand.u32 4294901760, %v2898_v45 }
 0x26e   :  { %v2880_v2 = vsub.f32 %v2878_v18, %v2879_v33 }
 0x26f   :  { %v9867_v59 = vadd.f32 %v2021_v17, %v1947_v54  ;;  %2756 = vmatmul.f32.gmra.mxu3 %v9753_v10  ;;  %v2885_v39 = vand.u32 4294901760, %v2884_v40  ;;  %2951 = vmatpush.msrb.mxu2 %v2884_v40 }
 0x270   :  { %v1718_v22 = vpop.f32.mrf.mxu0  ;;  %v1871_v43 = vpop.f32.mrf.mxu1  ;;  %3016 = vmatpush.msrb.mxu3 %v9880_v23  ;;  %v2881_v41 = vand.u32 4294901760, %v2880_v2  ;;  %2797 = vmatpush.msra.mxu0 %v9880_v23 }
 0x271   :  { %v1719_v44 = vadd.f32 %v9843_v20, %v1718_v22  ;;  %v1951_v62 = vpop.f32.mrf.mxu2  ;;  %v2886_v26 = vsub.f32 %v2884_v40, %v2885_v39  ;;  %2954 = vmatpush.msrb.mxu2 %v2890_v30 }
 0x272   :  { %v2027_v1 = vpop.f32.mrf.mxu3  ;;  %2691 = vmatmul.f32.gmra.mxu2 %v9753_v10  ;;  %3018 = vmatpush.msrb.mxu3 %v2798_v21 }
 0x273   :  { %v1868_v0 = vadd.f32 %v1867_v49, %v1719_v44  ;;  %2508 = vmatmul.f32.gmra.mxu0 %v9757_v7  ;;  %2590 = vmatmul.f32.gmra.mxu1 %v2280_v63  ;;  %v2887_v63 = vand.u32 4294901760, %v2886_v26 }
 0x274   :  { %2882 = vmatpush.msra.mxu1 %v2881_v41  ;;  %2957 = vmatpush.msrb.mxu2 %v2896_v12 }
 0x275   :  { %v1952_v10 = vadd.f32 %v1951_v62, %v1868_v0  ;;  %2799 = vmatpush.msra.mxu0 %v2798_v21 }
 0x276   :  { %2888 = vmatpush.msra.mxu1 %v2887_v63 }
 0x277   :  { %v9894_v7 = vadd.f32 %v2027_v1, %v1952_v10  ;;  %2760 = vmatmul.f32.gmra.mxu3 %v9768_v11  ;;  %3083 = vmatpush.msrb.mxu0 %v2879_v33 }
 0x278   :  { %v1726_v51 = vpop.f32.mrf.mxu0  ;;  %v1875_v38 = vpop.f32.mrf.mxu1  ;;  %2894 = vmatpush.msra.mxu1 %v2893_v60 }
 0x279   :  { %v1727_v16 = vadd.f32 %v9843_v20, %v1726_v51  ;;  %v1956_v36 = vpop.f32.mrf.mxu2  ;;  %3087 = vmatpush.msrb.mxu0 %v2885_v39  ;;  %v1584_v39 = vld [vmem:[#allocation3 + $0x40] sm:$0xff] }
 0x27a   :  { %v2033_v6 = vpop.f32.mrf.mxu3  ;;  %2695 = vmatmul.f32.gmra.mxu2 %v9768_v11  ;;  %2900 = vmatpush.msra.mxu1 %v2899_v9 }
 0x27b   :  { %v1872_v61 = vadd.f32 %v1871_v43, %v1727_v16  ;;  %2513 = vmatmul.f32.gmra.mxu0 %v9772_v29  ;;  %2596 = vmatmul.f32.gmra.mxu1 %v2288_v8 }
 0x27c   :  { %3091 = vmatpush.msrb.mxu0 %v2891_v25  ;;  %3142 = vmatpush.msrb.mxu1 %v9862_v37  ;;  %v1647_v25 = vsel %vm1060_vm2, %v1584_v39, 0 }
 0x27d   :  { %v1957_v5 = vadd.f32 %v1956_v36, %v1872_v61  ;;  %v9948_v51 = vand.u32 4294901760, %v1647_v25 }
 0x27e   :  { %3095 = vmatpush.msrb.mxu0 %v2897_v48  ;;  %3144 = vmatpush.msrb.mxu1 %v9872_v13  ;;  %v1587_v48 = vld [vmem:[#allocation3 + $0x58] sm:$0xff] }
 0x27f   :  { %v9902_v46 = vadd.f32 %v2033_v6, %v1957_v5  ;;  %2764 = vmatmul.f32.gmra.mxu3 %v9783_v28  ;;  %v2817_v36 = vsub.f32 %v1647_v25, %v9948_v51  ;;  %v1650_v60 = vsel %vm1060_vm2, %v1587_v48, 0 }
 0x280   :  { %v1734_v11 = vpop.f32.mrf.mxu0  ;;  %v1879_v50 = vpop.f32.mrf.mxu1  ;;  %3146 = vmatpush.msrb.mxu1 %v9880_v23 }
 0x281   :  { %v1735_v29 = vadd.f32 %v9843_v20, %v1734_v11  ;;  %v1961_v49 = vpop.f32.mrf.mxu2  ;;  %v2818_v5 = vand.u32 4294901760, %v2817_v36  ;;  %v9958_v11 = vand.u32 4294901760, %v1650_v60 }
 0x282   :  { %v2039_v8 = vpop.f32.mrf.mxu3  ;;  %2699 = vmatmul.f32.gmra.mxu2 %v9783_v28  ;;  %3148 = vmatpush.msrb.mxu1 %v2798_v21 }
 0x283   :  { %v1876_v19 = vadd.f32 %v1875_v38, %v1735_v29  ;;  %2518 = vmatmul.f32.gmra.mxu0 %v9787_v15  ;;  %2602 = vmatmul.f32.gmra.mxu1 %v2296_v24  ;;  %v1578_v24 = vld [vmem:[#allocation3 + $0x10] sm:$0xff] }
 0x284   :  { %v1641_v18 = vsel %vm1060_vm2, %v1578_v24, 0  ;;  %v1590_v29 = vld [vmem:[#allocation3 + $0x70] sm:$0xff] }
 0x285   :  { %v1962_v52 = vadd.f32 %v1961_v49, %v1876_v19  ;;  %v9926_v44 = vand.u32 4294901760, %v1641_v18  ;;  %v2819_v49 = vsub.f32 %v2817_v36, %v2818_v5  ;;  %v1653_v19 = vsel %vm1060_vm2, %v1590_v29, 0 }
 0x287   :  { %v9913_v17 = vadd.f32 %v2039_v8, %v1962_v52  ;;  %2768 = vmatmul.f32.gmra.mxu3 %v9798_v57  ;;  %v2801_v40 = vsub.f32 %v1641_v18, %v9926_v44  ;;  %v2825_v8 = vsub.f32 %v1650_v60, %v9958_v11 }
 0x288   :  { %v1742_v53 = vpop.f32.mrf.mxu0  ;;  %v1883_v34 = vpop.f32.mrf.mxu1 }
 0x289   :  { %v1743_v54 = vadd.f32 %v9843_v20, %v1742_v53  ;;  %v1966_v37 = vpop.f32.mrf.mxu2  ;;  %v2802_v2 = vand.u32 4294901760, %v2801_v40 }
 0x28a   :  { %v2045_v28 = vpop.f32.mrf.mxu3  ;;  %2703 = vmatmul.f32.gmra.mxu2 %v9798_v57 }
 0x28b   :  { %v1880_v15 = vadd.f32 %v1879_v50, %v1743_v54  ;;  %2523 = vmatmul.f32.gmra.mxu0 %v9802_v35  ;;  %2608 = vmatmul.f32.gmra.mxu1 %v2304_v42  ;;  %v1581_v42 = vld [vmem:[#allocation3 + $0x28] sm:$0xff]  ;;  %v2803_v10 = vsub.f32 %v2801_v40, %v2802_v2  ;;  %v2820_v54 = vand.u32 4294901760, %v2819_v49 }
 0x28c   :  { %v1644_v23 = vsel %vm1060_vm2, %v1581_v42, 0 }
 0x28d   :  { %v1967_v27 = vadd.f32 %v1966_v37, %v1880_v15  ;;  %v2804_v55 = vand.u32 4294901760, %v2803_v10  ;;  %v2826_v37 = vand.u32 4294901760, %v2825_v8 }
 0x28f   :  { %v9922_v13 = vadd.f32 %v2045_v28, %v1967_v27  ;;  %2772 = vmatmul.f32.gmra.mxu3 %v9813_v3  ;;  %v9968_v28 = vand.u32 4294901760, %v1653_v19  ;;  %v1593_v27 = vld [vmem:[#allocation3 + $0x88] sm:$0xff]  ;;  %v2827_v18 = vsub.f32 %v2825_v8, %v2826_v37 }
 0x290   :  { %v1750_v22 = vpop.f32.mrf.mxu0  ;;  %v1887_v43 = vpop.f32.mrf.mxu1 }
 0x291   :  { %v1751_v56 = vadd.f32 %v9843_v20, %v1750_v22  ;;  %v1971_v57 = vpop.f32.mrf.mxu2  ;;  %v2833_v22 = vsub.f32 %v1653_v19, %v9968_v28  ;;  %v2828_v42 = vand.u32 4294901760, %v2827_v18 }
 0x292   :  { %2707 = vmatmul.f32.gmra.mxu2 %v9813_v3  ;;  %v2051_v62 = vpop.f32.mrf.mxu3 }
 0x293   :  { %v1884_v35 = vadd.f32 %v1883_v34, %v1751_v56  ;;  %2528 = vmatmul.f32.gmra.mxu0 %v9816_v4  ;;  %2614 = vmatmul.f32.gmra.mxu1 %v2312_v47  ;;  %v9938_v4 = vand.u32 4294901760, %v1644_v23 }
 0x295   :  { %v1972_v33 = vadd.f32 %v1971_v57, %v1884_v35  ;;  %v2809_v41 = vsub.f32 %v1644_v23, %v9938_v4  ;;  %v1596_v23 = vld [vmem:[#allocation3 + $0xa0] sm:$0xff] }
 0x297   :  { %v9934_v1 = vadd.f32 %v2051_v62, %v1972_v33  ;;  %2776 = vmatmul.f32.gmra.mxu3 %v9825_v32  ;;  %v2834_v62 = vand.u32 4294901760, %v2833_v22 }
 0x298   :  { %v1758_v31 = vpop.f32.mrf.mxu0  ;;  %v2191_v0 = vpop.f32.mrf.mxu1 }
 0x299   :  { %v1759_v3 = vadd.f32 %v9843_v20, %v1758_v31  ;;  %v1976_v30 = vpop.f32.mrf.mxu2 }
 0x29a   :  { %2711 = vmatmul.f32.gmra.mxu2 %v9825_v32  ;;  %v2057_v26 = vpop.f32.mrf.mxu3 }
 0x29b   :  { %v1888_v47 = vadd.f32 %v1887_v43, %v1759_v3  ;;  %2533 = vmatmul.f32.gmra.mxu0 %v9828_v58  ;;  %2902 = vmatmul.f32.vlgmr.msra.gmra.mxu1 %v9926_v44  ;;  %v2810_v58 = vand.u32 4294901760, %v2809_v41  ;;  %v1656_v43 = vsel %vm1060_vm2, %v1593_v27, 0 }
 0x29c   :  { %v9980_v33 = vand.u32 4294901760, %v1656_v43 }
 0x29d   :  { %v1977_v21 = vadd.f32 %v1976_v30, %v1888_v47  ;;  %v2811_v16 = vsub.f32 %v2809_v41, %v2810_v58 }
 0x29e   :  { %v2841_v3 = vsub.f32 %v1656_v43, %v9980_v33 }
 0x29f   :  { %v9945_v20 = vadd.f32 %v2057_v26, %v1977_v21  ;;  %3022 = vmatmul.f32.vlgmr.msrb.gmra.mxu3 %v2802_v2  ;;  %v2812_v9 = vand.u32 4294901760, %v2811_v16  ;;  %v1659_v2 = vsel %vm1060_vm2, %v1596_v23, 0 }
 0x2a0   :  { %v2126_v12 = vpop.f32.mrf.mxu0  ;;  %v2195_v63 = vpop.f32.mrf.mxu1  ;;  %v2842_v21 = vand.u32 4294901760, %v2841_v3  ;;  %v9990_v10 = vand.u32 4294901760, %v1659_v2 }
 0x2a1   :  { %v2127_v32 = vadd.f32 %v2126_v12, %v9851_v14 }
 0x2a2   :  { %2960 = vmatmul.f32.vlgmr.msrb.gmra.mxu2 %v2801_v40  ;;  %v9965_v52 = vpop.f32.mrf.mxu3 }
 0x2a3   :  { %2805 = vmatmul.f32.vlgmr.msra.gmra.mxu0 %v2804_v55  ;;  %2906 = vmatmul.f32.gmra.mxu1 %v9938_v4  ;;  %v9951_v38 = vadd.f32 %v2191_v0, %v2127_v32  ;;  %v2835_v0 = vsub.f32 %v2833_v22, %v2834_v62  ;;  %v2849_v32 = vsub.f32 %v1659_v2, %v9990_v10 }
 0x2a5   :  { %v9955_v14 = vpop.f32.mrf.mxu2  ;;  %v2836_v30 = vand.u32 4294901760, %v2835_v0  ;;  %v2850_v60 = vand.u32 4294901760, %v2849_v32 }
 0x2a7   :  { %3028 = vmatmul.f32.gmra.mxu3 %v2810_v58 }
 0x2a8   :  { %v2130_v6 = vpop.f32.mrf.mxu0  ;;  %v2199_v45 = vpop.f32.mrf.mxu1 }
 0x2a9   :  { %v2131_v61 = vadd.f32 %v2130_v6, %v9867_v59 }
 0x2aa   :  { %2965 = vmatmul.f32.gmra.mxu2 %v2809_v41  ;;  %v9977_v57 = vpop.f32.mrf.mxu3  ;;  %v1599_v41 = vld [vmem:[#allocation3 + $0xb8] sm:$0xff] }
 0x2ab   :  { %2813 = vmatmul.f32.gmra.mxu0 %v2812_v9  ;;  %2910 = vmatmul.f32.gmra.mxu1 %v9948_v51  ;;  %v9961_v50 = vadd.f32 %v2195_v63, %v2131_v61  ;;  %v1662_v12 = vsel %vm1060_vm2, %v1599_v41, 0  ;;  %v2843_v63 = vsub.f32 %v2841_v3, %v2842_v21  ;;  %v2851_v9 = vsub.f32 %v2849_v32, %v2850_v60 }
 0x2ac   :  { %vm7369_vm2 = vcmask 1043456  }
 0x2ad   :  { %v9970_v15 = vpop.f32.mrf.mxu2  ;;  %v2852_v19 = vand.u32 4294901760, %v2851_v9 }
 0x2af   :  { %3034 = vmatmul.f32.gmra.mxu3 %v2818_v5 }
 0x2b0   :  { %v2134_v59 = vpop.f32.mrf.mxu0  ;;  %v2203_v53 = vpop.f32.mrf.mxu1 }
 0x2b1   :  { %v2135_v34 = vadd.f32 %v2134_v59, %v9894_v7 }
 0x2b2   :  { %2970 = vmatmul.f32.gmra.mxu2 %v2817_v36  ;;  %v9992_v26 = vpop.f32.mrf.mxu3  ;;  %v2844_v36 = vand.u32 4294901760, %v2843_v63 }
 0x2b3   :  { %2821 = vmatmul.f32.gmra.mxu0 %v2820_v54  ;;  %2914 = vmatmul.f32.gmra.mxu1 %v9958_v11  ;;  %v9973_v24 = vadd.f32 %v2199_v45, %v2135_v34 }
 0x2b5   :  { %v9985_v31 = vpop.f32.mrf.mxu2 }
 0x2b7   :  { %3040 = vmatmul.f32.gmra.mxu3 %v2826_v37 }
 0x2b8   :  { %v2138_v7 = vpop.f32.mrf.mxu0  ;;  %v2207_v56 = vpop.f32.mrf.mxu1 }
 0x2b9   :  { %v2139_v35 = vadd.f32 %v2138_v7, %v9902_v46 }
 0x2ba   :  { %2975 = vmatmul.f32.gmra.mxu2 %v2825_v8  ;;  %v10008_v61 = vpop.f32.mrf.mxu3 }
 0x2bb   :  { %2829 = vmatmul.f32.gmra.mxu0 %v2828_v42  ;;  %2918 = vmatmul.f32.gmra.mxu1 %v9968_v28  ;;  %v9983_v40 = vadd.f32 %v2203_v53, %v2139_v35 }
 0x2bd   :  { %v9999_v55 = vpop.f32.mrf.mxu2 }
 0x2bf   :  { %3046 = vmatmul.f32.gmra.mxu3 %v2834_v62 }
 0x2c0   :  { %v2142_v46 = vpop.f32.mrf.mxu0  ;;  %v2211_v47 = vpop.f32.mrf.mxu1 }
 0x2c1   :  { %v2143_v39 = vadd.f32 %v2142_v46, %v9913_v17  ;;  %v10001_v17 = vand.u32 4294901760, %v1662_v12 }
 0x2c2   :  { %2980 = vmatmul.f32.gmra.mxu2 %v2833_v22  ;;  %v10016_v34 = vpop.f32.mrf.mxu3 }
 0x2c3   :  { %2837 = vmatmul.f32.gmra.mxu0 %v2836_v30  ;;  %2922 = vmatmul.f32.gmra.mxu1 %v9980_v33  ;;  %v9995_v25 = vadd.f32 %v2207_v56, %v2143_v39  ;;  %v2857_v45 = vsub.f32 %v1662_v12, %v10001_v17 }
 0x2c5   :  { %v2858_v5 = vand.u32 4294901760, %v2857_v45  ;;  %v10010_v8 = vpop.f32.mrf.mxu2 }
 0x2c7   :  { %3052 = vmatmul.f32.gmra.mxu3 %v2842_v21  ;;  %v2859_v53 = vsub.f32 %v2857_v45, %v2858_v5 }
 0x2c8   :  { %v2146_v58 = vpop.f32.mrf.mxu0  ;;  %v2215_v48 = vpop.f32.mrf.mxu1 }
 0x2c9   :  { %v2147_v16 = vadd.f32 %v2146_v58, %v9922_v13  ;;  %v2860_v54 = vand.u32 4294901760, %v2859_v53 }
 0x2ca   :  { %2985 = vmatmul.f32.gmra.mxu2 %v2841_v3  ;;  %v10030_v56 = vpop.f32.mrf.mxu3 }
 0x2cb   :  { %2845 = vmatmul.f32.gmra.mxu0 %v2844_v36  ;;  %2926 = vmatmul.f32.gmra.mxu1 %v9990_v10  ;;  %v10005_v6 = vadd.f32 %v2211_v47, %v2147_v16 }
 0x2cd   :  { %v10021_v22 = vpop.f32.mrf.mxu2 }
 0x2cf   :  { %3058 = vmatmul.f32.gmra.mxu3 %v2850_v60 }
 0x2d0   :  { %v2150_v29 = vpop.f32.mrf.mxu0  ;;  %v2219_v49 = vpop.f32.mrf.mxu1 }
 0x2d1   :  { %v2151_v13 = vadd.f32 %v2150_v29, %v9934_v1 }
 0x2d2   :  { %2990 = vmatmul.f32.gmra.mxu2 %v2849_v32  ;;  %v10040_v62 = vpop.f32.mrf.mxu3 }
 0x2d3   :  { %2853 = vmatmul.f32.gmra.mxu0 %v2852_v19  ;;  %2930 = vmatmul.f32.gmra.mxu1 %v10001_v17  ;;  %v10014_v59 = vadd.f32 %v2215_v48, %v2151_v13  ;;  %v10117_v13 = vld [vmem:[#allocation6] sm:$0xff] }
 0x2d4   :  { %3191 = vst.msk [vmem:[#allocation4] sm:$0xff] %vm3190_vm9, %v10117_v13 }
 0x2d5   :  { %v10034_v35 = vpop.f32.mrf.mxu2  ;;  %3193 = vst.msk [vmem:[#allocation4 + $0x8] sm:$0x3] %vm3192_vm10, %v10117_v13 }
 0x2d6   :  { %3194 = vst.msk [vmem:[#allocation4 + $0x10] sm:$0xff] %vm3190_vm9, %v10117_v13 }
 0x2d7   :  { %3064 = vmatmul.f32.gmra.mxu3 %v2858_v5  ;;  %3195 = vst.msk [vmem:[#allocation4 + $0x18] sm:$0x3] %vm3192_vm10, %v10117_v13 }
 0x2d8   :  { %v2154_v37 = vpop.f32.mrf.mxu0  ;;  %v10018_v27 = vpop.f32.mrf.mxu1  ;;  %3196 = vst.msk [vmem:[#allocation4 + $0x20] sm:$0xff] %vm3190_vm9, %v10117_v13 }
 0x2d9   :  { %v2155_v18 = vadd.f32 %v2154_v37, %v9945_v20  ;;  %3197 = vst.msk [vmem:[#allocation4 + $0x28] sm:$0x3] %vm3192_vm10, %v10117_v13 }
 0x2da   :  { %2995 = vmatmul.f32.gmra.mxu2 %v2857_v45  ;;  %3198 = vst.msk [vmem:[#allocation4 + $0x30] sm:$0xff] %vm3190_vm9, %v10117_v13 }
 0x2db   :  { %2861 = vmatmul.f32.gmra.mxu0 %v2860_v54  ;;  %3150 = vmatmul.f32.vlgmr.msrb.gmra.mxu1 %v9926_v44  ;;  %v10024_v1 = vadd.f32 %v2219_v49, %v2155_v18  ;;  %v10137_v54 = vld [vmem:[#allocation4] sm:$0xff]  ;;  %3199 = vst.msk [vmem:[#allocation4 + $0x38] sm:$0x3] %vm3192_vm10, %v10117_v13 }
 0x2dc   :  { %13577 = vst [vmem:[#allocation13_spill] sm:$0xff] %v10137_v54 }
 0x2dd   :  { %v10044_v23 = vpop.f32.mrf.mxu2  ;;  %3200 = vst.msk [vmem:[#allocation4 + $0x40] sm:$0xff] %vm3190_vm9, %v10117_v13 }
 0x2de   :  { %3201 = vst.msk [vmem:[#allocation4 + $0x48] sm:$0x3] %vm3192_vm10, %v10117_v13 }
 0x2df   :  { %3202 = vst.msk [vmem:[#allocation4 + $0x50] sm:$0xff] %vm3190_vm9, %v10117_v13 }
 0x2e0   :  { %v10026_v43 = vpop.f32.mrf.mxu0  ;;  %v10028_v7 = vpop.f32.mrf.mxu1  ;;  %3203 = vst.msk [vmem:[#allocation4 + $0x58] sm:$0x3] %vm3192_vm10, %v10117_v13 }
 0x2e1   :  { %3204 = vst.msk [vmem:[#allocation4 + $0x60] sm:$0xff] %vm3190_vm9, %v10117_v13 }
 0x2e2   :  { %3205 = vst.msk [vmem:[#allocation4 + $0x68] sm:$0x3] %vm3192_vm10, %v10117_v13 }
 0x2e3   :  { %3097 = vmatmul.f32.vlgmr.msrb.gmra.mxu0 %v9926_v44  ;;  %3154 = vmatmul.f32.gmra.mxu1 %v9938_v4  ;;  %v10052_v44 = vpop.f32.mrf.mxu3  ;;  %3206 = vst.msk [vmem:[#allocation4 + $0x70] sm:$0xff] %vm3190_vm9, %v10117_v13 }
 0x2e4   :  { %3207 = vst.msk [vmem:[#allocation4 + $0x78] sm:$0x3] %vm3192_vm10, %v10117_v13 }
 0x2e5   :  { %v10058_v47 = vpop.f32.mrf.mxu2  ;;  %3208 = vst.msk [vmem:[#allocation4 + $0x80] sm:$0xff] %vm3190_vm9, %v10117_v13 }
 0x2e6   :  { %3209 = vst.msk [vmem:[#allocation4 + $0x88] sm:$0x3] %vm3192_vm10, %v10117_v13 }
 0x2e7   :  { %3210 = vst.msk [vmem:[#allocation4 + $0x90] sm:$0xff] %vm3190_vm9, %v10117_v13 }
 0x2e8   :  { %v10036_v20 = vpop.f32.mrf.mxu0  ;;  %v10038_v42 = vpop.f32.mrf.mxu1  ;;  %3211 = vst.msk [vmem:[#allocation4 + $0x98] sm:$0x3] %vm3192_vm10, %v10117_v13 }
 0x2e9   :  { %3230 = vst.msk [vmem:[#allocation5] sm:$0xff] %vm3190_vm9, %v10137_v54 }
 0x2ea   :  { %6983 = vst.msk [vmem:[#allocation6 + $0x8] sm:$0xff] %vm3190_vm9, %v10117_v13 }
 0x2eb   :  { %3101 = vmatmul.f32.gmra.mxu0 %v9938_v4  ;;  %3158 = vmatmul.f32.gmra.mxu1 %v9948_v51  ;;  %v10062_v4 = vpop.f32.mrf.mxu3  ;;  %6985 = vst.msk [vmem:[#allocation6 + $0x18] sm:$0x3] %vm3192_vm10, %v10117_v13 }
 0x2ec   :  { %6987 = vst.msk [vmem:[#allocation6 + $0x28] sm:$0xff] %vm3190_vm9, %v10117_v13 }
 0x2ed   :  { %6989 = vst.msk [vmem:[#allocation6 + $0x38] sm:$0x3] %vm3192_vm10, %v10117_v13 }
 0x2ee   :  { %6991 = vst.msk [vmem:[#allocation6 + $0x48] sm:$0xff] %vm3190_vm9, %v10117_v13 }
 0x2ef   :  { %6993 = vst.msk [vmem:[#allocation6 + $0x58] sm:$0x3] %vm3192_vm10, %v10117_v13 }
 0x2f0   :  { %v10046_v0 = vpop.f32.mrf.mxu0  ;;  %v10048_v3 = vpop.f32.mrf.mxu1  ;;  %6995 = vst.msk [vmem:[#allocation6 + $0x68] sm:$0xff] %vm3190_vm9, %v10117_v13 }
 0x2f1   :  { %6997 = vst.msk [vmem:[#allocation6 + $0x78] sm:$0x3] %vm3192_vm10, %v10117_v13 }
 0x2f2   :  { %6999 = vst.msk [vmem:[#allocation6 + $0x88] sm:$0xff] %vm3190_vm9, %v10117_v13 }
 0x2f3   :  { %3105 = vmatmul.f32.gmra.mxu0 %v9948_v51  ;;  %3162 = vmatmul.f32.gmra.mxu1 %v9958_v11  ;;  %v10068_v51 = vpop.f32.mrf.mxu2  ;;  %v10076_v12 = vpop.f32.mrf.mxu3  ;;  %7001 = vst.msk [vmem:[#allocation6 + $0x98] sm:$0x3] %vm3192_vm10, %v10117_v13 }
 0x2f4   :  { %7003 = vst.msk [vmem:[#allocation6 + $0xa8] sm:$0xff] %vm3190_vm9, %v10117_v13 }
 0x2f5   :  { %7005 = vst.msk [vmem:[#allocation6 + $0xb8] sm:$0x3] %vm3192_vm10, %v10117_v13 }
 0x2f6   :  { %7007 = vst.msk [vmem:[#allocation6 + $0xc8] sm:$0xff] %vm3190_vm9, %v10117_v13 }
 0x2f7   :  { %7009 = vst.msk [vmem:[#allocation6 + $0xd8] sm:$0x3] %vm3192_vm10, %v10117_v13 }
 0x2f8   :  { %v10054_v2 = vpop.f32.mrf.mxu0  ;;  %v10056_v46 = vpop.f32.mrf.mxu1  ;;  %7011 = vst.msk [vmem:[#allocation6 + $0xe8] sm:$0xff] %vm3190_vm9, %v10117_v13 }
 0x2f9   :  { %7013 = vst.msk [vmem:[#allocation6 + $0xf8] sm:$0x3] %vm3192_vm10, %v10117_v13 }
 0x2fa   :  { %7015 = vst.msk [vmem:[#allocation6 + $0x108] sm:$0xff] %vm3190_vm9, %v10117_v13 }
 0x2fb   :  { %3109 = vmatmul.f32.gmra.mxu0 %v9958_v11  ;;  %3166 = vmatmul.f32.gmra.mxu1 %v9968_v28  ;;  %v10080_v11 = vpop.f32.mrf.mxu2  ;;  %v10086_v58 = vpop.f32.mrf.mxu3  ;;  %7017 = vst.msk [vmem:[#allocation6 + $0x118] sm:$0x3] %vm3192_vm10, %v10117_v13  ;;  %vm7326_vm10 = vcmask 1047556  }
 0x300   :  { %v10064_v39 = vpop.f32.mrf.mxu0  ;;  %v10066_v30 = vpop.f32.mrf.mxu1 }
 0x303   :  { %3113 = vmatmul.f32.gmra.mxu0 %v9968_v28  ;;  %3170 = vmatmul.f32.gmra.mxu1 %v9980_v33  ;;  %v10090_v28 = vpop.f32.mrf.mxu2 }
 0x308   :  { %v10072_v21 = vpop.f32.mrf.mxu0  ;;  %v10074_v41 = vpop.f32.mrf.mxu1 }
 0x309   :  { %13572 = vst [vmem:[#allocation8_spill] sm:$0xff] %v10074_v41 }
 0x30b   :  { %3117 = vmatmul.f32.gmra.mxu0 %v9980_v33  ;;  %3174 = vmatmul.f32.gmra.mxu1 %v9990_v10  ;;  %v10097_v33 = vpop.f32.mrf.mxu3  ;;  %v10103_v45 = vpop.f32.mrf.mxu2 }
 0x310   :  { %v10082_v63 = vpop.f32.mrf.mxu0  ;;  %v10084_v32 = vpop.f32.mrf.mxu1 }
 0x311   :  { %13573 = vst [vmem:[#allocation9_spill] sm:$0xff] %v10084_v32  ;;  %v3229_v32 = vld [vmem:[#allocation4 + $0x8] sm:$0x3] }
 0x313   :  { %3121 = vmatmul.f32.gmra.mxu0 %v9990_v10  ;;  %3178 = vmatmul.f32.gmra.mxu1 %v10001_v17  ;;  %v10105_v9 = vpop.f32.mrf.mxu3  ;;  %v10111_v29 = vpop.f32.mrf.mxu2 }
 0x318   :  { %v10092_v48 = vpop.f32.mrf.mxu0  ;;  %v10094_v16 = vpop.f32.mrf.mxu1 }
 0x319   :  { %13574 = vst [vmem:[#allocation10_spill] sm:$0xff] %v10092_v48  ;;  %v3233_v48 = vrot.slane %v10137_v54, 1 }
 0x31b   :  { %3125 = vmatmul.f32.gmra.mxu0 %v10001_v17  ;;  %v10121_v19 = vpop.f32.mrf.mxu3  ;;  %v10131_v53 = vpop.f32.mrf.mxu2 }
 0x31c   :  { %13575 = vst [vmem:[#allocation11_spill] sm:$0xff] %v10121_v19 }
 0x31d   :  { %13576 = vst [vmem:[#allocation12_spill] sm:$0xff] %v10131_v53  ;;  %v3234_v53 = vrot.slane %v3229_v32, 1  ;;  %v2261_v32 = vadd.f32 %v9955_v14, %v9951_v38 }
 0x31f   :  { %v3235_v19 = vsel %vm1103_vm4, %v3233_v48, %v3234_v53  ;;  %v2418_v38 = vadd.f32 %v9965_v52, %v2261_v32 }
 0x320   :  { %v10099_v36 = vpop.f32.mrf.mxu0  ;;  %v10101_v60 = vpop.f32.mrf.mxu1  ;;  %3236 = vrot.lane.b32.xlu0 %v3235_v19, %s7900_s2 }
 0x321   :  { %v2500_v14 = vadd.f32 %v10026_v43, %v2418_v38 }
 0x323   :  { %v10152_v41 = vpop.f32.mrf.mxu3  ;;  %v2574_v43 = vadd.f32 %v10018_v27, %v2500_v14  ;;  %v2277_v27 = vadd.f32 %v9985_v31, %v9973_v24 }
 0x324   :  { %13578 = vst [vmem:[#allocation14_spill] sm:$0xff] %v10152_v41  ;;  %v10166_v41 = vpop.f32.mrf.mxu2 }
 0x325   :  { %13579 = vst [vmem:[#allocation15_spill] sm:$0xff] %v10166_v41  ;;  %v2269_v41 = vadd.f32 %v9970_v15, %v9961_v50  ;;  %v2685_v15 = vadd.f32 %v10058_v47, %v2574_v43  ;;  %v2426_v24 = vadd.f32 %v9992_v26, %v2277_v27  ;;  %v2285_v26 = vadd.f32 %v9999_v55, %v9983_v40 }
 0x326   :  { %v2293_v40 = vadd.f32 %v10010_v8, %v9995_v25  ;;  %v2301_v8 = vadd.f32 %v10021_v22, %v10005_v6 }
 0x327   :  { %v2422_v50 = vadd.f32 %v9977_v57, %v2269_v41  ;;  %v2750_v47 = vadd.f32 %v10062_v4, %v2685_v15 }
 0x328   :  { %v10107_v10 = vpop.f32.mrf.mxu0  ;;  %v10109_v5 = vpop.f32.mrf.mxu1 }
 0x329   :  { %v2505_v54 = vadd.f32 %v10036_v20, %v2422_v50  ;;  %v2807_v31 = vadd.f32 %v10099_v36, %v2750_v47  ;;  %v2510_v50 = vadd.f32 %v10046_v0, %v2426_v24 }
 0x32b   :  { %v10186_v53 = vpop.f32.mrf.mxu3  ;;  %v2580_v20 = vadd.f32 %v10028_v7, %v2505_v54  ;;  %v2904_v4 = vadd.f32 %v10094_v16, %v2807_v31  ;;  %v2586_v36 = vadd.f32 %v10038_v42, %v2510_v50 }
 0x32c   :  { %v2961_v38 = vpop.f32.mrf.mxu2 }
 0x32d   :  { %v2689_v7 = vadd.f32 %v10068_v51, %v2580_v20  ;;  %v2430_v51 = vadd.f32 %v10008_v61, %v2285_v26  ;;  %v2962_v20 = vadd.f32 %v2961_v38, %v2904_v4  ;;  %v2693_v55 = vadd.f32 %v10080_v11, %v2586_v36 }
 0x32e   :  { %v2438_v26 = vadd.f32 %v10030_v56, %v2301_v8 }
 0x32f   :  { %v2754_v15 = vadd.f32 %v10076_v12, %v2689_v7  ;;  %v2515_v16 = vadd.f32 %v10054_v2, %v2430_v51  ;;  %v2434_v12 = vadd.f32 %v10016_v34, %v2293_v40  ;;  %v2758_v61 = vadd.f32 %v10086_v58, %v2693_v55 }
 0x330   :  { %v10113_v49 = vpop.f32.mrf.mxu0  ;;  %v10115_v17 = vpop.f32.mrf.mxu1 }
 0x331   :  { %v2815_v47 = vadd.f32 %v10107_v10, %v2754_v15  ;;  %v2592_v31 = vadd.f32 %v10048_v3, %v2515_v16  ;;  %v2520_v7 = vadd.f32 %v10064_v39, %v2434_v12  ;;  %v2823_v25 = vadd.f32 %v10113_v49, %v2758_v61 }
 0x333   :  { %v3023_v57 = vpop.f32.mrf.mxu3  ;;  %v2908_v42 = vadd.f32 %v10101_v60, %v2815_v47  ;;  %v2598_v34 = vadd.f32 %v10056_v46, %v2520_v7  ;;  %v2912_v58 = vadd.f32 %v10109_v5, %v2823_v25  ;;  %v2309_v5 = vadd.f32 %v10034_v35, %v10014_v59 }
 0x334   :  { %v2966_v43 = vpop.f32.mrf.mxu2  ;;  %v3024_v24 = vadd.f32 %v3023_v57, %v2962_v20  ;;  %v2697_v57 = vadd.f32 %v10090_v28, %v2592_v31  ;;  %v2525_v28 = vadd.f32 %v10072_v21, %v2438_v26 }
 0x335   :  { %v2967_v2 = vadd.f32 %v2966_v43, %v2908_v42  ;;  %v2701_v56 = vadd.f32 %v10103_v45, %v2598_v34  ;;  %v2442_v21 = vadd.f32 %v10040_v62, %v2309_v5 }
 0x336   :  { %v2762_v6 = vadd.f32 %v10097_v33, %v2697_v57  ;;  %v2604_v33 = vadd.f32 %v10066_v30, %v2525_v28 }
 0x337   :  { %v2766_v47 = vadd.f32 %v10105_v9, %v2701_v56  ;;  %v2530_v7 = vadd.f32 %v10082_v63, %v2442_v21 }
 0x338   :  { %v10141_v37 = vpop.f32.mrf.mxu0  ;;  %v10143_v18 = vpop.f32.mrf.mxu1 }
 0x33b   :  { %v3029_v27 = vpop.f32.mrf.mxu3 }
 0x33c   :  { %v2971_v13 = vpop.f32.mrf.mxu2  ;;  %v3030_v49 = vadd.f32 %v3029_v27, %v2967_v2 }
 0x33d   :  { %v2972_v36 = vadd.f32 %v2971_v13, %v2912_v58  ;;  %v2317_v13 = vadd.f32 %v10044_v23, %v10024_v1 }
 0x33f   :  { %v2446_v8 = vadd.f32 %v10052_v44, %v2317_v13 }
 0x340   :  { %v10170_v48 = vpop.f32.mrf.mxu0  ;;  %v10172_v19 = vpop.f32.mrf.mxu1 }
 0x341   :  { %v2839_v31 = vadd.f32 %v10170_v48, %v2766_v47  ;;  %v13582_v47 = vld [vmem:[#allocation12_spill] sm:$0xff] }
 0x343   :  { %v3035_v11 = vpop.f32.mrf.mxu3  ;;  %v2920_v2 = vadd.f32 %v10143_v18, %v2839_v31 }
 0x344   :  { %v2976_v4 = vpop.f32.mrf.mxu2  ;;  %v3036_v40 = vadd.f32 %v3035_v11, %v2972_v36  ;;  %v13580_v11 = vld [vmem:[#allocation11_spill] sm:$0xff] }
 0x348   :  { %v10196_v52 = vpop.f32.mrf.mxu0  ;;  %v10198_v32 = vpop.f32.mrf.mxu1 }
 0x34b   :  { %v3041_v27 = vpop.f32.mrf.mxu3 }
 0x34c   :  { %v2981_v12 = vpop.f32.mrf.mxu2 }
 0x350   :  { %v10222_v41 = vpop.f32.mrf.mxu0  ;;  %v10224_v14 = vpop.f32.mrf.mxu1 }
 0x353   :  { %v3047_v58 = vpop.f32.mrf.mxu3 }
 0x358   :  { %v10250_v54 = vpop.f32.mrf.mxu0  ;;  %v3151_v0 = vpop.f32.mrf.mxu1 }
 0x360   :  { %v3098_v38 = vpop.f32.mrf.mxu0  ;;  %v3155_v50 = vpop.f32.mrf.mxu1 }
 0x361   :  { %v3099_v10 = vadd.f32 %v3098_v38, %v3024_v24  ;;  %v2705_v24 = vadd.f32 %v10111_v29, %v2604_v33 }
 0x363   :  { %v3152_v60 = vadd.f32 %v3151_v0, %v3099_v10  ;;  %v2831_v0 = vadd.f32 %v10141_v37, %v2762_v6 }
 0x365   :  { %v3182_v3 = vmax.f32 %v3152_v60, 0.0  ;;  %v2916_v20 = vadd.f32 %v10115_v17, %v2831_v0  ;;  %v2770_v60 = vadd.f32 %v13580_v11, %v2705_v24  ;;  %v2982_v0 = vadd.f32 %v2981_v12, %v2920_v2  ;;  %v13584_v12 = vld [vmem:[#allocation9_spill] sm:$0xff] }
 0x367   :  { %3213 = vst.msk [vmem:[#allocation4 + $0x11] sm:$0xff] %vm3190_vm9, %v3182_v3  ;;  %v7029_v39 = vrot.slane %v3182_v3, 7  ;;  %v2977_v10 = vadd.f32 %v2976_v4, %v2916_v20 }
 0x368   :  { %v3102_v22 = vpop.f32.mrf.mxu0  ;;  %v3159_v43 = vpop.f32.mrf.mxu1 }
 0x369   :  { %7032 = vst.msk [vmem:[#allocation6 + $0x28] sm:$0xfe] %vm7031_vm11, %v7029_v39  ;;  %v3103_v46 = vadd.f32 %v3102_v22, %v3030_v49  ;;  %v3042_v4 = vadd.f32 %v3041_v27, %v2977_v10  ;;  %v13581_v49 = vld [vmem:[#allocation8_spill] sm:$0xff]  ;;  %v2986_v27 = vpop.f32.mrf.mxu2 }
 0x36a   :  { %7034 = vst.msk [vmem:[#allocation6 + $0x38] sm:$0x1] %vm7033_vm12, %v7029_v39  ;;  %v2610_v6 = vadd.f32 %v13581_v49, %v2530_v7 }
 0x36b   :  { %v3156_v15 = vadd.f32 %v3155_v50, %v3103_v46 }
 0x36d   :  { %v3183_v51 = vmax.f32 %v3156_v15, 0.0  ;;  %v2847_v15 = vadd.f32 %v10196_v52, %v2770_v60  ;;  %v13583_v52 = vld [vmem:[#allocation10_spill] sm:$0xff] }
 0x36e   :  { %v10284_v59 = vld [vmem:[#allocation4 + $0x10] sm:$0xff]  ;;  %v3284_v35 = vld [vmem:[#allocation4 + $0x18] sm:$0x3] }
 0x36f   :  { %v3247_v45 = vld [vmem:[#allocation4 + $0x18] sm:$0x3]  ;;  %3215 = vst.msk [vmem:[#allocation4 + $0x21] sm:$0xff] %vm3190_vm9, %v3183_v51  ;;  %v7042_v37 = vrot.slane %v3183_v51, 7  ;;  %v3288_v55 = vrot.slane %v10284_v59, 1  ;;  %v3289_v16 = vrot.slane %v3284_v35, 1 }
 0x370   :  { %v3296_v30 = vrot.slane %v3284_v35, 2  ;;  %v3106_v62 = vpop.f32.mrf.mxu0  ;;  %3285 = vst.msk [vmem:[#allocation5 + $0x28] sm:$0xff] %vm3190_vm9, %v10284_v59  ;;  %v3259_v9 = vrot.slane %v10284_v59, 2  ;;  %v3255_v17 = vrot.slane %v3247_v45, 1  ;;  %v3260_v42 = vrot.slane %v3247_v45, 2  ;;  %v3163_v1 = vpop.f32.mrf.mxu1 }
 0x371   :  { %7044 = vst.msk [vmem:[#allocation6 + $0x48] sm:$0xfe] %vm7031_vm11, %v7042_v37  ;;  %v3107_v61 = vadd.f32 %v3106_v62, %v3036_v40  ;;  %v3290_v38 = vsel %vm1103_vm4, %v3288_v55, %v3289_v16  ;;  %v2709_v40 = vadd.f32 %v13582_v47, %v2610_v6  ;;  %v2535_v35 = vadd.f32 %v13583_v52, %v2446_v8  ;;  %v2991_v49 = vpop.f32.mrf.mxu2 }
 0x372   :  { %7045 = vst.msk [vmem:[#allocation6 + $0x58] sm:$0x1] %vm7033_vm12, %v7042_v37  ;;  %3291 = vrot.lane.b32.xlu1 %v3290_v38, %s7900_s2  ;;  %v10300_v23 = vsel %vm1112_vm5, %v3259_v9, %v3260_v42  ;;  %v3297_v50 = vsel %vm1112_vm5, %v3259_v9, %v3296_v30  ;;  %v3256_v29 = vsel %vm1103_vm4, %v3288_v55, %v3255_v17  ;;  %v13585_v38 = vld [vmem:[#allocation14_spill] sm:$0xff] }
 0x373   :  { %v3160_v48 = vadd.f32 %v3159_v43, %v3107_v61  ;;  %3299 = vst.msk [vmem:[#allocation5 + $0x30] sm:$0xff] %vm3190_vm9, %v3297_v50  ;;  %v2924_v16 = vadd.f32 %v10172_v19, %v2847_v15  ;;  %v3048_v30 = vadd.f32 %v3047_v58, %v2982_v0  ;;  %v2616_v61 = vadd.f32 %v13584_v12, %v2535_v35 }
 0x374   :  { %3258 = vst.msk [vmem:[#allocation5 + $0x10] sm:$0xff] %vm3190_vm9, %v3256_v29 }
 0x375   :  { %v3184_v25 = vmax.f32 %v3160_v48, 0.0  ;;  %v3053_v48 = vpop.f32.mrf.mxu3  ;;  %v2987_v11 = vadd.f32 %v2986_v27, %v2924_v16 }
 0x376   :  { %v10310_v57 = vld [vmem:[#allocation4 + $0x20] sm:$0xff]  ;;  %v3338_v3 = vld [vmem:[#allocation4 + $0x28] sm:$0x3] }
 0x377   :  { %v10312_v34 = vld [vmem:[#allocation4 + $0x28] sm:$0x3]  ;;  %3217 = vst.msk [vmem:[#allocation4 + $0x31] sm:$0xff] %vm3190_vm9, %v3184_v25  ;;  %v7053_v26 = vrot.slane %v3184_v25, 7  ;;  %v3342_v63 = vrot.slane %v10310_v57, 1  ;;  %v3343_v39 = vrot.slane %v3338_v3, 1 }
 0x378   :  { %v3110_v44 = vpop.f32.mrf.mxu0  ;;  %v3350_v22 = vrot.slane %v3338_v3, 2  ;;  %3339 = vst.msk [vmem:[#allocation5 + $0x50] sm:$0xff] %vm3190_vm9, %v10310_v57  ;;  %v10320_v18 = vrot.slane %v10310_v57, 2  ;;  %v3309_v43 = vrot.slane %v10312_v34, 1  ;;  %v3267_v28 = vld [vmem:[#allocation4 + $0x28] sm:$0x3]  ;;  %v3167_v45 = vpop.f32.mrf.mxu1 }
 0x379   :  { %7055 = vst.msk [vmem:[#allocation6 + $0x68] sm:$0xfe] %vm7031_vm11, %v7053_v26  ;;  %v3111_v46 = vadd.f32 %v3110_v44, %v3042_v4  ;;  %v3344_v5 = vsel %vm1103_vm4, %v3342_v63, %v3343_v39  ;;  %v3272_v56 = vrot.slane %v3267_v28, 1  ;;  %v3279_v36 = vrot.slane %v3267_v28, 2 }
 0x37a   :  { %7056 = vst.msk [vmem:[#allocation6 + $0x78] sm:$0x1] %vm7033_vm12, %v7053_v26  ;;  %3345 = vrot.lane.b32.xlu2 %v3344_v5, %s7900_s2  ;;  %v3310_v33 = vsel %vm1103_vm4, %v3342_v63, %v3309_v43  ;;  %v3351_v37 = vsel %vm1112_vm5, %v10320_v18, %v3350_v22  ;;  %v3054_v43 = vadd.f32 %v3053_v48, %v2987_v11 }
 0x37b   :  { %v3164_v51 = vadd.f32 %v3163_v1, %v3111_v46  ;;  %v10330_v21 = vsel %vm1103_vm4, %v3342_v63, %v3272_v56  ;;  %v3280_v20 = vsel %vm1112_vm5, %v10320_v18, %v3279_v36  ;;  %3268 = vst.msk [vmem:[#allocation5 + $0x18] sm:$0xff] %vm3190_vm9, %v10310_v57  ;;  %v2774_v1 = vadd.f32 %v13585_v38, %v2709_v40 }
 0x37c   :  { %3282 = vst.msk [vmem:[#allocation5 + $0x20] sm:$0xff] %vm3190_vm9, %v3280_v20 }
 0x37d   :  { %v3185_v55 = vmax.f32 %v3164_v51, 0.0  ;;  %3312 = vst.msk [vmem:[#allocation5 + $0x38] sm:$0xff] %vm3190_vm9, %v3310_v33  ;;  %v2855_v60 = vadd.f32 %v10222_v41, %v2774_v1  ;;  %v13586_v41 = vld [vmem:[#allocation15_spill] sm:$0xff] }
 0x37e   :  { %v10343_v13 = vld [vmem:[#allocation4 + $0x30] sm:$0xff]  ;;  %v3392_v62 = vld [vmem:[#allocation4 + $0x38] sm:$0x3]  ;;  %3353 = vst.msk [vmem:[#allocation5 + $0x58] sm:$0xff] %vm3190_vm9, %v3351_v37  ;;  %v2713_v39 = vadd.f32 %v13586_v41, %v2616_v61 }
 0x37f   :  { %v10345_v9 = vld [vmem:[#allocation4 + $0x38] sm:$0x3]  ;;  %3219 = vst.msk [vmem:[#allocation4 + $0x41] sm:$0xff] %vm3190_vm9, %v3185_v55  ;;  %v7064_v17 = vrot.slane %v3185_v55, 7  ;;  %v3396_v42 = vrot.slane %v10343_v13, 1  ;;  %v3397_v24 = vrot.slane %v3392_v62, 1  ;;  %v2928_v44 = vadd.f32 %v10198_v32, %v2855_v60 }
 0x380   :  { %v3404_v31 = vrot.slane %v3392_v62, 2  ;;  %v3114_v19 = vpop.f32.mrf.mxu0  ;;  %3393 = vst.msk [vmem:[#allocation5 + $0x78] sm:$0xff] %vm3190_vm9, %v10343_v13  ;;  %v10355_v50 = vrot.slane %v10343_v13, 2  ;;  %v3363_v29 = vrot.slane %v10345_v9, 1  ;;  %v3321_v10 = vld [vmem:[#allocation4 + $0x38] sm:$0x3]  ;;  %v3171_v22 = vpop.f32.mrf.mxu1  ;;  %v2778_v33 = vadd.f32 %v10186_v53, %v2713_v39 }
 0x381   :  { %7066 = vst.msk [vmem:[#allocation6 + $0x88] sm:$0xfe] %vm7031_vm11, %v7064_v17  ;;  %v3115_v7 = vadd.f32 %v3114_v19, %v3048_v30  ;;  %v3398_v25 = vsel %vm1103_vm4, %v3396_v42, %v3397_v24  ;;  %v3326_v8 = vrot.slane %v3321_v10, 1  ;;  %v3333_v2 = vrot.slane %v3321_v10, 2 }
 0x382   :  { %7067 = vst.msk [vmem:[#allocation6 + $0x98] sm:$0x1] %vm7033_vm12, %v7064_v17  ;;  %3399 = vrot.lane.b32.xlu0 %v3398_v25, %s7900_s2  ;;  %v3405_v3 = vsel %vm1112_vm5, %v10355_v50, %v3404_v31  ;;  %v3364_v63 = vsel %vm1103_vm4, %v3396_v42, %v3363_v29  ;;  %v2863_v53 = vadd.f32 %v10250_v54, %v2778_v33  ;;  %v2996_v31 = vpop.f32.mrf.mxu2 }
 0x383   :  { %v3168_v58 = vadd.f32 %v3167_v45, %v3115_v7  ;;  %v10366_v26 = vsel %vm1103_vm4, %v3396_v42, %v3326_v8  ;;  %v3334_v4 = vsel %vm1112_vm5, %v10355_v50, %v3333_v2  ;;  %3322 = vst.msk [vmem:[#allocation5 + $0x40] sm:$0xff] %vm3190_vm9, %v10343_v13  ;;  %v3059_v45 = vpop.f32.mrf.mxu3  ;;  %v2992_v37 = vadd.f32 %v2991_v49, %v2928_v44 }
 0x384   :  { %3336 = vst.msk [vmem:[#allocation5 + $0x48] sm:$0xff] %vm3190_vm9, %v3334_v4  ;;  %v2932_v62 = vadd.f32 %v10224_v14, %v2863_v53 }
 0x385   :  { %v3186_v6 = vmax.f32 %v3168_v58, 0.0  ;;  %3407 = vst.msk [vmem:[#allocation5 + $0x80] sm:$0xff] %vm3190_vm9, %v3405_v3  ;;  %v3060_v61 = vadd.f32 %v3059_v45, %v2992_v37 }
 0x386   :  { %v10377_v28 = vld [vmem:[#allocation4 + $0x40] sm:$0xff]  ;;  %v3446_v46 = vld [vmem:[#allocation4 + $0x48] sm:$0x3]  ;;  %3366 = vst.msk [vmem:[#allocation5 + $0x60] sm:$0xff] %vm3190_vm9, %v3364_v63  ;;  %v2997_v11 = vadd.f32 %v2996_v31, %v2932_v62 }
 0x387   :  { %v10379_v5 = vld [vmem:[#allocation4 + $0x48] sm:$0x3]  ;;  %3221 = vst.msk [vmem:[#allocation4 + $0x51] sm:$0xff] %vm3190_vm9, %v3186_v6  ;;  %v7075_v56 = vrot.slane %v3186_v6, 7  ;;  %v10384_v36 = vrot.slane %v10377_v28, 1  ;;  %v3451_v0 = vrot.slane %v3446_v46, 1 }
 0x388   :  { %v3458_v15 = vrot.slane %v3446_v46, 2  ;;  %v3118_v32 = vpop.f32.mrf.mxu0  ;;  %3447 = vst.msk [vmem:[#allocation5 + $0xa0] sm:$0xff] %vm3190_vm9, %v10377_v28  ;;  %v10390_v27 = vrot.slane %v10377_v28, 2  ;;  %v3417_v51 = vrot.slane %v10379_v5, 1  ;;  %v10393_v20 = vld [vmem:[#allocation4 + $0x48] sm:$0x3]  ;;  %v3175_v19 = vpop.f32.mrf.mxu1 }
 0x389   :  { %7077 = vst.msk [vmem:[#allocation6 + $0xa8] sm:$0xfe] %vm7031_vm11, %v7075_v56  ;;  %v3119_v47 = vadd.f32 %v3118_v32, %v3054_v43  ;;  %v3452_v40 = vsel %vm1103_vm4, %v10384_v36, %v3451_v0  ;;  %v3387_v52 = vrot.slane %v10393_v20, 2  ;;  %v3717_v32 = vld [vmem:[%s13459_s5 + $0x78] sm:$0xff] }
 0x38a   :  { %7078 = vst.msk [vmem:[#allocation6 + $0xb8] sm:$0x1] %vm7033_vm12, %v7075_v56  ;;  %3453 = vrot.lane.b32.xlu1 %v3452_v40, %s7900_s2  ;;  %v3459_v35 = vsel %vm1112_vm5, %v10390_v27, %v3458_v15  ;;  %v3418_v30 = vsel %vm1103_vm4, %v10384_v36, %v3417_v51 }
 0x38b   :  { %v3172_v55 = vadd.f32 %v3171_v22, %v3119_v47  ;;  %v3388_v16 = vsel %vm1112_vm5, %v10390_v27, %v3387_v52  ;;  %3376 = vst.msk [vmem:[#allocation5 + $0x68] sm:$0xff] %vm3190_vm9, %v10377_v28  ;;  %v3065_v3 = vpop.f32.mrf.mxu3  ;;  %v10467_v52 = vand.u32 4294901760, %v3717_v32 }
 0x38c   :  { %3390 = vst.msk [vmem:[#allocation5 + $0x70] sm:$0xff] %vm3190_vm9, %v3388_v16  ;;  %v3066_v39 = vadd.f32 %v3065_v3, %v2997_v11 }
 0x38d   :  { %v3187_v54 = vmax.f32 %v3172_v55, 0.0  ;;  %3461 = vst.msk [vmem:[#allocation5 + $0xa8] sm:$0xff] %vm3190_vm9, %v3459_v35  ;;  %v3716_v35 = vld [vmem:[%s13459_s5 + $0x70] sm:$0xff]  ;;  %3803 = vmatpush.msra.mxu2 %v10467_v52  ;;  %v10483_v16 = vsub.f32 %v3717_v32, %v10467_v52  ;;  %4118 = vmatpush.msra.mxu1 %v10467_v52 }
 0x38e   :  { %v10413_v17 = vld [vmem:[#allocation4 + $0x50] sm:$0xff]  ;;  %v3500_v42 = vld [vmem:[#allocation4 + $0x58] sm:$0x3]  ;;  %3420 = vst.msk [vmem:[#allocation5 + $0x88] sm:$0xff] %vm3190_vm9, %v3418_v30  ;;  %v10485_v30 = vand.u32 4294901760, %v3716_v35 }
 0x38f   :  { %v10415_v24 = vld [vmem:[#allocation4 + $0x58] sm:$0x3]  ;;  %3223 = vst.msk [vmem:[#allocation4 + $0x61] sm:$0xff] %vm3190_vm9, %v3187_v54  ;;  %v7086_v12 = vrot.slane %v3187_v54, 7  ;;  %v10420_v38 = vrot.slane %v10413_v17, 1  ;;  %v3505_v1 = vrot.slane %v3500_v42, 1  ;;  %4030 = vmatpush.msra.mxu0 %v10483_v16 }
 0x390   :  { %v3122_v29 = vpop.f32.mrf.mxu0  ;;  %v3512_v10 = vrot.slane %v3500_v42, 2  ;;  %3501 = vst.msk [vmem:[#allocation5 + $0xc8] sm:$0xff] %vm3190_vm9, %v10413_v17  ;;  %v10425_v14 = vrot.slane %v10413_v17, 2  ;;  %v3471_v48 = vrot.slane %v10415_v24, 1  ;;  %v10428_v7 = vld [vmem:[#allocation4 + $0x58] sm:$0x3]  ;;  %v3179_v15 = vpop.f32.mrf.mxu1  ;;  %3805 = vmatpush.msra.mxu2 %v10485_v30  ;;  %4120 = vmatpush.msra.mxu1 %v10485_v30 }
 0x391   :  { %7088 = vst.msk [vmem:[#allocation6 + $0xc8] sm:$0xfe] %vm7031_vm11, %v7086_v12  ;;  %v3123_v25 = vadd.f32 %v3122_v29, %v3060_v61  ;;  %v3506_v8 = vsel %vm1103_vm4, %v10420_v38, %v3505_v1  ;;  %v3441_v2 = vrot.slane %v10428_v7, 2  ;;  %v13494_v31 = vand.u32 4294901760, %v10483_v16  ;;  %v3714_v29 = vld [vmem:[%s13459_s5 + $0x60] sm:$0xff] }
 0x392   :  { %7089 = vst.msk [vmem:[#allocation6 + $0xd8] sm:$0x1] %vm7033_vm12, %v7086_v12  ;;  %3507 = vrot.lane.b32.xlu2 %v3506_v8, %s7900_s2  ;;  %v3472_v60 = vsel %vm1103_vm4, %v10420_v38, %v3471_v48  ;;  %v3513_v63 = vsel %vm1112_vm5, %v10425_v14, %v3512_v10  ;;  %v10503_v61 = vsub.f32 %v3716_v35, %v10485_v30  ;;  %v10526_v11 = vand.u32 4294901760, %v3714_v29 }
 0x393   :  { %v3176_v58 = vadd.f32 %v3175_v19, %v3123_v25  ;;  %v3442_v4 = vsel %vm1112_vm5, %v10425_v14, %v3441_v2  ;;  %3430 = vst.msk [vmem:[#allocation5 + $0x90] sm:$0xff] %vm3190_vm9, %v10413_v17  ;;  %v3902_v8 = vsub.f32 %v10483_v16, %v13494_v31 }
 0x394   :  { %3444 = vst.msk [vmem:[#allocation5 + $0x98] sm:$0xff] %vm3190_vm9, %v3442_v4  ;;  %4033 = vmatpush.msra.mxu0 %v10503_v61  ;;  %v13493_v2 = vand.u32 4294901760, %v10503_v61 }
 0x395   :  { %v3188_v41 = vmax.f32 %v3176_v58, 0.0  ;;  %3474 = vst.msk [vmem:[#allocation5 + $0xb0] sm:$0xff] %vm3190_vm9, %v3472_v60  ;;  %v3713_v60 = vld [vmem:[%s13459_s5 + $0x58] sm:$0xff] }
 0x396   :  { %v10446_v49 = vld [vmem:[#allocation4 + $0x60] sm:$0xff]  ;;  %v3554_v6 = vld [vmem:[#allocation4 + $0x68] sm:$0x3]  ;;  %3515 = vst.msk [vmem:[#allocation5 + $0xd0] sm:$0xff] %vm3190_vm9, %v3513_v63  ;;  %v10538_v63 = vand.u32 4294901760, %v3713_v60 }
 0x397   :  { %v10448_v44 = vld [vmem:[#allocation4 + $0x68] sm:$0x3]  ;;  %3225 = vst.msk [vmem:[#allocation4 + $0x71] sm:$0xff] %vm3190_vm9, %v3188_v41  ;;  %v7097_v22 = vrot.slane %v3188_v41, 7  ;;  %v10453_v43 = vrot.slane %v10446_v49, 1  ;;  %v3559_v46 = vrot.slane %v3554_v6, 1 }
 0x398   :  { %v3566_v56 = vrot.slane %v3554_v6, 2  ;;  %v3126_v0 = vpop.f32.mrf.mxu0  ;;  %3555 = vst.msk [vmem:[#allocation5 + $0xf0] sm:$0xff] %vm3190_vm9, %v10446_v49  ;;  %v10458_v33 = vrot.slane %v10446_v49, 2  ;;  %v3525_v51 = vrot.slane %v10448_v44, 1  ;;  %v10469_v53 = vld [vmem:[#allocation4 + $0x68] sm:$0x3]  ;;  %v10548_v6 = vsub.f32 %v3714_v29, %v10526_v11 }
 0x399   :  { %7099 = vst.msk [vmem:[#allocation6 + $0xe8] sm:$0xfe] %vm7031_vm11, %v7097_v22  ;;  %v3127_v47 = vadd.f32 %v3126_v0, %v3066_v39  ;;  %v3560_v40 = vsel %vm1103_vm4, %v10453_v43, %v3559_v46  ;;  %v3495_v45 = vrot.slane %v10469_v53, 2  ;;  %v3903_v41 = vand.u32 4294901760, %v3902_v8 }
 0x39a   :  { %7100 = vst.msk [vmem:[#allocation6 + $0xf8] sm:$0x1] %vm7033_vm12, %v7097_v22  ;;  %3561 = vrot.lane.b32.xlu0 %v3560_v40, %s7900_s2  ;;  %3249 = vrot.lane.b32.xlu2 %v10284_v59, %s7900_s2  ;;  %v3567_v37 = vsel %vm1112_vm5, %v10458_v33, %v3566_v56  ;;  %v3715_v59 = vld [vmem:[%s13459_s5 + $0x68] sm:$0xff]  ;;  %v3526_v62 = vsel %vm1103_vm4, %v10453_v43, %v3525_v51  ;;  %v3712_v22 = vld [vmem:[%s13459_s5 + $0x50] sm:$0xff] }
 0x39b   :  { %v3180_v55 = vadd.f32 %v3179_v15, %v3127_v47  ;;  %3484 = vst.msk [vmem:[#allocation5 + $0xb8] sm:$0xff] %vm3190_vm9, %v10446_v49  ;;  %v3496_v54 = vsel %vm1112_vm5, %v10458_v33, %v3495_v45  ;;  %v10500_v12 = vand.u32 4294901760, %v3715_v59  ;;  %v3908_v39 = vsub.f32 %v10503_v61, %v13493_v2  ;;  %v3711_v15 = vld [vmem:[%s13459_s5 + $0x48] sm:$0xff]  ;;  %3904 = vmatpush.msra.mxu3 %v3903_v41 }
 0x39c   :  { %3569 = vst.msk [vmem:[#allocation5 + $0xf8] sm:$0xff] %vm3190_vm9, %v3567_v37  ;;  %v10560_v56 = vand.u32 4294901760, %v3712_v22  ;;  %v10563_v0 = vsub.f32 %v3713_v60, %v10538_v63  ;;  %v13490_v47 = vand.u32 4294901760, %v10548_v6  ;;  %v10581_v45 = vand.u32 4294901760, %v3711_v15 }
 0x39d   :  { %v3189_v42 = vmax.f32 %v3180_v55, 0.0  ;;  %3498 = vst.msk [vmem:[#allocation5 + $0xc0] sm:$0xff] %vm3190_vm9, %v3496_v54  ;;  %3807 = vmatpush.msra.mxu2 %v10500_v12  ;;  %4122 = vmatpush.msra.mxu1 %v10500_v12  ;;  %v10536_v4 = vsub.f32 %v3715_v59, %v10500_v12  ;;  %v3909_v51 = vand.u32 4294901760, %v3908_v39 }
 0x39e   :  { %v10507_v1 = vld [vmem:[#allocation4 + $0x70] sm:$0xff]  ;;  %v3608_v19 = vld [vmem:[#allocation4 + $0x78] sm:$0x3]  ;;  %3528 = vst.msk [vmem:[#allocation5 + $0xd8] sm:$0xff] %vm3190_vm9, %v3526_v62  ;;  %v13489_v35 = vand.u32 4294901760, %v10563_v0  ;;  %v10584_v37 = vsub.f32 %v3712_v22, %v10560_v56  ;;  %v3920_v59 = vsub.f32 %v10548_v6, %v13490_v47  ;;  %v10620_v22 = vsub.f32 %v3711_v15, %v10581_v45 }
 0x39f   :  { %3227 = vst.msk [vmem:[#allocation4 + $0x81] sm:$0xff] %vm3190_vm9, %v3189_v42  ;;  %v7108_v10 = vrot.slane %v3189_v42, 7  ;;  %v10516_v48 = vrot.slane %v10507_v1, 1  ;;  %v3613_v25 = vrot.slane %v3608_v19, 1  ;;  %v3620_v58 = vrot.slane %v3608_v19, 2  ;;  %3809 = vmatpush.msra.mxu2 %v10526_v11  ;;  %4036 = vmatpush.msra.mxu0 %v10536_v4  ;;  %v3709_v15 = vld [vmem:[%s13459_s5 + $0x38] sm:$0xff] }
 0x3a0   :  { %3609 = vst.msk [vmem:[#allocation5 + $0x118] sm:$0xff] %vm3190_vm9, %v10507_v1  ;;  %v10554_v46 = vrot.slane %v10507_v1, 2  ;;  %v10568_v32 = vld [vmem:[#allocation4 + $0x78] sm:$0x3]  ;;  %4124 = vmatpush.msra.mxu1 %v10526_v11  ;;  %3910 = vmatpush.msra.mxu3 %v3909_v51  ;;  %v3926_v8 = vsub.f32 %v10563_v0, %v13489_v35  ;;  %v13488_v60 = vand.u32 4294901760, %v10584_v37  ;;  %v3921_v41 = vand.u32 4294901760, %v3920_v59 }
 0x3a1   :  { %7110 = vst.msk [vmem:[#allocation6 + $0x108] sm:$0xfe] %vm7031_vm11, %v7108_v10  ;;  %v3614_v3 = vsel %vm1103_vm4, %v10516_v48, %v3613_v25  ;;  %3811 = vmatpush.msra.mxu2 %v10538_v63  ;;  %4039 = vmatpush.msra.mxu0 %v10548_v6  ;;  %v3549_v54 = vrot.slane %v10568_v32, 2 }
 0x3a2   :  { %7111 = vst.msk [vmem:[#allocation6 + $0x118] sm:$0x1] %vm7033_vm12, %v7108_v10  ;;  %3303 = vrot.lane.b32.xlu0 %v10310_v57, %s7900_s2  ;;  %3615 = vrot.lane.b32.xlu1 %v3614_v3, %s7900_s2  ;;  %v13491_v57 = vand.u32 4294901760, %v10536_v4  ;;  %v3621_v62 = vsel %vm1112_vm5, %v10554_v46, %v3620_v58  ;;  %v3710_v3 = vld [vmem:[%s13459_s5 + $0x40] sm:$0xff]  ;;  %v3932_v59 = vsub.f32 %v10584_v37, %v13488_v60  ;;  %v3708_v60 = vld [vmem:[%s13459_s5 + $0x30] sm:$0xff] }
 0x3a3   :  { %3411 = vrot.lane.b32.xlu2 %v10377_v28, %s7900_s2  ;;  %v10571_v28 = vld [vmem:[#allocation4 + $0x78] sm:$0x3]  ;;  %3538 = vst.msk [vmem:[#allocation5 + $0xe0] sm:$0xff] %vm3190_vm9, %v10507_v1  ;;  %3813 = vmatpush.msra.mxu2 %v10560_v56  ;;  %v10617_v39 = vand.u32 4294901760, %v3710_v3 }
 0x3a4   :  { %v3914_v40 = vsub.f32 %v10536_v4, %v13491_v57  ;;  %v3579_v19 = vrot.slane %v10571_v28, 1  ;;  %4126 = vmatpush.msra.mxu1 %v10538_v63  ;;  %4042 = vmatpush.msra.mxu0 %v10563_v0  ;;  %3623 = vst.msk [vmem:[#allocation5 + $0x120] sm:$0xff] %vm3190_vm9, %v3621_v62  ;;  %v3550_v62 = vsel %vm1112_vm5, %v10554_v46, %v3549_v54  ;;  %v3314_v54 = vrot.slane %v10312_v34, 2  ;;  %v3237_v57 = vpop.permute.xlu0 %3236 }
 0x3a5   :  { %3815 = vmatpush.msra.mxu2 %v10581_v45  ;;  %3552 = vst.msk [vmem:[#allocation5 + $0xe8] sm:$0xff] %vm3190_vm9, %v3550_v62 }
 0x3a6   :  { %v10587_v55 = vld [vmem:[#allocation4 + $0x80] sm:$0xff]  ;;  %v10596_v42 = vld [vmem:[#allocation4 + $0x88] sm:$0x3]  ;;  %v3915_v25 = vand.u32 4294901760, %v3914_v40  ;;  %4128 = vmatpush.msra.mxu1 %v10560_v56  ;;  %v3927_v40 = vand.u32 4294901760, %v3926_v8  ;;  %v10642_v8 = vsub.f32 %v3710_v3, %v10617_v39  ;;  %4045 = vmatpush.msra.mxu0 %v10584_v37  ;;  %3240 = vst.msk [vmem:[#allocation5] sm:$0xff] %vm3239_vm13, %v3237_v57 }
 0x3a7   :  { %v10601_v29 = vld [vmem:[#allocation4 + $0x88] sm:$0x3]  ;;  %3592 = vst.msk [vmem:[#allocation5 + $0x108] sm:$0xff] %vm3190_vm9, %v10587_v55  ;;  %v13500_v10 = vrot.slane %v10587_v55, 1  ;;  %v13503_v58 = vrot.slane %v10587_v55, 2  ;;  %v3633_v51 = vrot.slane %v10596_v42, 1  ;;  %3817 = vmatpush.msra.mxu2 %v10617_v39 }
 0x3a8   :  { %3916 = vmatpush.msra.mxu3 %v3915_v25  ;;  %v3603_v35 = vrot.slane %v10601_v29, 2  ;;  %v10651_v25 = vand.u32 4294901760, %v3708_v60  ;;  %v3707_v3 = vld [vmem:[%s13459_s5 + $0x28] sm:$0xff]  ;;  %v13498_v47 = vand.u32 4294901760, %v10642_v8  ;;  %4130 = vmatpush.msra.mxu1 %v10581_v45 }
 0x3a9   :  { %4048 = vmatpush.msra.mxu0 %v10620_v22  ;;  %v10684_v31 = vand.u32 4294901760, %v3707_v3 }
 0x3aa   :  { %3465 = vrot.lane.b32.xlu0 %v10413_v17, %s7900_s2  ;;  %3357 = vrot.lane.b32.xlu1 %v10343_v13, %s7900_s2  ;;  %v13492_v13 = vand.u32 4294901760, %v10620_v22  ;;  %v10639_v17 = vand.u32 4294901760, %v3709_v15 }
 0x3ab   :  { %3573 = vrot.lane.b32.xlu2 %v10507_v1, %s7900_s2  ;;  %v3933_v1 = vand.u32 4294901760, %v3932_v59  ;;  %3922 = vmatpush.msra.mxu3 %v3921_v41  ;;  %v3604_v59 = vsel %vm1112_vm5, %v13503_v58, %v3603_v35  ;;  %v10670_v41 = vsub.f32 %v3708_v60, %v10651_v25  ;;  %v3944_v60 = vsub.f32 %v10642_v8, %v13498_v47 }
 0x3ac   :  { %v3938_v62 = vsub.f32 %v10620_v22, %v13492_v13  ;;  %v10662_v34 = vsub.f32 %v3709_v15, %v10639_v17  ;;  %3819 = vmatpush.msra.mxu2 %v10639_v17  ;;  %3606 = vst.msk [vmem:[#allocation5 + $0x110] sm:$0xff] %vm3190_vm9, %v3604_v59  ;;  %v3634_v15 = vsel %vm1103_vm4, %v13500_v10, %v3633_v51  ;;  %v3638_v10 = vrot.slane %v10596_v42, 2 }
 0x3ad   :  { %v3580_v13 = vsel %vm1103_vm4, %v10516_v48, %v3579_v19  ;;  %3928 = vmatpush.msra.mxu3 %v3927_v40  ;;  %4132 = vmatpush.msra.mxu1 %v10617_v39  ;;  %v13495_v51 = vand.u32 4294901760, %v10670_v41  ;;  %3636 = vst.msk [vmem:[#allocation5 + $0x128] sm:$0xff] %vm3190_vm9, %v3634_v15  ;;  %v3945_v57 = vand.u32 4294901760, %v3944_v60  ;;  %v3315_v40 = vsel %vm1112_vm5, %v10320_v18, %v3314_v54  ;;  %v3705_v60 = vld [vmem:[%s13459_s5 + $0x18] sm:$0xff] }
 0x3ae   :  { %v3939_v35 = vand.u32 4294901760, %v3938_v62  ;;  %v13496_v2 = vand.u32 4294901760, %v10662_v34  ;;  %3821 = vmatpush.msra.mxu2 %v10651_v25  ;;  %4051 = vmatpush.msra.mxu0 %v10642_v8  ;;  %3582 = vst.msk [vmem:[#allocation5 + $0x100] sm:$0xff] %vm3190_vm9, %v3580_v13  ;;  %v3706_v13 = vld [vmem:[%s13459_s5 + $0x20] sm:$0xff]  ;;  %v10710_v59 = vsub.f32 %v3707_v3, %v10684_v31  ;;  %v3476_v54 = vrot.slane %v10415_v24, 2  ;;  %v3703_v3 = vld [vmem:[%s13459_s5 + $0x8] sm:$0xff] }
 0x3af   :  { %3934 = vmatpush.msra.mxu3 %v3933_v1  ;;  %4134 = vmatpush.msra.mxu1 %v10639_v17  ;;  %v3956_v1 = vsub.f32 %v10670_v41, %v13495_v51  ;;  %v10714_v18 = vand.u32 4294901760, %v3706_v13  ;;  %v10730_v24 = vand.u32 4294901760, %v3705_v60 }
 0x3b0   :  { %v3950_v19 = vsub.f32 %v10662_v34, %v13496_v2  ;;  %3823 = vmatpush.msra.mxu2 %v10684_v31  ;;  %4054 = vmatpush.msra.mxu0 %v10662_v34 }
 0x3b1   :  { %3940 = vmatpush.msra.mxu3 %v3939_v35  ;;  %v3957_v15 = vand.u32 4294901760, %v3956_v1  ;;  %v13497_v35 = vand.u32 4294901760, %v10710_v59  ;;  %4136 = vmatpush.msra.mxu1 %v10651_v25 }
 0x3b2   :  { %3627 = vrot.lane.b32.xlu0 %v10587_v55, %s7900_s2  ;;  %3519 = vrot.lane.b32.xlu1 %v10446_v49, %s7900_s2  ;;  %v3951_v62 = vand.u32 4294901760, %v3950_v19  ;;  %v3368_v49 = vrot.slane %v10345_v9, 2  ;;  %v3704_v9 = vld [vmem:[%s13459_s5 + $0x10] sm:$0xff] }
 0x3b3   :  { %3316 = vrot.lane.b32.xlu2 %v3315_v40, %s7900_s2  ;;  %3946 = vmatpush.msra.mxu3 %v3945_v57  ;;  %v10733_v57 = vsub.f32 %v3706_v13, %v10714_v18  ;;  %v10735_v19 = vand.u32 4294901760, %v3704_v9  ;;  %v10737_v40 = vand.u32 4294901760, %v3703_v3  ;;  %v3962_v1 = vsub.f32 %v10710_v59, %v13497_v35 }
 0x3b4   :  { %3825 = vmatpush.msra.mxu2 %v10714_v18  ;;  %4057 = vmatpush.msra.mxu0 %v10670_v41  ;;  %v10747_v13 = vsub.f32 %v3705_v60, %v10730_v24  ;;  %v3477_v35 = vsel %vm1112_vm5, %v10425_v14, %v3476_v54  ;;  %v3702_v14 = vld [vmem:[%s13459_s5] sm:$0xff] }
 0x3b5   :  { %13587 = vst [vmem:[#allocation11_spill] sm:$0xff] %v10733_v57  ;;  %3952 = vmatpush.msra.mxu3 %v3951_v62  ;;  %4138 = vmatpush.msra.mxu1 %v10684_v31  ;;  %v13499_v51 = vand.u32 4294901760, %v10733_v57  ;;  %v10750_v2 = vsub.f32 %v3704_v9, %v10735_v19  ;;  %v3369_v62 = vsel %vm1112_vm5, %v10355_v50, %v3368_v49  ;;  %v3963_v47 = vand.u32 4294901760, %v3962_v1  ;;  %v3662_v54 = vld [vmem:[#allocation5] sm:$0xff] }
 0x3b6   :  { %3827 = vmatpush.msra.mxu2 %v10730_v24  ;;  %4060 = vmatpush.msra.mxu0 %v10710_v59  ;;  %v13501_v9 = vand.u32 4294901760, %v10747_v13  ;;  %v10770_v49 = vsub.f32 %v3703_v3, %v10737_v40  ;;  %v10776_v1 = vand.u32 4294901760, %v3662_v54 }
 0x3b7   :  { %3958 = vmatpush.msra.mxu3 %v3957_v15  ;;  %4140 = vmatpush.msra.mxu1 %v10714_v18  ;;  %v3968_v60 = vsub.f32 %v10733_v57, %v13499_v51  ;;  %v13502_v50 = vand.u32 4294901760, %v10750_v2  ;;  %v10774_v15 = vand.u32 4294901760, %v3702_v14 }
 0x3b8   :  { %3829 = vmatpush.msra.mxu2 %v10735_v19  ;;  %v3974_v51 = vsub.f32 %v10747_v13, %v13501_v9  ;;  %4063 = vmatpush.msra.mxu0 %v10733_v57 }
 0x3b9   :  { %3964 = vmatpush.msra.mxu3 %v3963_v47  ;;  %v3980_v3 = vsub.f32 %v10750_v2, %v13502_v50  ;;  %v3835_v47 = vsub.f32 %v3662_v54, %v10776_v1  ;;  %4142 = vmatpush.msra.mxu1 %v10730_v24 }
 0x3ba   :  { %3370 = vrot.lane.b32.xlu0 %v3369_v62, %s7900_s2  ;;  %3262 = vrot.lane.b32.xlu1 %v10300_v23, %s7900_s2  ;;  %v3422_v23 = vrot.slane %v10379_v5, 2  ;;  %v3969_v62 = vand.u32 4294901760, %v3968_v60  ;;  %v3530_v5 = vrot.slane %v10448_v44, 2  ;;  %v10790_v60 = vsub.f32 %v3702_v14, %v10774_v15 }
 0x3bb   :  { %3478 = vrot.lane.b32.xlu2 %v3477_v35, %s7900_s2  ;;  %v3985_v35 = vand.u32 4294901760, %v10770_v49  ;;  %v3975_v9 = vand.u32 4294901760, %v3974_v51  ;;  %3831 = vmatpush.msra.mxu2 %v10737_v40  ;;  %v3981_v58 = vand.u32 4294901760, %v3980_v3  ;;  %v3836_v57 = vand.u32 4294901760, %v3835_v47 }
 0x3bc   :  { %3970 = vmatpush.msra.mxu3 %v3969_v62  ;;  %v3991_v44 = vand.u32 4294901760, %v10790_v60  ;;  %4066 = vmatpush.msra.mxu0 %v10747_v13  ;;  %v3423_v14 = vsel %vm1112_vm5, %v10390_v27, %v3422_v23  ;;  %v3531_v42 = vsel %vm1112_vm5, %v10458_v33, %v3530_v5  ;;  %v13588_v27 = vrot.slane %v10587_v55, 2  ;;  %v3730_v5 = vld [vmem:[%s13459_s5 + $0xe0] sm:$0xff] }
 0x3bd   :  { %v3986_v50 = vsub.f32 %v10770_v49, %v3985_v35  ;;  %4144 = vmatpush.msra.mxu1 %v10735_v19  ;;  %3833 = vmatpush.msra.mxu2 %v10774_v15  ;;  %v3837_v54 = vsub.f32 %v3835_v47, %v3836_v57  ;;  %v3584_v23 = vrot.slane %v10571_v28, 2  ;;  %v3380_v3 = vrot.slane %v10393_v20, 1 }
 0x3be   :  { %3976 = vmatpush.msra.mxu3 %v3975_v9  ;;  %v3992_v62 = vsub.f32 %v10790_v60, %v3991_v44  ;;  %4069 = vmatpush.msra.mxu0 %v10750_v2  ;;  %v3639_v9 = vsel %vm1112_vm5, %v13588_v27, %v3638_v10  ;;  %v13589_v10 = vand.u32 4294901760, %v10483_v16  ;;  %v13590_v16 = vand.u32 4294901760, %v10503_v61 }
 0x3bf   :  { %v3987_v51 = vand.u32 4294901760, %v3986_v50  ;;  %4146 = vmatpush.msra.mxu1 %v10737_v40  ;;  %v3838_v33 = vand.u32 4294901760, %v3837_v54  ;;  %v3381_v20 = vsel %vm1103_vm4, %v10384_v36, %v3380_v3  ;;  %v3434_v28 = vrot.slane %v10428_v7, 1  ;;  %v3729_v54 = vld [vmem:[%s13459_s5 + $0xd8] sm:$0xff]  ;;  %v3728_v3 = vld [vmem:[%s13459_s5 + $0xd0] sm:$0xff] }
 0x3c0   :  { %3982 = vmatpush.msra.mxu3 %v3981_v58  ;;  %v3993_v50 = vand.u32 4294901760, %v3992_v62  ;;  %4072 = vmatpush.msra.mxu0 %v10770_v49  ;;  %v3585_v58 = vsel %vm1112_vm5, %v10554_v46, %v3584_v23  ;;  %v13592_v36 = vand.u32 4294901760, %v10548_v6 }
 0x3c1   :  { %4148 = vmatpush.msra.mxu1 %v10774_v15  ;;  %3839 = vmatmul.f32.vlgmr.msra.gmra.mxu2 %v3838_v33 }
 0x3c2   :  { %3532 = vrot.lane.b32.xlu0 %v3531_v42, %s7900_s2  ;;  %3424 = vrot.lane.b32.xlu1 %v3423_v14, %s7900_s2 }
 0x3c3   :  { %3640 = vrot.lane.b32.xlu2 %v3639_v9, %s7900_s2  ;;  %3988 = vmatpush.msra.mxu3 %v3987_v51  ;;  %v10958_v9 = vand.u32 4294901760, %v3729_v54 }
 0x3c4   :  { %4075 = vmatpush.msra.mxu0 %v10790_v60  ;;  %4152 = vmatmul.f32.vlgmr.msra.gmra.mxu1 %v3836_v57 }
 0x3c5   :  { %3994 = vmatpush.msra.mxu3 %v3993_v50  ;;  %4078 = vmatmul.f32.vlgmr.msra.gmra.mxu0 %v3835_v47 }
 0x3c6   :  { %3996 = vmatmul.f32.vlgmr.msra.gmra.mxu3 %v10776_v1  ;;  %4201 = vmatpush.msrb.mxu2 %v13589_v10 }
 0x3c7   :  { %4296 = vmatpush.msrb.mxu3 %v10467_v52  ;;  %v3542_v52 = vrot.slane %v10568_v32, 1 }
 0x3c8   :  { %4205 = vmatpush.msrb.mxu2 %v13590_v16 }
 0x3c9   :  { %4298 = vmatpush.msrb.mxu3 %v10485_v30  ;;  %v3435_v30 = vsel %vm1103_vm4, %v10420_v38, %v3434_v28  ;;  %v3543_v7 = vsel %vm1103_vm4, %v10516_v48, %v3542_v52  ;;  %v3596_v38 = vrot.slane %v10601_v29, 1  ;;  %v13594_v48 = vld [vmem:[#allocation13_spill] sm:$0xff]  ;;  %v13602_v29 = vld [vmem:[#allocation11_spill] sm:$0xff]  ;;  %v10971_v28 = vand.u32 4294901760, %v3728_v3 }
 0x3ca   :  { %3274 = vrot.lane.b32.xlu0 %v10330_v21, %s7900_s2  ;;  %3586 = vrot.lane.b32.xlu1 %v3585_v58, %s7900_s2  ;;  %v13591_v21 = vand.u32 4294901760, %v10536_v4  ;;  %v13593_v4 = vand.u32 4294901760, %v10563_v0  ;;  %v3241_v6 = vrot.slane %v13594_v48, 2  ;;  %v13597_v0 = vrot.slane %v10587_v55, 1 }
 0x3cb   :  { %3382 = vrot.lane.b32.xlu2 %v3381_v20, %s7900_s2  ;;  %4300 = vmatpush.msrb.mxu3 %v10500_v12  ;;  %v7897_v12 = vld [vmem:[#allocation4 + $0x8] sm:$0x3]  ;;  %v13601_v55 = vand.u32 4294901760, %v10710_v59  ;;  %v10974_v52 = vsub.f32 %v3729_v54, %v10958_v9 }
 0x3cc   :  { %4209 = vmatpush.msrb.mxu2 %v13591_v21  ;;  %v3242_v61 = vrot.slane %v7897_v12, 2 }
 0x3cd   :  { %4302 = vmatpush.msrb.mxu3 %v10526_v11  ;;  %v4483_v12 = vand.u32 4294901760, %v10974_v52 }
 0x3ce   :  { %4213 = vmatpush.msrb.mxu2 %v13592_v36  ;;  %v3243_v46 = vsel %vm1112_vm5, %v3241_v6, %v3242_v61  ;;  %v3727_v61 = vld [vmem:[%s13459_s5 + $0xc8] sm:$0xff] }
 0x3cf   :  { %4304 = vmatpush.msrb.mxu3 %v10538_v63  ;;  %v3488_v63 = vrot.slane %v10469_v53, 1  ;;  %3245 = vst.msk [vmem:[#allocation5 + $0x8] sm:$0xff] %vm3190_vm9, %v3243_v46  ;;  %v3597_v53 = vsel %vm1103_vm4, %v13597_v0, %v3596_v38  ;;  %v10995_v38 = vsub.f32 %v3728_v3, %v10971_v28  ;;  %v4484_v6 = vsub.f32 %v10974_v52, %v4483_v12  ;;  %v3722_v3 = vld [vmem:[%s13459_s5 + $0xa0] sm:$0xff] }
 0x3d0   :  { %4217 = vmatpush.msrb.mxu2 %v13593_v4  ;;  %v10992_v4 = vand.u32 4294901760, %v3727_v61 }
 0x3d1   :  { %4306 = vmatpush.msrb.mxu3 %v10560_v56  ;;  %v13596_v56 = vand.u32 4294901760, %v10620_v22  ;;  %v3489_v32 = vsel %vm1103_vm4, %v10453_v43, %v3488_v63  ;;  %v13600_v43 = vand.u32 4294901760, %v10670_v41  ;;  %v3732_v41 = vld [vmem:[%s13459_s5 + $0xf0] sm:$0xff]  ;;  %v3726_v63 = vld [vmem:[%s13459_s5 + $0xc0] sm:$0xff] }
 0x3d2   :  { %3436 = vrot.lane.b32.xlu0 %v3435_v30, %s7900_s2  ;;  %3328 = vrot.lane.b32.xlu1 %v10366_v26, %s7900_s2  ;;  %v13595_v26 = vand.u32 4294901760, %v10584_v37  ;;  %v13599_v37 = vand.u32 4294901760, %v10662_v34  ;;  %v11009_v0 = vsub.f32 %v3727_v61, %v10992_v4 }
 0x3d3   :  { %3544 = vrot.lane.b32.xlu2 %v3543_v7, %s7900_s2  ;;  %4308 = vmatpush.msrb.mxu3 %v10581_v45  ;;  %v13598_v45 = vand.u32 4294901760, %v10642_v8  ;;  %v3733_v8 = vld [vmem:[%s13459_s5 + $0xf8] sm:$0xff] }
 0x3d4   :  { %v3346_v11 = vpop.permute.xlu2 %3345  ;;  %4221 = vmatpush.msrb.mxu2 %v13595_v26  ;;  %v10904_v34 = vand.u32 4294901760, %v3733_v8  ;;  %v11004_v26 = vand.u32 4294901760, %v3726_v63 }
 0x3d5   :  { %3348 = vst.msk [vmem:[#allocation5 + $0x50] sm:$0xff] %vm3239_vm13, %v3346_v11  ;;  %4310 = vmatpush.msrb.mxu3 %v10617_v39  ;;  %v13603_v39 = vand.u32 4294901760, %v13602_v29  ;;  %v3724_v29 = vld [vmem:[%s13459_s5 + $0xb0] sm:$0xff] }
 0x3d6   :  { %4225 = vmatpush.msrb.mxu2 %v13596_v56  ;;  %4361 = vmatpush.msrb.mxu0 %v10904_v34  ;;  %v4489_v56 = vand.u32 4294901760, %v10995_v38 }
 0x3d7   :  { %4312 = vmatpush.msrb.mxu3 %v10639_v17  ;;  %v13605_v17 = vand.u32 4294901760, %v10750_v2 }
 0x3d8   :  { %4229 = vmatpush.msrb.mxu2 %v13598_v45 }
 0x3d9   :  { %4314 = vmatpush.msrb.mxu3 %v10651_v25 }
 0x3da   :  { %3598 = vrot.lane.b32.xlu0 %v3597_v53, %s7900_s2  ;;  %3490 = vrot.lane.b32.xlu1 %v3489_v32, %s7900_s2  ;;  %v3725_v53 = vld [vmem:[%s13459_s5 + $0xb8] sm:$0xff]  ;;  %v4485_v32 = vand.u32 4294901760, %v4484_v6 }
 0x3db   :  { %4316 = vmatpush.msrb.mxu3 %v10684_v31  ;;  %4233 = vmatpush.msrb.mxu2 %v13599_v37  ;;  %v13604_v31 = vand.u32 4294901760, %v10747_v13  ;;  %v3731_v13 = vld [vmem:[%s13459_s5 + $0xe8] sm:$0xff]  ;;  %v11015_v45 = vand.u32 4294901760, %v3725_v53  ;;  %v11018_v37 = vsub.f32 %v3726_v63, %v11004_v26 }
 0x3dc   :  { %v3672_v25 = vld [vmem:[#allocation5 + $0x50] sm:$0xff] }
 0x3dd   :  { %4318 = vmatpush.msrb.mxu3 %v10714_v18  ;;  %4237 = vmatpush.msrb.mxu2 %v13600_v43  ;;  %v10913_v18 = vsub.f32 %v3733_v8, %v10904_v34  ;;  %v4490_v43 = vsub.f32 %v10995_v38, %v4489_v56  ;;  %v11034_v8 = vsub.f32 %v3725_v53, %v11015_v45 }
 0x3df   :  { %4320 = vmatpush.msrb.mxu3 %v10730_v24  ;;  %4241 = vmatpush.msrb.mxu2 %v13601_v55  ;;  %v10915_v24 = vand.u32 4294901760, %v3732_v41  ;;  %v4495_v55 = vand.u32 4294901760, %v11009_v0 }
 0x3e1   :  { %4322 = vmatpush.msrb.mxu3 %v10735_v19  ;;  %4245 = vmatpush.msrb.mxu2 %v13603_v39  ;;  %v10921_v19 = vand.u32 4294901760, %v3672_v25  ;;  %v10929_v49 = vsub.f32 %v3732_v41, %v10915_v24 }
 0x3e2   :  { %4363 = vmatpush.msrb.mxu0 %v10915_v24 }
 0x3e3   :  { %4324 = vmatpush.msrb.mxu3 %v10737_v40  ;;  %4249 = vmatpush.msrb.mxu2 %v13604_v31  ;;  %v4459_v40 = vand.u32 4294901760, %v10913_v18  ;;  %v4465_v60 = vand.u32 4294901760, %v10929_v49  ;;  %v3851_v42 = vsub.f32 %v3672_v25, %v10921_v19  ;;  %v4501_v31 = vand.u32 4294901760, %v11018_v37 }
 0x3e4   :  { %v3292_v22 = vpop.permute.xlu1 %3291 }
 0x3e5   :  { %3294 = vst.msk [vmem:[#allocation5 + $0x28] sm:$0xff] %vm3239_vm13, %v3292_v22  ;;  %4326 = vmatpush.msrb.mxu3 %v10774_v15  ;;  %4253 = vmatpush.msrb.mxu2 %v13605_v17  ;;  %v4460_v47 = vsub.f32 %v10913_v18, %v4459_v40  ;;  %v4466_v27 = vsub.f32 %v10929_v49, %v4465_v60  ;;  %v3852_v36 = vand.u32 4294901760, %v3851_v42  ;;  %v11031_v17 = vand.u32 4294901760, %v3724_v29 }
 0x3e7   :  { %4257 = vmatpush.msrb.mxu2 %v3985_v35  ;;  %4676 = vmatpush.msra.mxu3 %v10904_v34  ;;  %v10934_v35 = vand.u32 4294901760, %v3731_v13  ;;  %v4461_v62 = vand.u32 4294901760, %v4460_v47  ;;  %v4467_v20 = vand.u32 4294901760, %v4466_v27  ;;  %v3853_v46 = vsub.f32 %v3851_v42, %v3852_v36  ;;  %v3723_v47 = vld [vmem:[%s13459_s5 + $0xa8] sm:$0xff] }
 0x3e8   :  { %v11055_v54 = vand.u32 4294901760, %v3723_v47 }
 0x3e9   :  { %4261 = vmatpush.msrb.mxu2 %v3991_v44  ;;  %4678 = vmatpush.msra.mxu3 %v10915_v24  ;;  %v10944_v44 = vand.u32 4294901760, %v3730_v5  ;;  %v10948_v51 = vsub.f32 %v3731_v13, %v10934_v35  ;;  %v3854_v41 = vand.u32 4294901760, %v3853_v46  ;;  %v4496_v13 = vsub.f32 %v11009_v0, %v4495_v55 }
 0x3ea   :  { %4365 = vmatpush.msrb.mxu0 %v10934_v35  ;;  %4462 = vmatpush.msrb.mxu1 %v4461_v62  ;;  %v11058_v62 = vsub.f32 %v3724_v29, %v11031_v17 }
 0x3eb   :  { %4588 = vmatpush.msra.mxu2 %v10913_v18  ;;  %4680 = vmatpush.msra.mxu3 %v10934_v35  ;;  %v10961_v33 = vsub.f32 %v3730_v5, %v10944_v44  ;;  %v4471_v23 = vand.u32 4294901760, %v10948_v51  ;;  %v4507_v5 = vand.u32 4294901760, %v11034_v8 }
 0x3ec   :  { %v3508_v59 = vpop.permute.xlu2 %3507  ;;  %v3667_v2 = vld [vmem:[#allocation5 + $0x28] sm:$0xff]  ;;  %4367 = vmatpush.msrb.mxu0 %v10944_v44  ;;  %4468 = vmatpush.msrb.mxu1 %v4467_v20  ;;  %v4513_v20 = vand.u32 4294901760, %v11058_v62 }
 0x3ed   :  { %3510 = vst.msk [vmem:[#allocation5 + $0xc8] sm:$0xff] %vm3239_vm13, %v3508_v59  ;;  %v10919_v57 = vand.u32 4294901760, %v3667_v2  ;;  %4591 = vmatpush.msra.mxu2 %v10929_v49  ;;  %4682 = vmatpush.msra.mxu3 %v10944_v44  ;;  %v4477_v16 = vand.u32 4294901760, %v10961_v33  ;;  %v4472_v30 = vsub.f32 %v10948_v51, %v4471_v23 }
 0x3ee   :  { %4369 = vmatpush.msrb.mxu0 %v10958_v9 }
 0x3ef   :  { %4000 = vmatmul.f32.gmra.mxu3 %v10919_v57  ;;  %v3843_v15 = vsub.f32 %v3667_v2, %v10919_v57  ;;  %4594 = vmatpush.msra.mxu2 %v10948_v51  ;;  %v4478_v7 = vsub.f32 %v10961_v33, %v4477_v16  ;;  %v4473_v11 = vand.u32 4294901760, %v4472_v30  ;;  %v4491_v2 = vand.u32 4294901760, %v4490_v43 }
 0x3f0   :  { %4684 = vmatpush.msra.mxu3 %v10958_v9  ;;  %4371 = vmatpush.msrb.mxu0 %v10971_v28 }
 0x3f1   :  { %4083 = vmatmul.f32.gmra.mxu0 %v3843_v15  ;;  %v3844_v14 = vand.u32 4294901760, %v3843_v15  ;;  %v4479_v48 = vand.u32 4294901760, %v4478_v7  ;;  %4474 = vmatpush.msrb.mxu1 %v4473_v11  ;;  %v3721_v7 = vld [vmem:[%s13459_s5 + $0x98] sm:$0xff]  ;;  %v4514_v11 = vsub.f32 %v11058_v62, %v4513_v20 }
 0x3f2   :  { %4686 = vmatpush.msra.mxu3 %v10971_v28  ;;  %4373 = vmatpush.msrb.mxu0 %v10992_v4 }
 0x3f3   :  { %4158 = vmatmul.f32.gmra.mxu1 %v3844_v14  ;;  %v3845_v50 = vsub.f32 %v3843_v15, %v3844_v14  ;;  %4597 = vmatpush.msra.mxu2 %v10961_v33  ;;  %v4502_v15 = vsub.f32 %v11018_v37, %v4501_v31 }
 0x3f4   :  { %v3400_v10 = vpop.permute.xlu0 %3399  ;;  %v3250_v58 = vpop.permute.xlu2 %3249  ;;  %4688 = vmatpush.msra.mxu3 %v10992_v4  ;;  %4480 = vmatpush.msrb.mxu1 %v4479_v48  ;;  %v11082_v48 = vand.u32 4294901760, %v3721_v7 }
 0x3f5   :  { %3402 = vst.msk [vmem:[#allocation5 + $0x78] sm:$0xff] %vm3239_vm13, %v3400_v10  ;;  %v3846_v21 = vand.u32 4294901760, %v3845_v50  ;;  %4375 = vmatpush.msrb.mxu0 %v11004_v26  ;;  %4600 = vmatpush.msra.mxu2 %v10974_v52  ;;  %v4503_v27 = vand.u32 4294901760, %v4502_v15  ;;  %v4508_v50 = vsub.f32 %v11034_v8, %v4507_v5  ;;  %v3719_v15 = vld [vmem:[%s13459_s5 + $0x88] sm:$0xff] }
 0x3f6   :  { %3252 = vst.msk [vmem:[#allocation5 + $0x8] sm:$0xff] %vm3239_vm13, %v3250_v58  ;;  %4690 = vmatpush.msra.mxu3 %v11004_v26  ;;  %4486 = vmatpush.msrb.mxu1 %v4485_v32  ;;  %v3687_v58 = vld [vmem:[#allocation5 + $0xc8] sm:$0xff]  ;;  %v3720_v32 = vld [vmem:[%s13459_s5 + $0x90] sm:$0xff] }
 0x3f7   :  { %3847 = vmatmul.f32.gmra.mxu2 %v3846_v21  ;;  %4004 = vmatmul.f32.gmra.mxu3 %v10921_v19  ;;  %v11068_v21 = vand.u32 4294901760, %v3722_v3  ;;  %v4509_v30 = vand.u32 4294901760, %v4508_v50  ;;  %v11085_v46 = vand.u32 4294901760, %v3687_v58 }
 0x3f8   :  { %4377 = vmatpush.msrb.mxu0 %v11015_v45  ;;  %4492 = vmatpush.msrb.mxu1 %v4491_v2  ;;  %v11104_v2 = vand.u32 4294901760, %v3720_v32 }
 0x3f9   :  { %4088 = vmatmul.f32.gmra.mxu0 %v3851_v42  ;;  %v4497_v42 = vand.u32 4294901760, %v4496_v13  ;;  %4692 = vmatpush.msra.mxu3 %v11015_v45  ;;  %v11089_v53 = vsub.f32 %v3722_v3, %v11068_v21  ;;  %v11107_v13 = vsub.f32 %v3721_v7, %v11082_v48  ;;  %v3875_v7 = vsub.f32 %v3687_v58, %v11085_v46 }
 0x3fa   :  { %4379 = vmatpush.msrb.mxu0 %v11031_v17  ;;  %4603 = vmatpush.msra.mxu2 %v10995_v38  ;;  %v11122_v3 = vsub.f32 %v3720_v32, %v11104_v2 }
 0x3fb   :  { %4164 = vmatmul.f32.gmra.mxu1 %v3852_v36  ;;  %v11071_v36 = vsub.f32 %v3723_v47, %v11055_v54  ;;  %4694 = vmatpush.msra.mxu3 %v11031_v17  ;;  %v13505_v50 = vand.u32 4294901760, %v11107_v13 }
 0x3fc   :  { %v3454_v39 = vpop.permute.xlu1 %3453  ;;  %v3677_v22 = vld [vmem:[#allocation5 + $0x78] sm:$0xff]  ;;  %4498 = vmatpush.msrb.mxu1 %v4497_v42  ;;  %4381 = vmatpush.msrb.mxu0 %v11055_v54  ;;  %v11114_v42 = vand.u32 4294901760, %v3719_v15 }
 0x3fd   :  { %3456 = vst.msk [vmem:[#allocation5 + $0xa0] sm:$0xff] %vm3239_vm13, %v3454_v39  ;;  %v3412_v25 = vpop.permute.xlu2 %3411  ;;  %v11037_v59 = vand.u32 4294901760, %v3677_v22  ;;  %v4519_v63 = vand.u32 4294901760, %v11071_v36  ;;  %4606 = vmatpush.msra.mxu2 %v11009_v0  ;;  %4696 = vmatpush.msra.mxu3 %v11055_v54  ;;  %v4532_v32 = vsub.f32 %v11107_v13, %v13505_v50 }
 0x3fe   :  { %3414 = vst.msk [vmem:[#allocation5 + $0x80] sm:$0xff] %vm3239_vm13, %v3412_v25  ;;  %4504 = vmatpush.msrb.mxu1 %v4503_v27  ;;  %4383 = vmatpush.msrb.mxu0 %v11068_v21 }
 0x3ff   :  { %3855 = vmatmul.f32.gmra.mxu2 %v3854_v41  ;;  %4008 = vmatmul.f32.gmra.mxu3 %v11037_v59  ;;  %v3859_v14 = vsub.f32 %v3677_v22, %v11037_v59  ;;  %v4515_v22 = vand.u32 4294901760, %v4514_v11  ;;  %v4520_v25 = vsub.f32 %v11071_v36, %v4519_v63  ;;  %v4525_v41 = vand.u32 4294901760, %v11089_v53 }
 0x400   :  { %4510 = vmatpush.msrb.mxu1 %v4509_v30  ;;  %4385 = vmatpush.msrb.mxu0 %v11082_v48  ;;  %v11131_v11 = vsub.f32 %v3719_v15, %v11114_v42  ;;  %v4533_v15 = vand.u32 4294901760, %v4532_v32 }
 0x401   :  { %4093 = vmatmul.f32.gmra.mxu0 %v3859_v14  ;;  %v3860_v10 = vand.u32 4294901760, %v3859_v14  ;;  %v4526_v27 = vsub.f32 %v11089_v53, %v4525_v41  ;;  %4609 = vmatpush.msra.mxu2 %v11018_v37 }
 0x402   :  { %4516 = vmatpush.msrb.mxu1 %v4515_v22  ;;  %4387 = vmatpush.msrb.mxu0 %v11104_v2  ;;  %v4543_v58 = vand.u32 4294901760, %v11131_v11 }
 0x403   :  { %4170 = vmatmul.f32.gmra.mxu1 %v3860_v10  ;;  %v3861_v61 = vsub.f32 %v3859_v14, %v3860_v10  ;;  %v4521_v14 = vand.u32 4294901760, %v4520_v25  ;;  %v3718_v10 = vld [vmem:[%s13459_s5 + $0x80] sm:$0xff]  ;;  %4698 = vmatpush.msra.mxu3 %v11068_v21 }
 0x404   :  { %v3682_v6 = vld [vmem:[#allocation5 + $0xa0] sm:$0xff]  ;;  %4389 = vmatpush.msrb.mxu0 %v11114_v42  ;;  %4612 = vmatpush.msra.mxu2 %v11034_v8 }
 0x405   :  { %v3574_v43 = vpop.permute.xlu2 %3573  ;;  %v3862_v29 = vand.u32 4294901760, %v3861_v61  ;;  %v11094_v39 = vand.u32 4294901760, %v3682_v6  ;;  %v11128_v61 = vand.u32 4294901760, %v3718_v10  ;;  %4522 = vmatpush.msrb.mxu1 %v4521_v14  ;;  %4700 = vmatpush.msra.mxu3 %v11082_v48 }
 0x406   :  { %3576 = vst.msk [vmem:[#allocation5 + $0xf8] sm:$0xff] %vm3239_vm13, %v3574_v43  ;;  %v4537_v43 = vand.u32 4294901760, %v11122_v3  ;;  %4615 = vmatpush.msra.mxu2 %v11058_v62 }
 0x407   :  { %3863 = vmatmul.f32.gmra.mxu2 %v3862_v29  ;;  %4012 = vmatmul.f32.gmra.mxu3 %v11094_v39  ;;  %v3867_v47 = vsub.f32 %v3682_v6, %v11094_v39  ;;  %v4527_v6 = vand.u32 4294901760, %v4526_v27  ;;  %v11141_v22 = vsub.f32 %v3718_v10, %v11128_v61  ;;  %v4544_v10 = vsub.f32 %v11131_v11, %v4543_v58 }
 0x408   :  { %v4538_v14 = vsub.f32 %v11122_v3, %v4537_v43  ;;  %4391 = vmatpush.msrb.mxu0 %v11128_v61  ;;  %4702 = vmatpush.msra.mxu3 %v11104_v2 }
 0x409   :  { %4098 = vmatmul.f32.gmra.mxu0 %v3867_v47  ;;  %v3868_v30 = vand.u32 4294901760, %v3867_v47  ;;  %4528 = vmatpush.msrb.mxu1 %v4527_v6  ;;  %v4549_v50 = vand.u32 4294901760, %v11141_v22  ;;  %v4545_v32 = vand.u32 4294901760, %v4544_v10 }
 0x40a   :  { %4759 = vmatpush.msra.mxu0 %v4459_v40  ;;  %v4539_v6 = vand.u32 4294901760, %v4538_v14  ;;  %4618 = vmatpush.msra.mxu2 %v11071_v36 }
 0x40b   :  { %4176 = vmatmul.f32.gmra.mxu1 %v3868_v30  ;;  %v3869_v29 = vsub.f32 %v3867_v47, %v3868_v30  ;;  %v3876_v30 = vand.u32 4294901760, %v3875_v7  ;;  %4704 = vmatpush.msra.mxu3 %v11114_v42 }
 0x40c   :  { %v3562_v25 = vpop.permute.xlu0 %3561  ;;  %4534 = vmatpush.msrb.mxu1 %v4533_v15  ;;  %4763 = vmatpush.msra.mxu0 %v4465_v60 }
 0x40d   :  { %3564 = vst.msk [vmem:[#allocation5 + $0xf0] sm:$0xff] %vm3239_vm13, %v3562_v25  ;;  %v3317_v27 = vpop.permute.xlu2 %3316  ;;  %v3870_v47 = vand.u32 4294901760, %v3869_v29  ;;  %v4550_v29 = vsub.f32 %v11141_v22, %v4549_v50  ;;  %v3877_v18 = vsub.f32 %v3875_v7, %v3876_v30  ;;  %4621 = vmatpush.msra.mxu2 %v11089_v53  ;;  %4706 = vmatpush.msra.mxu3 %v11128_v61 }
 0x40e   :  { %3319 = vst.msk [vmem:[#allocation5 + $0x38] sm:$0xff] %vm3239_vm13, %v3317_v27  ;;  %4540 = vmatpush.msrb.mxu1 %v4539_v6  ;;  %4767 = vmatpush.msra.mxu0 %v4471_v23  ;;  %v3663_v27 = vld [vmem:[#allocation5 + $0x8] sm:$0xff] }
 0x40f   :  { %3871 = vmatmul.f32.gmra.mxu2 %v3870_v47  ;;  %4016 = vmatmul.f32.gmra.mxu3 %v11085_v46  ;;  %v4551_v40 = vand.u32 4294901760, %v4550_v29  ;;  %v3878_v60 = vand.u32 4294901760, %v3877_v18  ;;  %v11182_v33 = vand.u32 4294901760, %v3663_v27 }
 0x410   :  { %4546 = vmatpush.msrb.mxu1 %v4545_v32  ;;  %4771 = vmatpush.msra.mxu0 %v4477_v16 }
 0x411   :  { %4103 = vmatmul.f32.gmra.mxu0 %v3875_v7  ;;  %4624 = vmatpush.msra.mxu2 %v11107_v13 }
 0x412   :  { %4552 = vmatpush.msrb.mxu1 %v4551_v40  ;;  %4775 = vmatpush.msra.mxu0 %v4483_v12 }
 0x413   :  { %4182 = vmatmul.f32.gmra.mxu1 %v3876_v30  ;;  %4627 = vmatpush.msra.mxu2 %v11122_v3  ;;  %v3678_v3 = vld [vmem:[#allocation5 + $0x80] sm:$0xff] }
 0x414   :  { %v3304_v25 = vpop.permute.xlu0 %3303  ;;  %v3616_v15 = vpop.permute.xlu1 %3615  ;;  %v3692_v14 = vld [vmem:[#allocation5 + $0xf0] sm:$0xff]  ;;  %4854 = vmatpush.msra.mxu1 %v10904_v34  ;;  %4779 = vmatpush.msra.mxu0 %v4489_v56 }
 0x415   :  { %3306 = vst.msk [vmem:[#allocation5 + $0x30] sm:$0xff] %vm3239_vm13, %v3304_v25  ;;  %v3479_v49 = vpop.permute.xlu2 %3478  ;;  %v11171_v7 = vand.u32 4294901760, %v3692_v14  ;;  %4630 = vmatpush.msra.mxu2 %v11131_v11 }
 0x416   :  { %3618 = vst.msk [vmem:[#allocation5 + $0x118] sm:$0xff] %vm3239_vm13, %v3616_v15  ;;  %4856 = vmatpush.msra.mxu1 %v10915_v24  ;;  %4783 = vmatpush.msra.mxu0 %v4495_v55  ;;  %v11193_v24 = vsub.f32 %v3663_v27, %v11182_v33 }
 0x417   :  { %3481 = vst.msk [vmem:[#allocation5 + $0xb0] sm:$0xff] %vm3239_vm13, %v3479_v49  ;;  %3879 = vmatmul.f32.gmra.mxu2 %v3878_v60  ;;  %4020 = vmatmul.f32.gmra.mxu3 %v11171_v7  ;;  %v3883_v51 = vsub.f32 %v3692_v14, %v11171_v7 }
 0x418   :  { %4858 = vmatpush.msra.mxu1 %v10934_v35  ;;  %4787 = vmatpush.msra.mxu0 %v4501_v31  ;;  %v4394_v37 = vand.u32 4294901760, %v11193_v24 }
 0x419   :  { %4108 = vmatmul.f32.gmra.mxu0 %v3883_v51  ;;  %v3884_v34 = vand.u32 4294901760, %v3883_v51  ;;  %4633 = vmatpush.msra.mxu2 %v11141_v22 }
 0x41a   :  { %4860 = vmatpush.msra.mxu1 %v10944_v44  ;;  %4791 = vmatpush.msra.mxu0 %v4507_v5 }
 0x41b   :  { %4188 = vmatmul.f32.gmra.mxu1 %v3884_v34  ;;  %v3885_v23 = vsub.f32 %v3883_v51, %v3884_v34 }
 0x41c   :  { %v3466_v16 = vpop.permute.xlu0 %3465  ;;  %v3358_v52 = vpop.permute.xlu1 %3357  ;;  %v3668_v56 = vld [vmem:[#allocation5 + $0x30] sm:$0xff]  ;;  %4862 = vmatpush.msra.mxu1 %v10958_v9  ;;  %4795 = vmatpush.msra.mxu0 %v4513_v20 }
 0x41d   :  { %3468 = vst.msk [vmem:[#allocation5 + $0xa8] sm:$0xff] %vm3239_vm13, %v3466_v16  ;;  %v3641_v35 = vpop.permute.xlu2 %3640  ;;  %v3886_v12 = vand.u32 4294901760, %v3885_v23  ;;  %v3697_v38 = vld [vmem:[#allocation5 + $0x118] sm:$0xff]  ;;  %v11211_v55 = vand.u32 4294901760, %v3668_v56 }
 0x41e   :  { %3360 = vst.msk [vmem:[#allocation5 + $0x58] sm:$0xff] %vm3239_vm13, %v3358_v52  ;;  %v11202_v0 = vand.u32 4294901760, %v3697_v38  ;;  %4864 = vmatpush.msra.mxu1 %v10971_v28  ;;  %4799 = vmatpush.msra.mxu0 %v4519_v63  ;;  %v4395_v28 = vsub.f32 %v11193_v24, %v4394_v37  ;;  %v13606_v63 = vand.u32 4294901760, %v11107_v13 }
 0x41f   :  { %3643 = vst.msk [vmem:[#allocation5 + $0x128] sm:$0xff] %vm3239_vm13, %v3641_v35  ;;  %3887 = vmatmul.f32.gmra.mxu2 %v3886_v12  ;;  %v11225_v62 = vsub.f32 %v3668_v56, %v11211_v55 }
 0x420   :  { %4024 = vmatmul.f32.gmra.mxu3 %v11202_v0  ;;  %v3891_v44 = vsub.f32 %v3697_v38, %v11202_v0  ;;  %4866 = vmatpush.msra.mxu1 %v10992_v4  ;;  %v4396_v47 = vand.u32 4294901760, %v4395_v28  ;;  %v3749_v28 = vld [vmem:[%s13459_s5 + $0x178] sm:$0xff] }
 0x421   :  { %4803 = vmatpush.msra.mxu0 %v4525_v41 }
 0x422   :  { %4113 = vmatmul.f32.gmra.mxu0 %v3891_v44  ;;  %v3892_v9 = vand.u32 4294901760, %v3891_v44  ;;  %4868 = vmatpush.msra.mxu1 %v11004_v26  ;;  %v4402_v26 = vand.u32 4294901760, %v11225_v62 }
 0x423   :  { %4807 = vmatpush.msra.mxu0 %v13606_v63 }
 0x424   :  { %4194 = vmatmul.f32.gmra.mxu1 %v3892_v9  ;;  %v3628_v31 = vpop.permute.xlu0 %3627  ;;  %v3520_v8 = vpop.permute.xlu1 %3519  ;;  %v3893_v5 = vsub.f32 %v3891_v44, %v3892_v9  ;;  %v4403_v13 = vsub.f32 %v11225_v62, %v4402_v26 }
 0x425   :  { %3630 = vst.msk [vmem:[#allocation5 + $0x120] sm:$0xff] %vm3239_vm13, %v3628_v31  ;;  %v3383_v20 = vpop.permute.xlu2 %3382  ;;  %v3673_v4 = vld [vmem:[#allocation5 + $0x58] sm:$0xff]  ;;  %4870 = vmatpush.msra.mxu1 %v11015_v45  ;;  %4811 = vmatpush.msra.mxu0 %v4537_v43  ;;  %v11264_v43 = vand.u32 4294901760, %v3678_v3 }
 0x426   :  { %3522 = vst.msk [vmem:[#allocation5 + $0xd0] sm:$0xff] %vm3239_vm13, %v3520_v8  ;;  %v3894_v36 = vand.u32 4294901760, %v3893_v5  ;;  %v11239_v53 = vand.u32 4294901760, %v3673_v4 }
 0x427   :  { %3385 = vst.msk [vmem:[#allocation5 + $0x68] sm:$0xff] %vm3239_vm13, %v3383_v20  ;;  %4872 = vmatpush.msra.mxu1 %v11031_v17  ;;  %4815 = vmatpush.msra.mxu0 %v4543_v58  ;;  %v3683_v58 = vld [vmem:[#allocation5 + $0xa8] sm:$0xff] }
 0x428   :  { %3895 = vmatmul.f32.gmra.mxu2 %v3894_v36  ;;  %4328 = vmatmul.f32.vlgmr.msrb.gmra.mxu3 %v10776_v1  ;;  %v11252_v30 = vsub.f32 %v3673_v4, %v11239_v53  ;;  %v11281_v22 = vand.u32 4294901760, %v3683_v58  ;;  %v3747_v36 = vld [vmem:[%s13459_s5 + $0x168] sm:$0xff] }
 0x429   :  { %4874 = vmatpush.msra.mxu1 %v11055_v54  ;;  %4819 = vmatpush.msra.mxu0 %v4549_v50  ;;  %v4404_v54 = vand.u32 4294901760, %v4403_v13 }
 0x42a   :  { %4397 = vmatmul.f32.vlgmr.msrb.gmra.mxu0 %v4396_v47  ;;  %v4410_v11 = vand.u32 4294901760, %v11252_v30  ;;  %v11288_v32 = vsub.f32 %v3683_v58, %v11281_v22 }
 0x42b   :  { %4876 = vmatpush.msra.mxu1 %v11068_v21 }
 0x42c   :  { %4554 = vmatmul.f32.vlgmr.msrb.gmra.mxu1 %v11182_v33  ;;  %v3371_v45 = vpop.permute.xlu0 %3370  ;;  %v3263_v41 = vpop.permute.xlu1 %3262  ;;  %v4426_v18 = vand.u32 4294901760, %v11288_v32 }
 0x42d   :  { %3373 = vst.msk [vmem:[#allocation5 + $0x60] sm:$0xff] %vm3239_vm13, %v3371_v45  ;;  %v3545_v17 = vpop.permute.xlu2 %3544  ;;  %4878 = vmatpush.msra.mxu1 %v11082_v48  ;;  %v11273_v48 = vsub.f32 %v3678_v3, %v11264_v43  ;;  %v11375_v45 = vand.u32 4294901760, %v3747_v36 }
 0x42e   :  { %3547 = vst.msk [vmem:[#allocation5 + $0xe0] sm:$0xff] %vm3239_vm13, %v3545_v17  ;;  %v4427_v14 = vsub.f32 %v11288_v32, %v4426_v18 }
 0x42f   :  { %3265 = vst.msk [vmem:[#allocation5 + $0x10] sm:$0xff] %vm3239_vm13, %v3263_v41  ;;  %4880 = vmatpush.msra.mxu1 %v11104_v2 }
 0x430   :  { %4263 = vmatmul.f32.vlgmr.msrb.gmra.mxu2 %v10776_v1  ;;  %4332 = vmatmul.f32.gmra.mxu3 %v10919_v57  ;;  %v4411_v1 = vsub.f32 %v11252_v30, %v4410_v11  ;;  %v4428_v60 = vand.u32 4294901760, %v4427_v14  ;;  %v3743_v14 = vld [vmem:[%s13459_s5 + $0x148] sm:$0xff] }
 0x431   :  { %4882 = vmatpush.msra.mxu1 %v11114_v42  ;;  %v4418_v42 = vand.u32 4294901760, %v11273_v48 }
 0x432   :  { %4405 = vmatmul.f32.gmra.mxu0 %v4404_v54  ;;  %v4412_v2 = vand.u32 4294901760, %v4411_v1  ;;  %v11394_v54 = vsub.f32 %v3747_v36, %v11375_v45 }
 0x433   :  { %4884 = vmatpush.msra.mxu1 %v11128_v61  ;;  %v4419_v61 = vsub.f32 %v11273_v48, %v4418_v42 }
 0x434   :  { %4558 = vmatmul.f32.gmra.mxu1 %v11211_v55  ;;  %v3533_v21 = vpop.permute.xlu0 %3532  ;;  %v3425_v50 = vpop.permute.xlu1 %3424 }
 0x435   :  { %3535 = vst.msk [vmem:[#allocation5 + $0xd8] sm:$0xff] %vm3239_vm13, %v3533_v21  ;;  %v4420_v29 = vand.u32 4294901760, %v4419_v61  ;;  %v3745_v21 = vld [vmem:[%s13459_s5 + $0x158] sm:$0xff] }
 0x436   :  { %3427 = vst.msk [vmem:[#allocation5 + $0x88] sm:$0xff] %vm3239_vm13, %v3425_v50 }
 0x438   :  { %4267 = vmatmul.f32.gmra.mxu2 %v10919_v57  ;;  %4336 = vmatmul.f32.gmra.mxu3 %v10921_v19  ;;  %v3688_v57 = vld [vmem:[#allocation5 + $0xd0] sm:$0xff] }
 0x439   :  { %v11295_v40 = vand.u32 4294901760, %v3688_v57 }
 0x43a   :  { %4413 = vmatmul.f32.gmra.mxu0 %v4412_v2 }
 0x43b   :  { %v11302_v49 = vsub.f32 %v3688_v57, %v11295_v40 }
 0x43c   :  { %4562 = vmatmul.f32.gmra.mxu1 %v11239_v53  ;;  %v3275_v10 = vpop.permute.xlu0 %3274  ;;  %v3587_v6 = vpop.permute.xlu1 %3586 }
 0x43d   :  { %3277 = vst.msk [vmem:[#allocation5 + $0x18] sm:$0xff] %vm3239_vm13, %v3275_v10  ;;  %v13517_v27 = vand.u32 4294901760, %v11302_v49  ;;  %v13511_v10 = vand.u32 4294901760, %v11394_v54 }
 0x43e   :  { %3589 = vst.msk [vmem:[#allocation5 + $0x100] sm:$0xff] %vm3239_vm13, %v3587_v6 }
 0x43f   :  { %v4435_v16 = vsub.f32 %v11302_v49, %v13517_v27 }
 0x440   :  { %4271 = vmatmul.f32.gmra.mxu2 %v10921_v19  ;;  %4340 = vmatmul.f32.gmra.mxu3 %v11037_v59  ;;  %v3693_v19 = vld [vmem:[#allocation5 + $0xf8] sm:$0xff] }
 0x441   :  { %v11309_v51 = vand.u32 4294901760, %v3693_v19  ;;  %v4436_v35 = vand.u32 4294901760, %v4435_v16  ;;  %v11344_v5 = vpop.f32.mrf.mxu1  ;;  %v3742_v16 = vld [vmem:[%s13459_s5 + $0x140] sm:$0xff] }
 0x442   :  { %4421 = vmatmul.f32.gmra.mxu0 %v4420_v29  ;;  %v5030_v29 = vsub.f32 %v11394_v54, %v13511_v10 }
 0x443   :  { %v11316_v52 = vsub.f32 %v3693_v19, %v11309_v51 }
 0x444   :  { %4566 = vmatmul.f32.gmra.mxu1 %v11264_v43  ;;  %v3437_v25 = vpop.permute.xlu0 %3436  ;;  %v3329_v15 = vpop.permute.xlu1 %3328 }
 0x445   :  { %3439 = vst.msk [vmem:[#allocation5 + $0x90] sm:$0xff] %vm3239_vm13, %v3437_v25  ;;  %v13516_v12 = vand.u32 4294901760, %v11316_v52 }
 0x446   :  { %3331 = vst.msk [vmem:[#allocation5 + $0x40] sm:$0xff] %vm3239_vm13, %v3329_v15 }
 0x447   :  { %v4443_v56 = vsub.f32 %v11316_v52, %v13516_v12 }
 0x448   :  { %4275 = vmatmul.f32.gmra.mxu2 %v11037_v59  ;;  %4344 = vmatmul.f32.gmra.mxu3 %v11094_v39  ;;  %v3698_v59 = vld [vmem:[#allocation5 + $0x120] sm:$0xff] }
 0x449   :  { %v11323_v38 = vand.u32 4294901760, %v3698_v59  ;;  %v11354_v20 = vpop.f32.mrf.mxu3 }
 0x44a   :  { %4429 = vmatmul.f32.gmra.mxu0 %v4428_v60 }
 0x44b   :  { %v11330_v44 = vsub.f32 %v3698_v59, %v11323_v38  ;;  %v5031_v59 = vand.u32 4294901760, %v5030_v29 }
 0x44c   :  { %4570 = vmatmul.f32.gmra.mxu1 %v11281_v22  ;;  %v3599_v34 = vpop.permute.xlu0 %3598  ;;  %v3491_v23 = vpop.permute.xlu1 %3490 }
 0x44d   :  { %3601 = vst.msk [vmem:[#allocation5 + $0x108] sm:$0xff] %vm3239_vm13, %v3599_v34  ;;  %v13514_v9 = vand.u32 4294901760, %v11330_v44 }
 0x44e   :  { %3493 = vst.msk [vmem:[#allocation5 + $0xb8] sm:$0xff] %vm3239_vm13, %v3491_v23  ;;  %v11440_v23 = vand.u32 4294901760, %v3743_v14 }
 0x44f   :  { %v4451_v31 = vsub.f32 %v11330_v44, %v13514_v9 }
 0x450   :  { %4279 = vmatmul.f32.gmra.mxu2 %v11094_v39  ;;  %4348 = vmatmul.f32.gmra.mxu3 %v11085_v46  ;;  %v4444_v39 = vand.u32 4294901760, %v4443_v56  ;;  %v11451_v56 = vand.u32 4294901760, %v3742_v16 }
 0x451   :  { %v4452_v8 = vand.u32 4294901760, %v4451_v31 }
 0x452   :  { %4437 = vmatmul.f32.gmra.mxu0 %v4436_v35 }
 0x454   :  { %4574 = vmatmul.f32.gmra.mxu1 %v11295_v40 }
 0x458   :  { %4283 = vmatmul.f32.gmra.mxu2 %v11085_v46  ;;  %4352 = vmatmul.f32.gmra.mxu3 %v11171_v7  ;;  %v11342_v46 = vpop.f32.mrf.mxu0 }
 0x45a   :  { %4445 = vmatmul.f32.gmra.mxu0 %v4444_v39 }
 0x45c   :  { %4578 = vmatmul.f32.gmra.mxu1 %v11309_v51 }
 0x460   :  { %4287 = vmatmul.f32.gmra.mxu2 %v11171_v7  ;;  %4356 = vmatmul.f32.gmra.mxu3 %v11202_v0  ;;  %v11352_v7 = vand.u32 4294901760, %v3749_v28 }
 0x462   :  { %4453 = vmatmul.f32.gmra.mxu0 %v4452_v8  ;;  %v11358_v4 = vsub.f32 %v3749_v28, %v11352_v7  ;;  %5234 = vmatpush.msrb.mxu1 %v11352_v7  ;;  %v11462_v8 = vsub.f32 %v3743_v14, %v11440_v23  ;;  %v3741_v28 = vld [vmem:[%s13459_s5 + $0x138] sm:$0xff] }
 0x463   :  { %4919 = vmatpush.msrb.mxu2 %v11352_v7  ;;  %v11476_v36 = vand.u32 4294901760, %v3741_v28 }
 0x464   :  { %4582 = vmatmul.f32.gmra.mxu1 %v11323_v38  ;;  %5146 = vmatpush.msrb.mxu0 %v11358_v4 }
 0x468   :  { %4291 = vmatmul.f32.gmra.mxu2 %v11202_v0  ;;  %4710 = vmatmul.f32.vlgmr.msra.gmra.mxu3 %v4394_v37  ;;  %v13515_v0 = vand.u32 4294901760, %v11358_v4  ;;  %v3748_v37 = vld [vmem:[%s13459_s5 + $0x170] sm:$0xff] }
 0x469   :  { %v11373_v47 = vand.u32 4294901760, %v3748_v37 }
 0x46a   :  { %4821 = vmatmul.f32.vlgmr.msra.gmra.mxu0 %v11182_v33  ;;  %v5018_v41 = vsub.f32 %v11358_v4, %v13515_v0 }
 0x46b   :  { %v11391_v3 = vsub.f32 %v3748_v37, %v11373_v47  ;;  %5236 = vmatpush.msrb.mxu1 %v11373_v47  ;;  %4921 = vmatpush.msrb.mxu2 %v11373_v47  ;;  %v11470_v37 = vld [vmem:[%s13460_s6] ss:$0 sm:$0xff] }
 0x46c   :  { %4886 = vmatmul.f32.vlgmr.msra.gmra.mxu1 %v11182_v33  ;;  %v3746_v33 = vld [vmem:[%s13459_s5 + $0x160] sm:$0xff]  ;;  %v5019_v50 = vand.u32 4294901760, %v5018_v41 }
 0x46d   :  { %v11383_v13 = vand.u32 4294901760, %v3746_v33  ;;  %v13513_v2 = vand.u32 4294901760, %v11391_v3  ;;  %5149 = vmatpush.msrb.mxu0 %v11391_v3  ;;  %4923 = vmatpush.msrb.mxu2 %v11375_v45 }
 0x46e   :  { %v11371_v63 = vpop.f32.mrf.mxu0  ;;  %5020 = vmatpush.msrb.mxu3 %v5019_v50  ;;  %5238 = vmatpush.msrb.mxu1 %v11375_v45  ;;  %v13506_v50 = vand.u32 4294901760, %v11462_v8 }
 0x46f   :  { %v11400_v1 = vsub.f32 %v3746_v33, %v11383_v13  ;;  %v5024_v57 = vsub.f32 %v11391_v3, %v13513_v2  ;;  %5152 = vmatpush.msrb.mxu0 %v11394_v54  ;;  %4925 = vmatpush.msrb.mxu2 %v11383_v13 }
 0x470   :  { %4636 = vmatmul.f32.vlgmr.msra.gmra.mxu2 %v11193_v24  ;;  %4716 = vmatmul.f32.gmra.mxu3 %v4402_v26  ;;  %v11388_v17 = vpop.f32.mrf.mxu1  ;;  %v11403_v24 = vand.u32 4294901760, %v3745_v21  ;;  %v11406_v26 = vpop.f32.mrf.mxu2 }
 0x471   :  { %v13510_v6 = vand.u32 4294901760, %v11400_v1  ;;  %v5025_v60 = vand.u32 4294901760, %v5024_v57  ;;  %5155 = vmatpush.msrb.mxu0 %v11400_v1  ;;  %5240 = vmatpush.msrb.mxu1 %v11383_v13 }
 0x472   :  { %4825 = vmatmul.f32.gmra.mxu0 %v11211_v55  ;;  %v4001_v58 = vpop.f32.mrf.mxu3  ;;  %v11414_v61 = vsub.f32 %v3745_v21, %v11403_v24  ;;  %4927 = vmatpush.msrb.mxu2 %v11403_v24 }
 0x473   :  { %v5036_v25 = vsub.f32 %v11400_v1, %v13510_v6  ;;  %5026 = vmatpush.msrb.mxu3 %v5025_v60  ;;  %5242 = vmatpush.msrb.mxu1 %v11403_v24  ;;  %v5054_v60 = vsub.f32 %v11462_v8, %v13506_v50 }
 0x474   :  { %4890 = vmatmul.f32.gmra.mxu1 %v11211_v55  ;;  %v13509_v15 = vand.u32 4294901760, %v11414_v61  ;;  %v3744_v55 = vld [vmem:[%s13459_s5 + $0x150] sm:$0xff]  ;;  %5158 = vmatpush.msrb.mxu0 %v11414_v61 }
 0x475   :  { %v11438_v34 = vand.u32 4294901760, %v3744_v55  ;;  %5032 = vmatpush.msrb.mxu3 %v5031_v59 }
 0x476   :  { %v11436_v19 = vpop.f32.mrf.mxu0  ;;  %v5042_v35 = vsub.f32 %v11414_v61, %v13509_v15 }
 0x477   :  { %v11459_v31 = vsub.f32 %v3744_v55, %v11438_v34  ;;  %v11488_v55 = vsub.f32 %v3741_v28, %v11476_v36  ;;  %v3739_v28 = vld [vmem:[%s13459_s5 + $0x128] sm:$0xff]  ;;  %5244 = vmatpush.msrb.mxu1 %v11438_v34  ;;  %4929 = vmatpush.msrb.mxu2 %v11438_v34 }
 0x478   :  { %4641 = vmatmul.f32.gmra.mxu2 %v11225_v62  ;;  %4722 = vmatmul.f32.gmra.mxu3 %v4410_v11  ;;  %v11456_v39 = vpop.f32.mrf.mxu1  ;;  %v5037_v62 = vand.u32 4294901760, %v5036_v25  ;;  %v11474_v11 = vsub.f32 %v3742_v16, %v11451_v56  ;;  %v5043_v29 = vand.u32 4294901760, %v5042_v35  ;;  %v3740_v35 = vld [vmem:[%s13459_s5 + $0x130] sm:$0xff] }
 0x479   :  { %v13508_v21 = vand.u32 4294901760, %v11459_v31  ;;  %5161 = vmatpush.msrb.mxu0 %v11459_v31  ;;  %5246 = vmatpush.msrb.mxu1 %v11440_v23 }
 0x47a   :  { %4829 = vmatmul.f32.gmra.mxu0 %v11239_v53  ;;  %v3848_v33 = vpop.f32.mrf.mxu2  ;;  %v11479_v41 = vpop.f32.mrf.mxu3  ;;  %v13507_v25 = vand.u32 4294901760, %v11474_v11  ;;  %5038 = vmatpush.msrb.mxu3 %v5037_v62  ;;  %v5055_v62 = vand.u32 4294901760, %v5054_v60  ;;  %v3738_v60 = vld [vmem:[%s13459_s5 + $0x120] sm:$0xff] }
 0x47b   :  { %v3849_v57 = vadd.f32 %v11470_v37, %v3848_v33  ;;  %v5048_v14 = vsub.f32 %v11459_v31, %v13508_v21  ;;  %5164 = vmatpush.msrb.mxu0 %v11462_v8  ;;  %v3645_v33 = vld [vmem:[#allocation4 + $0x90] sm:$0xff]  ;;  %v3646_v21 = vld [vmem:[#allocation4 + $0x98] sm:$0x3]  ;;  %4931 = vmatpush.msrb.mxu2 %v11440_v23 }
 0x47c   :  { %4894 = vmatmul.f32.gmra.mxu1 %v11239_v53  ;;  %v5060_v59 = vsub.f32 %v11474_v11, %v13507_v25  ;;  %v13512_v53 = vand.u32 4294901760, %v11488_v55  ;;  %v11515_v25 = vand.u32 4294901760, %v3739_v28  ;;  %5044 = vmatpush.msrb.mxu3 %v5043_v29  ;;  %v3650_v10 = vrot.slane %v3645_v33, 1  ;;  %3647 = vst.msk [vmem:[#allocation5 + $0x130] sm:$0xff] %vm3190_vm9, %v3645_v33 }
 0x47d   :  { %v4002_v16 = vadd.f32 %v4001_v58, %v3849_v57  ;;  %v5049_v58 = vand.u32 4294901760, %v5048_v14  ;;  %v11513_v57 = vand.u32 4294901760, %v3740_v35  ;;  %5167 = vmatpush.msrb.mxu0 %v11474_v11  ;;  %v3651_v14 = vrot.slane %v3646_v21, 1  ;;  %5248 = vmatpush.msrb.mxu1 %v11451_v56 }
 0x47e   :  { %v11509_v50 = vpop.f32.mrf.mxu0  ;;  %v5061_v15 = vand.u32 4294901760, %v5060_v59  ;;  %v5066_v6 = vsub.f32 %v11488_v55, %v13512_v53  ;;  %v11534_v53 = vsub.f32 %v3739_v28, %v11515_v25  ;;  %v3657_v2 = vrot.slane %v3645_v33, 2  ;;  %4933 = vmatpush.msrb.mxu2 %v11451_v56 }
 0x47f   :  { %v11531_v59 = vsub.f32 %v3740_v35, %v11513_v57  ;;  %v3658_v9 = vrot.slane %v3646_v21, 2  ;;  %5050 = vmatpush.msrb.mxu3 %v5049_v58  ;;  %v3652_v12 = vsel %vm1103_vm4, %v3650_v10, %v3651_v14  ;;  %v4085_v35 = vadd.f32 %v11371_v63, %v4002_v16  ;;  %5170 = vmatpush.msrb.mxu0 %v11488_v55 }
 0x480   :  { %4646 = vmatmul.f32.gmra.mxu2 %v11252_v30  ;;  %4728 = vmatmul.f32.gmra.mxu3 %v4418_v42  ;;  %v11528_v29 = vpop.f32.mrf.mxu1  ;;  %v5067_v0 = vand.u32 4294901760, %v5066_v6  ;;  %v11538_v30 = vand.u32 4294901760, %v3738_v60  ;;  %v3737_v42 = vld [vmem:[%s13459_s5 + $0x118] sm:$0xff]  ;;  %v13519_v6 = vand.u32 4294901760, %v11534_v53 }
 0x481   :  { %v13520_v21 = vand.u32 4294901760, %v11531_v59  ;;  %v3659_v10 = vsel %vm1112_vm5, %v3657_v2, %v3658_v9  ;;  %v11549_v33 = vand.u32 4294901760, %v3737_v42  ;;  %5056 = vmatpush.msrb.mxu3 %v5055_v62  ;;  %v11558_v16 = vadd.f32 %v11388_v17, %v4085_v35  ;;  %3653 = vrot.lane.b32.xlu1 %v3652_v12, %s7900_s2  ;;  %v3736_v17 = vld [vmem:[%s13459_s5 + $0x110] sm:$0xff] }
 0x482   :  { %4833 = vmatmul.f32.gmra.mxu0 %v11264_v43  ;;  %v3856_v28 = vpop.f32.mrf.mxu2  ;;  %v4009_v27 = vpop.f32.mrf.mxu3  ;;  %3661 = vst.msk [vmem:[#allocation5 + $0x138] sm:$0xff] %vm3190_vm9, %v3659_v10  ;;  %v11555_v63 = vsub.f32 %v3738_v60, %v11538_v30  ;;  %v5078_v2 = vsub.f32 %v11534_v53, %v13519_v6  ;;  %v3735_v60 = vld [vmem:[%s13459_s5 + $0x108] sm:$0xff]  ;;  %5250 = vmatpush.msrb.mxu1 %v11476_v36 }
 0x483   :  { %v3857_v58 = vadd.f32 %v11470_v37, %v3856_v28  ;;  %v5072_v9 = vsub.f32 %v11531_v59, %v13520_v21  ;;  %v11569_v62 = vsub.f32 %v3737_v42, %v11549_v33  ;;  %5062 = vmatpush.msrb.mxu3 %v5061_v15  ;;  %5173 = vmatpush.msrb.mxu0 %v11531_v59  ;;  %v11591_v10 = vand.u32 4294901760, %v3735_v60 }
 0x484   :  { %4898 = vmatmul.f32.gmra.mxu1 %v11264_v43  ;;  %v13518_v43 = vand.u32 4294901760, %v11555_v63  ;;  %v5079_v42 = vand.u32 4294901760, %v5078_v2  ;;  %4935 = vmatpush.msrb.mxu2 %v11476_v36 }
 0x485   :  { %v4006_v14 = vadd.f32 %v11479_v41, %v3857_v58  ;;  %v5073_v12 = vand.u32 4294901760, %v5072_v9  ;;  %v13521_v15 = vand.u32 4294901760, %v11569_v62  ;;  %v11585_v41 = vand.u32 4294901760, %v3736_v17  ;;  %5068 = vmatpush.msrb.mxu3 %v5067_v0  ;;  %v3734_v58 = vld [vmem:[%s13459_s5 + $0x100] sm:$0xff]  ;;  %5176 = vmatpush.msrb.mxu0 %v11534_v53 }
 0x486   :  { %v11580_v35 = vpop.f32.mrf.mxu0  ;;  %v5084_v28 = vsub.f32 %v11555_v63, %v13518_v43  ;;  %v11608_v6 = vand.u32 4294901760, %v3734_v58  ;;  %5252 = vmatpush.msrb.mxu1 %v11513_v57  ;;  %4937 = vmatpush.msrb.mxu2 %v11513_v57 }
 0x487   :  { %v4090_v9 = vadd.f32 %v11436_v19, %v4006_v14  ;;  %v5090_v2 = vsub.f32 %v11569_v62, %v13521_v15  ;;  %v11606_v43 = vsub.f32 %v3736_v17, %v11585_v41  ;;  %5074 = vmatpush.msrb.mxu3 %v5073_v12  ;;  %5179 = vmatpush.msrb.mxu0 %v11555_v63 }
 0x488   :  { %4651 = vmatmul.f32.gmra.mxu2 %v11273_v48  ;;  %4734 = vmatmul.f32.gmra.mxu3 %v4426_v18  ;;  %v11600_v0 = vpop.f32.mrf.mxu1  ;;  %v5085_v21 = vand.u32 4294901760, %v5084_v28  ;;  %v11612_v48 = vsub.f32 %v3735_v60, %v11591_v10  ;;  %v11621_v15 = vsub.f32 %v3734_v58, %v11608_v6 }
 0x489   :  { %v11615_v18 = vadd.f32 %v11456_v39, %v4090_v9  ;;  %v13523_v17 = vand.u32 4294901760, %v11606_v43  ;;  %5080 = vmatpush.msrb.mxu3 %v5079_v42  ;;  %v5091_v60 = vand.u32 4294901760, %v5090_v2  ;;  %5254 = vmatpush.msrb.mxu1 %v11515_v25 }
 0x48a   :  { %4837 = vmatmul.f32.gmra.mxu0 %v11281_v22  ;;  %v3864_v19 = vpop.f32.mrf.mxu2  ;;  %v4013_v14 = vpop.f32.mrf.mxu3  ;;  %v13522_v39 = vand.u32 4294901760, %v11612_v48  ;;  %v13524_v9 = vand.u32 4294901760, %v11621_v15  ;;  %4939 = vmatpush.msrb.mxu2 %v11515_v25 }
 0x48b   :  { %v3865_v12 = vadd.f32 %v11470_v37, %v3864_v19  ;;  %v5096_v28 = vsub.f32 %v11606_v43, %v13523_v17  ;;  %5086 = vmatpush.msrb.mxu3 %v5085_v21  ;;  %5182 = vmatpush.msrb.mxu0 %v11569_v62 }
 0x48c   :  { %4902 = vmatmul.f32.gmra.mxu1 %v11281_v22  ;;  %v5102_v42 = vsub.f32 %v11612_v48, %v13522_v39  ;;  %v5108_v19 = vsub.f32 %v11621_v15, %v13524_v9  ;;  %4941 = vmatpush.msrb.mxu2 %v11538_v30 }
 0x48d   :  { %v4010_v58 = vadd.f32 %v4009_v27, %v3865_v12  ;;  %v5097_v22 = vand.u32 4294901760, %v5096_v28  ;;  %5092 = vmatpush.msrb.mxu3 %v5091_v60  ;;  %5256 = vmatpush.msrb.mxu1 %v11538_v30  ;;  %v13607_v12 = vand.u32 4294901760, %v11302_v49 }
 0x48e   :  { %v4104_v2 = vpop.f32.mrf.mxu0  ;;  %v5103_v27 = vand.u32 4294901760, %v5102_v42  ;;  %v5109_v28 = vand.u32 4294901760, %v5108_v19  ;;  %5185 = vmatpush.msrb.mxu0 %v11606_v43  ;;  %4943 = vmatpush.msrb.mxu2 %v11549_v33 }
 0x48f   :  { %v4095_v21 = vadd.f32 %v11509_v50, %v4010_v58  ;;  %5098 = vmatpush.msrb.mxu3 %v5097_v22  ;;  %5258 = vmatpush.msrb.mxu1 %v11549_v33 }
 0x490   :  { %4656 = vmatmul.f32.gmra.mxu2 %v11288_v32  ;;  %4740 = vmatmul.f32.gmra.mxu3 %v13607_v12  ;;  %v4183_v39 = vpop.f32.mrf.mxu1  ;;  %v13610_v12 = vand.u32 4294901760, %v11330_v44 }
 0x491   :  { %v11648_v17 = vadd.f32 %v11528_v29, %v4095_v21  ;;  %5104 = vmatpush.msrb.mxu3 %v5103_v27  ;;  %5188 = vmatpush.msrb.mxu0 %v11612_v48 }
 0x492   :  { %4841 = vmatmul.f32.gmra.mxu0 %v11295_v40  ;;  %v3872_v60 = vpop.f32.mrf.mxu2  ;;  %v4017_v9 = vpop.f32.mrf.mxu3  ;;  %5260 = vmatpush.msrb.mxu1 %v11585_v41 }
 0x493   :  { %v3873_v50 = vadd.f32 %v11470_v37, %v3872_v60  ;;  %5110 = vmatpush.msrb.mxu3 %v5109_v28  ;;  %5191 = vmatpush.msrb.mxu0 %v11621_v15  ;;  %v13612_v60 = vand.u32 4294901760, %v11394_v54  ;;  %v13614_v54 = vand.u32 4294901760, %v11414_v61 }
 0x494   :  { %4906 = vmatmul.f32.gmra.mxu1 %v11295_v40  ;;  %v13608_v40 = vand.u32 4294901760, %v11316_v52  ;;  %4945 = vmatpush.msrb.mxu2 %v11585_v41 }
 0x495   :  { %v4014_v32 = vadd.f32 %v4013_v14, %v3873_v50  ;;  %5412 = vmatpush.msra.mxu3 %v11352_v7  ;;  %5262 = vmatpush.msrb.mxu1 %v11591_v10  ;;  %v3841_v50 = vadd.f32 %v11470_v37, %v11406_v26  ;;  %v13615_v26 = vand.u32 4294901760, %v11459_v31 }
 0x496   :  { %v4109_v29 = vpop.f32.mrf.mxu0  ;;  %4947 = vmatpush.msrb.mxu2 %v11591_v10 }
 0x497   :  { %v4100_v58 = vadd.f32 %v11580_v35, %v4014_v32  ;;  %5414 = vmatpush.msra.mxu3 %v11373_v47  ;;  %5264 = vmatpush.msrb.mxu1 %v11608_v6  ;;  %v13609_v47 = vand.u32 4294901760, %v11358_v4  ;;  %v3998_v61 = vadd.f32 %v11354_v20, %v3841_v50 }
 0x498   :  { %4661 = vmatmul.f32.gmra.mxu2 %v11302_v49  ;;  %4746 = vmatmul.f32.gmra.mxu3 %v13608_v40  ;;  %v4189_v14 = vpop.f32.mrf.mxu1  ;;  %v3664_v49 = vld [vmem:[#allocation5 + $0x10] sm:$0xff] }
 0x499   :  { %v11668_v42 = vadd.f32 %v11600_v0, %v4100_v58  ;;  %5416 = vmatpush.msra.mxu3 %v11375_v45  ;;  %4949 = vmatpush.msrb.mxu2 %v11608_v6  ;;  %v11678_v0 = vand.u32 4294901760, %v3664_v49  ;;  %v13611_v45 = vand.u32 4294901760, %v11391_v3  ;;  %v4080_v20 = vadd.f32 %v11342_v46, %v3998_v61  ;;  %v3763_v46 = vld [vmem:[%s13459_s5 + $0x1e8] sm:$0xff]  ;;  %v3761_v61 = vld [vmem:[%s13459_s5 + $0x1d8] sm:$0xff] }
 0x49a   :  { %4845 = vmatmul.f32.gmra.mxu0 %v11309_v51  ;;  %v3880_v22 = vpop.f32.mrf.mxu2  ;;  %v4021_v19 = vpop.f32.mrf.mxu3 }
 0x49b   :  { %v3881_v7 = vadd.f32 %v11470_v37, %v3880_v22  ;;  %5418 = vmatpush.msra.mxu3 %v11383_v13  ;;  %5317 = vmatpush.msra.mxu2 %v13609_v47  ;;  %v4951_v13 = vsub.f32 %v3664_v49, %v11678_v0  ;;  %v13616_v22 = vand.u32 4294901760, %v11462_v8  ;;  %v3765_v8 = vld [vmem:[%s13459_s5 + $0x1f8] sm:$0xff] }
 0x49c   :  { %4910 = vmatmul.f32.gmra.mxu1 %v11309_v51 }
 0x49d   :  { %v4018_v35 = vadd.f32 %v4017_v9, %v3881_v7  ;;  %5420 = vmatpush.msra.mxu3 %v11403_v24  ;;  %5321 = vmatpush.msra.mxu2 %v13611_v45  ;;  %v4952_v32 = vand.u32 4294901760, %v4951_v13 }
 0x49f   :  { %v11683_v27 = vpop.f32.mrf.mxu0  ;;  %v4105_v21 = vadd.f32 %v4104_v2, %v4018_v35  ;;  %v3669_v2 = vld [vmem:[#allocation5 + $0x38] sm:$0xff]  ;;  %5422 = vmatpush.msra.mxu3 %v11438_v34  ;;  %5325 = vmatpush.msra.mxu2 %v13612_v60  ;;  %v11743_v35 = vand.u32 4294901760, %v3765_v8  ;;  %v13620_v60 = vand.u32 4294901760, %v11531_v59 }
 0x4a0   :  { %4666 = vmatmul.f32.gmra.mxu2 %v11316_v52  ;;  %4752 = vmatmul.f32.gmra.mxu3 %v13610_v12  ;;  %v11702_v24 = vand.u32 4294901760, %v3669_v2 }
 0x4a1   :  { %v11688_v51 = vpop.f32.mrf.mxu1  ;;  %v11693_v9 = vadd.f32 %v4183_v39, %v4105_v21  ;;  %5424 = vmatpush.msra.mxu3 %v11440_v23  ;;  %v13613_v39 = vand.u32 4294901760, %v11400_v1  ;;  %v3674_v23 = vld [vmem:[#allocation5 + $0x60] sm:$0xff]  ;;  %v11757_v21 = vand.u32 4294901760, %v3763_v46  ;;  %5477 = vmatpush.msra.mxu0 %v11743_v35 }
 0x4a2   :  { %4849 = vmatmul.f32.gmra.mxu0 %v11323_v38  ;;  %v3888_v4 = vpop.f32.mrf.mxu2  ;;  %v4959_v1 = vsub.f32 %v3669_v2, %v11702_v24  ;;  %v4154_v2 = vadd.f32 %v11344_v5, %v4080_v20  ;;  %v3759_v20 = vld [vmem:[%s13459_s5 + $0x1c8] sm:$0xff] }
 0x4a3   :  { %v3889_v52 = vadd.f32 %v11470_v37, %v3888_v4  ;;  %v4025_v28 = vpop.f32.mrf.mxu3  ;;  %5329 = vmatpush.msra.mxu2 %v13613_v39  ;;  %5426 = vmatpush.msra.mxu3 %v11451_v56  ;;  %v4953_v56 = vsub.f32 %v4951_v13, %v4952_v32 }
 0x4a4   :  { %4914 = vmatmul.f32.gmra.mxu1 %v11323_v38  ;;  %v4960_v31 = vand.u32 4294901760, %v4959_v1 }
 0x4a5   :  { %v4022_v3 = vadd.f32 %v4021_v19, %v3889_v52  ;;  %5333 = vmatpush.msra.mxu2 %v13614_v54  ;;  %5428 = vmatpush.msra.mxu3 %v11476_v36  ;;  %v11729_v36 = vand.u32 4294901760, %v3674_v23  ;;  %v4954_v49 = vand.u32 4294901760, %v4953_v56 }
 0x4a6   :  { %v4961_v4 = vsub.f32 %v4959_v1, %v4960_v31 }
 0x4a7   :  { %v11709_v58 = vpop.f32.mrf.mxu0  ;;  %v4110_v38 = vadd.f32 %v4109_v29, %v4022_v3  ;;  %5337 = vmatpush.msra.mxu2 %v13615_v26  ;;  %5430 = vmatpush.msra.mxu3 %v11513_v57  ;;  %13617 = vst [vmem:[#allocation8_spill] sm:$0xff] %v11729_v36  ;;  %v11755_v47 = vsub.f32 %v3674_v23, %v11729_v36 }
 0x4a8   :  { %4671 = vmatmul.f32.gmra.mxu2 %v11330_v44  ;;  %5112 = vmatmul.f32.vlgmr.msrb.gmra.mxu3 %v11678_v0  ;;  %v4962_v26 = vand.u32 4294901760, %v4961_v4 }
 0x4a9   :  { %v11716_v34 = vpop.f32.mrf.mxu1  ;;  %v11722_v40 = vadd.f32 %v4189_v14, %v4110_v38  ;;  %5341 = vmatpush.msra.mxu2 %v13616_v22  ;;  %5432 = vmatpush.msra.mxu3 %v11515_v25  ;;  %v13618_v14 = vand.u32 4294901760, %v11474_v11  ;;  %v13619_v11 = vand.u32 4294901760, %v11488_v55  ;;  %v4968_v54 = vand.u32 4294901760, %v11755_v47 }
 0x4aa   :  { %5194 = vmatmul.f32.vlgmr.msrb.gmra.mxu0 %v4951_v13  ;;  %v3762_v13 = vld [vmem:[%s13459_s5 + $0x1e0] sm:$0xff]  ;;  %v13623_v22 = vand.u32 4294901760, %v11555_v63 }
 0x4ab   :  { %v3896_v29 = vpop.f32.mrf.mxu2  ;;  %v4329_v44 = vpop.f32.mrf.mxu3  ;;  %5345 = vmatpush.msra.mxu2 %v13618_v14  ;;  %5434 = vmatpush.msra.mxu3 %v11538_v30  ;;  %v11764_v30 = vsub.f32 %v3765_v8, %v11743_v35  ;;  %v11774_v52 = vand.u32 4294901760, %v3762_v13  ;;  %v4969_v63 = vsub.f32 %v11755_v47, %v4968_v54 }
 0x4ac   :  { %v3897_v19 = vadd.f32 %v11470_v37, %v3896_v29  ;;  %5268 = vmatmul.f32.vlgmr.msrb.gmra.mxu1 %v4952_v32  ;;  %v3764_v37 = vld [vmem:[%s13459_s5 + $0x1f0] sm:$0xff] }
 0x4ad   :  { %v11745_v25 = vand.u32 4294901760, %v3764_v37  ;;  %5349 = vmatpush.msra.mxu2 %v13619_v11  ;;  %5436 = vmatpush.msra.mxu3 %v11549_v33  ;;  %v13535_v5 = vand.u32 4294901760, %v11764_v30  ;;  %v11811_v56 = vsub.f32 %v3762_v13, %v11774_v52  ;;  %v3760_v29 = vld [vmem:[%s13459_s5 + $0x1d0] sm:$0xff] }
 0x4ae   :  { %v4026_v7 = vadd.f32 %v4025_v28, %v3897_v19  ;;  %v11777_v28 = vsub.f32 %v3763_v46, %v11757_v21  ;;  %v11823_v14 = vand.u32 4294901760, %v3760_v29  ;;  %v3684_v11 = vld [vmem:[#allocation5 + $0xb0] sm:$0xff] }
 0x4af   :  { %v11741_v57 = vpop.f32.mrf.mxu0  ;;  %v11767_v55 = vsub.f32 %v3764_v37, %v11745_v25  ;;  %5353 = vmatpush.msra.mxu2 %v13620_v60  ;;  %5479 = vmatpush.msra.mxu0 %v11745_v25  ;;  %v13624_v60 = vand.u32 4294901760, %v11569_v62 }
 0x4b0   :  { %4955 = vmatmul.f32.vlgmr.msrb.gmra.mxu2 %v4954_v49  ;;  %5116 = vmatmul.f32.gmra.mxu3 %v11702_v24  ;;  %v4115_v12 = vadd.f32 %v11683_v27, %v4026_v7  ;;  %v3679_v27 = vld [vmem:[#allocation5 + $0x88] sm:$0xff]  ;;  %v13533_v59 = vand.u32 4294901760, %v11777_v28  ;;  %v13532_v7 = vand.u32 4294901760, %v11811_v56  ;;  %v11832_v49 = vand.u32 4294901760, %v3759_v20 }
 0x4b1   :  { %v11760_v45 = vpop.f32.mrf.mxu1  ;;  %v13534_v33 = vand.u32 4294901760, %v11767_v55  ;;  %5438 = vmatpush.msra.mxu3 %v11585_v41  ;;  %v11794_v38 = vand.u32 4294901760, %v3679_v27  ;;  %5481 = vmatpush.msra.mxu0 %v11757_v21  ;;  %v11845_v4 = vsub.f32 %v3760_v29, %v11823_v14  ;;  %v4970_v29 = vand.u32 4294901760, %v4969_v63 }
 0x4b2   :  { %5199 = vmatmul.f32.gmra.mxu0 %v4959_v1  ;;  %v11782_v3 = vadd.f32 %v11688_v51, %v4115_v12  ;;  %v13621_v51 = vand.u32 4294901760, %v11534_v53  ;;  %v5576_v1 = vsub.f32 %v11764_v30, %v13535_v5  ;;  %v5588_v53 = vsub.f32 %v11777_v28, %v13533_v59 }
 0x4b3   :  { %v4264_v39 = vpop.f32.mrf.mxu2  ;;  %v11784_v50 = vpop.f32.mrf.mxu3  ;;  %13622 = vst [vmem:[#allocation12_spill] sm:$0xff] %v11794_v38  ;;  %v5582_v41 = vsub.f32 %v11767_v55, %v13534_v33  ;;  %5440 = vmatpush.msra.mxu3 %v11591_v10  ;;  %5483 = vmatpush.msra.mxu0 %v11774_v52  ;;  %v11838_v46 = vsub.f32 %v3679_v27, %v11794_v38 }
 0x4b4   :  { %v4265_v32 = vadd.f32 %v4264_v39, %v4154_v2  ;;  %5274 = vmatmul.f32.gmra.mxu1 %v4960_v31  ;;  %5357 = vmatpush.msra.mxu2 %v13621_v51  ;;  %v11821_v31 = vand.u32 4294901760, %v3761_v61  ;;  %v5589_v12 = vand.u32 4294901760, %v5588_v53  ;;  %v5594_v13 = vsub.f32 %v11811_v56, %v13532_v7  ;;  %v3750_v7 = vld [vmem:[%s13459_s5 + $0x180] sm:$0xff] }
 0x4b5   :  { %v5583_v19 = vand.u32 4294901760, %v5582_v41  ;;  %5442 = vmatpush.msra.mxu3 %v11608_v6  ;;  %v11857_v27 = vsub.f32 %v3759_v20, %v11832_v49  ;;  %v4976_v53 = vand.u32 4294901760, %v11838_v46  ;;  %v13627_v20 = vand.u32 4294901760, %v11612_v48 }
 0x4b6   :  { %v4330_v23 = vadd.f32 %v4329_v44, %v4265_v32  ;;  %5361 = vmatpush.msra.mxu2 %v13623_v22  ;;  %v5577_v44 = vand.u32 4294901760, %v5576_v1  ;;  %5485 = vmatpush.msra.mxu0 %v11821_v31  ;;  %v11842_v6 = vsub.f32 %v3761_v61, %v11821_v31  ;;  %v13527_v1 = vand.u32 4294901760, %v11845_v4  ;;  %v3757_v22 = vld [vmem:[%s13459_s5 + $0x1b8] sm:$0xff] }
 0x4b7   :  { %v11818_v10 = vpop.f32.mrf.mxu0  ;;  %v5595_v62 = vand.u32 4294901760, %v5594_v13  ;;  %5792 = vmatpush.msrb.mxu3 %v11743_v35  ;;  %v3755_v13 = vld [vmem:[%s13459_s5 + $0x1a8] sm:$0xff] }
 0x4b8   :  { %4963 = vmatmul.f32.gmra.mxu2 %v4962_v26  ;;  %5120 = vmatmul.f32.gmra.mxu3 %v11729_v36  ;;  %v4399_v8 = vadd.f32 %v11709_v58, %v4330_v23  ;;  %v3758_v58 = vld [vmem:[%s13459_s5 + $0x1c0] sm:$0xff]  ;;  %v11870_v23 = vand.u32 4294901760, %v3684_v11  ;;  %v13525_v26 = vand.u32 4294901760, %v11857_v27  ;;  %v13632_v36 = vand.u32 4294901760, %v11764_v30 }
 0x4b9   :  { %v11835_v37 = vpop.f32.mrf.mxu1  ;;  %5578 = vmatpush.msra.mxu1 %v5577_v44  ;;  %v11854_v2 = vand.u32 4294901760, %v3758_v58  ;;  %5365 = vmatpush.msra.mxu2 %v13624_v60 }
 0x4ba   :  { %5204 = vmatmul.f32.gmra.mxu0 %v11755_v47  ;;  %v11862_v39 = vadd.f32 %v11716_v34, %v4399_v8  ;;  %v13531_v47 = vand.u32 4294901760, %v11842_v6  ;;  %13625 = vst [vmem:[#allocation10_spill] sm:$0xff] %v11870_v23  ;;  %v13626_v34 = vand.u32 4294901760, %v11606_v43  ;;  %v5612_v43 = vsub.f32 %v11857_v27, %v13525_v26  ;;  %5794 = vmatpush.msrb.mxu3 %v11745_v25 }
 0x4bb   :  { %v4268_v32 = vpop.f32.mrf.mxu2  ;;  %v11864_v51 = vpop.f32.mrf.mxu3  ;;  %5584 = vmatpush.msra.mxu1 %v5583_v19  ;;  %5487 = vmatpush.msra.mxu0 %v11823_v14  ;;  %v11891_v44 = vsub.f32 %v3758_v58, %v11854_v2  ;;  %v3756_v19 = vld [vmem:[%s13459_s5 + $0x1b0] sm:$0xff]  ;;  %v11911_v48 = vsub.f32 %v3684_v11, %v11870_v23 }
 0x4bc   :  { %v4269_v41 = vadd.f32 %v4268_v32, %v11558_v16  ;;  %5280 = vmatmul.f32.gmra.mxu1 %v4968_v54  ;;  %5369 = vmatpush.msra.mxu2 %v13626_v34  ;;  %v5600_v61 = vsub.f32 %v11842_v6, %v13531_v47  ;;  %v5606_v16 = vsub.f32 %v11845_v4, %v13527_v1  ;;  %v11904_v58 = vand.u32 4294901760, %v3756_v19 }
 0x4bd   :  { %5590 = vmatpush.msra.mxu1 %v5589_v12  ;;  %5489 = vmatpush.msra.mxu0 %v11832_v49  ;;  %v11902_v12 = vand.u32 4294901760, %v3757_v22  ;;  %v13526_v60 = vand.u32 4294901760, %v11891_v44  ;;  %v11914_v32 = vand.u32 4294901760, %v3755_v13  ;;  %v4977_v34 = vsub.f32 %v11838_v46, %v4976_v53 }
 0x4be   :  { %v4334_v54 = vadd.f32 %v11784_v50, %v4269_v41  ;;  %5373 = vmatpush.msra.mxu2 %v13627_v20  ;;  %v5601_v63 = vand.u32 4294901760, %v5600_v61  ;;  %v5607_v8 = vand.u32 4294901760, %v5606_v16  ;;  %v5613_v61 = vand.u32 4294901760, %v5612_v43  ;;  %5796 = vmatpush.msrb.mxu3 %v11757_v21 }
 0x4bf   :  { %v11899_v50 = vpop.f32.mrf.mxu0  ;;  %5596 = vmatpush.msra.mxu1 %v5595_v62  ;;  %5491 = vmatpush.msra.mxu0 %v11854_v2  ;;  %v11922_v16 = vsub.f32 %v3757_v22, %v11902_v12  ;;  %v11925_v11 = vsub.f32 %v3756_v19, %v11904_v58  ;;  %v11937_v20 = vsub.f32 %v3755_v13, %v11914_v32  ;;  %v13628_v22 = vand.u32 4294901760, %v11621_v15 }
 0x4c0   :  { %4971 = vmatmul.f32.gmra.mxu2 %v4970_v29  ;;  %5124 = vmatmul.f32.gmra.mxu3 %v11794_v38  ;;  %v4407_v41 = vadd.f32 %v11741_v57, %v4334_v54  ;;  %v3754_v29 = vld [vmem:[%s13459_s5 + $0x1a0] sm:$0xff]  ;;  %v3689_v57 = vld [vmem:[#allocation5 + $0xd8] sm:$0xff]  ;;  %v5618_v54 = vsub.f32 %v11891_v44, %v13526_v60  ;;  %v4984_v13 = vand.u32 4294901760, %v11911_v48 }
 0x4c1   :  { %v11917_v62 = vpop.f32.mrf.mxu1  ;;  %5602 = vmatpush.msra.mxu1 %v5601_v63  ;;  %5493 = vmatpush.msra.mxu0 %v11902_v12  ;;  %v11934_v43 = vand.u32 4294901760, %v3754_v29  ;;  %v13530_v60 = vand.u32 4294901760, %v11925_v11 }
 0x4c2   :  { %5209 = vmatmul.f32.gmra.mxu0 %v11838_v46  ;;  %5377 = vmatpush.msra.mxu2 %v13628_v22  ;;  %v11942_v19 = vadd.f32 %v11760_v45, %v4407_v41  ;;  %v13528_v46 = vand.u32 4294901760, %v11922_v16  ;;  %v5619_v15 = vand.u32 4294901760, %v5618_v54  ;;  %v13529_v22 = vand.u32 4294901760, %v11937_v20 }
 0x4c3   :  { %v4272_v63 = vpop.f32.mrf.mxu2  ;;  %v11944_v26 = vpop.f32.mrf.mxu3  ;;  %5608 = vmatpush.msra.mxu1 %v5607_v8  ;;  %5495 = vmatpush.msra.mxu0 %v11904_v58  ;;  %v11953_v45 = vand.u32 4294901760, %v3689_v57  ;;  %v4978_v41 = vand.u32 4294901760, %v4977_v34  ;;  %v4985_v47 = vsub.f32 %v11911_v48, %v4984_v13 }
 0x4c4   :  { %13629 = vst [vmem:[#allocation9_spill] sm:$0xff] %v11942_v19  ;;  %v4273_v1 = vadd.f32 %v4272_v63, %v11615_v18  ;;  %5286 = vmatmul.f32.gmra.mxu1 %v4976_v53  ;;  %v5624_v8 = vsub.f32 %v11922_v16, %v13528_v46  ;;  %v5630_v18 = vsub.f32 %v11925_v11, %v13530_v60  ;;  %v3752_v46 = vld [vmem:[%s13459_s5 + $0x190] sm:$0xff] }
 0x4c5   :  { %5614 = vmatpush.msra.mxu1 %v5613_v61  ;;  %5497 = vmatpush.msra.mxu0 %v11914_v32  ;;  %v5636_v54 = vsub.f32 %v11937_v20, %v13529_v22  ;;  %v3753_v61 = vld [vmem:[%s13459_s5 + $0x198] sm:$0xff]  ;;  %v11970_v63 = vsub.f32 %v3754_v29, %v11934_v43  ;;  %v11982_v60 = vand.u32 4294901760, %v3752_v46  ;;  %v3751_v29 = vld [vmem:[%s13459_s5 + $0x188] sm:$0xff]  ;;  %v4991_v59 = vsub.f32 %v3689_v57, %v11953_v45 }
 0x4c6   :  { %v4338_v53 = vadd.f32 %v11864_v51, %v4273_v1  ;;  %5704 = vmatpush.msrb.mxu2 %v11764_v30  ;;  %v5625_v1 = vand.u32 4294901760, %v5624_v8  ;;  %v5631_v34 = vand.u32 4294901760, %v5630_v18  ;;  %v11980_v22 = vand.u32 4294901760, %v3753_v61  ;;  %5798 = vmatpush.msrb.mxu3 %v11774_v52 }
 0x4c7   :  { %v11977_v51 = vpop.f32.mrf.mxu0  ;;  %5620 = vmatpush.msra.mxu1 %v5619_v15  ;;  %5499 = vmatpush.msra.mxu0 %v11934_v43  ;;  %v11990_v15 = vand.u32 4294901760, %v3751_v29  ;;  %v5637_v33 = vand.u32 4294901760, %v5636_v54  ;;  %v12001_v5 = vsub.f32 %v3752_v46, %v11982_v60 }
 0x4c8   :  { %4979 = vmatmul.f32.gmra.mxu2 %v4978_v41  ;;  %5128 = vmatmul.f32.gmra.mxu3 %v11870_v23  ;;  %v4415_v8 = vadd.f32 %v11818_v10, %v4338_v53  ;;  %v11998_v41 = vsub.f32 %v3753_v61, %v11980_v22  ;;  %v13630_v10 = vand.u32 4294901760, %v11970_v63  ;;  %v12010_v53 = vand.u32 4294901760, %v3750_v7  ;;  %v3694_v23 = vld [vmem:[#allocation5 + $0x100] sm:$0xff] }
 0x4c9   :  { %v11993_v18 = vpop.f32.mrf.mxu1  ;;  %5626 = vmatpush.msra.mxu1 %v5625_v1  ;;  %5501 = vmatpush.msra.mxu0 %v11980_v22  ;;  %v12013_v54 = vsub.f32 %v3751_v29, %v11990_v15 }
 0x4ca   :  { %5214 = vmatmul.f32.gmra.mxu0 %v11911_v48  ;;  %v5642_v57 = vsub.f32 %v11970_v63, %v13630_v10  ;;  %v12016_v61 = vadd.f32 %v11835_v37, %v4415_v8  ;;  %v13542_v48 = vand.u32 4294901760, %v11998_v41  ;;  %v13540_v10 = vand.u32 4294901760, %v12001_v5  ;;  %5800 = vmatpush.msrb.mxu3 %v11821_v31 }
 0x4cb   :  { %v4276_v46 = vpop.f32.mrf.mxu2  ;;  %v4345_v1 = vpop.f32.mrf.mxu3  ;;  %5632 = vmatpush.msra.mxu1 %v5631_v34  ;;  %5503 = vmatpush.msra.mxu0 %v11982_v60  ;;  %v13541_v19 = vand.u32 4294901760, %v12013_v54  ;;  %v4986_v37 = vand.u32 4294901760, %v4985_v47  ;;  %v4992_v8 = vand.u32 4294901760, %v4991_v59 }
 0x4cc   :  { %13631 = vst [vmem:[#allocation14_spill] sm:$0xff] %v12016_v61  ;;  %v4277_v38 = vadd.f32 %v4276_v46, %v11648_v17  ;;  %5292 = vmatmul.f32.gmra.mxu1 %v4984_v13  ;;  %v5643_v29 = vand.u32 4294901760, %v5642_v57  ;;  %v5648_v34 = vsub.f32 %v11998_v41, %v13542_v48  ;;  %v5654_v61 = vsub.f32 %v12001_v5, %v13540_v10 }
 0x4cd   :  { %5638 = vmatpush.msra.mxu1 %v5637_v33  ;;  %5505 = vmatpush.msra.mxu0 %v11990_v15  ;;  %v12033_v13 = vand.u32 4294901760, %v3694_v23  ;;  %v5660_v47 = vsub.f32 %v12013_v54, %v13541_v19  ;;  %v12039_v33 = vsub.f32 %v3750_v7, %v12010_v53  ;;  %v4993_v19 = vsub.f32 %v4991_v59, %v4992_v8 }
 0x4ce   :  { %v4342_v17 = vadd.f32 %v11944_v26, %v4277_v38  ;;  %5707 = vmatpush.msrb.mxu2 %v11767_v55  ;;  %5802 = vmatpush.msrb.mxu3 %v11823_v14  ;;  %v5649_v46 = vand.u32 4294901760, %v5648_v34  ;;  %v5655_v10 = vand.u32 4294901760, %v5654_v61 }
 0x4cf   :  { %v12043_v57 = vpop.f32.mrf.mxu0  ;;  %5644 = vmatpush.msra.mxu1 %v5643_v29  ;;  %5507 = vmatpush.msra.mxu0 %v12010_v53  ;;  %v13545_v38 = vand.u32 4294901760, %v12039_v33  ;;  %v5661_v48 = vand.u32 4294901760, %v5660_v47  ;;  %v4999_v61 = vsub.f32 %v3694_v23, %v12033_v13  ;;  %v13633_v47 = vand.u32 4294901760, %v11767_v55 }
 0x4d0   :  { %4987 = vmatmul.f32.gmra.mxu2 %v4986_v37  ;;  %5132 = vmatmul.f32.gmra.mxu3 %v11953_v45  ;;  %v4423_v26 = vadd.f32 %v11899_v50, %v4342_v17  ;;  %v3699_v17 = vld [vmem:[#allocation5 + $0x128] sm:$0xff]  ;;  %v13634_v23 = vand.u32 4294901760, %v11777_v28 }
 0x4d1   :  { %v12049_v7 = vpop.f32.mrf.mxu1  ;;  %5650 = vmatpush.msra.mxu1 %v5649_v46  ;;  %5875 = vmatpush.msrb.mxu0 %v13632_v36  ;;  %v5666_v29 = vsub.f32 %v12039_v33, %v13545_v38  ;;  %v4994_v46 = vand.u32 4294901760, %v4993_v19  ;;  %v12067_v38 = vand.u32 4294901760, %v3699_v17 }
 0x4d2   :  { %5219 = vmatmul.f32.gmra.mxu0 %v4991_v59  ;;  %v12058_v37 = vadd.f32 %v11917_v62, %v4423_v26  ;;  %5710 = vmatpush.msrb.mxu2 %v11777_v28  ;;  %v3665_v59 = vld [vmem:[#allocation5 + $0x18] sm:$0xff]  ;;  %v5000_v26 = vand.u32 4294901760, %v4999_v61 }
 0x4d3   :  { %v4280_v50 = vpop.f32.mrf.mxu2  ;;  %v4349_v34 = vpop.f32.mrf.mxu3  ;;  %5656 = vmatpush.msra.mxu1 %v5655_v10  ;;  %5879 = vmatpush.msrb.mxu0 %v13633_v47  ;;  %v5667_v30 = vand.u32 4294901760, %v5666_v29  ;;  %v12076_v28 = vand.u32 4294901760, %v3665_v59 }
 0x4d4   :  { %v4281_v36 = vadd.f32 %v4280_v50, %v11668_v42  ;;  %5298 = vmatmul.f32.gmra.mxu1 %v4992_v8  ;;  %5804 = vmatpush.msrb.mxu3 %v11832_v49  ;;  %v13635_v42 = vand.u32 4294901760, %v11811_v56  ;;  %v5001_v10 = vsub.f32 %v4999_v61, %v5000_v26  ;;  %v5007_v8 = vsub.f32 %v3699_v17, %v12067_v38 }
 0x4d5   :  { %5662 = vmatpush.msra.mxu1 %v5661_v48  ;;  %5883 = vmatpush.msrb.mxu0 %v13634_v23  ;;  %v13636_v48 = vand.u32 4294901760, %v11842_v6  ;;  %v12094_v47 = vsub.f32 %v3665_v59, %v12076_v28 }
 0x4d6   :  { %v4346_v62 = vadd.f32 %v4345_v1, %v4281_v36  ;;  %5713 = vmatpush.msrb.mxu2 %v11811_v56  ;;  %5806 = vmatpush.msrb.mxu3 %v11854_v2  ;;  %v5002_v17 = vand.u32 4294901760, %v5001_v10  ;;  %v13639_v36 = vand.u32 4294901760, %v11891_v44 }
 0x4d7   :  { %v12071_v55 = vpop.f32.mrf.mxu0  ;;  %5668 = vmatpush.msra.mxu1 %v5667_v30  ;;  %5887 = vmatpush.msrb.mxu0 %v13635_v42 }
 0x4d8   :  { %4995 = vmatmul.f32.gmra.mxu2 %v4994_v46  ;;  %5136 = vmatmul.f32.gmra.mxu3 %v12033_v13  ;;  %v4431_v19 = vadd.f32 %v11977_v51, %v4346_v62  ;;  %v13637_v51 = vand.u32 4294901760, %v11845_v4 }
 0x4d9   :  { %v12079_v1 = vpop.f32.mrf.mxu1  ;;  %5970 = vmatpush.msrb.mxu1 %v11743_v35  ;;  %5891 = vmatpush.msrb.mxu0 %v13636_v48 }
 0x4da   :  { %5224 = vmatmul.f32.gmra.mxu0 %v4999_v61  ;;  %v12086_v56 = vadd.f32 %v11993_v18, %v4431_v19  ;;  %5716 = vmatpush.msrb.mxu2 %v11842_v6  ;;  %v3670_v61 = vld [vmem:[#allocation5 + $0x40] sm:$0xff]  ;;  %v13638_v6 = vand.u32 4294901760, %v11857_v27 }
 0x4db   :  { %v4284_v29 = vpop.f32.mrf.mxu2  ;;  %v4353_v50 = vpop.f32.mrf.mxu3  ;;  %5972 = vmatpush.msrb.mxu1 %v11745_v25  ;;  %5895 = vmatpush.msrb.mxu0 %v13637_v51  ;;  %v5008_v25 = vand.u32 4294901760, %v5007_v8  ;;  %v12109_v30 = vand.u32 4294901760, %v3670_v61 }
 0x4dc   :  { %v4285_v35 = vadd.f32 %v4284_v29, %v11693_v9  ;;  %5304 = vmatmul.f32.gmra.mxu1 %v5000_v26  ;;  %5808 = vmatpush.msrb.mxu3 %v11902_v12 }
 0x4dd   :  { %5974 = vmatpush.msrb.mxu1 %v11757_v21  ;;  %5899 = vmatpush.msrb.mxu0 %v13638_v6  ;;  %v5510_v21 = vand.u32 4294901760, %v12094_v47  ;;  %v12128_v26 = vsub.f32 %v3670_v61, %v12109_v30 }
 0x4de   :  { %v4350_v18 = vadd.f32 %v4349_v34, %v4285_v35  ;;  %5719 = vmatpush.msrb.mxu2 %v11845_v4  ;;  %5810 = vmatpush.msrb.mxu3 %v11904_v58  ;;  %v13640_v4 = vand.u32 4294901760, %v11922_v16  ;;  %v13645_v35 = vand.u32 4294901760, %v12001_v5 }
 0x4df   :  { %v12102_v9 = vpop.f32.mrf.mxu0  ;;  %5976 = vmatpush.msrb.mxu1 %v11774_v52  ;;  %5903 = vmatpush.msrb.mxu0 %v13639_v36  ;;  %v5009_v52 = vsub.f32 %v5007_v8, %v5008_v25  ;;  %v3685_v36 = vld [vmem:[#allocation5 + $0xb8] sm:$0xff] }
 0x4e0   :  { %5003 = vmatmul.f32.gmra.mxu2 %v5002_v17  ;;  %5140 = vmatmul.f32.gmra.mxu3 %v12067_v38  ;;  %v4439_v34 = vadd.f32 %v12043_v57, %v4350_v18 }
 0x4e1   :  { %v12112_v59 = vpop.f32.mrf.mxu1  ;;  %5978 = vmatpush.msrb.mxu1 %v11821_v31  ;;  %5907 = vmatpush.msrb.mxu0 %v13640_v4  ;;  %v5511_v31 = vsub.f32 %v12094_v47, %v5510_v21  ;;  %v5010_v42 = vand.u32 4294901760, %v5009_v52  ;;  %v13648_v4 = vld [vmem:[#allocation8_spill] sm:$0xff] }
 0x4e2   :  { %5229 = vmatmul.f32.gmra.mxu0 %v5007_v8  ;;  %v12118_v23 = vadd.f32 %v12049_v7, %v4439_v34  ;;  %5722 = vmatpush.msrb.mxu2 %v11857_v27  ;;  %v13641_v7 = vand.u32 4294901760, %v11925_v11  ;;  %v3675_v27 = vld [vmem:[#allocation5 + $0x68] sm:$0xff]  ;;  %v13647_v34 = vand.u32 4294901760, %v12039_v33 }
 0x4e3   :  { %v4288_v62 = vpop.f32.mrf.mxu2  ;;  %v4357_v46 = vpop.f32.mrf.mxu3  ;;  %5980 = vmatpush.msrb.mxu1 %v11823_v14  ;;  %5812 = vmatpush.msrb.mxu3 %v11914_v32  ;;  %v5512_v48 = vand.u32 4294901760, %v5511_v31 }
 0x4e4   :  { %v4289_v57 = vadd.f32 %v4288_v62, %v11722_v40  ;;  %5310 = vmatmul.f32.gmra.mxu1 %v5008_v25  ;;  %5911 = vmatpush.msrb.mxu0 %v13641_v7  ;;  %v13642_v40 = vand.u32 4294901760, %v11937_v20  ;;  %v13646_v25 = vand.u32 4294901760, %v12013_v54  ;;  %v12207_v62 = vand.u32 4294901760, %v3685_v36 }
 0x4e5   :  { %5982 = vmatpush.msrb.mxu1 %v11832_v49  ;;  %5725 = vmatpush.msrb.mxu2 %v11891_v44  ;;  %v5518_v49 = vand.u32 4294901760, %v12128_v26  ;;  %v12143_v44 = vand.u32 4294901760, %v3675_v27 }
 0x4e6   :  { %v4354_v14 = vadd.f32 %v4353_v50, %v4289_v57  ;;  %5814 = vmatpush.msrb.mxu3 %v11934_v43  ;;  %5915 = vmatpush.msrb.mxu0 %v13642_v40  ;;  %v13643_v50 = vand.u32 4294901760, %v11970_v63  ;;  %v13650_v40 = vld [vmem:[#allocation12_spill] sm:$0xff] }
 0x4e7   :  { %v12137_v19 = vpop.f32.mrf.mxu0  ;;  %5984 = vmatpush.msrb.mxu1 %v11854_v2  ;;  %5728 = vmatpush.msrb.mxu2 %v11922_v16 }
 0x4e8   :  { %5011 = vmatmul.f32.gmra.mxu2 %v5010_v42  ;;  %5444 = vmatmul.f32.vlgmr.msra.gmra.mxu3 %v11678_v0  ;;  %v4447_v10 = vadd.f32 %v12071_v55, %v4354_v14 }
 0x4e9   :  { %v12146_v8 = vpop.f32.mrf.mxu1  ;;  %5986 = vmatpush.msrb.mxu1 %v11902_v12  ;;  %5816 = vmatpush.msrb.mxu3 %v11980_v22  ;;  %v5519_v12 = vsub.f32 %v12128_v26, %v5518_v49 }
 0x4ea   :  { %5513 = vmatmul.f32.vlgmr.msra.gmra.mxu0 %v5512_v48  ;;  %v12151_v2 = vadd.f32 %v12079_v1, %v4447_v10  ;;  %5731 = vmatpush.msrb.mxu2 %v11925_v11  ;;  %v12163_v1 = vsub.f32 %v3675_v27, %v12143_v44  ;;  %v3680_v11 = vld [vmem:[#allocation5 + $0x90] sm:$0xff]  ;;  %v12221_v27 = vsub.f32 %v3685_v36, %v12207_v62 }
 0x4eb   :  { %v4292_v16 = vpop.f32.mrf.mxu2  ;;  %v4711_v29 = vpop.f32.mrf.mxu3  ;;  %5988 = vmatpush.msrb.mxu1 %v11904_v58  ;;  %5919 = vmatpush.msrb.mxu0 %v13643_v50  ;;  %v13644_v58 = vand.u32 4294901760, %v11998_v41  ;;  %v5520_v61 = vand.u32 4294901760, %v5519_v12  ;;  %v12177_v6 = vand.u32 4294901760, %v3680_v11 }
 0x4ec   :  { %v4293_v55 = vadd.f32 %v4292_v16, %v11782_v3  ;;  %5670 = vmatmul.f32.vlgmr.msra.gmra.mxu1 %v12076_v28  ;;  %5818 = vmatpush.msrb.mxu3 %v11982_v60 }
 0x4ed   :  { %5990 = vmatpush.msrb.mxu1 %v11914_v32  ;;  %5923 = vmatpush.msrb.mxu0 %v13644_v58  ;;  %v5526_v32 = vand.u32 4294901760, %v12163_v1 }
 0x4ee   :  { %v4358_v51 = vadd.f32 %v4357_v46, %v4293_v55  ;;  %5734 = vmatpush.msrb.mxu2 %v11937_v20  ;;  %5820 = vmatpush.msrb.mxu3 %v11990_v15  ;;  %v13651_v55 = vld [vmem:[#allocation14_spill] sm:$0xff] }
 0x4ef   :  { %v4826_v3 = vpop.f32.mrf.mxu0  ;;  %5992 = vmatpush.msrb.mxu1 %v11934_v43  ;;  %5927 = vmatpush.msrb.mxu0 %v13645_v35 }
 0x4f0   :  { %5379 = vmatmul.f32.vlgmr.msra.gmra.mxu2 %v11678_v0  ;;  %5448 = vmatmul.f32.gmra.mxu3 %v11702_v24  ;;  %v4455_v18 = vadd.f32 %v12102_v9, %v4358_v51  ;;  %v3695_v51 = vld [vmem:[#allocation5 + $0x108] sm:$0xff] }
 0x4f1   :  { %v4891_v20 = vpop.f32.mrf.mxu1  ;;  %5994 = vmatpush.msrb.mxu1 %v11980_v22  ;;  %5737 = vmatpush.msrb.mxu2 %v11970_v63  ;;  %v5527_v22 = vsub.f32 %v12163_v1, %v5526_v32  ;;  %v12195_v63 = vsub.f32 %v3680_v11, %v12177_v6 }
 0x4f2   :  { %5521 = vmatmul.f32.gmra.mxu0 %v5520_v61  ;;  %5822 = vmatpush.msrb.mxu3 %v12010_v53  ;;  %v12184_v43 = vadd.f32 %v12112_v59, %v4455_v18  ;;  %v13652_v61 = vld [vmem:[#allocation10_spill] sm:$0xff] }
 0x4f3   :  { %v4637_v0 = vpop.f32.mrf.mxu2  ;;  %v4717_v17 = vpop.f32.mrf.mxu3  ;;  %5931 = vmatpush.msrb.mxu0 %v13646_v25  ;;  %5996 = vmatpush.msrb.mxu1 %v11982_v60  ;;  %v5534_v52 = vand.u32 4294901760, %v12195_v63 }
 0x4f4   :  { %v4638_v9 = vadd.f32 %v4637_v0, %v11862_v39  ;;  %5674 = vmatmul.f32.gmra.mxu1 %v12109_v30  ;;  %5740 = vmatpush.msrb.mxu2 %v11998_v41  ;;  %v3654_v59 = vpop.permute.xlu1 %3653  ;;  %v5528_v41 = vand.u32 4294901760, %v5527_v22  ;;  %v12241_v0 = vand.u32 4294901760, %v3695_v51 }
 0x4f5   :  { %5935 = vmatpush.msrb.mxu0 %v13647_v34  ;;  %5998 = vmatpush.msrb.mxu1 %v11990_v15  ;;  %3656 = vst.msk [vmem:[#allocation5 + $0x130] sm:$0xff] %vm3239_vm13, %v3654_v59  ;;  %v5535_v7 = vsub.f32 %v12195_v63, %v5534_v52 }
 0x4f6   :  { %v4712_v60 = vadd.f32 %v4711_v29, %v4638_v9  ;;  %5743 = vmatpush.msrb.mxu2 %v12001_v5 }
 0x4f7   :  { %v4830_v39 = vpop.f32.mrf.mxu0  ;;  %6000 = vmatpush.msrb.mxu1 %v12010_v53 }
 0x4f8   :  { %5383 = vmatmul.f32.gmra.mxu2 %v11702_v24  ;;  %5452 = vmatmul.f32.gmra.mxu3 %v13648_v4  ;;  %v4823_v15 = vadd.f32 %v12137_v19, %v4712_v60  ;;  %v13649_v24 = vld [vmem:[#allocation9_spill] sm:$0xff]  ;;  %v5536_v19 = vand.u32 4294901760, %v5535_v7 }
 0x4f9   :  { %v4895_v46 = vpop.f32.mrf.mxu1  ;;  %5746 = vmatpush.msrb.mxu2 %v12013_v54  ;;  %v3690_v54 = vld [vmem:[#allocation5 + $0xe0] sm:$0xff] }
 0x4fa   :  { %5529 = vmatmul.f32.gmra.mxu0 %v5528_v41  ;;  %v12212_v5 = vadd.f32 %v12146_v8, %v4823_v15  ;;  %v12226_v48 = vand.u32 4294901760, %v3690_v54 }
 0x4fb   :  { %v4642_v57 = vpop.f32.mrf.mxu2  ;;  %v4723_v53 = vpop.f32.mrf.mxu3  ;;  %5749 = vmatpush.msrb.mxu2 %v12039_v33  ;;  %v5542_v33 = vand.u32 4294901760, %v12221_v27 }
 0x4fc   :  { %v4643_v31 = vadd.f32 %v4642_v57, %v13649_v24  ;;  %5678 = vmatmul.f32.gmra.mxu1 %v12143_v44  ;;  %v12236_v58 = vsub.f32 %v3690_v54, %v12226_v48  ;;  %v3700_v34 = vld [vmem:[#allocation5 + $0x130] sm:$0xff] }
 0x4fd   :  { %v5543_v11 = vsub.f32 %v12221_v27, %v5542_v33 }
 0x4fe   :  { %v4718_v14 = vadd.f32 %v4717_v17, %v4643_v31 }
 0x4ff   :  { %v4834_v42 = vpop.f32.mrf.mxu0  ;;  %v5544_v18 = vand.u32 4294901760, %v5543_v11 }
 0x500   :  { %5387 = vmatmul.f32.gmra.mxu2 %v13648_v4  ;;  %5456 = vmatmul.f32.gmra.mxu3 %v13650_v40  ;;  %v4827_v10 = vadd.f32 %v4826_v3, %v4718_v14  ;;  %v12251_v4 = vsub.f32 %v3695_v51, %v12241_v0 }
 0x501   :  { %v4899_v8 = vpop.f32.mrf.mxu1 }
 0x502   :  { %5537 = vmatmul.f32.gmra.mxu0 %v5536_v19  ;;  %v12228_v16 = vadd.f32 %v4891_v20, %v4827_v10  ;;  %v5550_v20 = vand.u32 4294901760, %v12236_v58 }
 0x503   :  { %v4647_v29 = vpop.f32.mrf.mxu2  ;;  %v4729_v50 = vpop.f32.mrf.mxu3 }
 0x504   :  { %v4648_v12 = vadd.f32 %v4647_v29, %v13651_v55  ;;  %5682 = vmatmul.f32.gmra.mxu1 %v12177_v6  ;;  %v5551_v59 = vsub.f32 %v12236_v58, %v5550_v20 }
 0x506   :  { %v4724_v35 = vadd.f32 %v4723_v53, %v4648_v12 }
 0x507   :  { %v4838_v3 = vpop.f32.mrf.mxu0 }
 0x508   :  { %5391 = vmatmul.f32.gmra.mxu2 %v13650_v40  ;;  %5460 = vmatmul.f32.gmra.mxu3 %v13652_v61  ;;  %v4831_v17 = vadd.f32 %v4830_v39, %v4724_v35  ;;  %v12253_v39 = vand.u32 4294901760, %v3700_v34 }
 0x509   :  { %v4903_v25 = vpop.f32.mrf.mxu1 }
 0x50a   :  { %5545 = vmatmul.f32.gmra.mxu0 %v5544_v18  ;;  %v12243_v9 = vadd.f32 %v4895_v46, %v4831_v17  ;;  %v5552_v46 = vand.u32 4294901760, %v5551_v59  ;;  %v12259_v24 = vsub.f32 %v3700_v34, %v12253_v39 }
 0x50b   :  { %v4652_v22 = vpop.f32.mrf.mxu2  ;;  %v4735_v36 = vpop.f32.mrf.mxu3 }
 0x50c   :  { %v4653_v60 = vadd.f32 %v4652_v22, %v12058_v37  ;;  %5686 = vmatmul.f32.gmra.mxu1 %v12207_v62  ;;  %v5558_v37 = vand.u32 4294901760, %v12251_v4 }
 0x50e   :  { %v4730_v41 = vadd.f32 %v4729_v50, %v4653_v60  ;;  %v5559_v40 = vsub.f32 %v12251_v4, %v5558_v37 }
 0x50f   :  { %v4842_v15 = vpop.f32.mrf.mxu0 }
 0x510   :  { %5395 = vmatmul.f32.gmra.mxu2 %v13652_v61  ;;  %5464 = vmatmul.f32.gmra.mxu3 %v11953_v45  ;;  %v4835_v57 = vadd.f32 %v4834_v42, %v4730_v41  ;;  %v5566_v42 = vand.u32 4294901760, %v12259_v24 }
 0x511   :  { %v4907_v53 = vpop.f32.mrf.mxu1 }
 0x512   :  { %5553 = vmatmul.f32.gmra.mxu0 %v5552_v46  ;;  %v12261_v31 = vadd.f32 %v4899_v8, %v4835_v57  ;;  %v5560_v8 = vand.u32 4294901760, %v5559_v40  ;;  %v3773_v40 = vld [vmem:[%s13459_s5 + $0x238] sm:$0xff] }
 0x513   :  { %v4657_v7 = vpop.f32.mrf.mxu2  ;;  %v4741_v54 = vpop.f32.mrf.mxu3 }
 0x514   :  { %v4658_v14 = vadd.f32 %v4657_v7, %v12086_v56  ;;  %5690 = vmatmul.f32.gmra.mxu1 %v12226_v48  ;;  %v5567_v56 = vsub.f32 %v12259_v24, %v5566_v42 }
 0x516   :  { %v4736_v19 = vadd.f32 %v4735_v36, %v4658_v14 }
 0x517   :  { %v4846_v10 = vpop.f32.mrf.mxu0 }
 0x518   :  { %5399 = vmatmul.f32.gmra.mxu2 %v11953_v45  ;;  %5468 = vmatmul.f32.gmra.mxu3 %v12033_v13  ;;  %v4839_v29 = vadd.f32 %v4838_v3, %v4736_v19  ;;  %v5568_v45 = vand.u32 4294901760, %v5567_v56 }
 0x519   :  { %v4911_v50 = vpop.f32.mrf.mxu1 }
 0x51a   :  { %5561 = vmatmul.f32.gmra.mxu0 %v5560_v8  ;;  %v12274_v55 = vadd.f32 %v4903_v25, %v4839_v29 }
 0x51b   :  { %v4662_v12 = vpop.f32.mrf.mxu2  ;;  %v4747_v11 = vpop.f32.mrf.mxu3 }
 0x51c   :  { %v4663_v51 = vadd.f32 %v4662_v12, %v12118_v23  ;;  %5694 = vmatmul.f32.gmra.mxu1 %v12241_v0 }
 0x51e   :  { %v4742_v35 = vadd.f32 %v4741_v54, %v4663_v51 }
 0x51f   :  { %v4850_v61 = vpop.f32.mrf.mxu0 }
 0x520   :  { %5403 = vmatmul.f32.gmra.mxu2 %v12033_v13  ;;  %5472 = vmatmul.f32.gmra.mxu3 %v12067_v38  ;;  %v4843_v3 = vadd.f32 %v4842_v15, %v4742_v35 }
 0x521   :  { %v4915_v18 = vpop.f32.mrf.mxu1 }
 0x522   :  { %5569 = vmatmul.f32.gmra.mxu0 %v5568_v45  ;;  %v12280_v17 = vadd.f32 %v4907_v53, %v4843_v3 }
 0x523   :  { %v4667_v25 = vpop.f32.mrf.mxu2  ;;  %v4753_v22 = vpop.f32.mrf.mxu3 }
 0x524   :  { %v4668_v36 = vadd.f32 %v4667_v25, %v12151_v2  ;;  %5698 = vmatmul.f32.gmra.mxu1 %v12253_v39 }
 0x526   :  { %v4748_v23 = vadd.f32 %v4747_v11, %v4668_v36  ;;  %v3770_v11 = vld [vmem:[%s13459_s5 + $0x220] sm:$0xff] }
 0x527   :  { %v5195_v34 = vpop.f32.mrf.mxu0  ;;  %v12345_v35 = vand.u32 4294901760, %v3770_v11 }
 0x528   :  { %5407 = vmatmul.f32.gmra.mxu2 %v12067_v38  ;;  %5826 = vmatmul.f32.vlgmr.msrb.gmra.mxu3 %v5510_v21  ;;  %v4847_v13 = vadd.f32 %v4846_v10, %v4748_v23 }
 0x529   :  { %v5269_v60 = vpop.f32.mrf.mxu1  ;;  %v12362_v25 = vsub.f32 %v3770_v11, %v12345_v35 }
 0x52a   :  { %5937 = vmatmul.f32.vlgmr.msrb.gmra.mxu0 %v12076_v28  ;;  %v12288_v59 = vadd.f32 %v4911_v50, %v4847_v13  ;;  %v3772_v50 = vld [vmem:[%s13459_s5 + $0x230] sm:$0xff] }
 0x52b   :  { %v4672_v41 = vpop.f32.mrf.mxu2  ;;  %v5113_v15 = vpop.f32.mrf.mxu3  ;;  %v12332_v56 = vand.u32 4294901760, %v3772_v50 }
 0x52c   :  { %v4673_v46 = vadd.f32 %v4672_v41, %v12184_v43  ;;  %6002 = vmatmul.f32.vlgmr.msrb.gmra.mxu1 %v12076_v28 }
 0x52d   :  { %v12350_v3 = vsub.f32 %v3772_v50, %v12332_v56 }
 0x52e   :  { %v4754_v2 = vadd.f32 %v4753_v22, %v4673_v46 }
 0x52f   :  { %v5200_v57 = vpop.f32.mrf.mxu0  ;;  %v6139_v13 = vand.u32 4294901760, %v12350_v3 }
 0x530   :  { %5752 = vmatmul.f32.vlgmr.msrb.gmra.mxu2 %v12094_v47  ;;  %5832 = vmatmul.f32.gmra.mxu3 %v5518_v49  ;;  %v4851_v38 = vadd.f32 %v4850_v61, %v4754_v2 }
 0x531   :  { %v5275_v21 = vpop.f32.mrf.mxu1  ;;  %v6140_v2 = vsub.f32 %v12350_v3, %v6139_v13 }
 0x532   :  { %5941 = vmatmul.f32.gmra.mxu0 %v12109_v30  ;;  %v12296_v53 = vadd.f32 %v4915_v18, %v4851_v38 }
 0x533   :  { %v4956_v7 = vpop.f32.mrf.mxu2  ;;  %v5117_v54 = vpop.f32.mrf.mxu3 }
 0x534   :  { %v4957_v14 = vadd.f32 %v4956_v7, %v12212_v5  ;;  %6006 = vmatmul.f32.gmra.mxu1 %v12109_v30  ;;  %v12311_v5 = vand.u32 4294901760, %v3773_v40  ;;  %v3767_v7 = vld [vmem:[%s13459_s5 + $0x208] sm:$0xff] }
 0x536   :  { %v5114_v28 = vadd.f32 %v5113_v15, %v4957_v14  ;;  %6043 = vmatpush.msra.mxu2 %v12311_v5  ;;  %6294 = vmatpush.msra.mxu1 %v12311_v5  ;;  %v6151_v15 = vand.u32 4294901760, %v12362_v25  ;;  %v6141_v14 = vand.u32 4294901760, %v6140_v2 }
 0x537   :  { %v12300_v43 = vpop.f32.mrf.mxu0 }
 0x538   :  { %5757 = vmatmul.f32.gmra.mxu2 %v12128_v26  ;;  %5838 = vmatmul.f32.gmra.mxu3 %v5526_v32  ;;  %v5196_v47 = vadd.f32 %v5195_v34, %v5114_v28  ;;  %v12318_v32 = vsub.f32 %v3773_v40, %v12311_v5  ;;  %v12402_v40 = vand.u32 4294901760, %v3767_v7 }
 0x539   :  { %v12305_v49 = vpop.f32.mrf.mxu1  ;;  %6296 = vmatpush.msra.mxu1 %v12332_v56  ;;  %6045 = vmatpush.msra.mxu2 %v12332_v56 }
 0x53a   :  { %5945 = vmatmul.f32.gmra.mxu0 %v12143_v44  ;;  %v12313_v30 = vadd.f32 %v5269_v60, %v5196_v47  ;;  %v6133_v29 = vand.u32 4294901760, %v12318_v32 }
 0x53b   :  { %v4964_v19 = vpop.f32.mrf.mxu2  ;;  %v5121_v10 = vpop.f32.mrf.mxu3  ;;  %6222 = vmatpush.msra.mxu0 %v12318_v32 }
 0x53c   :  { %v4965_v26 = vadd.f32 %v4964_v19, %v12228_v16  ;;  %6010 = vmatmul.f32.gmra.mxu1 %v12143_v44  ;;  %v3771_v44 = vld [vmem:[%s13459_s5 + $0x228] sm:$0xff]  ;;  %v6134_v51 = vsub.f32 %v12318_v32, %v6133_v29  ;;  %v3766_v19 = vld [vmem:[%s13459_s5 + $0x200] sm:$0xff] }
 0x53d   :  { %v12334_v12 = vand.u32 4294901760, %v3771_v44  ;;  %6225 = vmatpush.msra.mxu0 %v12350_v3 }
 0x53e   :  { %v5118_v8 = vadd.f32 %v5117_v54, %v4965_v26  ;;  %v12414_v26 = vand.u32 4294901760, %v3766_v19 }
 0x53f   :  { %v12330_v16 = vpop.f32.mrf.mxu0  ;;  %v12353_v18 = vsub.f32 %v3771_v44, %v12334_v12  ;;  %6298 = vmatpush.msra.mxu1 %v12334_v12  ;;  %6047 = vmatpush.msra.mxu2 %v12334_v12 }
 0x540   :  { %5762 = vmatmul.f32.gmra.mxu2 %v12163_v1  ;;  %5844 = vmatmul.f32.gmra.mxu3 %v5534_v52  ;;  %v5201_v45 = vadd.f32 %v5200_v57, %v5118_v8  ;;  %v3769_v1 = vld [vmem:[%s13459_s5 + $0x218] sm:$0xff]  ;;  %v6135_v52 = vand.u32 4294901760, %v6134_v51 }
 0x541   :  { %v12347_v61 = vpop.f32.mrf.mxu1  ;;  %v12364_v22 = vand.u32 4294901760, %v3769_v1  ;;  %v6145_v60 = vand.u32 4294901760, %v12353_v18  ;;  %6228 = vmatpush.msra.mxu0 %v12353_v18  ;;  %6300 = vmatpush.msra.mxu1 %v12345_v35 }
 0x542   :  { %5949 = vmatmul.f32.gmra.mxu0 %v12177_v6  ;;  %v12366_v36 = vadd.f32 %v5275_v21, %v5201_v45  ;;  %6136 = vmatpush.msra.mxu3 %v6135_v52  ;;  %v3768_v21 = vld [vmem:[%s13459_s5 + $0x210] sm:$0xff] }
 0x543   :  { %v4972_v23 = vpop.f32.mrf.mxu2  ;;  %v5125_v34 = vpop.f32.mrf.mxu3  ;;  %v12376_v46 = vsub.f32 %v3769_v1, %v12364_v22  ;;  %v6146_v57 = vsub.f32 %v12353_v18, %v6145_v60  ;;  %6231 = vmatpush.msra.mxu0 %v12362_v25  ;;  %v12400_v47 = vand.u32 4294901760, %v3768_v21  ;;  %6302 = vmatpush.msra.mxu1 %v12364_v22 }
 0x544   :  { %v4973_v41 = vadd.f32 %v4972_v23, %v12243_v9  ;;  %6014 = vmatmul.f32.gmra.mxu1 %v12177_v6  ;;  %v6152_v6 = vsub.f32 %v12362_v25, %v6151_v15  ;;  %6142 = vmatpush.msra.mxu3 %v6141_v14 }
 0x545   :  { %v6157_v38 = vand.u32 4294901760, %v12376_v46  ;;  %v6147_v28 = vand.u32 4294901760, %v6146_v57  ;;  %v12420_v11 = vsub.f32 %v3768_v21, %v12400_v47  ;;  %6234 = vmatpush.msra.mxu0 %v12376_v46  ;;  %6049 = vmatpush.msra.mxu2 %v12345_v35 }
 0x546   :  { %v5122_v9 = vadd.f32 %v5121_v10, %v4973_v41  ;;  %v6153_v44 = vand.u32 4294901760, %v6152_v6  ;;  %6304 = vmatpush.msra.mxu1 %v12400_v47 }
 0x547   :  { %v12397_v54 = vpop.f32.mrf.mxu0  ;;  %v6158_v10 = vsub.f32 %v12376_v46, %v6157_v38  ;;  %6148 = vmatpush.msra.mxu3 %v6147_v28  ;;  %v6163_v52 = vand.u32 4294901760, %v12420_v11  ;;  %6237 = vmatpush.msra.mxu0 %v12420_v11 }
 0x548   :  { %5767 = vmatmul.f32.gmra.mxu2 %v12195_v63  ;;  %5850 = vmatmul.f32.gmra.mxu3 %v5542_v33  ;;  %v5206_v8 = vadd.f32 %v12300_v43, %v5122_v9  ;;  %v12424_v63 = vsub.f32 %v3767_v7, %v12402_v40  ;;  %v12429_v33 = vsub.f32 %v3766_v19, %v12414_v26 }
 0x549   :  { %v12417_v50 = vpop.f32.mrf.mxu1  ;;  %v6159_v1 = vand.u32 4294901760, %v6158_v10  ;;  %6051 = vmatpush.msra.mxu2 %v12364_v22  ;;  %6154 = vmatpush.msra.mxu3 %v6153_v44 }
 0x54a   :  { %5953 = vmatmul.f32.gmra.mxu0 %v12207_v62  ;;  %v12432_v43 = vadd.f32 %v12305_v49, %v5206_v8  ;;  %v6169_v23 = vand.u32 4294901760, %v12424_v63  ;;  %v6175_v2 = vand.u32 4294901760, %v12429_v33  ;;  %v6164_v49 = vsub.f32 %v12420_v11, %v6163_v52  ;;  %6306 = vmatpush.msra.mxu1 %v12402_v40 }
 0x54b   :  { %v4980_v51 = vpop.f32.mrf.mxu2  ;;  %v5129_v45 = vpop.f32.mrf.mxu3  ;;  %6240 = vmatpush.msra.mxu0 %v12424_v63  ;;  %6053 = vmatpush.msra.mxu2 %v12400_v47 }
 0x54c   :  { %v4981_v41 = vadd.f32 %v4980_v51, %v12261_v31  ;;  %6018 = vmatmul.f32.gmra.mxu1 %v12207_v62  ;;  %v6170_v57 = vsub.f32 %v12424_v63, %v6169_v23  ;;  %v6176_v62 = vsub.f32 %v12429_v33, %v6175_v2  ;;  %6160 = vmatpush.msra.mxu3 %v6159_v1  ;;  %v6165_v6 = vand.u32 4294901760, %v6164_v49  ;;  %v3681_v1 = vld [vmem:[#allocation5 + $0x98] sm:$0xff] }
 0x54d   :  { %6243 = vmatpush.msra.mxu0 %v12429_v33  ;;  %6055 = vmatpush.msra.mxu2 %v12402_v40 }
 0x54e   :  { %v5126_v9 = vadd.f32 %v5125_v34, %v4981_v41  ;;  %v6171_v21 = vand.u32 4294901760, %v6170_v57  ;;  %6166 = vmatpush.msra.mxu3 %v6165_v6  ;;  %v6177_v14 = vand.u32 4294901760, %v6176_v62  ;;  %6308 = vmatpush.msra.mxu1 %v12414_v26 }
 0x54f   :  { %v5220_v31 = vpop.f32.mrf.mxu0  ;;  %6057 = vmatpush.msra.mxu2 %v12414_v26 }
 0x550   :  { %5772 = vmatmul.f32.gmra.mxu2 %v12221_v27  ;;  %5856 = vmatmul.f32.gmra.mxu3 %v5550_v20  ;;  %v5211_v34 = vadd.f32 %v12330_v16, %v5126_v9  ;;  %v3788_v9 = vsel %vm3190_vm9, %v3681_v1, 0 }
 0x551   :  { %v5299_v7 = vpop.f32.mrf.mxu1  ;;  %6172 = vmatpush.msra.mxu3 %v6171_v21  ;;  %6369 = vmatpush.msrb.mxu2 %v6133_v29 }
 0x552   :  { %5957 = vmatmul.f32.gmra.mxu0 %v12226_v48  ;;  %v12462_v28 = vadd.f32 %v12347_v61, %v5211_v34  ;;  %v12542_v34 = vand.u32 4294901760, %v3788_v9 }
 0x553   :  { %v4988_v19 = vpop.f32.mrf.mxu2  ;;  %v5133_v10 = vpop.f32.mrf.mxu3  ;;  %6178 = vmatpush.msra.mxu3 %v6177_v14  ;;  %6373 = vmatpush.msrb.mxu2 %v6139_v13  ;;  %v3686_v14 = vld [vmem:[#allocation5 + $0xc0] sm:$0xff] }
 0x554   :  { %v4989_v27 = vadd.f32 %v4988_v19, %v12274_v55  ;;  %6022 = vmatmul.f32.gmra.mxu1 %v12226_v48  ;;  %v3666_v55 = vld [vmem:[#allocation5 + $0x20] sm:$0xff] }
 0x555   :  { %6440 = vmatpush.msrb.mxu3 %v12311_v5  ;;  %6377 = vmatpush.msrb.mxu2 %v6145_v60 }
 0x556   :  { %v5130_v20 = vadd.f32 %v5129_v45, %v4989_v27  ;;  %v6083_v27 = vsub.f32 %v3788_v9, %v12542_v34 }
 0x557   :  { %v5225_v16 = vpop.f32.mrf.mxu0  ;;  %6442 = vmatpush.msrb.mxu3 %v12332_v56  ;;  %6381 = vmatpush.msrb.mxu2 %v6151_v15 }
 0x558   :  { %5777 = vmatmul.f32.gmra.mxu2 %v12236_v58  ;;  %5862 = vmatmul.f32.gmra.mxu3 %v5558_v37  ;;  %v5216_v48 = vadd.f32 %v12397_v54, %v5130_v20  ;;  %v3779_v58 = vsel %vm3190_vm9, %v3666_v55, 0  ;;  %v3676_v54 = vld [vmem:[#allocation5 + $0x70] sm:$0xff] }
 0x559   :  { %v5305_v61 = vpop.f32.mrf.mxu1  ;;  %6444 = vmatpush.msrb.mxu3 %v12334_v12  ;;  %6385 = vmatpush.msrb.mxu2 %v6157_v38  ;;  %v12493_v3 = vand.u32 4294901760, %v3779_v58  ;;  %v3785_v44 = vsel %vm3190_vm9, %v3676_v54, 0 }
 0x55a   :  { %5961 = vmatmul.f32.gmra.mxu0 %v12241_v0  ;;  %v12482_v5 = vadd.f32 %v12417_v50, %v5216_v48  ;;  %v12528_v51 = vand.u32 4294901760, %v3785_v44 }
 0x55b   :  { %v4996_v32 = vpop.f32.mrf.mxu2  ;;  %v5137_v29 = vpop.f32.mrf.mxu3  ;;  %6446 = vmatpush.msrb.mxu3 %v12345_v35  ;;  %6389 = vmatpush.msrb.mxu2 %v6163_v52  ;;  %v6059_v35 = vsub.f32 %v3779_v58, %v12493_v3 }
 0x55c   :  { %v4997_v37 = vadd.f32 %v4996_v32, %v12280_v17  ;;  %6026 = vmatmul.f32.gmra.mxu1 %v12241_v0  ;;  %v3671_v0 = vld [vmem:[#allocation5 + $0x48] sm:$0xff]  ;;  %v6084_v32 = vand.u32 4294901760, %v6083_v27 }
 0x55d   :  { %6448 = vmatpush.msrb.mxu3 %v12364_v22  ;;  %6393 = vmatpush.msrb.mxu2 %v6169_v23  ;;  %v6060_v15 = vand.u32 4294901760, %v6059_v35 }
 0x55e   :  { %v5134_v56 = vadd.f32 %v5133_v10, %v4997_v37  ;;  %v3691_v37 = vld [vmem:[#allocation5 + $0xe8] sm:$0xff] }
 0x55f   :  { %v5230_v18 = vpop.f32.mrf.mxu0  ;;  %6450 = vmatpush.msrb.mxu3 %v12400_v47  ;;  %6397 = vmatpush.msrb.mxu2 %v6175_v2  ;;  %v6075_v2 = vsub.f32 %v3785_v44, %v12528_v51 }
 0x560   :  { %5782 = vmatmul.f32.gmra.mxu2 %v12251_v4  ;;  %5868 = vmatmul.f32.gmra.mxu3 %v5566_v42  ;;  %v5221_v17 = vadd.f32 %v5220_v31, %v5134_v56  ;;  %v3782_v4 = vsel %vm3190_vm9, %v3671_v0, 0 }
 0x561   :  { %v5311_v12 = vpop.f32.mrf.mxu1  ;;  %6452 = vmatpush.msrb.mxu3 %v12402_v40  ;;  %v12515_v46 = vand.u32 4294901760, %v3782_v4  ;;  %v6076_v21 = vand.u32 4294901760, %v6075_v2 }
 0x562   :  { %5965 = vmatmul.f32.gmra.mxu0 %v12253_v39  ;;  %v12506_v25 = vadd.f32 %v5299_v7, %v5221_v17 }
 0x563   :  { %v5004_v22 = vpop.f32.mrf.mxu2  ;;  %v5141_v13 = vpop.f32.mrf.mxu3  ;;  %6454 = vmatpush.msrb.mxu3 %v12414_v26  ;;  %v6077_v10 = vsub.f32 %v6075_v2, %v6076_v21 }
 0x564   :  { %v5005_v42 = vadd.f32 %v5004_v22, %v12288_v59  ;;  %6030 = vmatmul.f32.gmra.mxu1 %v12253_v39  ;;  %v6061_v59 = vsub.f32 %v6059_v35, %v6060_v15  ;;  %v6067_v39 = vsub.f32 %v3782_v4, %v12515_v46 }
 0x566   :  { %v5138_v60 = vadd.f32 %v5137_v29, %v5005_v42  ;;  %v6062_v63 = vand.u32 4294901760, %v6061_v59  ;;  %v6068_v33 = vand.u32 4294901760, %v6067_v39 }
 0x567   :  { %v12517_v38 = vpop.f32.mrf.mxu0 }
 0x568   :  { %5787 = vmatmul.f32.gmra.mxu2 %v12259_v24  ;;  %6180 = vmatmul.f32.vlgmr.msra.gmra.mxu3 %v12493_v3  ;;  %v5226_v47 = vadd.f32 %v5225_v16, %v5138_v60  ;;  %v6069_v41 = vsub.f32 %v6067_v39, %v6068_v33  ;;  %v3791_v16 = vsel %vm3190_vm9, %v3686_v14, 0 }
 0x569   :  { %v12521_v40 = vpop.f32.mrf.mxu1  ;;  %v12554_v29 = vand.u32 4294901760, %v3791_v16 }
 0x56a   :  { %6246 = vmatmul.f32.vlgmr.msra.gmra.mxu0 %v6059_v35  ;;  %v12524_v8 = vadd.f32 %v5305_v61, %v5226_v47  ;;  %v6070_v6 = vand.u32 4294901760, %v6069_v41  ;;  %v6078_v61 = vand.u32 4294901760, %v6077_v10 }
 0x56b   :  { %v5012_v26 = vpop.f32.mrf.mxu2  ;;  %v5445_v50 = vpop.f32.mrf.mxu3  ;;  %v6091_v0 = vsub.f32 %v3791_v16, %v12554_v29 }
 0x56c   :  { %v5013_v11 = vadd.f32 %v5012_v26, %v12296_v53  ;;  %6312 = vmatmul.f32.vlgmr.msra.gmra.mxu1 %v6060_v15  ;;  %v3696_v15 = vld [vmem:[#allocation5 + $0x110] sm:$0xff] }
 0x56d   :  { %v6092_v4 = vand.u32 4294901760, %v6091_v0  ;;  %v3797_v26 = vsel %vm3190_vm9, %v3696_v15, 0 }
 0x56e   :  { %v5142_v24 = vadd.f32 %v5141_v13, %v5013_v11 }
 0x56f   :  { %v12530_v45 = vpop.f32.mrf.mxu0  ;;  %v6093_v47 = vsub.f32 %v6091_v0, %v6092_v4 }
 0x570   :  { %6063 = vmatmul.f32.vlgmr.msra.gmra.mxu2 %v6062_v63  ;;  %6184 = vmatmul.f32.gmra.mxu3 %v12515_v46  ;;  %v5231_v52 = vadd.f32 %v5230_v18, %v5142_v24  ;;  %v6085_v18 = vsub.f32 %v6083_v27, %v6084_v32  ;;  %v12578_v63 = vand.u32 4294901760, %v3797_v26 }
 0x571   :  { %v12533_v23 = vpop.f32.mrf.mxu1  ;;  %v6094_v11 = vand.u32 4294901760, %v6093_v47 }
 0x572   :  { %6251 = vmatmul.f32.gmra.mxu0 %v6067_v39  ;;  %v12536_v53 = vadd.f32 %v5311_v12, %v5231_v52  ;;  %v3794_v12 = vsel %vm3190_vm9, %v3691_v37, 0  ;;  %v6086_v13 = vand.u32 4294901760, %v6085_v18 }
 0x573   :  { %v5380_v49 = vpop.f32.mrf.mxu2  ;;  %v5449_v57 = vpop.f32.mrf.mxu3  ;;  %v12566_v42 = vand.u32 4294901760, %v3794_v12 }
 0x574   :  { %v5381_v62 = vadd.f32 %v5380_v49, %v12313_v30  ;;  %6318 = vmatmul.f32.gmra.mxu1 %v6068_v33  ;;  %v3701_v33 = vld [vmem:[#allocation5 + $0x138] sm:$0xff] }
 0x575   :  { %v6099_v59 = vsub.f32 %v3794_v12, %v12566_v42  ;;  %v3800_v41 = vsel %vm3190_vm9, %v3701_v33, 0 }
 0x576   :  { %v12540_v31 = vadd.f32 %v5445_v50, %v5381_v62  ;;  %v12588_v62 = vand.u32 4294901760, %v3800_v41 }
 0x577   :  { %v12544_v7 = vpop.f32.mrf.mxu0  ;;  %v6100_v24 = vand.u32 4294901760, %v6099_v59 }
 0x578   :  { %6071 = vmatmul.f32.gmra.mxu2 %v6070_v6  ;;  %6188 = vmatmul.f32.gmra.mxu3 %v12528_v51 }
 0x579   :  { %v12547_v19 = vpop.f32.mrf.mxu1 }
 0x57a   :  { %6256 = vmatmul.f32.gmra.mxu0 %v6075_v2  ;;  %v6101_v2 = vsub.f32 %v6099_v59, %v6100_v24 }
 0x57b   :  { %v5384_v30 = vpop.f32.mrf.mxu2  ;;  %v5453_v20 = vpop.f32.mrf.mxu3 }
 0x57c   :  { %v5385_v55 = vadd.f32 %v5384_v30, %v12366_v36  ;;  %6324 = vmatmul.f32.gmra.mxu1 %v6076_v21  ;;  %v6102_v21 = vand.u32 4294901760, %v6101_v2 }
 0x57e   :  { %v12552_v48 = vadd.f32 %v5449_v57, %v5385_v55 }
 0x57f   :  { %v12556_v58 = vpop.f32.mrf.mxu0 }
 0x580   :  { %6079 = vmatmul.f32.gmra.mxu2 %v6078_v61  ;;  %6192 = vmatmul.f32.gmra.mxu3 %v12542_v34 }
 0x581   :  { %v12559_v56 = vpop.f32.mrf.mxu1 }
 0x582   :  { %6261 = vmatmul.f32.gmra.mxu0 %v6083_v27  ;;  %v6115_v27 = vsub.f32 %v3800_v41, %v12588_v62 }
 0x583   :  { %v5388_v36 = vpop.f32.mrf.mxu2  ;;  %v5457_v17 = vpop.f32.mrf.mxu3 }
 0x584   :  { %v5389_v35 = vadd.f32 %v5388_v36, %v12432_v43  ;;  %6330 = vmatmul.f32.gmra.mxu1 %v6084_v32  ;;  %v6116_v61 = vand.u32 4294901760, %v6115_v27 }
 0x586   :  { %v12564_v22 = vadd.f32 %v5453_v20, %v5389_v35 }
 0x587   :  { %v12568_v60 = vpop.f32.mrf.mxu0 }
 0x588   :  { %6087 = vmatmul.f32.gmra.mxu2 %v6086_v13  ;;  %6196 = vmatmul.f32.gmra.mxu3 %v12554_v29 }
 0x589   :  { %v12571_v54 = vpop.f32.mrf.mxu1 }
 0x58a   :  { %6266 = vmatmul.f32.gmra.mxu0 %v6091_v0  ;;  %v6117_v0 = vsub.f32 %v6115_v27, %v6116_v61 }
 0x58b   :  { %v5392_v43 = vpop.f32.mrf.mxu2  ;;  %v5461_v39 = vpop.f32.mrf.mxu3 }
 0x58c   :  { %v5393_v50 = vadd.f32 %v5392_v43, %v12462_v28  ;;  %6336 = vmatmul.f32.gmra.mxu1 %v6092_v4  ;;  %v6107_v28 = vsub.f32 %v3797_v26, %v12578_v63  ;;  %v6118_v13 = vand.u32 4294901760, %v6117_v0 }
 0x58e   :  { %v12576_v44 = vadd.f32 %v5457_v17, %v5393_v50  ;;  %v6108_v14 = vand.u32 4294901760, %v6107_v28 }
 0x58f   :  { %v12580_v1 = vpop.f32.mrf.mxu0 }
 0x590   :  { %6095 = vmatmul.f32.gmra.mxu2 %v6094_v11  ;;  %6200 = vmatmul.f32.gmra.mxu3 %v12566_v42  ;;  %v6109_v20 = vsub.f32 %v6107_v28, %v6108_v14 }
 0x591   :  { %v12583_v52 = vpop.f32.mrf.mxu1 }
 0x592   :  { %6271 = vmatmul.f32.gmra.mxu0 %v6099_v59  ;;  %v6110_v37 = vand.u32 4294901760, %v6109_v20 }
 0x593   :  { %v5396_v49 = vpop.f32.mrf.mxu2  ;;  %v5465_v57 = vpop.f32.mrf.mxu3 }
 0x594   :  { %v5397_v9 = vadd.f32 %v5396_v49, %v12482_v5  ;;  %6342 = vmatmul.f32.gmra.mxu1 %v6100_v24 }
 0x596   :  { %v12590_v6 = vadd.f32 %v5461_v39, %v5397_v9 }
 0x597   :  { %v12592_v10 = vpop.f32.mrf.mxu0 }
 0x598   :  { %6103 = vmatmul.f32.gmra.mxu2 %v6102_v21  ;;  %6204 = vmatmul.f32.gmra.mxu3 %v12578_v63 }
 0x599   :  { %v12596_v30 = vpop.f32.mrf.mxu1 }
 0x59a   :  { %6276 = vmatmul.f32.gmra.mxu0 %v6107_v28 }
 0x59b   :  { %v5400_v16 = vpop.f32.mrf.mxu2  ;;  %v5469_v5 = vpop.f32.mrf.mxu3 }
 0x59c   :  { %v5401_v55 = vadd.f32 %v5400_v16, %v12506_v25  ;;  %6348 = vmatmul.f32.gmra.mxu1 %v6108_v14 }
 0x59e   :  { %v12599_v32 = vadd.f32 %v5465_v57, %v5401_v55 }
 0x59f   :  { %v12601_v18 = vpop.f32.mrf.mxu0 }
 0x5a0   :  { %6111 = vmatmul.f32.gmra.mxu2 %v6110_v37  ;;  %6208 = vmatmul.f32.gmra.mxu3 %v12588_v62 }
 0x5a1   :  { %v12604_v36 = vpop.f32.mrf.mxu1 }
 0x5a2   :  { %6281 = vmatmul.f32.gmra.mxu0 %v6115_v27 }
 0x5a3   :  { %v5404_v17 = vpop.f32.mrf.mxu2  ;;  %v5473_v12 = vpop.f32.mrf.mxu3 }
 0x5a4   :  { %v5405_v35 = vadd.f32 %v5404_v17, %v12524_v8  ;;  %6354 = vmatmul.f32.gmra.mxu1 %v6116_v61  ;;  %v5523_v17 = vadd.f32 %v12530_v45, %v12552_v48 }
 0x5a6   :  { %v12607_v25 = vadd.f32 %v5469_v5, %v5405_v35  ;;  %v5515_v5 = vadd.f32 %v12517_v38, %v12540_v31 }
 0x5a7   :  { %v5938_v4 = vpop.f32.mrf.mxu0 }
 0x5a8   :  { %6119 = vmatmul.f32.gmra.mxu2 %v6118_v13  ;;  %6456 = vmatmul.f32.vlgmr.msrb.gmra.mxu3 %v12493_v3 }
 0x5a9   :  { %v6003_v15 = vpop.f32.mrf.mxu1 }
 0x5ab   :  { %v5408_v47 = vpop.f32.mrf.mxu2  ;;  %v5827_v59 = vpop.f32.mrf.mxu3 }
 0x5ac   :  { %v5409_v43 = vadd.f32 %v5408_v47, %v12536_v53 }
 0x5ae   :  { %v12611_v39 = vadd.f32 %v5473_v12, %v5409_v43  ;;  %v5676_v12 = vadd.f32 %v12533_v23, %v5523_v17 }
 0x5af   :  { %v5942_v26 = vpop.f32.mrf.mxu0 }
 0x5b0   :  { %6399 = vmatmul.f32.vlgmr.msrb.gmra.mxu2 %v12493_v3  ;;  %6460 = vmatmul.f32.gmra.mxu3 %v12515_v46 }
 0x5b1   :  { %v12615_v8 = vpop.f32.mrf.mxu1 }
 0x5b3   :  { %v5753_v50 = vpop.f32.mrf.mxu2  ;;  %v5833_v11 = vpop.f32.mrf.mxu3 }
 0x5b7   :  { %v12619_v24 = vpop.f32.mrf.mxu0 }
 0x5b8   :  { %6403 = vmatmul.f32.gmra.mxu2 %v12515_v46  ;;  %6464 = vmatmul.f32.gmra.mxu3 %v12528_v51 }
 0x5b9   :  { %v12621_v53 = vpop.f32.mrf.mxu1 }
 0x5bb   :  { %v5758_v33 = vpop.f32.mrf.mxu2  ;;  %v5839_v41 = vpop.f32.mrf.mxu3 }
 0x5bc   :  { %v5759_v13 = vadd.f32 %v5758_v33, %v5676_v12  ;;  %v5539_v33 = vadd.f32 %v12556_v58, %v12576_v44 }
 0x5bf   :  { %v12627_v28 = vpop.f32.mrf.mxu0 }
 0x5c0   :  { %6407 = vmatmul.f32.gmra.mxu2 %v12528_v51  ;;  %6468 = vmatmul.f32.gmra.mxu3 %v12542_v34 }
 0x5c1   :  { %v12629_v49 = vpop.f32.mrf.mxu1 }
 0x5c3   :  { %v5763_v3 = vpop.f32.mrf.mxu2  ;;  %v12625_v2 = vpop.f32.mrf.mxu3 }
 0x5c7   :  { %v12635_v9 = vpop.f32.mrf.mxu0 }
 0x5c8   :  { %6411 = vmatmul.f32.gmra.mxu2 %v12542_v34  ;;  %6472 = vmatmul.f32.gmra.mxu3 %v12554_v29 }
 0x5c9   :  { %v12637_v21 = vpop.f32.mrf.mxu1 }
 0x5cb   :  { %v5768_v46 = vpop.f32.mrf.mxu2  ;;  %v12633_v57 = vpop.f32.mrf.mxu3 }
 0x5cf   :  { %v12643_v27 = vpop.f32.mrf.mxu0 }
 0x5d0   :  { %6415 = vmatmul.f32.gmra.mxu2 %v12554_v29  ;;  %6476 = vmatmul.f32.gmra.mxu3 %v12566_v42 }
 0x5d1   :  { %v12647_v34 = vpop.f32.mrf.mxu1 }
 0x5d3   :  { %v5773_v51 = vpop.f32.mrf.mxu2  ;;  %v12641_v14 = vpop.f32.mrf.mxu3 }
 0x5d7   :  { %v12655_v29 = vpop.f32.mrf.mxu0 }
 0x5d8   :  { %6419 = vmatmul.f32.gmra.mxu2 %v12566_v42  ;;  %6480 = vmatmul.f32.gmra.mxu3 %v12578_v63  ;;  %v5672_v42 = vadd.f32 %v12521_v40, %v5515_v5  ;;  %v5531_v40 = vadd.f32 %v12544_v7, %v12564_v22 }
 0x5d9   :  { %v12662_v37 = vpop.f32.mrf.mxu1 }
 0x5da   :  { %v5754_v0 = vadd.f32 %v5753_v50, %v5672_v42  ;;  %v5834_v50 = vadd.f32 %v5833_v11, %v5759_v13  ;;  %v5684_v11 = vadd.f32 %v12559_v56, %v5539_v33 }
 0x5db   :  { %v5778_v20 = vpop.f32.mrf.mxu2  ;;  %v12649_v16 = vpop.f32.mrf.mxu3 }
 0x5dc   :  { %v5828_v38 = vadd.f32 %v5827_v59, %v5754_v0 }
 0x5de   :  { %v5939_v47 = vadd.f32 %v5938_v4, %v5828_v38 }
 0x5df   :  { %v12670_v35 = vpop.f32.mrf.mxu0 }
 0x5e0   :  { %6423 = vmatmul.f32.gmra.mxu2 %v12578_v63  ;;  %6484 = vmatmul.f32.gmra.mxu3 %v12588_v62  ;;  %v6004_v5 = vadd.f32 %v6003_v15, %v5939_v47 }
 0x5e1   :  { %v12672_v43 = vpop.f32.mrf.mxu1 }
 0x5e3   :  { %v12657_v55 = vpop.f32.mrf.mxu2  ;;  %v12659_v61 = vpop.f32.mrf.mxu3 }
 0x5e4   :  { %13653 = vst [vmem:[#allocation15_spill] sm:$0xff] %v12659_v61  ;;  %v5943_v61 = vadd.f32 %v5942_v26, %v5834_v50 }
 0x5e6   :  { %v6008_v12 = vadd.f32 %v12615_v8, %v5943_v61 }
 0x5e7   :  { %v6247_v23 = vpop.f32.mrf.mxu0 }
 0x5e8   :  { %6427 = vmatmul.f32.gmra.mxu2 %v12588_v62  ;;  %v5680_v62 = vadd.f32 %v12547_v19, %v5531_v40  ;;  %v5769_v19 = vadd.f32 %v5768_v46, %v5684_v11 }
 0x5e9   :  { %v6313_v17 = vpop.f32.mrf.mxu1 }
 0x5ea   :  { %v5764_v42 = vadd.f32 %v5763_v3, %v5680_v62  ;;  %v5547_v3 = vadd.f32 %v12568_v60, %v12590_v6  ;;  %v5846_v58 = vadd.f32 %v12625_v2, %v5769_v19 }
 0x5eb   :  { %v12667_v31 = vpop.f32.mrf.mxu2  ;;  %v6181_v63 = vpop.f32.mrf.mxu3 }
 0x5ec   :  { %v5840_v38 = vadd.f32 %v5839_v41, %v5764_v42  ;;  %v5688_v61 = vadd.f32 %v12571_v54, %v5547_v3  ;;  %v5951_v46 = vadd.f32 %v12627_v28, %v5846_v58 }
 0x5ee   :  { %v5947_v26 = vadd.f32 %v12619_v24, %v5840_v38  ;;  %v5774_v40 = vadd.f32 %v5773_v51, %v5688_v61  ;;  %v5555_v24 = vadd.f32 %v12580_v1, %v12599_v32  ;;  %v6016_v60 = vadd.f32 %v12629_v49, %v5951_v46 }
 0x5f0   :  { %v6012_v44 = vadd.f32 %v12621_v53, %v5947_v26  ;;  %v5852_v50 = vadd.f32 %v12633_v57, %v5774_v40  ;;  %v5692_v53 = vadd.f32 %v12583_v52, %v5555_v24 }
 0x5f2   :  { %v5955_v51 = vadd.f32 %v12635_v9, %v5852_v50  ;;  %v13654_v50 = vld [vmem:[#allocation15_spill] sm:$0xff] }
 0x5f3   :  { %v6064_v45 = vpop.f32.mrf.mxu2  ;;  %v6185_v48 = vpop.f32.mrf.mxu3 }
 0x5f4   :  { %v6065_v59 = vadd.f32 %v6064_v45, %v6004_v5  ;;  %v5779_v45 = vadd.f32 %v5778_v20, %v5692_v53  ;;  %v6020_v1 = vadd.f32 %v12637_v21, %v5955_v51 }
 0x5f6   :  { %v6182_v0 = vadd.f32 %v6181_v63, %v6065_v59  ;;  %v5858_v28 = vadd.f32 %v12641_v14, %v5779_v45 }
 0x5f8   :  { %v6248_v4 = vadd.f32 %v6247_v23, %v6182_v0  ;;  %v5959_v20 = vadd.f32 %v12643_v27, %v5858_v28  ;;  %v6319_v27 = vpop.f32.mrf.mxu1 }
 0x5fa   :  { %v6314_v7 = vadd.f32 %v6313_v17, %v6248_v4  ;;  %v6024_v9 = vadd.f32 %v12647_v34, %v5959_v20 }
 0x5fb   :  { %v6072_v22 = vpop.f32.mrf.mxu2  ;;  %v6189_v15 = vpop.f32.mrf.mxu3 }
 0x5fc   :  { %v6073_v13 = vadd.f32 %v6072_v22, %v6008_v12 }
 0x5fe   :  { %v12681_v47 = vadd.f32 %v6185_v48, %v6073_v13  ;;  %v5563_v48 = vadd.f32 %v12592_v10, %v12607_v25 }
 0x600   :  { %v5696_v49 = vadd.f32 %v12596_v30, %v5563_v48  ;;  %v6325_v13 = vpop.f32.mrf.mxu1 }
 0x602   :  { %v5784_v59 = vadd.f32 %v12657_v55, %v5696_v49  ;;  %v6252_v55 = vpop.f32.mrf.mxu0 }
 0x603   :  { %v6080_v41 = vpop.f32.mrf.mxu2  ;;  %v6193_v8 = vpop.f32.mrf.mxu3 }
 0x604   :  { %v6081_v63 = vadd.f32 %v6080_v41, %v6012_v44  ;;  %v5864_v42 = vadd.f32 %v12649_v16, %v5784_v59  ;;  %v5571_v41 = vadd.f32 %v12601_v18, %v12611_v39 }
 0x606   :  { %v12689_v56 = vadd.f32 %v6189_v15, %v6081_v63  ;;  %v5963_v21 = vadd.f32 %v12655_v29, %v5864_v42  ;;  %v5700_v63 = vadd.f32 %v12604_v36, %v5571_v41 }
 0x608   :  { %v6028_v23 = vadd.f32 %v12662_v37, %v5963_v21  ;;  %v6331_v37 = vpop.f32.mrf.mxu1 }
 0x60a   :  { %v6257_v22 = vpop.f32.mrf.mxu0 }
 0x60b   :  { %v6088_v6 = vpop.f32.mrf.mxu2  ;;  %v6197_v2 = vpop.f32.mrf.mxu3 }
 0x60c   :  { %v6089_v5 = vadd.f32 %v6088_v6, %v6016_v60 }
 0x60e   :  { %v6194_v54 = vadd.f32 %v6193_v8, %v6089_v5 }
 0x610   :  { %v6337_v8 = vpop.f32.mrf.mxu1 }
 0x612   :  { %v6262_v26 = vpop.f32.mrf.mxu0 }
 0x613   :  { %v6096_v32 = vpop.f32.mrf.mxu2  ;;  %v6201_v57 = vpop.f32.mrf.mxu3 }
 0x614   :  { %v6097_v62 = vadd.f32 %v6096_v32, %v6020_v1  ;;  %v6263_v1 = vadd.f32 %v6262_v26, %v6194_v54 }
 0x616   :  { %v6198_v52 = vadd.f32 %v6197_v2, %v6097_v62 }
 0x618   :  { %v6343_v6 = vpop.f32.mrf.mxu1 }
 0x61a   :  { %v6267_v44 = vpop.f32.mrf.mxu0 }
 0x61b   :  { %v6104_v0 = vpop.f32.mrf.mxu2  ;;  %v6205_v10 = vpop.f32.mrf.mxu3  ;;  %v6268_v39 = vadd.f32 %v6267_v44, %v6198_v52 }
 0x61c   :  { %v6105_v25 = vadd.f32 %v6104_v0, %v6024_v9  ;;  %v6253_v0 = vadd.f32 %v6252_v55, %v12681_v47  ;;  %v6496_v47 = vld [vmem:[%s13461_s7] sm:$0xff] }
 0x61e   :  { %v6202_v14 = vadd.f32 %v6201_v57, %v6105_v25  ;;  %v6338_v57 = vadd.f32 %v6337_v8, %v6268_v39 }
 0x620   :  { %v6349_v36 = vpop.f32.mrf.mxu1 }
 0x622   :  { %v6272_v46 = vpop.f32.mrf.mxu0 }
 0x623   :  { %v6112_v33 = vpop.f32.mrf.mxu2  ;;  %v6209_v30 = vpop.f32.mrf.mxu3  ;;  %v6273_v18 = vadd.f32 %v6272_v46, %v6202_v14 }
 0x624   :  { %v6113_v4 = vadd.f32 %v6112_v33, %v6028_v23 }
 0x625   :  { %v6344_v32 = vadd.f32 %v6343_v6, %v6273_v18 }
 0x626   :  { %v6206_v17 = vadd.f32 %v6205_v10, %v6113_v4  ;;  %v6320_v4 = vadd.f32 %v6319_v27, %v6253_v0 }
 0x628   :  { %v6355_v23 = vpop.f32.mrf.mxu1 }
 0x62a   :  { %v6277_v5 = vpop.f32.mrf.mxu0 }
 0x62b   :  { %v6120_v38 = vpop.f32.mrf.mxu2  ;;  %v6457_v12 = vpop.f32.mrf.mxu3  ;;  %v6278_v28 = vadd.f32 %v6277_v5, %v6206_v17 }
 0x62d   :  { %v6350_v20 = vadd.f32 %v6349_v36, %v6278_v28 }
 0x632   :  { %v6282_v62 = vpop.f32.mrf.mxu0 }
 0x633   :  { %v6400_v16 = vpop.f32.mrf.mxu2  ;;  %v12709_v15 = vpop.f32.mrf.mxu3 }
 0x634   :  { %v6401_v34 = vadd.f32 %v6400_v16, %v6314_v7  ;;  %v5789_v7 = vadd.f32 %v12667_v31, %v5700_v63  ;;  %v6258_v31 = vadd.f32 %v6257_v22, %v12689_v56 }
 0x636   :  { %v12711_v11 = vadd.f32 %v6457_v12, %v6401_v34  ;;  %v5870_v60 = vadd.f32 %v13654_v50, %v5789_v7  ;;  %v6326_v52 = vadd.f32 %v6325_v13, %v6258_v31 }
 0x638   :  { %v5967_v2 = vadd.f32 %v12670_v35, %v5870_v60  ;;  %v6488_v50 = vmax.f32 %v12711_v11, 0.0 }
 0x63a   :  { %v6032_v51 = vadd.f32 %v12672_v43, %v5967_v2  ;;  %v6332_v43 = vadd.f32 %v6331_v37, %v6263_v1 }
 0x63b   :  { %v6404_v19 = vpop.f32.mrf.mxu2  ;;  %v6465_v29 = vpop.f32.mrf.mxu3 }
 0x63c   :  { %v6121_v48 = vadd.f32 %v6120_v38, %v6032_v51  ;;  %v6405_v38 = vadd.f32 %v6404_v19, %v6320_v4 }
 0x63e   :  { %v6210_v49 = vadd.f32 %v6209_v30, %v6121_v48  ;;  %v6462_v27 = vadd.f32 %v12709_v15, %v6405_v38  ;;  %v12773_v48 = vand.u32 4294901760, %v6488_v50 }
 0x640   :  { %v6283_v25 = vadd.f32 %v6282_v62, %v6210_v49 }
 0x642   :  { %v6356_v17 = vadd.f32 %v6355_v23, %v6283_v25 }
 0x643   :  { %v6408_v3 = vpop.f32.mrf.mxu2  ;;  %v6469_v58 = vpop.f32.mrf.mxu3 }
 0x644   :  { %v6409_v33 = vadd.f32 %v6408_v3, %v6326_v52  ;;  %v6505_v3 = vsel %vm3190_vm9, %v6496_v47, 0 }
 0x645   :  { %v12736_v63 = vand.u32 4294901760, %v6505_v3 }
 0x646   :  { %v6466_v55 = vadd.f32 %v6465_v29, %v6409_v33 }
 0x647   :  { %v12761_v5 = vsub.f32 %v6505_v3, %v12736_v63 }
 0x649   :  { %v6554_v31 = vand.u32 4294901760, %v12761_v5 }
 0x64b   :  { %v6412_v61 = vpop.f32.mrf.mxu2  ;;  %v6473_v40 = vpop.f32.mrf.mxu3 }
 0x64c   :  { %v6413_v14 = vadd.f32 %v6412_v61, %v6332_v43 }
 0x64e   :  { %v6470_v12 = vadd.f32 %v6469_v58, %v6413_v14  ;;  %v6490_v58 = vmax.f32 %v6466_v55, 0.0 }
 0x650   :  { %v6491_v44 = vmax.f32 %v6470_v12, 0.0  ;;  %v12749_v60 = vand.u32 4294901760, %v6490_v58 }
 0x652   :  { %v12738_v7 = vand.u32 4294901760, %v6491_v44  ;;  %v12777_v28 = vsub.f32 %v6490_v58, %v12749_v60  ;;  %v6500_v58 = vld [vmem:[%s13461_s7 + $0x20] sm:$0xff] }
 0x653   :  { %v6416_v24 = vpop.f32.mrf.mxu2  ;;  %v6477_v53 = vpop.f32.mrf.mxu3 }
 0x654   :  { %v6417_v35 = vadd.f32 %v6416_v24, %v6338_v57  ;;  %v6497_v24 = vld [vmem:[%s13461_s7 + $0x8] sm:$0xff]  ;;  %v12770_v18 = vsub.f32 %v6491_v44, %v12738_v7 }
 0x656   :  { %v6474_v56 = vadd.f32 %v6473_v40, %v6417_v35  ;;  %v6489_v40 = vmax.f32 %v6462_v27, 0.0  ;;  %v6498_v35 = vld [vmem:[%s13461_s7 + $0x10] sm:$0xff] }
 0x657   :  { %v6511_v25 = vsel %vm3190_vm9, %v6498_v35, 0 }
 0x658   :  { %v6492_v16 = vmax.f32 %v6474_v56, 0.0  ;;  %v12764_v11 = vand.u32 4294901760, %v6489_v40 }
 0x65a   :  { %v12731_v8 = vand.u32 4294901760, %v6492_v16 }
 0x65b   :  { %v6420_v45 = vpop.f32.mrf.mxu2  ;;  %v6481_v42 = vpop.f32.mrf.mxu3 }
 0x65c   :  { %v6421_v59 = vadd.f32 %v6420_v45, %v6344_v32  ;;  %v12752_v6 = vsub.f32 %v6492_v16, %v12731_v8  ;;  %v6508_v45 = vsel %vm3190_vm9, %v6497_v24, 0 }
 0x65d   :  { %v12789_v57 = vand.u32 4294901760, %v6508_v45 }
 0x65e   :  { %v6478_v21 = vadd.f32 %v6477_v53, %v6421_v59  ;;  %v6645_v36 = vand.u32 4294901760, %v12752_v6  ;;  %v12798_v59 = vsub.f32 %v6489_v40, %v12764_v11  ;;  %v6517_v40 = vsel %vm3190_vm9, %v6500_v58, 0 }
 0x65f   :  { %v6561_v52 = vsub.f32 %v6508_v45, %v12789_v57 }
 0x660   :  { %v6493_v22 = vmax.f32 %v6478_v21, 0.0  ;;  %v6646_v43 = vsub.f32 %v12752_v6, %v6645_v36 }
 0x662   :  { %v12729_v41 = vand.u32 4294901760, %v6493_v22  ;;  %v6647_v56 = vand.u32 4294901760, %v6646_v43  ;;  %v7125_v43 = vld [vmem:[#allocation6 + $0x28] sm:$0x1f] }
 0x663   :  { %v6424_v9 = vpop.f32.mrf.mxu2  ;;  %v6485_v13 = vpop.f32.mrf.mxu3 }
 0x664   :  { %v6425_v10 = vadd.f32 %v6424_v9, %v6350_v20  ;;  %v12743_v15 = vsub.f32 %v6493_v22, %v12729_v41  ;;  %v6651_v20 = vand.u32 4294901760, %v12770_v18  ;;  %v6657_v9 = vand.u32 4294901760, %v12777_v28  ;;  %v6499_v22 = vld [vmem:[%s13461_s7 + $0x18] sm:$0xff] }
 0x666   :  { %v6482_v54 = vadd.f32 %v6481_v42, %v6425_v10  ;;  %v6639_v39 = vand.u32 4294901760, %v12743_v15  ;;  %v12806_v42 = vsub.f32 %v6488_v50, %v12773_v48  ;;  %v6555_v10 = vsub.f32 %v12761_v5, %v6554_v31  ;;  %v6501_v50 = vld [vmem:[%s13461_s7 + $0x28] sm:$0xff] }
 0x667   :  { %v6652_v21 = vsub.f32 %v12770_v18, %v6651_v20  ;;  %v6658_v23 = vsub.f32 %v12777_v28, %v6657_v9 }
 0x668   :  { %v6494_v30 = vmax.f32 %v6482_v54, 0.0  ;;  %v6640_v62 = vsub.f32 %v12743_v15, %v6639_v39  ;;  %v6663_v54 = vand.u32 4294901760, %v12798_v59  ;;  %v6669_v33 = vand.u32 4294901760, %v12806_v42 }
 0x669   :  { %v6556_v4 = vand.u32 4294901760, %v6555_v10  ;;  %v6653_v38 = vand.u32 4294901760, %v6652_v21  ;;  %v6659_v47 = vand.u32 4294901760, %v6658_v23  ;;  %v12912_v10 = vld [vmem:[%s13462_s8 + $0x8] sm:$0x1f] }
 0x66a   :  { %v12725_v26 = vand.u32 4294901760, %v6494_v30  ;;  %v6641_v14 = vand.u32 4294901760, %v6640_v62  ;;  %v6664_v12 = vsub.f32 %v12798_v59, %v6663_v54  ;;  %v6670_v55 = vsub.f32 %v12806_v42, %v6669_v33  ;;  %v12924_v21 = vld [vmem:[%s13462_s8 + $0x28] sm:$0x1f] }
 0x66b   :  { %v6428_v34 = vpop.f32.mrf.mxu2  ;;  %v7177_v23 = vld [vmem:[#allocation6 + $0x8] sm:$0x7c] }
 0x66c   :  { %v6429_v37 = vadd.f32 %v6428_v34, %v6356_v17  ;;  %v12734_v29 = vsub.f32 %v6494_v30, %v12725_v26  ;;  %v6562_v30 = vand.u32 4294901760, %v6561_v52  ;;  %v12830_v17 = vand.u32 4294901760, %v6511_v25 }
 0x66d   :  { %v6671_v3 = vand.u32 4294901760, %v6670_v55 }
 0x66e   :  { %v6486_v19 = vadd.f32 %v6485_v13, %v6429_v37  ;;  %v6633_v53 = vand.u32 4294901760, %v12734_v29  ;;  %v6563_v16 = vsub.f32 %v6561_v52, %v6562_v30  ;;  %v6569_v34 = vsub.f32 %v6511_v25, %v12830_v17 }
 0x66f   :  { %v6514_v13 = vsel %vm3190_vm9, %v6499_v22, 0  ;;  %v6665_v37 = vand.u32 4294901760, %v6664_v12  ;;  %v12942_v12 = vrot.slane %v12924_v21, 6  ;;  %v7267_v22 = vld [vmem:[#allocation6 + $0x8] sm:$0xf0] }
 0x670   :  { %v6495_v61 = vmax.f32 %v6486_v19, 0.0  ;;  %v6634_v32 = vsub.f32 %v12734_v29, %v6633_v53  ;;  %v6564_v27 = vand.u32 4294901760, %v6563_v16  ;;  %v6570_v44 = vand.u32 4294901760, %v6569_v34 }
 0x671   :  { %v12850_v19 = vand.u32 4294901760, %v6514_v13 }
 0x672   :  { %v12740_v46 = vand.u32 4294901760, %v6495_v61  ;;  %v6635_v0 = vand.u32 4294901760, %v6634_v32 }
 0x674   :  { %v12755_v2 = vsub.f32 %v6495_v61, %v12740_v46  ;;  %6537 = vmatpush.msrb.mxu0 %v12740_v46  ;;  %6788 = vmatpush.msra.mxu3 %v12740_v46  ;;  %v6571_v61 = vsub.f32 %v6569_v34, %v6570_v44 }
 0x676   :  { %v6627_v51 = vand.u32 4294901760, %v12755_v2  ;;  %6539 = vmatpush.msrb.mxu0 %v12725_v26  ;;  %6716 = vmatpush.msra.mxu2 %v12755_v2 }
 0x677   :  { %6790 = vmatpush.msra.mxu3 %v12725_v26 }
 0x678   :  { %v6628_v1 = vsub.f32 %v12755_v2, %v6627_v51  ;;  %6541 = vmatpush.msrb.mxu0 %v12729_v41  ;;  %6719 = vmatpush.msra.mxu2 %v12734_v29  ;;  %v6577_v29 = vsub.f32 %v6514_v13, %v12850_v19  ;;  %v7269_v13 = vld [vmem:[#allocation6 + $0x18] sm:$0x1] }
 0x679   :  { %6792 = vmatpush.msra.mxu3 %v12729_v41 }
 0x67a   :  { %6543 = vmatpush.msrb.mxu0 %v12731_v8  ;;  %6722 = vmatpush.msra.mxu2 %v12743_v15  ;;  %v6629_v49 = vand.u32 4294901760, %v6628_v1  ;;  %v6572_v15 = vand.u32 4294901760, %v6571_v61  ;;  %v6578_v24 = vand.u32 4294901760, %v6577_v29  ;;  %v12960_v61 = vrot.slane %v12924_v21, 4 }
 0x67b   :  { %6794 = vmatpush.msra.mxu3 %v12731_v8 }
 0x67c   :  { %6545 = vmatpush.msrb.mxu0 %v12738_v7  ;;  %6630 = vmatpush.msrb.mxu1 %v6629_v49 }
 0x67d   :  { %6725 = vmatpush.msra.mxu2 %v12752_v6  ;;  %6796 = vmatpush.msra.mxu3 %v12738_v7  ;;  %v6520_v6 = vsel %vm3190_vm9, %v6501_v50, 0  ;;  %v7183_v50 = vld [vmem:[#allocation6 + $0x68] sm:$0x7c] }
 0x67e   :  { %6547 = vmatpush.msrb.mxu0 %v12749_v60  ;;  %6636 = vmatpush.msrb.mxu1 %v6635_v0 }
 0x67f   :  { %6728 = vmatpush.msra.mxu2 %v12770_v18  ;;  %6798 = vmatpush.msra.mxu3 %v12749_v60 }
 0x680   :  { %6549 = vmatpush.msrb.mxu0 %v12764_v11  ;;  %6642 = vmatpush.msrb.mxu1 %v6641_v14 }
 0x681   :  { %6731 = vmatpush.msra.mxu2 %v12777_v28  ;;  %6800 = vmatpush.msra.mxu3 %v12764_v11 }
 0x682   :  { %6551 = vmatpush.msrb.mxu0 %v12773_v48  ;;  %6648 = vmatpush.msrb.mxu1 %v6647_v56  ;;  %v12935_v56 = vld [vmem:[%s13462_s8 + $0x38] sm:$0x1f] }
 0x683   :  { %6734 = vmatpush.msra.mxu2 %v12798_v59  ;;  %6802 = vmatpush.msra.mxu3 %v12773_v48 }
 0x684   :  { %6557 = vmatmul.f32.vlgmr.msrb.gmra.mxu0 %v6556_v4  ;;  %6654 = vmatpush.msrb.mxu1 %v6653_v38 }
 0x685   :  { %6863 = vmatpush.msra.mxu0 %v6627_v51  ;;  %6737 = vmatpush.msra.mxu2 %v12806_v42 }
 0x686   :  { %6660 = vmatpush.msrb.mxu1 %v6659_v47  ;;  %6740 = vmatmul.f32.vlgmr.msra.gmra.mxu2 %v12761_v5  ;;  %v12945_v47 = vrot.slane %v12912_v10, 4 }
 0x687   :  { %6867 = vmatpush.msra.mxu0 %v6633_v53  ;;  %6806 = vmatmul.f32.vlgmr.msra.gmra.mxu3 %v6554_v31  ;;  %v6592_v53 = vand.u32 4294901760, %v6520_v6 }
 0x688   :  { %6666 = vmatpush.msrb.mxu1 %v6665_v37  ;;  %v7271_v37 = vld [vmem:[#allocation6 + $0x28] sm:$0xf0] }
 0x689   :  { %6871 = vmatpush.msra.mxu0 %v6639_v39  ;;  %v6593_v45 = vsub.f32 %v6520_v6, %v6592_v53  ;;  %v6503_v39 = vld [vmem:[%s13461_s7 + $0x38] sm:$0xff]  ;;  %v7307_v6 = vmul.f32 %v12945_v47, %v7267_v22 }
 0x68a   :  { %6672 = vmatpush.msrb.mxu1 %v6671_v3  ;;  %v7273_v3 = vld [vmem:[#allocation6 + $0x38] sm:$0x1] }
 0x68b   :  { %6875 = vmatpush.msra.mxu0 %v6645_v36  ;;  %6674 = vmatmul.f32.vlgmr.msrb.gmra.mxu1 %v12736_v63  ;;  %v6526_v36 = vsel %vm3190_vm9, %v6503_v39, 0 }
 0x68c   :  { %6565 = vmatmul.f32.gmra.mxu0 %v6564_v27  ;;  %6934 = vmatpush.msra.mxu1 %v12740_v46  ;;  %v12869_v46 = vand.u32 4294901760, %v6517_v40  ;;  %v6608_v31 = vand.u32 4294901760, %v6526_v36  ;;  %v12956_v27 = vld [vmem:[%s13462_s8 + $0x48] sm:$0x1f] }
 0x68d   :  { %6879 = vmatpush.msra.mxu0 %v6651_v20 }
 0x68e   :  { %6936 = vmatpush.msra.mxu1 %v12725_v26  ;;  %6745 = vmatmul.f32.gmra.mxu2 %v6561_v52  ;;  %v6579_v26 = vsub.f32 %v6577_v29, %v6578_v24  ;;  %v6609_v62 = vsub.f32 %v6526_v36, %v6608_v31  ;;  %v12917_v52 = vld [vmem:[%s13462_s8 + $0x18] sm:$0x1f] }
 0x68f   :  { %6883 = vmatpush.msra.mxu0 %v6657_v9  ;;  %6812 = vmatmul.f32.gmra.mxu3 %v6562_v30  ;;  %v7123_v9 = vld [vmem:[#allocation6 + $0x8] sm:$0x1f]  ;;  %v7135_v14 = vmul.f32 %v7125_v43, %v12917_v52  ;;  %v12948_v55 = vrot.slane %v12917_v52, 4 }
 0x690   :  { %6938 = vmatpush.msra.mxu1 %v12729_v41  ;;  %v6585_v41 = vsub.f32 %v6517_v40, %v12869_v46  ;;  %v6610_v20 = vand.u32 4294901760, %v6609_v62  ;;  %v7133_v25 = vmul.f32 %v7123_v9, %v12912_v10  ;;  %v7179_v30 = vld [vmem:[#allocation6 + $0x28] sm:$0x7c]  ;;  %v12965_v40 = vrot.slane %v12935_v56, 6 }
 0x691   :  { %6887 = vmatpush.msra.mxu0 %v6663_v54  ;;  %v12927_v54 = vrot.slane %v12912_v10, 6  ;;  %v7154_v38 = vsel %vm7152_vm14, %v7135_v14, 0.0 }
 0x692   :  { %6940 = vmatpush.msra.mxu1 %v12731_v8  ;;  %v6580_v8 = vand.u32 4294901760, %v6579_v26  ;;  %v6586_v2 = vand.u32 4294901760, %v6585_v41  ;;  %v6611_v35 = vsub.f32 %v6609_v62, %v6610_v20  ;;  %v7153_v4 = vsel %vm7152_vm14, %v7133_v25, 0.0  ;;  %v7279_v26 = vld [vmem:[#allocation6 + $0x68] sm:$0xf0] }
 0x693   :  { %6891 = vmatpush.msra.mxu0 %v6669_v33  ;;  %6678 = vmatmul.f32.gmra.mxu1 %v12789_v57  ;;  %v12930_v33 = vrot.slane %v12917_v52, 6  ;;  %v7131_v25 = vld [vmem:[#allocation6 + $0x88] sm:$0x1f] }
 0x694   :  { %6573 = vmatmul.f32.gmra.mxu0 %v6572_v15  ;;  %6942 = vmatpush.msra.mxu1 %v12738_v7  ;;  %v6502_v7 = vld [vmem:[%s13461_s7 + $0x30] sm:$0xff]  ;;  %v6587_v5 = vsub.f32 %v6585_v41, %v6586_v2  ;;  %v6612_v42 = vand.u32 4294901760, %v6611_v35  ;;  %v7275_v15 = vld [vmem:[#allocation6 + $0x48] sm:$0xf0] }
 0x695   :  { %v7219_v58 = vmul.f32 %v12930_v33, %v7179_v30  ;;  %v7315_v39 = vmul.f32 %v12960_v61, %v7275_v15 }
 0x696   :  { %6944 = vmatpush.msra.mxu1 %v12749_v60  ;;  %6750 = vmatmul.f32.gmra.mxu2 %v6569_v34  ;;  %v6523_v60 = vsel %vm3190_vm9, %v6502_v7, 0  ;;  %v6588_v51 = vand.u32 4294901760, %v6587_v5  ;;  %v7217_v34 = vmul.f32 %v12927_v54, %v7177_v23  ;;  %v12975_v7 = vrot.slane %v12956_v27, 6 }
 0x697   :  { %6818 = vmatmul.f32.gmra.mxu3 %v6570_v44  ;;  %v6600_v18 = vand.u32 4294901760, %v6523_v60  ;;  %v7127_v44 = vld [vmem:[#allocation6 + $0x48] sm:$0x1f] }
 0x698   :  { %6946 = vmatpush.msra.mxu1 %v12764_v11  ;;  %v6594_v11 = vand.u32 4294901760, %v6593_v45  ;;  %v7137_v36 = vmul.f32 %v7127_v44, %v12924_v21 }
 0x699   :  { %v6601_v28 = vsub.f32 %v6523_v60, %v6600_v18  ;;  %v7129_v60 = vld [vmem:[#allocation6 + $0x68] sm:$0x1f] }
 0x69a   :  { %6948 = vmatpush.msra.mxu1 %v12773_v48  ;;  %v6595_v48 = vsub.f32 %v6593_v45, %v6594_v11  ;;  %v7139_v14 = vmul.f32 %v7129_v60, %v12935_v56 }
 0x69b   :  { %6682 = vmatmul.f32.gmra.mxu1 %v12830_v17  ;;  %v6602_v32 = vand.u32 4294901760, %v6601_v28 }
 0x69c   :  { %6581 = vmatmul.f32.gmra.mxu0 %v6580_v8  ;;  %v6596_v1 = vand.u32 4294901760, %v6595_v48  ;;  %v7309_v8 = vmul.f32 %v12945_v47, %v7269_v13  ;;  %v7158_v60 = vsel %vm7152_vm14, %v7139_v14, 0.0 }
 0x69d   :  { %v6603_v49 = vsub.f32 %v6601_v28, %v6602_v32 }
 0x69e   :  { %6755 = vmatmul.f32.gmra.mxu2 %v6577_v29  ;;  %v12962_v29 = vadd.f32 %v7154_v38, %v7153_v4 }
 0x69f   :  { %6824 = vmatmul.f32.gmra.mxu3 %v6578_v24  ;;  %v6604_v59 = vand.u32 4294901760, %v6603_v49  ;;  %v7277_v24 = vld [vmem:[#allocation6 + $0x58] sm:$0x1] }
 0x6a0   :  { %v7317_v48 = vmul.f32 %v12960_v61, %v7277_v24  ;;  %v7141_v24 = vmul.f32 %v7131_v25, %v12956_v27 }
 0x6a2   :  { %v7359_v13 = vsel %vm7033_vm12, %v7317_v48, 0.0 }
 0x6a3   :  { %6686 = vmatmul.f32.gmra.mxu1 %v12850_v19 }
 0x6a4   :  { %6589 = vmatmul.f32.gmra.mxu0 %v6588_v51  ;;  %v7185_v51 = vld [vmem:[#allocation6 + $0x88] sm:$0x7c] }
 0x6a5   :  { %v7225_v23 = vmul.f32 %v12975_v7, %v7185_v51 }
 0x6a6   :  { %6760 = vmatmul.f32.gmra.mxu2 %v6585_v41  ;;  %v7281_v41 = vld [vmem:[#allocation6 + $0x78] sm:$0x1] }
 0x6a7   :  { %6830 = vmatmul.f32.gmra.mxu3 %v6586_v2  ;;  %v7311_v2 = vmul.f32 %v12948_v55, %v7271_v37  ;;  %v7395_v37 = vld [vmem:[#allocation6 + $0x68] sm:$0x1f] }
 0x6a9   :  { %v7338_v35 = vsel %vm7336_vm1, %v7311_v2, 0.0 }
 0x6ab   :  { %6690 = vmatmul.f32.gmra.mxu1 %v12869_v46 }
 0x6ac   :  { %6597 = vmatmul.f32.gmra.mxu0 %v6596_v1  ;;  %v7223_v1 = vmul.f32 %v12965_v40, %v7183_v50 }
 0x6ae   :  { %6765 = vmatmul.f32.gmra.mxu2 %v6593_v45  ;;  %v7237_v45 = vsel %vm7236_vm15, %v7217_v34, 0.0  ;;  %v7340_v34 = vsel %vm7336_vm1, %v7315_v39, 0.0  ;;  %v7242_v44 = vsel %vm7236_vm15, %v7223_v1, 0.0 }
 0x6af   :  { %6836 = vmatmul.f32.gmra.mxu3 %v6594_v11  ;;  %v7238_v11 = vsel %vm7236_vm15, %v7219_v58, 0.0 }
 0x6b0   :  { %v7239_v4 = vadd.f32 %v7238_v11, %v7237_v45  ;;  %v7405_v45 = vmul.f32 %v7395_v37, %v12917_v52 }
 0x6b3   :  { %6694 = vmatmul.f32.gmra.mxu1 %v6592_v53 }
 0x6b4   :  { %6605 = vmatmul.f32.gmra.mxu0 %v6604_v59 }
 0x6b6   :  { %6770 = vmatmul.f32.gmra.mxu2 %v6601_v28 }
 0x6b7   :  { %6842 = vmatmul.f32.gmra.mxu3 %v6602_v32  ;;  %v7283_v32 = vld [vmem:[#allocation6 + $0x88] sm:$0xf0] }
 0x6bb   :  { %6698 = vmatmul.f32.gmra.mxu1 %v6600_v18 }
 0x6bc   :  { %6613 = vmatmul.f32.gmra.mxu0 %v6612_v42  ;;  %v7356_v42 = vsel %vm7033_vm12, %v7309_v8, 0.0  ;;  %v7244_v8 = vsel %vm7236_vm15, %v7225_v23, 0.0 }
 0x6be   :  { %6775 = vmatmul.f32.gmra.mxu2 %v6609_v62 }
 0x6bf   :  { %6848 = vmatmul.f32.gmra.mxu3 %v6610_v20  ;;  %v7337_v20 = vsel %vm7336_vm1, %v7307_v6, 0.0  ;;  %v7393_v6 = vld [vmem:[#allocation6 + $0x48] sm:$0x1f] }
 0x6c3   :  { %6702 = vmatmul.f32.gmra.mxu1 %v6608_v31 }
 0x6c4   :  { %6893 = vmatmul.f32.vlgmr.msra.gmra.mxu0 %v12736_v63 }
 0x6cb   :  { %6950 = vmatmul.f32.vlgmr.msra.gmra.mxu1 %v12736_v63 }
 0x6cc   :  { %6897 = vmatmul.f32.gmra.mxu0 %v12789_v57 }
 0x6d3   :  { %6954 = vmatmul.f32.gmra.mxu1 %v12789_v57 }
 0x6d4   :  { %6901 = vmatmul.f32.gmra.mxu0 %v12830_v17 }
 0x6db   :  { %6958 = vmatmul.f32.gmra.mxu1 %v12830_v17 }
 0x6dc   :  { %6905 = vmatmul.f32.gmra.mxu0 %v12850_v19 }
 0x6e3   :  { %6962 = vmatmul.f32.gmra.mxu1 %v12850_v19  ;;  %v7181_v19 = vld [vmem:[#allocation6 + $0x48] sm:$0x7c] }
 0x6e4   :  { %6909 = vmatmul.f32.gmra.mxu0 %v12869_v46  ;;  %v7221_v5 = vmul.f32 %v12942_v12, %v7181_v19  ;;  %v7339_v19 = vadd.f32 %v7338_v35, %v7337_v20 }
 0x6e6   :  { %v7240_v30 = vsel %vm7236_vm15, %v7221_v5, 0.0  ;;  %v7341_v2 = vadd.f32 %v7340_v34, %v7339_v19  ;;  %v7397_v5 = vld [vmem:[#allocation6 + $0x88] sm:$0x1f] }
 0x6e7   :  { %v7241_v50 = vadd.f32 %v7240_v30, %v7239_v4  ;;  %v7407_v35 = vmul.f32 %v7397_v5, %v12924_v21  ;;  %v7401_v4 = vld [vmem:[#allocation6 + $0xc8] sm:$0x1f]  ;;  %v7422_v30 = vsel %vm7152_vm14, %v7405_v45, 0.0 }
 0x6e8   :  { %v7449_v34 = vld [vmem:[#allocation6 + $0x88] sm:$0x7c]  ;;  %v7411_v19 = vmul.f32 %v7401_v4, %v12956_v27 }
 0x6e9   :  { %v7243_v51 = vadd.f32 %v7242_v44, %v7241_v50  ;;  %v7451_v50 = vld [vmem:[#allocation6 + $0xa8] sm:$0x7c] }
 0x6eb   :  { %6966 = vmatmul.f32.gmra.mxu1 %v12869_v46  ;;  %v12968_v46 = vrot.slane %v12935_v56, 4  ;;  %v7245_v20 = vadd.f32 %v7244_v8, %v7243_v51  ;;  %v7461_v51 = vmul.f32 %v7451_v50, %v12965_v40  ;;  %v7513_v50 = vld [vmem:[#allocation6 + $0x98] sm:$0x1] }
 0x6ec   :  { %6913 = vmatmul.f32.gmra.mxu0 %v6592_v53 }
 0x6ed   :  { %v7319_v49 = vmul.f32 %v12968_v46, %v7279_v26  ;;  %v7321_v62 = vmul.f32 %v12968_v46, %v7281_v41  ;;  %v7249_v44 = vrot.slane %v7245_v20, 2  ;;  %v7478_v4 = vsel %vm7236_vm15, %v7461_v51, 0.0 }
 0x6ef   :  { %v7342_v26 = vsel %vm7336_vm1, %v7319_v49, 0.0  ;;  %v7361_v41 = vsel %vm7033_vm12, %v7321_v62, 0.0  ;;  %v7160_v62 = vsel %vm7152_vm14, %v7141_v24, 0.0  ;;  %v7424_v24 = vsel %vm7152_vm14, %v7407_v35, 0.0 }
 0x6f3   :  { %6970 = vmatmul.f32.gmra.mxu1 %v6592_v53  ;;  %v7313_v53 = vmul.f32 %v12948_v55, %v7273_v3  ;;  %v7156_v3 = vsel %vm7152_vm14, %v7137_v36, 0.0  ;;  %v7343_v36 = vadd.f32 %v7342_v26, %v7341_v2  ;;  %v7459_v2 = vmul.f32 %v7449_v34, %v12942_v12  ;;  %v7507_v34 = vld [vmem:[#allocation6 + $0x68] sm:$0xf0] }
 0x6f4   :  { %6917 = vmatmul.f32.gmra.mxu0 %v6600_v18  ;;  %v7157_v48 = vadd.f32 %v7156_v3, %v12962_v29 }
 0x6f5   :  { %v7357_v9 = vsel %vm7033_vm12, %v7313_v53, 0.0  ;;  %v7476_v35 = vsel %vm7236_vm15, %v7459_v2, 0.0 }
 0x6f6   :  { %v7358_v58 = vadd.f32 %v7357_v9, %v7356_v42  ;;  %v7447_v42 = vld [vmem:[#allocation6 + $0x68] sm:$0x7c]  ;;  %v7159_v14 = vadd.f32 %v7158_v60, %v7157_v48  ;;  %v7259_v48 = vsel %vm7152_vm14, %v7249_v44, 0.0 }
 0x6f7   :  { %v7457_v3 = vmul.f32 %v7447_v42, %v12930_v33 }
 0x6f8   :  { %v7360_v53 = vadd.f32 %v7359_v13, %v7358_v58  ;;  %v7161_v13 = vadd.f32 %v7160_v62, %v7159_v14 }
 0x6fa   :  { %v7362_v1 = vadd.f32 %v7361_v41, %v7360_v53  ;;  %v7169_v45 = vsel %vm7152_vm14, %v7161_v13, 0.0  ;;  %v7509_v13 = vld [vmem:[#allocation6 + $0x78] sm:$0x1] }
 0x6fb   :  { %6974 = vmatmul.f32.gmra.mxu1 %v6600_v18  ;;  %v12981_v18 = vrot.slane %v12956_v27, 4  ;;  %v7170_v42 = vrot.slane %v7169_v45, 4  ;;  %v7529_v2 = vmul.f32 %v7509_v13, %v12948_v55 }
 0x6fc   :  { %6921 = vmatmul.f32.gmra.mxu0 %v6608_v31 }
 0x6fd   :  { %v7323_v38 = vmul.f32 %v12981_v18, %v7283_v32  ;;  %v7399_v32 = vld [vmem:[#allocation6 + $0xa8] sm:$0x1f]  ;;  %v7171_v44 = vadd.f32 %v7170_v42, %v7169_v45  ;;  %v7517_v45 = vld [vmem:[#allocation6 + $0xb8] sm:$0x1]  ;;  %v7533_v42 = vmul.f32 %v7513_v50, %v12960_v61 }
 0x6ff   :  { %v7344_v11 = vsel %vm7336_vm1, %v7323_v38, 0.0  ;;  %v7409_v38 = vmul.f32 %v7399_v32, %v12935_v56 }
 0x700   :  { %v7345_v23 = vadd.f32 %v7344_v11, %v7343_v36  ;;  %v7474_v11 = vsel %vm7236_vm15, %v7457_v3, 0.0  ;;  %v7428_v36 = vsel %vm7152_vm14, %v7411_v19, 0.0  ;;  %v7503_v3 = vld [vmem:[#allocation6 + $0x48] sm:$0xf0] }
 0x701   :  { %v12903_v63 = vpop.f32.mrf.mxu0  ;;  %v7426_v5 = vsel %vm7152_vm14, %v7409_v38, 0.0 }
 0x702   :  { %v7373_v26 = vrot.slane %v7345_v23, 4 }
 0x703   :  { %6978 = vmatmul.f32.gmra.mxu1 %v6608_v31  ;;  %v7285_v31 = vld [vmem:[#allocation6 + $0x98] sm:$0x1] }
 0x704   :  { %v7325_v22 = vmul.f32 %v12981_v18, %v7285_v31  ;;  %v7403_v31 = vmul.f32 %v7393_v6, %v12912_v10  ;;  %v7453_v6 = vld [vmem:[#allocation6 + $0xc8] sm:$0x7c] }
 0x706   :  { %v7363_v39 = vsel %vm7033_vm12, %v7325_v22, 0.0  ;;  %v7445_v22 = vld [vmem:[#allocation6 + $0x48] sm:$0x7c]  ;;  %v7421_v37 = vsel %vm7152_vm14, %v7403_v31, 0.0 }
 0x707   :  { %v7364_v29 = vadd.f32 %v7363_v39, %v7362_v1  ;;  %v7423_v58 = vadd.f32 %v7422_v30, %v7421_v37  ;;  %v7455_v8 = vmul.f32 %v7445_v22, %v12927_v54  ;;  %v7463_v1 = vmul.f32 %v7453_v6, %v12975_v7  ;;  %v7515_v6 = vld [vmem:[#allocation6 + $0xa8] sm:$0xf0] }
 0x708   :  { %v12905_v57 = vpop.f32.mrf.mxu1  ;;  %v7260_v30 = vrot.slane %v7259_v48, 4 }
 0x709   :  { %v12907_v0 = vpop.f32.mrf.mxu0  ;;  %v12985_v28 = vpop.f32.mrf.mxu2  ;;  %v7374_v41 = vrot.slane %v7364_v29, 4  ;;  %v7425_v60 = vadd.f32 %v7424_v24, %v7423_v58  ;;  %v7473_v20 = vsel %vm7236_vm15, %v7455_v8, 0.0  ;;  %v7480_v37 = vsel %vm7236_vm15, %v7463_v1, 0.0  ;;  %v7505_v58 = vld [vmem:[#allocation6 + $0x58] sm:$0x1] }
 0x70a   :  { %v13008_v15 = vpop.f32.mrf.mxu3  ;;  %v7475_v14 = vadd.f32 %v7474_v11, %v7473_v20  ;;  %v7511_v24 = vld [vmem:[#allocation6 + $0x88] sm:$0xf0]  ;;  %v7527_v8 = vmul.f32 %v7507_v34, %v12948_v55  ;;  %v13064_v51 = vadd.f32 %v7260_v30, %v7259_v48  ;;  %v7525_v20 = vmul.f32 %v7505_v58, %v12945_v47 }
 0x70b   :  { %v7375_v31 = vsel %vm7369_vm2, %v7373_v26, %v7374_v41  ;;  %v7427_v62 = vadd.f32 %v7426_v5, %v7425_v60  ;;  %v7519_v1 = vld [vmem:[#allocation6 + $0xc8] sm:$0xf0]  ;;  %v7537_v30 = vmul.f32 %v7517_v45, %v12968_v46  ;;  %v7570_v34 = vsel %vm7033_vm12, %v7529_v2, 0.0 }
 0x70c   :  { %v7385_v38 = vsel %vm7152_vm14, %v7375_v31, 0.0  ;;  %v7477_v22 = vadd.f32 %v7476_v35, %v7475_v14  ;;  %v7521_v31 = vld [vmem:[#allocation6 + $0xd8] sm:$0x1]  ;;  %v7531_v35 = vmul.f32 %v7511_v24, %v12960_v61  ;;  %v7172_v14 = vrot.slane %v7171_v44, 2  ;;  %v7659_v58 = vld [vmem:[#allocation6 + $0xa8] sm:$0x7c] }
 0x70d   :  { %v7429_v29 = vadd.f32 %v7428_v36, %v7427_v62  ;;  %v7386_v26 = vrot.slane %v7385_v38, 4  ;;  %v7523_v62 = vmul.f32 %v7503_v3, %v12945_v47  ;;  %v7262_v13 = vrot.slane %v13064_v51, 2 }
 0x70e   :  { %v7479_v19 = vadd.f32 %v7478_v4, %v7477_v22  ;;  %v7535_v4 = vmul.f32 %v7515_v6, %v12968_v46  ;;  %v7552_v22 = vsel %vm7336_vm1, %v7527_v8, 0.0  ;;  %v7539_v3 = vmul.f32 %v7519_v1, %v12981_v18  ;;  %v7607_v8 = vld [vmem:[#allocation6 + $0xa8] sm:$0x1f] }
 0x70f   :  { %v7437_v41 = vsel %vm7152_vm14, %v7429_v29, 0.0  ;;  %v13073_v48 = vadd.f32 %v7386_v26, %v7385_v38  ;;  %v7551_v50 = vsel %vm7336_vm1, %v7523_v62, 0.0  ;;  %v7554_v38 = vsel %vm7336_vm1, %v7531_v35, 0.0  ;;  %v7605_v1 = vld [vmem:[#allocation6 + $0x88] sm:$0x1f] }
 0x710   :  { %v12938_v17 = vpop.f32.mrf.mxu1  ;;  %v7481_v11 = vadd.f32 %v7480_v37, %v7479_v19  ;;  %v7438_v29 = vrot.slane %v7437_v41, 4  ;;  %v7541_v19 = vmul.f32 %v7521_v31, %v12981_v18  ;;  %v7569_v26 = vsel %vm7033_vm12, %v7525_v20, 0.0  ;;  %v7661_v31 = vld [vmem:[#allocation6 + $0xc8] sm:$0x7c] }
 0x711   :  { %v12950_v16 = vpop.f32.mrf.mxu0  ;;  %v13026_v25 = vpop.f32.mrf.mxu2  ;;  %v7572_v6 = vsel %vm7033_vm12, %v7533_v42, 0.0  ;;  %v13087_v2 = vadd.f32 %v7172_v14, %v7171_v44  ;;  %v7574_v62 = vsel %vm7033_vm12, %v7537_v30, 0.0  ;;  %v7609_v35 = vld [vmem:[#allocation6 + $0xc8] sm:$0x1f]  ;;  %v7669_v20 = vmul.f32 %v7659_v58, %v12930_v33 }
 0x712   :  { %v13036_v53 = vpop.f32.mrf.mxu3  ;;  %v7485_v37 = vrot.slane %v7481_v11, 2  ;;  %v7439_v45 = vadd.f32 %v7438_v29, %v7437_v41  ;;  %v7553_v11 = vadd.f32 %v7552_v22, %v7551_v50  ;;  %v7617_v14 = vmul.f32 %v7607_v8, %v12917_v52  ;;  %v7663_v29 = vld [vmem:[#allocation6 + $0xe8] sm:$0x7c] }
 0x713   :  { %v7611_v50 = vld [vmem:[#allocation6 + $0xe8] sm:$0x1f]  ;;  %v7671_v33 = vmul.f32 %v7661_v31, %v12942_v12  ;;  %v7619_v52 = vmul.f32 %v7609_v35, %v12924_v21 }
 0x714   :  { %v7495_v44 = vsel %vm7152_vm14, %v7485_v37, 0.0  ;;  %v7555_v42 = vadd.f32 %v7554_v38, %v7553_v11  ;;  %v7665_v38 = vld [vmem:[#allocation6 + $0x108] sm:$0x7c]  ;;  %v7621_v12 = vmul.f32 %v7611_v50, %v12935_v56  ;;  %v7263_v56 = vadd.f32 %v7262_v13, %v13064_v51 }
 0x715   :  { %v7496_v8 = vrot.slane %v7495_v44, 4  ;;  %v7613_v11 = vld [vmem:[#allocation6 + $0x108] sm:$0x1f]  ;;  %v7174_v13 = vrot.slane %v13087_v2, 1 }
 0x716   :  { %v7623_v31 = vmul.f32 %v7613_v11, %v12956_v27  ;;  %v7638_v27 = vsel %vm7152_vm14, %v7621_v12, 0.0 }
 0x717   :  { %v7497_v51 = vadd.f32 %v7496_v8, %v7495_v44  ;;  %v7719_v44 = vld [vmem:[#allocation6 + $0xa8] sm:$0xf0] }
 0x718   :  { %v12991_v59 = vpop.f32.mrf.mxu1 }
 0x719   :  { %v12997_v43 = vpop.f32.mrf.mxu0  ;;  %v13052_v23 = vpop.f32.mrf.mxu2  ;;  %v7498_v8 = vrot.slane %v7497_v51, 2 }
 0x71a   :  { %v13062_v60 = vpop.f32.mrf.mxu3 }
 0x720   :  { %v13020_v49 = vpop.f32.mrf.mxu1 }
 0x721   :  { %v13024_v9 = vpop.f32.mrf.mxu0  ;;  %v13081_v24 = vpop.f32.mrf.mxu2 }
 0x722   :  { %13655 = vst [vmem:[#allocation13_spill] sm:$0xff] %v13024_v9  ;;  %v13103_v58 = vpop.f32.mrf.mxu3 }
 0x728   :  { %v13042_v39 = vpop.f32.mrf.mxu1 }
 0x729   :  { %13656 = vst [vmem:[#allocation11_spill] sm:$0xff] %v13042_v39  ;;  %v13047_v32 = vpop.f32.mrf.mxu0  ;;  %v7556_v39 = vsel %vm7336_vm1, %v7535_v4, 0.0  ;;  %v7576_v4 = vsel %vm7033_vm12, %v7541_v19, 0.0  ;;  %v7686_v19 = vsel %vm7236_vm15, %v7669_v20, 0.0  ;;  %v13119_v20 = vpop.f32.mrf.mxu2 }
 0x72a   :  { %13657 = vst [vmem:[#allocation8_spill] sm:$0xff] %v13047_v32  ;;  %v7388_v32 = vrot.slane %v13073_v48, 2 }
 0x730   :  { %v13060_v5 = vpop.f32.mrf.mxu1 }
 0x731   :  { %13658 = vst [vmem:[#allocation9_spill] sm:$0xff] %v13060_v5  ;;  %v13066_v36 = vpop.f32.mrf.mxu0  ;;  %v7657_v5 = vld [vmem:[#allocation6 + $0x88] sm:$0x7c] }
 0x732   :  { %13659 = vst [vmem:[#allocation12_spill] sm:$0xff] %v13066_v36  ;;  %v7571_v36 = vadd.f32 %v7570_v34, %v7569_v26  ;;  %v7558_v34 = vsel %vm7336_vm1, %v7539_v3, 0.0  ;;  %v7667_v30 = vmul.f32 %v7657_v5, %v12927_v54  ;;  %v7557_v26 = vadd.f32 %v7556_v39, %v7555_v42 }
 0x733   :  { %v7673_v3 = vmul.f32 %v7663_v29, %v12965_v40  ;;  %v7634_v5 = vsel %vm7152_vm14, %v7617_v14, 0.0  ;;  %v6676_v39 = vadd.f32 %v12905_v57, %v12903_v63  ;;  %v7389_v42 = vadd.f32 %v7388_v32, %v13073_v48 }
 0x734   :  { %v7573_v41 = vadd.f32 %v7572_v6, %v7571_v36  ;;  %v7615_v36 = vmul.f32 %v7605_v1, %v12912_v10  ;;  %v7440_v6 = vrot.slane %v7439_v45, 2  ;;  %v7675_v10 = vmul.f32 %v7665_v38, %v12975_v7 }
 0x735   :  { %v7685_v21 = vsel %vm7236_vm15, %v7667_v30, 0.0  ;;  %v7688_v1 = vsel %vm7236_vm15, %v7671_v33, 0.0  ;;  %v7690_v57 = vsel %vm7236_vm15, %v7673_v3, 0.0  ;;  %v7640_v32 = vsel %vm7152_vm14, %v7623_v31, 0.0  ;;  %v7721_v3 = vld [vmem:[#allocation6 + $0xb8] sm:$0x1] }
 0x736   :  { %v7575_v37 = vadd.f32 %v7574_v62, %v7573_v41  ;;  %v7633_v40 = vsel %vm7152_vm14, %v7615_v36, 0.0  ;;  %v7636_v62 = vsel %vm7152_vm14, %v7619_v52, 0.0  ;;  %v7687_v35 = vadd.f32 %v7686_v19, %v7685_v21 }
 0x737   :  { %v7635_v63 = vadd.f32 %v7634_v5, %v7633_v40  ;;  %v7692_v30 = vsel %vm7236_vm15, %v7675_v10, 0.0  ;;  %v7441_v33 = vadd.f32 %v7440_v6, %v7439_v45  ;;  %v7390_v36 = vrot.slane %v7389_v42, 1  ;;  %v7717_v10 = vld [vmem:[#allocation6 + $0x98] sm:$0x1] }
 0x738   :  { %v13093_v9 = vpop.f32.mrf.mxu1  ;;  %v7577_v54 = vadd.f32 %v7576_v4, %v7575_v37  ;;  %v7689_v29 = vadd.f32 %v7688_v1, %v7687_v35  ;;  %v7739_v31 = vmul.f32 %v7719_v44, %v12948_v55 }
 0x739   :  { %v13097_v22 = vpop.f32.mrf.mxu0  ;;  %v7637_v50 = vadd.f32 %v7636_v62, %v7635_v63  ;;  %v7442_v6 = vrot.slane %v7441_v33, 1  ;;  %v13139_v1 = vadd.f32 %v7390_v36, %v7389_v42  ;;  %v13143_v63 = vpop.f32.mrf.mxu2  ;;  %v7499_v42 = vadd.f32 %v7498_v8, %v7497_v51 }
 0x73a   :  { %13660 = vst [vmem:[#allocation14_spill] sm:$0xff] %v13097_v22  ;;  %v7559_v22 = vadd.f32 %v7558_v34, %v7557_v26  ;;  %v7586_v14 = vrot.slane %v7577_v54, 4  ;;  %v6742_v34 = vadd.f32 %v12985_v28, %v6676_v39  ;;  %v7691_v48 = vadd.f32 %v7690_v57, %v7689_v29  ;;  %v7715_v39 = vld [vmem:[#allocation6 + $0x88] sm:$0xf0]  ;;  %v7729_v57 = vld [vmem:[#allocation6 + $0xf8] sm:$0x1] }
 0x73b   :  { %v7264_v26 = vrot.slane %v7263_v56, 1  ;;  %v7639_v37 = vadd.f32 %v7638_v27, %v7637_v50  ;;  %v6680_v28 = vadd.f32 %v12938_v17, %v12907_v0  ;;  %v7175_v54 = vadd.f32 %v7174_v13, %v13087_v2  ;;  %v7723_v17 = vld [vmem:[#allocation6 + $0xc8] sm:$0xf0]  ;;  %v7733_v50 = vld [vmem:[#allocation6 + $0x118] sm:$0x1] }
 0x73c   :  { %v7585_v41 = vrot.slane %v7559_v22, 4  ;;  %v13131_v22 = vpop.f32.mrf.mxu3  ;;  %v7693_v38 = vadd.f32 %v7692_v30, %v7691_v48  ;;  %v6808_v11 = vadd.f32 %v13008_v15, %v6742_v34  ;;  %v7725_v15 = vld [vmem:[#allocation6 + $0xd8] sm:$0x1]  ;;  %v7735_v29 = vmul.f32 %v7715_v39, %v12945_v47 }
 0x73d   :  { %v7641_v45 = vadd.f32 %v7640_v32, %v7639_v37  ;;  %v7265_v12 = vadd.f32 %v7264_v26, %v7263_v56  ;;  %v6747_v40 = vadd.f32 %v13026_v25, %v6680_v28  ;;  %v7727_v56 = vld [vmem:[#allocation6 + $0xe8] sm:$0xf0]  ;;  %v7737_v25 = vmul.f32 %v7717_v10, %v12945_v47 }
 0x73e   :  { %v7587_v52 = vsel %vm7369_vm2, %v7585_v41, %v7586_v14  ;;  %v7697_v0 = vrot.slane %v7693_v38, 2  ;;  %v7741_v41 = vmul.f32 %v7721_v3, %v12948_v55  ;;  %v13147_v14 = vadd.f32 %v7442_v6, %v7441_v33 }
 0x73f   :  { %v7597_v5 = vsel %vm7152_vm14, %v7587_v52, 0.0  ;;  %v7649_v2 = vsel %vm7152_vm14, %v7641_v45, 0.0  ;;  %v7743_v30 = vmul.f32 %v7723_v17, %v12960_v61  ;;  %v7745_v32 = vmul.f32 %v7725_v15, %v12960_v61 }
 0x740   :  { %v13124_v7 = vpop.f32.mrf.mxu1  ;;  %v7598_v27 = vrot.slane %v7597_v5, 4  ;;  %v7650_v48 = vrot.slane %v7649_v2, 4  ;;  %v7707_v13 = vsel %vm7152_vm14, %v7697_v0, 0.0  ;;  %v7747_v55 = vmul.f32 %v7727_v56, %v12968_v46 }
 0x741   :  { %v6894_v4 = vpop.f32.mrf.mxu0  ;;  %v7749_v33 = vmul.f32 %v7729_v57, %v12968_v46  ;;  %v6684_v51 = vadd.f32 %v12991_v59, %v12950_v16  ;;  %v6814_v26 = vadd.f32 %v13036_v53, %v6747_v40  ;;  %v7764_v47 = vsel %vm7336_vm1, %v7739_v31, 0.0  ;;  %v13173_v31 = vpop.f32.mrf.mxu2 }
 0x742   :  { %v6895_v19 = vadd.f32 %v6894_v4, %v6808_v11  ;;  %v7731_v4 = vld [vmem:[#allocation6 + $0x108] sm:$0xf0]  ;;  %v7782_v37 = vsel %vm7033_vm12, %v7741_v41, 0.0  ;;  %v7599_v36 = vadd.f32 %v7598_v27, %v7597_v5  ;;  %v7753_v38 = vmul.f32 %v7733_v50, %v12981_v18 }
 0x743   :  { %v7751_v52 = vmul.f32 %v7731_v4, %v12981_v18  ;;  %v7763_v46 = vsel %vm7336_vm1, %v7735_v29, 0.0  ;;  %v7766_v16 = vsel %vm7336_vm1, %v7743_v30, 0.0  ;;  %v7781_v59 = vsel %vm7033_vm12, %v7737_v25, 0.0 }
 0x744   :  { %v13161_v61 = vpop.f32.mrf.mxu3  ;;  %v7784_v53 = vsel %vm7033_vm12, %v7745_v32, 0.0  ;;  %v7651_v45 = vadd.f32 %v7650_v48, %v7649_v2  ;;  %v7708_v44 = vrot.slane %v7707_v13, 4  ;;  %v7765_v6 = vadd.f32 %v7764_v47, %v7763_v46  ;;  %v13661_v47 = vld [vmem:[#allocation13_spill] sm:$0xff] }
 0x745   :  { %v7783_v8 = vadd.f32 %v7782_v37, %v7781_v59  ;;  %v6752_v3 = vadd.f32 %v13052_v23, %v6684_v51  ;;  %v7768_v18 = vsel %vm7336_vm1, %v7747_v55, 0.0  ;;  %v7786_v39 = vsel %vm7033_vm12, %v7749_v33, 0.0  ;;  %v13662_v37 = vld [vmem:[#allocation11_spill] sm:$0xff] }
 0x746   :  { %v7500_v10 = vrot.slane %v7499_v42, 1  ;;  %v7767_v0 = vadd.f32 %v7766_v16, %v7765_v6  ;;  %v7600_v40 = vrot.slane %v7599_v36, 2  ;;  %v7652_v23 = vrot.slane %v7651_v45, 2  ;;  %v13664_v16 = vld [vmem:[#allocation9_spill] sm:$0xff]  ;;  %v13666_v6 = vld [vmem:[#allocation14_spill] sm:$0xff] }
 0x747   :  { %v7785_v17 = vadd.f32 %v7784_v53, %v7783_v8  ;;  %v7709_v2 = vadd.f32 %v7708_v44, %v7707_v13  ;;  %v6688_v41 = vadd.f32 %v13020_v49, %v12997_v43  ;;  %v6820_v27 = vadd.f32 %v13062_v60, %v6752_v3 }
 0x748   :  { %v6951_v21 = vpop.f32.mrf.mxu1  ;;  %v7769_v56 = vadd.f32 %v7768_v18, %v7767_v0  ;;  %v7501_v50 = vadd.f32 %v7500_v10, %v7499_v42  ;;  %v7601_v25 = vadd.f32 %v7600_v40, %v7599_v36  ;;  %v7653_v30 = vadd.f32 %v7652_v23, %v7651_v45  ;;  %v13665_v45 = vld [vmem:[#allocation12_spill] sm:$0xff] }
 0x749   :  { %v6898_v62 = vpop.f32.mrf.mxu0  ;;  %v6952_v35 = vadd.f32 %v6951_v21, %v6895_v19  ;;  %v7817_v21 = vsel %vm7346_vm3, %v7175_v54, %v7265_v12  ;;  %v7787_v57 = vadd.f32 %v7786_v39, %v7785_v17  ;;  %v13183_v54 = vld [vmem:[%s13462_s8] sm:$0x1f]  ;;  %v13188_v12 = vld [vmem:[%s13462_s8 + $0x10] sm:$0x1f]  ;;  %v7710_v32 = vrot.slane %v7709_v2, 2  ;;  %v6776_v10 = vpop.f32.mrf.mxu2 }
 0x74a   :  { %v6899_v28 = vadd.f32 %v6898_v62, %v6814_v26  ;;  %v7770_v62 = vsel %vm7336_vm1, %v7751_v52, 0.0  ;;  %v7820_v43 = vsel %vm7818_vm6, %v7817_v21, %v13139_v1  ;;  %v6757_v55 = vadd.f32 %v13081_v24, %v6688_v41  ;;  %v7122_v26 = vld [vmem:[#allocation6] sm:$0x1f] }
 0x74b   :  { %v7023_v34 = vrot.slane %v6952_v35, 7  ;;  %v7788_v35 = vsel %vm7033_vm12, %v7753_v38, 0.0  ;;  %v7771_v29 = vadd.f32 %v7770_v62, %v7769_v56  ;;  %v7822_v48 = vsel %vm101_vm0, %v7820_v43, %v13147_v14  ;;  %v7176_v52 = vld [vmem:[#allocation6] sm:$0x7c] }
 0x74c   :  { %v13192_v60 = vpop.f32.mrf.mxu3  ;;  %v13198_v42 = vrot.slane %v13183_v54, 6  ;;  %v13201_v1 = vrot.slane %v13188_v12, 6  ;;  %v6692_v36 = vadd.f32 %v13662_v37, %v13661_v47  ;;  %v13663_v14 = vld [vmem:[#allocation8_spill] sm:$0xff]  ;;  %v7602_v53 = vrot.slane %v7601_v25, 1 }
 0x74d   :  { %7026 = vst [vmem:[#allocation6 + $0x20] sm:$0xfe] %v7023_v34  ;;  %v7797_v46 = vrot.slane %v7771_v29, 4  ;;  %v6696_v59 = vadd.f32 %v13664_v16, %v13663_v14  ;;  %v6700_v44 = vadd.f32 %v13093_v9, %v13665_v45  ;;  %v6704_v8 = vadd.f32 %v13124_v7, %v13666_v6 }
 0x74e   :  { %7027 = vst [vmem:[#allocation6 + $0x30] sm:$0x1] %v7023_v34  ;;  %v7789_v34 = vadd.f32 %v7788_v35, %v7787_v57  ;;  %v6826_v39 = vadd.f32 %v13103_v58, %v6757_v55  ;;  %v7216_v21 = vmul.f32 %v13198_v42, %v7176_v52  ;;  %v7654_v0 = vrot.slane %v7653_v30, 1  ;;  %v13250_v55 = vld [vmem:[%s13462_s8 + $0x30] sm:$0x1f] }
 0x74f   :  { %v6762_v7 = vadd.f32 %v13119_v20, %v6692_v36  ;;  %v13225_v17 = vadd.f32 %v7710_v32, %v7709_v2  ;;  %v6767_v62 = vadd.f32 %v13143_v63, %v6696_v59  ;;  %v6772_v56 = vadd.f32 %v13173_v31, %v6700_v44  ;;  %v7266_v52 = vld [vmem:[#allocation6] sm:$0xf0] }
 0x750   :  { %v6955_v11 = vpop.f32.mrf.mxu1  ;;  %v6777_v57 = vadd.f32 %v6776_v10, %v6704_v8  ;;  %v7227_v63 = vsel %vm7226_vm8, %v7216_v21, 0.0  ;;  %v13239_v43 = vadd.f32 %v7602_v53, %v7601_v25  ;;  %v13255_v25 = vrot.slane %v13183_v54, 4 }
 0x751   :  { %v6902_v19 = vpop.f32.mrf.mxu0  ;;  %v6956_v5 = vadd.f32 %v6955_v11, %v6899_v28  ;;  %v7798_v28 = vrot.slane %v7789_v34, 4  ;;  %v13208_v11 = vsel %vm7369_vm2, %v7822_v48, %v7501_v50  ;;  %v7712_v31 = vrot.slane %v13225_v17, 1 }
 0x752   :  { %v6903_v4 = vadd.f32 %v6902_v19, %v6820_v27  ;;  %v13217_v19 = vld [vmem:[%s13462_s8 + $0x20] sm:$0x1f]  ;;  %v13263_v14 = vadd.f32 %v13192_v60, %v6772_v56  ;;  %v13274_v6 = vrot.slane %v13250_v55, 6 }
 0x753   :  { %v7036_v15 = vrot.slane %v6956_v5, 7  ;;  %v7132_v5 = vmul.f32 %v7122_v26, %v13183_v54  ;;  %v13231_v35 = vrot.slane %v13217_v19, 6  ;;  %v6832_v26 = vadd.f32 %v13131_v22, %v6762_v7  ;;  %v13270_v22 = vld [vmem:[%s13462_s8 + $0x40] sm:$0x1f] }
 0x754   :  { %v7124_v13 = vld [vmem:[#allocation6 + $0x20] sm:$0x1f]  ;;  %v6849_v50 = vpop.f32.mrf.mxu3  ;;  %v13285_v21 = vrot.slane %v13270_v22, 6 }
 0x755   :  { %7039 = vst [vmem:[#allocation6 + $0x40] sm:$0xfe] %v7036_v15  ;;  %v7178_v38 = vld [vmem:[#allocation6 + $0x20] sm:$0x7c]  ;;  %v7134_v18 = vmul.f32 %v7124_v13, %v13188_v12  ;;  %v7143_v41 = vsel %vm7142_vm7, %v7132_v5, 0.0  ;;  %v13265_v16 = vadd.f32 %v6849_v50, %v6777_v57  ;;  %v13281_v5 = vrot.slane %v13250_v55, 4 }
 0x756   :  { %7040 = vst [vmem:[#allocation6 + $0x50] sm:$0x1] %v7036_v15  ;;  %v7218_v9 = vmul.f32 %v13201_v1, %v7178_v38  ;;  %v7799_v15 = vsel %vm7369_vm2, %v7797_v46, %v7798_v28  ;;  %v7270_v48 = vld [vmem:[#allocation6 + $0x20] sm:$0xf0]  ;;  %v13259_v38 = vrot.slane %v13188_v12, 4  ;;  %v6838_v28 = vadd.f32 %v13161_v61, %v6767_v62 }
 0x757   :  { %v7144_v20 = vsel %vm7142_vm7, %v7134_v18, 0.0  ;;  %v13245_v32 = vsel %vm7152_vm14, %v7799_v15, 0.0  ;;  %v7272_v46 = vld [vmem:[#allocation6 + $0x30] sm:$0x1]  ;;  %v7306_v18 = vmul.f32 %v13255_v25, %v7266_v52 }
 0x758   :  { %v6959_v49 = vpop.f32.mrf.mxu1  ;;  %v7145_v37 = vadd.f32 %v7144_v20, %v7143_v41  ;;  %v7310_v7 = vmul.f32 %v13259_v38, %v7270_v48  ;;  %v7312_v41 = vmul.f32 %v13259_v38, %v7272_v46 }
 0x759   :  { %v6906_v33 = vpop.f32.mrf.mxu0  ;;  %v6960_v51 = vadd.f32 %v6959_v49, %v6903_v4  ;;  %v7228_v4 = vsel %vm7226_vm8, %v7218_v9, 0.0  ;;  %v13241_v49 = vadd.f32 %v7654_v0, %v7653_v30 }
 0x75a   :  { %v6907_v40 = vadd.f32 %v6906_v33, %v6826_v39  ;;  %v7229_v36 = vadd.f32 %v7228_v4, %v7227_v63 }
 0x75b   :  { %v7047_v24 = vrot.slane %v6960_v51, 7 }
 0x75c   :  { %v7126_v3 = vld [vmem:[#allocation6 + $0x40] sm:$0x1f] }
 0x75d   :  { %7050 = vst [vmem:[#allocation6 + $0x60] sm:$0xfe] %v7047_v24  ;;  %v7136_v58 = vmul.f32 %v7126_v3, %v13217_v19  ;;  %v7180_v2 = vld [vmem:[#allocation6 + $0x40] sm:$0x7c]  ;;  %v13278_v3 = vrot.slane %v13217_v19, 4 }
 0x75e   :  { %7051 = vst [vmem:[#allocation6 + $0x70] sm:$0x1] %v7047_v24  ;;  %v7220_v34 = vmul.f32 %v13231_v35, %v7180_v2  ;;  %v7274_v30 = vld [vmem:[#allocation6 + $0x40] sm:$0xf0]  ;;  %v7268_v24 = vld [vmem:[#allocation6 + $0x10] sm:$0x1] }
 0x75f   :  { %v7146_v33 = vsel %vm7142_vm7, %v7136_v58, 0.0  ;;  %v7276_v39 = vld [vmem:[#allocation6 + $0x50] sm:$0x1]  ;;  %v7308_v0 = vmul.f32 %v13255_v25, %v7268_v24  ;;  %v7314_v56 = vmul.f32 %v13278_v3, %v7274_v30  ;;  %v7392_v24 = vld [vmem:[#allocation6 + $0x40] sm:$0x1f] }
 0x760   :  { %v6963_v23 = vpop.f32.mrf.mxu1  ;;  %v7230_v51 = vsel %vm7226_vm8, %v7220_v34, 0.0  ;;  %v7147_v45 = vadd.f32 %v7146_v33, %v7145_v37  ;;  %v7328_v34 = vsel %vm7326_vm10, %v7310_v7, 0.0 }
 0x761   :  { %v6910_v27 = vpop.f32.mrf.mxu0  ;;  %v6964_v29 = vadd.f32 %v6963_v23, %v6907_v40  ;;  %v7231_v61 = vadd.f32 %v7230_v51, %v7229_v36  ;;  %v13291_v23 = vrot.slane %v13270_v22, 4  ;;  %v7330_v52 = vsel %vm7326_vm10, %v7314_v56, 0.0 }
 0x762   :  { %v6911_v53 = vadd.f32 %v6910_v27, %v6832_v26  ;;  %v7316_v27 = vmul.f32 %v13278_v3, %v7276_v39  ;;  %v7402_v56 = vmul.f32 %v7392_v24, %v13183_v54 }
 0x763   :  { %v7058_v13 = vrot.slane %v6964_v29, 7  ;;  %v7327_v29 = vsel %vm7326_vm10, %v7306_v18, 0.0 }
 0x764   :  { %v7128_v47 = vld [vmem:[#allocation6 + $0x60] sm:$0x1f]  ;;  %v7329_v30 = vadd.f32 %v7328_v34, %v7327_v29 }
 0x765   :  { %7061 = vst [vmem:[#allocation6 + $0x80] sm:$0xfe] %v7058_v13  ;;  %v7138_v59 = vmul.f32 %v7128_v47, %v13250_v55  ;;  %v7182_v44 = vld [vmem:[#allocation6 + $0x60] sm:$0x7c]  ;;  %v7280_v15 = vld [vmem:[#allocation6 + $0x70] sm:$0x1] }
 0x766   :  { %7062 = vst [vmem:[#allocation6 + $0x90] sm:$0x1] %v7058_v13  ;;  %v7278_v60 = vld [vmem:[#allocation6 + $0x60] sm:$0xf0]  ;;  %v7222_v9 = vmul.f32 %v13274_v6, %v7182_v44  ;;  %v7320_v51 = vmul.f32 %v13281_v5, %v7280_v15  ;;  %v7331_v46 = vadd.f32 %v7330_v52, %v7329_v30 }
 0x767   :  { %v7148_v8 = vsel %vm7142_vm7, %v7138_v59, 0.0  ;;  %v7318_v20 = vmul.f32 %v13281_v5, %v7278_v60  ;;  %v7394_v63 = vld [vmem:[#allocation6 + $0x60] sm:$0x1f]  ;;  %v7347_v59 = vsel %vm7346_vm3, %v7308_v0, 0.0  ;;  %v7348_v60 = vsel %vm7346_vm3, %v7312_v41, 0.0 }
 0x768   :  { %v6967_v10 = vpop.f32.mrf.mxu1  ;;  %v7149_v58 = vadd.f32 %v7148_v8, %v7147_v45  ;;  %v7232_v57 = vsel %vm7226_vm8, %v7222_v9, 0.0  ;;  %v7352_v41 = vsel %vm7346_vm3, %v7320_v51, 0.0  ;;  %v7444_v29 = vld [vmem:[#allocation6 + $0x40] sm:$0x7c] }
 0x769   :  { %v6914_v40 = vpop.f32.mrf.mxu0  ;;  %v6968_v62 = vadd.f32 %v6967_v10, %v6911_v53  ;;  %v7233_v13 = vadd.f32 %v7232_v57, %v7231_v61  ;;  %v7404_v53 = vmul.f32 %v7394_v63, %v13188_v12 }
 0x76a   :  { %v6915_v4 = vadd.f32 %v6914_v40, %v6838_v28  ;;  %v7332_v28 = vsel %vm7326_vm10, %v7318_v20, 0.0  ;;  %v7349_v40 = vadd.f32 %v7348_v60, %v7347_v59 }
 0x76b   :  { %v7069_v2 = vrot.slane %v6968_v62, 7  ;;  %v7333_v9 = vadd.f32 %v7332_v28, %v7331_v46  ;;  %v7350_v62 = vsel %vm7346_vm3, %v7316_v27, 0.0  ;;  %v7412_v28 = vsel %vm7142_vm7, %v7402_v56, 0.0 }
 0x76c   :  { %v7130_v50 = vld [vmem:[#allocation6 + $0x80] sm:$0x1f]  ;;  %v7351_v63 = vadd.f32 %v7350_v62, %v7349_v40 }
 0x76d   :  { %v7184_v48 = vld [vmem:[#allocation6 + $0x80] sm:$0x7c]  ;;  %7072 = vst [vmem:[#allocation6 + $0xa0] sm:$0xfe] %v7069_v2  ;;  %v7140_v26 = vmul.f32 %v7130_v50, %v13270_v22  ;;  %v7284_v37 = vld [vmem:[#allocation6 + $0x90] sm:$0x1] }
 0x76e   :  { %v7282_v33 = vld [vmem:[#allocation6 + $0x80] sm:$0xf0]  ;;  %v7224_v47 = vmul.f32 %v13285_v21, %v7184_v48  ;;  %7073 = vst [vmem:[#allocation6 + $0xb0] sm:$0x1] %v7069_v2  ;;  %v7324_v10 = vmul.f32 %v13291_v23, %v7284_v37  ;;  %v7353_v37 = vadd.f32 %v7352_v41, %v7351_v63 }
 0x76f   :  { %v7322_v36 = vmul.f32 %v13291_v23, %v7282_v33  ;;  %v7150_v45 = vsel %vm7142_vm7, %v7140_v26, 0.0  ;;  %v7396_v7 = vld [vmem:[#allocation6 + $0x80] sm:$0x1f]  ;;  %v7413_v26 = vsel %vm7142_vm7, %v7404_v53, 0.0 }
 0x770   :  { %v7234_v44 = vsel %vm7226_vm8, %v7224_v47, 0.0  ;;  %v6971_v8 = vpop.f32.mrf.mxu1  ;;  %v7151_v18 = vadd.f32 %v7150_v45, %v7149_v58  ;;  %v7406_v50 = vmul.f32 %v7396_v7, %v13217_v19  ;;  %v7446_v48 = vld [vmem:[#allocation6 + $0x60] sm:$0x7c]  ;;  %v7354_v33 = vsel %vm7346_vm3, %v7324_v10, 0.0 }
 0x771   :  { %v7334_v61 = vsel %vm7326_vm10, %v7322_v36, 0.0  ;;  %v7235_v39 = vadd.f32 %v7234_v44, %v7233_v13  ;;  %v6918_v15 = vpop.f32.mrf.mxu0  ;;  %v6972_v0 = vadd.f32 %v6971_v8, %v6915_v4  ;;  %v7448_v13 = vld [vmem:[#allocation6 + $0x80] sm:$0x7c]  ;;  %v7456_v59 = vmul.f32 %v7446_v48, %v13201_v1 }
 0x772   :  { %v7162_v57 = vsel %vm7142_vm7, %v7151_v18, 0.0  ;;  %v7335_v2 = vadd.f32 %v7334_v61, %v7333_v9  ;;  %v6919_v4 = vadd.f32 %v6918_v15, %v13263_v14  ;;  %v7454_v14 = vmul.f32 %v7444_v29, %v13198_v42 }
 0x773   :  { %v7248_v20 = vrot.slane %v7235_v39, 2  ;;  %v7080_v58 = vrot.slane %v6972_v0, 7  ;;  %v7163_v34 = vrot.slane %v7162_v57, 4  ;;  %v7355_v44 = vadd.f32 %v7354_v33, %v7353_v37 }
 0x774   :  { %v7398_v30 = vld [vmem:[#allocation6 + $0xa0] sm:$0x1f]  ;;  %v7370_v46 = vrot.slane %v7335_v2, 4  ;;  %v7415_v53 = vsel %vm7142_vm7, %v7406_v50, 0.0  ;;  %v7414_v60 = vadd.f32 %v7413_v26, %v7412_v28  ;;  %v7458_v18 = vmul.f32 %v7448_v13, %v13231_v35 }
 0x775   :  { %v7252_v27 = vsel %vm7142_vm7, %v7248_v20, 0.0  ;;  %7083 = vst [vmem:[#allocation6 + $0xc0] sm:$0xfe] %v7080_v58  ;;  %v7164_v47 = vadd.f32 %v7163_v34, %v7162_v57  ;;  %v7408_v36 = vmul.f32 %v7398_v30, %v13250_v55  ;;  %v7450_v52 = vld [vmem:[#allocation6 + $0xa0] sm:$0x7c]  ;;  %v7371_v0 = vrot.slane %v7355_v44, 4 }
 0x776   :  { %v7253_v51 = vrot.slane %v7252_v27, 4  ;;  %7084 = vst [vmem:[#allocation6 + $0xd0] sm:$0x1] %v7080_v58  ;;  %v7460_v39 = vmul.f32 %v7450_v52, %v13274_v6  ;;  %v7416_v40 = vadd.f32 %v7415_v53, %v7414_v60  ;;  %v7464_v62 = vsel %vm7226_vm8, %v7454_v14, 0.0  ;;  %v7502_v58 = vld [vmem:[#allocation6 + $0x40] sm:$0xf0] }
 0x777   :  { %v7165_v24 = vrot.slane %v7164_v47, 2  ;;  %v7417_v8 = vsel %vm7142_vm7, %v7408_v36, 0.0  ;;  %v7465_v56 = vsel %vm7226_vm8, %v7456_v59, 0.0  ;;  %v7467_v57 = vsel %vm7226_vm8, %v7458_v18, 0.0  ;;  %v7506_v34 = vld [vmem:[#allocation6 + $0x60] sm:$0xf0] }
 0x778   :  { %v7254_v45 = vadd.f32 %v7253_v51, %v7252_v27  ;;  %v6975_v61 = vpop.f32.mrf.mxu1  ;;  %v7372_v29 = vsel %vm7369_vm2, %v7370_v46, %v7371_v0  ;;  %v7810_v27 = vrot.slane %v13245_v32, 4  ;;  %v7418_v26 = vadd.f32 %v7417_v8, %v7416_v40  ;;  %v7510_v51 = vld [vmem:[#allocation6 + $0x80] sm:$0xf0]  ;;  %v7504_v52 = vld [vmem:[#allocation6 + $0x50] sm:$0x1] }
 0x779   :  { %v6922_v10 = vpop.f32.mrf.mxu0  ;;  %v6976_v9 = vadd.f32 %v6975_v61, %v6919_v4  ;;  %v7166_v7 = vadd.f32 %v7165_v24, %v7164_v47  ;;  %v7378_v50 = vsel %vm7142_vm7, %v7372_v29, 0.0  ;;  %v7466_v4 = vadd.f32 %v7465_v56, %v7464_v62  ;;  %v7508_v46 = vld [vmem:[#allocation6 + $0x70] sm:$0x1]  ;;  %v7514_v44 = vld [vmem:[#allocation6 + $0xa0] sm:$0xf0] }
 0x77a   :  { %v7255_v15 = vrot.slane %v7254_v45, 2  ;;  %v6923_v63 = vadd.f32 %v6922_v10, %v13265_v16  ;;  %v7379_v33 = vrot.slane %v7378_v50, 4  ;;  %v7469_v47 = vsel %vm7226_vm8, %v7460_v39, 0.0  ;;  %v7516_v39 = vld [vmem:[#allocation6 + $0xb0] sm:$0x1] }
 0x77b   :  { %v7091_v20 = vrot.slane %v6976_v9, 7  ;;  %v7167_v2 = vrot.slane %v7166_v7, 1  ;;  %v7468_v36 = vadd.f32 %v7467_v57, %v7466_v4  ;;  %v7522_v28 = vmul.f32 %v7502_v58, %v13255_v25 }
 0x77c   :  { %v7256_v41 = vadd.f32 %v7255_v15, %v7254_v45  ;;  %v7400_v48 = vld [vmem:[#allocation6 + $0xc0] sm:$0x1f]  ;;  %v7380_v59 = vadd.f32 %v7379_v33, %v7378_v50  ;;  %v7512_v45 = vld [vmem:[#allocation6 + $0x90] sm:$0x1]  ;;  %v7526_v53 = vmul.f32 %v7506_v34, %v13259_v38  ;;  %v7530_v9 = vmul.f32 %v7510_v51, %v13278_v3 }
 0x77d   :  { %v7452_v13 = vld [vmem:[#allocation6 + $0xc0] sm:$0x7c]  ;;  %7094 = vst [vmem:[#allocation6 + $0xe0] sm:$0xfe] %v7091_v20  ;;  %v7410_v30 = vmul.f32 %v7400_v48, %v13270_v22  ;;  %v13339_v37 = vadd.f32 %v7167_v2, %v7166_v7  ;;  %v7470_v8 = vadd.f32 %v7469_v47, %v7468_v36  ;;  %v7524_v0 = vmul.f32 %v7504_v52, %v13255_v25  ;;  %v7520_v58 = vld [vmem:[#allocation6 + $0xd0] sm:$0x1] }
 0x77e   :  { %7095 = vst [vmem:[#allocation6 + $0xf0] sm:$0x1] %v7091_v20  ;;  %v7462_v16 = vmul.f32 %v7452_v13, %v13285_v21  ;;  %v7257_v14 = vrot.slane %v7256_v41, 1  ;;  %v7518_v10 = vld [vmem:[#allocation6 + $0xc0] sm:$0xf0]  ;;  %v7381_v15 = vrot.slane %v7380_v59, 2  ;;  %v7528_v40 = vmul.f32 %v7508_v46, %v13259_v38 }
 0x77f   :  { %v7419_v24 = vsel %vm7142_vm7, %v7410_v30, 0.0  ;;  %v7532_v57 = vmul.f32 %v7512_v45, %v13278_v3  ;;  %v7534_v20 = vmul.f32 %v7514_v44, %v13281_v5  ;;  %v7536_v34 = vmul.f32 %v7516_v39, %v13281_v5  ;;  %v7604_v51 = vld [vmem:[#allocation6 + $0x80] sm:$0x1f] }
 0x780   :  { %v6979_v61 = vpop.f32.mrf.mxu1  ;;  %v7420_v60 = vadd.f32 %v7419_v24, %v7418_v26  ;;  %v7471_v18 = vsel %vm7226_vm8, %v7462_v16, 0.0  ;;  %v7538_v50 = vmul.f32 %v7518_v10, %v13291_v23  ;;  %v7542_v48 = vsel %vm7326_vm10, %v7522_v28, 0.0  ;;  %v7606_v16 = vld [vmem:[#allocation6 + $0xa0] sm:$0x1f] }
 0x781   :  { %v6980_v7 = vadd.f32 %v6979_v61, %v6923_v63  ;;  %v7472_v56 = vadd.f32 %v7471_v18, %v7470_v8  ;;  %v7543_v13 = vsel %vm7326_vm10, %v7526_v53, 0.0  ;;  %v7545_v4 = vsel %vm7326_vm10, %v7530_v9, 0.0 }
 0x782   :  { %v7430_v62 = vsel %vm7142_vm7, %v7420_v60, 0.0  ;;  %v13357_v33 = vadd.f32 %v7257_v14, %v7256_v41  ;;  %v7382_v30 = vadd.f32 %v7381_v15, %v7380_v59  ;;  %v7544_v47 = vadd.f32 %v7543_v13, %v7542_v48  ;;  %v7608_v14 = vld [vmem:[#allocation6 + $0xc0] sm:$0x1f] }
 0x783   :  { %v7102_v2 = vrot.slane %v6980_v7, 7  ;;  %v7431_v29 = vrot.slane %v7430_v62, 4  ;;  %v7484_v63 = vrot.slane %v7472_v56, 2  ;;  %v7540_v52 = vmul.f32 %v7520_v58, %v13291_v23  ;;  %v7658_v56 = vld [vmem:[#allocation6 + $0xa0] sm:$0x7c] }
 0x784   :  { %v7547_v46 = vsel %vm7326_vm10, %v7534_v20, 0.0  ;;  %v7561_v28 = vsel %vm7346_vm3, %v7528_v40, 0.0  ;;  %v7546_v44 = vadd.f32 %v7545_v4, %v7544_v47  ;;  %v7560_v41 = vsel %vm7346_vm3, %v7524_v0, 0.0  ;;  %v7610_v8 = vld [vmem:[#allocation6 + $0xe0] sm:$0x1f] }
 0x785   :  { %7105 = vst [vmem:[#allocation6 + $0x100] sm:$0xfe] %v7102_v2  ;;  %v7432_v26 = vadd.f32 %v7431_v29, %v7430_v62  ;;  %v7488_v36 = vsel %vm7142_vm7, %v7484_v63, 0.0  ;;  %v7549_v59 = vsel %vm7326_vm10, %v7538_v50, 0.0  ;;  %v7562_v53 = vadd.f32 %v7561_v28, %v7560_v41  ;;  %v7656_v62 = vld [vmem:[#allocation6 + $0x80] sm:$0x7c] }
 0x786   :  { %7106 = vst [vmem:[#allocation6 + $0x110] sm:$0x1] %v7102_v2  ;;  %v7489_v45 = vrot.slane %v7488_v36, 4  ;;  %v7563_v61 = vsel %vm7346_vm3, %v7532_v57, 0.0  ;;  %v7565_v60 = vsel %vm7346_vm3, %v7536_v34, 0.0  ;;  %v7548_v10 = vadd.f32 %v7547_v46, %v7546_v44 }
 0x787   :  { %v7433_v24 = vrot.slane %v7432_v26, 2  ;;  %v7614_v9 = vmul.f32 %v7604_v51, %v13183_v54  ;;  %v7383_v7 = vrot.slane %v7382_v30, 1  ;;  %v7564_v15 = vadd.f32 %v7563_v61, %v7562_v53  ;;  %v7660_v58 = vld [vmem:[#allocation6 + $0xc0] sm:$0x7c] }
 0x788   :  { %v7490_v39 = vadd.f32 %v7489_v45, %v7488_v36  ;;  %v7616_v40 = vmul.f32 %v7606_v16, %v13188_v12  ;;  %v7618_v0 = vmul.f32 %v7608_v14, %v13217_v19  ;;  %v7550_v2 = vadd.f32 %v7549_v59, %v7548_v10  ;;  %v7662_v34 = vld [vmem:[#allocation6 + $0xe0] sm:$0x7c]  ;;  %v7716_v59 = vld [vmem:[#allocation6 + $0x90] sm:$0x1] }
 0x789   :  { %v7434_v18 = vadd.f32 %v7433_v24, %v7432_v26  ;;  %v7567_v57 = vsel %vm7346_vm3, %v7540_v52, 0.0  ;;  %v7620_v29 = vmul.f32 %v7610_v8, %v13250_v55  ;;  %v7566_v63 = vadd.f32 %v7565_v60, %v7564_v15  ;;  %v7714_v14 = vld [vmem:[#allocation6 + $0x80] sm:$0xf0]  ;;  %v7724_v15 = vld [vmem:[#allocation6 + $0xd0] sm:$0x1] }
 0x78a   :  { %v7491_v20 = vrot.slane %v7490_v39, 2  ;;  %v7624_v54 = vsel %vm7142_vm7, %v7614_v9, 0.0  ;;  %v7625_v13 = vsel %vm7142_vm7, %v7616_v40, 0.0  ;;  %v7582_v19 = vrot.slane %v7550_v2, 4  ;;  %v7718_v61 = vld [vmem:[#allocation6 + $0xa0] sm:$0xf0] }
 0x78b   :  { %v7435_v50 = vrot.slane %v7434_v18, 1  ;;  %v7627_v26 = vsel %vm7142_vm7, %v7618_v0, 0.0  ;;  %v7568_v51 = vadd.f32 %v7567_v57, %v7566_v63  ;;  %v7626_v16 = vadd.f32 %v7625_v13, %v7624_v54 }
 0x78c   :  { %v7612_v48 = vld [vmem:[#allocation6 + $0x100] sm:$0x1f]  ;;  %v13374_v12 = vadd.f32 %v7491_v20, %v7490_v39  ;;  %v7666_v55 = vmul.f32 %v7656_v62, %v13198_v42  ;;  %v7668_v36 = vmul.f32 %v7658_v56, %v13201_v1  ;;  %v7384_v52 = vadd.f32 %v7383_v7, %v7382_v30  ;;  %v7728_v20 = vld [vmem:[#allocation6 + $0xf0] sm:$0x1] }
 0x78d   :  { %v7622_v4 = vmul.f32 %v7612_v48, %v13270_v22  ;;  %v7664_v47 = vld [vmem:[#allocation6 + $0x100] sm:$0x7c]  ;;  %v7629_v46 = vsel %vm7142_vm7, %v7620_v29, 0.0  ;;  %v7670_v28 = vmul.f32 %v7660_v58, %v13231_v35  ;;  %v7672_v24 = vmul.f32 %v7662_v34, %v13274_v6  ;;  %v7732_v58 = vld [vmem:[#allocation6 + $0x110] sm:$0x1] }
 0x78e   :  { %v13383_v45 = vadd.f32 %v7435_v50, %v7434_v18  ;;  %v7583_v44 = vrot.slane %v7568_v51, 4  ;;  %v7628_v22 = vadd.f32 %v7627_v26, %v7626_v16  ;;  %v7674_v41 = vmul.f32 %v7664_v47, %v13285_v21  ;;  %v7720_v18 = vld [vmem:[#allocation6 + $0xb0] sm:$0x1]  ;;  %v7722_v39 = vld [vmem:[#allocation6 + $0xc0] sm:$0xf0] }
 0x78f   :  { %v7631_v53 = vsel %vm7142_vm7, %v7622_v4, 0.0  ;;  %v7676_v42 = vsel %vm7226_vm8, %v7666_v55, 0.0  ;;  %v7677_v1 = vsel %vm7226_vm8, %v7668_v36, 0.0  ;;  %v7679_v30 = vsel %vm7226_vm8, %v7670_v28, 0.0  ;;  %v7726_v56 = vld [vmem:[#allocation6 + $0xe0] sm:$0xf0] }
 0x790   :  { %v7493_v35 = vrot.slane %v13374_v12, 1  ;;  %v7584_v6 = vsel %vm7369_vm2, %v7582_v19, %v7583_v44  ;;  %v7630_v60 = vadd.f32 %v7629_v46, %v7628_v22  ;;  %v7678_v8 = vadd.f32 %v7677_v1, %v7676_v42  ;;  %v7730_v29 = vld [vmem:[#allocation6 + $0x100] sm:$0xf0] }
 0x791   :  { %v7590_v21 = vsel %vm7142_vm7, %v7584_v6, 0.0  ;;  %v7681_v10 = vsel %vm7226_vm8, %v7672_v24, 0.0  ;;  %v7683_v9 = vsel %vm7226_vm8, %v7674_v41, 0.0  ;;  %v7816_v7 = vsel %vm7346_vm3, %v13339_v37, %v13357_v33 }
 0x792   :  { %v7591_v40 = vrot.slane %v7590_v21, 4  ;;  %v7632_v0 = vadd.f32 %v7631_v53, %v7630_v60  ;;  %v7680_v62 = vadd.f32 %v7679_v30, %v7678_v8  ;;  %v7734_v2 = vmul.f32 %v7714_v14, %v13255_v25 }
 0x793   :  { %v7819_v57 = vsel %vm7818_vm6, %v7816_v7, %v7384_v52  ;;  %v7736_v34 = vmul.f32 %v7716_v59, %v13255_v25  ;;  %v7738_v50 = vmul.f32 %v7718_v61, %v13259_v38  ;;  %v7742_v63 = vmul.f32 %v7722_v39, %v13278_v3 }
 0x794   :  { %v7592_v48 = vadd.f32 %v7591_v40, %v7590_v21  ;;  %v7642_v37 = vsel %vm7142_vm7, %v7632_v0, 0.0  ;;  %v7682_v33 = vadd.f32 %v7681_v10, %v7680_v62  ;;  %v7740_v54 = vmul.f32 %v7720_v18, %v13259_v38 }
 0x795   :  { %v7643_v13 = vrot.slane %v7642_v37, 4  ;;  %v7744_v19 = vmul.f32 %v7724_v15, %v13278_v3  ;;  %v7746_v4 = vmul.f32 %v7726_v56, %v13281_v5  ;;  %v7748_v26 = vmul.f32 %v7728_v20, %v13281_v5 }
 0x796   :  { %v7593_v47 = vrot.slane %v7592_v48, 2  ;;  %v7684_v51 = vadd.f32 %v7683_v9, %v7682_v33  ;;  %v7750_v25 = vmul.f32 %v7730_v29, %v13291_v23  ;;  %v7752_v16 = vmul.f32 %v7732_v58, %v13291_v23 }
 0x797   :  { %v7644_v55 = vadd.f32 %v7643_v13, %v7642_v37  ;;  %v7754_v36 = vsel %vm7326_vm10, %v7734_v2, 0.0  ;;  %v7755_v52 = vsel %vm7326_vm10, %v7738_v50, 0.0  ;;  %v7757_v38 = vsel %vm7326_vm10, %v7742_v63, 0.0 }
 0x798   :  { %v7594_v46 = vadd.f32 %v7593_v47, %v7592_v48  ;;  %v7696_v28 = vrot.slane %v7684_v51, 2  ;;  %v7756_v3 = vadd.f32 %v7755_v52, %v7754_v36  ;;  %v7759_v24 = vsel %vm7326_vm10, %v7746_v4, 0.0 }
 0x799   :  { %v7645_v44 = vrot.slane %v7644_v55, 2  ;;  %v7761_v5 = vsel %vm7326_vm10, %v7750_v25, 0.0  ;;  %v7772_v22 = vsel %vm7346_vm3, %v7736_v34, 0.0  ;;  %v7773_v41 = vsel %vm7346_vm3, %v7740_v54, 0.0 }
 0x79a   :  { %v7595_v23 = vrot.slane %v7594_v46, 1  ;;  %v7700_v14 = vsel %vm7142_vm7, %v7696_v28, 0.0  ;;  %v7758_v59 = vadd.f32 %v7757_v38, %v7756_v3  ;;  %v7774_v53 = vadd.f32 %v7773_v41, %v7772_v22 }
 0x79b   :  { %v7646_v42 = vadd.f32 %v7645_v44, %v7644_v55  ;;  %v7701_v1 = vrot.slane %v7700_v14, 4  ;;  %v7775_v30 = vsel %vm7346_vm3, %v7744_v19, 0.0  ;;  %v7777_v61 = vsel %vm7346_vm3, %v7748_v26, 0.0 }
 0x79c   :  { %v7494_v6 = vadd.f32 %v7493_v35, %v13374_v12  ;;  %v7821_v60 = vsel %vm101_vm0, %v7819_v57, %v13383_v45  ;;  %v7760_v8 = vadd.f32 %v7759_v24, %v7758_v59  ;;  %v7776_v18 = vadd.f32 %v7775_v30, %v7774_v53 }
 0x79d   :  { %v7647_v39 = vrot.slane %v7646_v42, 1  ;;  %v7702_v21 = vadd.f32 %v7701_v1, %v7700_v14  ;;  %v7779_v10 = vsel %vm7346_vm3, %v7752_v16, 0.0  ;;  %v15_v9 = vstv %s13463_s9 }
 0x79e   :  { %v7762_v7 = vadd.f32 %v7761_v5, %v7760_v8  ;;  %v7778_v15 = vadd.f32 %v7777_v61, %v7776_v18  ;;  %v7811_v40 = vadd.f32 %v7810_v27, %v13245_v32  ;;  %16 = vst [vmem:[#allocation7] sm:$0x1] %v15_v9  ;;  %v7596_v12 = vadd.f32 %v7595_v23, %v7594_v46 }
 0x79f   :  { %v7703_v35 = vrot.slane %v7702_v21, 2  ;;  %v7713_v45 = vadd.f32 %v7712_v31, %v13225_v17  ;;  %v7826_v0 = vsel %vm7142_vm7, %v13208_v11, %v13239_v43  ;;  %v7648_v62 = vadd.f32 %v7647_v39, %v7646_v42 }
 0x7a0   :  { %v7823_v56 = vsel %vm7369_vm2, %v7821_v60, %v7494_v6  ;;  %v7780_v20 = vadd.f32 %v7779_v10, %v7778_v15  ;;  %v7794_v2 = vrot.slane %v7762_v7, 4  ;;  %v7828_v32 = vsel %vm1112_vm5, %v7826_v0, %v13241_v49 }
 0x7a1   :  { %v7704_v57 = vadd.f32 %v7703_v35, %v7702_v21  ;;  %v7812_v29 = vrot.slane %v7811_v40, 2  ;;  %v7825_v34 = vsel %vm7142_vm7, %v7823_v56, %v7596_v12  ;;  %v7830_v31 = vsel %vm1103_vm4, %v7828_v32, %v7713_v45 }
 0x7a2   :  { %v7795_v27 = vrot.slane %v7780_v20, 4  ;;  %v7827_v17 = vsel %vm1112_vm5, %v7825_v34, %v7648_v62  ;;  %v7831_v49 = vsel %vm3190_vm9, %v7830_v31, 0.0  ;;  %vm7848_vm0 = vcmask 7168  }
 0x7a3   :  { %v7705_v58 = vrot.slane %v7704_v57, 1  ;;  %v7813_v48 = vadd.f32 %v7812_v29, %v7811_v40 }
 0x7a4   :  { %v7796_v11 = vsel %vm7369_vm2, %v7794_v2, %v7795_v27 }
 0x7a5   :  { %v7706_v43 = vadd.f32 %v7705_v58, %v7704_v57  ;;  %v7802_v50 = vsel %vm7142_vm7, %v7796_v11, 0.0  ;;  %v7814_v19 = vrot.slane %v7813_v48, 1  ;;  %v7895_v36 = vld [vmem:[#allocation7] ss:$0 sm:$0xff] }
 0x7a6   :  { %v7803_v63 = vrot.slane %v7802_v50, 4 }
 0x7a7   :  { %v7829_v37 = vsel %vm1103_vm4, %v7827_v17, %v7706_v43  ;;  %v7815_v47 = vadd.f32 %v7814_v19, %v7813_v48  ;;  %vm7850_vm4 = vcmask 0  }
 0x7a8   :  { %v7832_v33 = vadd.f32 %v7831_v49, %v7829_v37  ;;  %v7804_v54 = vadd.f32 %v7803_v63, %v7802_v50 }
 0x7a9   :  { %v7836_v16 = vsel %vm7033_vm12, %v7815_v47, 0.0 }
 0x7aa   :  { %7833 = vadd.xlane.f32.xlu2 %v7832_v33  ;;  %v7805_v13 = vrot.slane %v7804_v54, 2 }
 0x7ac   :  { %v7806_v4 = vadd.f32 %v7805_v13, %v7804_v54 }
 0x7ae   :  { %v7807_v26 = vrot.slane %v7806_v4, 1 }
 0x7b0   :  { %v7808_v51 = vadd.f32 %v7807_v26, %v7806_v4 }
 0x7b2   :  { %v7835_v25 = vsel %vm7346_vm3, %v7808_v51, 0.0 }
 0x7b3   :  { %v7837_v55 = vadd.f32 %v7836_v16, %v7835_v25 }
 0x7b5   :  { %7838 = vadd.xlane.f32.xlu0 %v7837_v55 }
 0x81d   :  { %v7834_v52 = vpop.xlane.xlu2 %7833 }
 0x81e   :  { %v7844_v38 = vadd.f32 %v7895_v36, %v7834_v52 }
 0x820   :  { %v7846_v46 = vmax.f32 %v7844_v38, 0.0 }
 0x822   :  { %7849 = vst.msk [vmem:[%s13464_s10] sm:$0xff] %vm7848_vm0, %v7846_v46 }
 0x828   :  { %v7839_v28 = vpop.xlane.xlu0 %7838 }
 0x829   :  { %v7845_v3 = vadd.f32 %v7895_v36, %v7839_v28 }
 0x82b   :  { %v7847_v24 = vmax.f32 %v7845_v3, 0.0 }
 0x82d   :  { %7851 = vst.msk [vmem:[%s13464_s10 + $0x8] sm:$0x1] %vm7850_vm4, %v7847_v24 }

</bundles_post_ra>
